<compile_context>
chip_gen: v7x
topology: tpu7x:2x2x1
jax: 0.10.0
libtpu: 0.0.40
codegen_flags: <defaults>
</compile_context>

<pallas_src>
import jax
import jax.numpy as jnp
from jax.experimental import pallas as pl
from jax.experimental.pallas import tpu as pltpu


# ---------------- Pallas kernels ----------------

def _conv_relu_pool_kernel(w_ref, b_ref, cols_ref, o_ref):
    """o = relu( max_corner(W @ cols[corner]) + b ); cols_ref is (4, K, bn)."""
    w = w_ref[...]                                              # (OC, K)
    y = jnp.dot(w, cols_ref[0], preferred_element_type=jnp.float32)
    for c in range(1, cols_ref.shape[0]):                       # running max
        y = jnp.maximum(
            y, jnp.dot(w, cols_ref[c], preferred_element_type=jnp.float32))
    o_ref[...] = jnp.maximum(y + b_ref[...], 0.0)


def _conv2_mlp_kernel(cols_ref, w2_ref, b2_ref, w1_ref, b1_ref,
                      w2f_ref, b2f_ref, w3f_ref, b3f_ref, o_ref):
    """Fused conv2(+ReLU+pool) -> fc1(+ReLU) -> fc2(+ReLU) -> fc3.

    cols_ref: (4*N, K2, P2) pool-corner patch matrices (corner-major, then n).
    w1_ref:   (OC2, P2, 120) fc1 weight split into per-conv2-channel slabs,
              so the NCHW flatten needs no in-kernel transpose/reshape.
    """
    N = o_ref.shape[0]
    n_corners = cols_ref.shape[0] // N
    oc2 = w2_ref.shape[0]
    w2 = w2_ref[...]                                            # (OC2, K2)
    b2 = b2_ref[...]                                            # (OC2, 1)

    acts = []
    for n in range(N):
        y = jnp.dot(w2, cols_ref[n], preferred_element_type=jnp.float32)
        for ci in range(1, n_corners):                          # running max
            y = jnp.maximum(
                y, jnp.dot(w2, cols_ref[ci * N + n],
                           preferred_element_type=jnp.float32))
        acts.append(jnp.maximum(y + b2, 0.0))                   # (OC2, P2)
    a2 = jnp.stack(acts, axis=1)                                # (OC2, N, P2)

    # fc1: h[n, o] = sum_{c, p} a2[c, n, p] * w1[c, p, o]
    h = jnp.dot(a2[0], w1_ref[0], preferred_element_type=jnp.float32)
    for c in range(1, oc2):
        h = h + jnp.dot(a2[c], w1_ref[c], preferred_element_type=jnp.float32)
    h = jnp.maximum(h + b1_ref[...], 0.0)                       # (N, 120)
    h = jnp.maximum(
        jnp.dot(h, w2f_ref[...], preferred_element_type=jnp.float32)
        + b2f_ref[...], 0.0)                                    # (N, 84)
    o_ref[...] = (jnp.dot(h, w3f_ref[...], preferred_element_type=jnp.float32)
                  + b3f_ref[...])                               # (N, 13)


# ---------------- im2col glue (pool-corner patch matrices) ----------------

def _pool_corner_stacks(x_cf, k):
    """x_cf: (C, N, H, W).  For each of the 4 pool corners, the im2col patch
    stack (C, k*k, N, OHp, OWp) of a valid stride-1 conv followed by 2x2/2
    max-pool.  Conv output sizes must be even (true for this net; PyTorch
    MaxPool2d would floor otherwise)."""
    C, N, H, W = x_cf.shape
    OH, OW = H - k + 1, W - k + 1
    assert OH % 2 == 0 and OW % 2 == 0, (OH, OW)
    OHp, OWp = OH // 2, OW // 2
    stacks = []
    for di in range(2):
        for dj in range(2):
            sl = [x_cf[:, :, di + kh: di + kh + 2 * OHp: 2,
                             dj + kw: dj + kw + 2 * OWp: 2]
                  for kh in range(k) for kw in range(k)]
            stacks.append(jnp.stack(sl, axis=1))     # (C, k*k, N, OHp, OWp)
    return stacks, (C, N, OHp, OWp)


# ---------------- Wrappers ----------------

def conv_relu_pool_pallas(x_cf, weight, bias, *, block_n=None):
    """Fused valid conv (stride 1) + ReLU + 2x2/2 max-pool.

    x_cf (C, N, H, W) channel-first -> (OC, N, OHp, OWp) channel-first.
    block_n: optional 128-multiple lane block (e.g. 1152 to shard the lane
    axis across the two TensorCores of v7x); None = one lane-dense block
    (best on single-TC v5e / v6e)."""
    OC, C, k, _ = weight.shape
    stacks, (_, N, OHp, OWp) = _pool_corner_stacks(x_cf, k)
    K = C * k * k
    Mp = N * OHp * OWp
    cols = jnp.stack([s.reshape(K, Mp) for s in stacks], axis=0)   # (4, K, Mp)

    if block_n is None:
        bn = ((Mp + 127) // 128) * 128
    else:
        assert block_n % 128 == 0, "lane blocks must be 128-aligned"
        bn = block_n
    mp_pad = ((Mp + bn - 1) // bn) * bn
    if mp_pad != Mp:                      # zero-pad -> well-defined lanes,
        cols = jnp.pad(cols, ((0, 0), (0, 0), (0, mp_pad - Mp)))   # unmasked vst

    out = pl.pallas_call(
        _conv_relu_pool_kernel,
        out_shape=jax.ShapeDtypeStruct((OC, mp_pad), jnp.float32),
        grid=(mp_pad // bn,),
        in_specs=[pl.BlockSpec((OC, K), lambda j: (0, 0)),
                  pl.BlockSpec((OC, 1), lambda j: (0, 0)),
                  pl.BlockSpec((4, K, bn), lambda j: (0, 0, j))],
        out_specs=pl.BlockSpec((OC, bn), lambda j: (0, j)),
        compiler_params=pltpu.CompilerParams(
            dimension_semantics=("parallel",)),
    )(weight.reshape(OC, K), bias.reshape(OC, 1), cols)
    return out[:, :Mp].reshape(OC, N, OHp, OWp)


def conv2_mlp_pallas(a_cf, w2, b2, w1, b1, w2f, b2f, w3f, b3f):
    """conv2 + ReLU + pool fused with the 3-layer MLP.  a_cf: (C, N, H, W)."""
    OC2, C2, k, _ = w2.shape
    stacks, (_, N, OHp, OWp) = _pool_corner_stacks(a_cf, k)
    K2 = C2 * k * k
    P2 = OHp * OWp
    # (4, N, K2, P2) corner-major then batch -> flatten to (4*N, K2, P2).
    cols = jnp.stack(
        [jnp.transpose(s, (2, 0, 1, 3, 4)).reshape(N, K2, P2) for s in stacks],
        axis=0).reshape(4 * N, K2, P2)
    n_out = w3f.shape[1]
    # grid=() : every operand lives whole in VMEM; fc1_w DMA overlaps the
    # corner DMAs and the conv2 activation never round-trips through HBM.
    return pl.pallas_call(
        _conv2_mlp_kernel,
        out_shape=jax.ShapeDtypeStruct((N, n_out), jnp.float32),
    )(cols, w2.reshape(OC2, K2), b2.reshape(OC2, 1),
      w1, b1.reshape(1, -1), w2f, b2f.reshape(1, -1), w3f, b3f.reshape(1, -1))


# ---------------- Parameters & forward ----------------

def init_params(key):
    def uniform(k, shape, fan_in):
        bound = 1.0 / jnp.sqrt(jnp.float32(fan_in))
        return jax.random.uniform(k, shape, jnp.float32, -bound, bound)
    ks = jax.random.split(key, 10)
    fc1_in = 16 * 22 * 9
    return {
        "conv1_w": uniform(ks[0], (6, 3, 5, 5), 3 * 5 * 5),
        "conv1_b": uniform(ks[1], (6,), 3 * 5 * 5),
        "conv2_w": uniform(ks[2], (16, 6, 5, 5), 6 * 5 * 5),
        "conv2_b": uniform(ks[3], (16,), 6 * 5 * 5),
        # fc1 weight kept as (conv2_channels, pooled_pixels, 120): row index
        # c*198+p of the PyTorch (out, 16*22*9) weight, pre-transposed.
        "fc1_w": uniform(ks[4], (fc1_in, 120), fc1_in).reshape(16, 22 * 9, 120),
        "fc1_b": uniform(ks[5], (120,), fc1_in),
        "fc2_w": uniform(ks[6], (120, 84), 120),     # pre-transposed (in, out)
        "fc2_b": uniform(ks[7], (84,), 120),
        "fc3_w": uniform(ks[8], (84, 13), 84),
        "fc3_b": uniform(ks[9], (13,), 84),
    }


def _conv1_lane_block():
    # v7x has 2 TensorCores: two equal lane-dense 1152-wide "parallel" shards
    # (lane axis padded 2112 -> 2304).  v5e/v6e are single-TC: one block.
    try:
        kind = jax.devices()[0].device_kind.lower()
    except Exception:
        return None
    return 1152 if "v7" in kind else None


_CONV1_BLOCK_N = _conv1_lane_block()


def net_forward(params, x):
    # channel-first (C, N, H, W) so the conv stages chain without transposes.
    a = jnp.transpose(x, (1, 0, 2, 3))
    a = conv_relu_pool_pallas(a, params["conv1_w"], params["conv1_b"],
                              block_n=_CONV1_BLOCK_N)          # (6, N, 48, 22)
    return conv2_mlp_pallas(a, params["conv2_w"], params["conv2_b"],
                            params["fc1_w"], params["fc1_b"],
                            params["fc2_w"], params["fc2_b"],
                            params["fc3_w"], params["fc3_b"])  # (N, 13)


# ---------------- Pure-JAX reference (correctness check) ----------------

def net_forward_ref(params, x):
    def conv(x, w, b):
        y = jax.lax.conv_general_dilated(
            x, w, window_strides=(1, 1), padding="VALID",
            dimension_numbers=("NCHW", "OIHW", "NCHW"))
        return y + b.reshape(1, -1, 1, 1)

    def pool(x):
        return jax.lax.reduce_window(x, -jnp.inf, jax.lax.max,
                                     (1, 1, 2, 2), (1, 1, 2, 2), "VALID")

    a = pool(jax.nn.relu(conv(x, params["conv1_w"], params["conv1_b"])))
    a = pool(jax.nn.relu(conv(a, params["conv2_w"], params["conv2_b"])))
    a = a.reshape(a.shape[0], -1)
    h = jax.nn.relu(a @ params["fc1_w"].reshape(-1, 120) + params["fc1_b"])
    h = jax.nn.relu(h @ params["fc2_w"] + params["fc2_b"])
    return h @ params["fc3_w"] + params["fc3_b"]


if __name__ == "__main__":
    key = jax.random.PRNGKey(0)
    kp, kx = jax.random.split(key)
    params = init_params(kp)
    # (N=2, C=3, H=100, W=48): conv1 -> 96x44, pool -> 48x22, conv2 -> 44x18,
    # pool -> 22x9, flatten -> 16*22*9 = 3168 = fc1 in_features.
    x = jax.random.normal(kx, (2, 3, 100, 48), jnp.float32)
    out = jax.block_until_ready(jax.jit(net_forward)(params, x))
    assert out.shape == (2, 13), out.shape
    ref = jax.block_until_ready(jax.jit(net_forward_ref)(params, x))
    assert jnp.allclose(out, ref, atol=2e-3, rtol=2e-3), \
        float(jnp.max(jnp.abs(out - ref)))
    print("KERNEL_OK")
</pallas_src>

<mosaic_0001>
module attributes {stable_mosaic.version = 11 : i64} {
  func.func @_conv_relu_pool_kernel(%arg0: i32, %arg1: memref<6x75xf32, #tpu.memory_space<vmem>>, %arg2: memref<6x1xf32, #tpu.memory_space<vmem>>, %arg3: memref<4x75x2176xf32, #tpu.memory_space<vmem>>, %arg4: memref<6x2176xf32, #tpu.memory_space<vmem>>) attributes {dimension_semantics = [#tpu.dimension_semantics<parallel>], iteration_bounds = array<i64: 1>, scalar_prefetch = 0 : i64, scratch_operands = 0 : i64, tpu.core_type = #tpu.core_type<tc>, window_params = [{pipeline_mode = #tpu.pipeline_mode<synchronous>, transform_indices = @transform_0, window_bounds = array<i64: 6, 75>}, {pipeline_mode = #tpu.pipeline_mode<synchronous>, transform_indices = @transform_1, window_bounds = array<i64: 6, 1>}, {transform_indices = @transform_2, window_bounds = array<i64: 4, 75, 2176>}, {transform_indices = @transform_3, window_bounds = array<i64: 6, 2176>}]} {
    %c0 = arith.constant 0 : index
    %c0_0 = arith.constant 0 : index
    %0 = vector.load %arg1[%c0, %c0_0] : memref<6x75xf32, #tpu.memory_space<vmem>>, vector<6x75xf32>
    %c0_1 = arith.constant 0 : index
    %c0_2 = arith.constant 0 : index
    %c0_3 = arith.constant 0 : index
    %1 = vector.load %arg3[%c0_1, %c0_2, %c0_3] : memref<4x75x2176xf32, #tpu.memory_space<vmem>>, vector<1x75x2176xf32>
    %2 = vector.shape_cast %1 : vector<1x75x2176xf32> to vector<75x2176xf32>
    %cst = arith.constant dense<0.000000e+00> : vector<6x2176xf32>
    %3 = tpu.matmul %0, %2, %cst {dimension_numbers = #tpu.dot_dimension_numbers<[1], [0], [0], [1], [0, 0, 1, 1], [], []>} : vector<6x75xf32>, vector<75x2176xf32>, vector<6x2176xf32> -> vector<6x2176xf32>
    %c1 = arith.constant 1 : index
    %c0_4 = arith.constant 0 : index
    %c0_5 = arith.constant 0 : index
    %4 = vector.load %arg3[%c1, %c0_4, %c0_5] : memref<4x75x2176xf32, #tpu.memory_space<vmem>>, vector<1x75x2176xf32>
    %5 = vector.shape_cast %4 : vector<1x75x2176xf32> to vector<75x2176xf32>
    %cst_6 = arith.constant dense<0.000000e+00> : vector<6x2176xf32>
    %6 = tpu.matmul %0, %5, %cst_6 {dimension_numbers = #tpu.dot_dimension_numbers<[1], [0], [0], [1], [0, 0, 1, 1], [], []>} : vector<6x75xf32>, vector<75x2176xf32>, vector<6x2176xf32> -> vector<6x2176xf32>
    %7 = arith.maximumf %3, %6 : vector<6x2176xf32>
    %c2 = arith.constant 2 : index
    %c0_7 = arith.constant 0 : index
    %c0_8 = arith.constant 0 : index
    %8 = vector.load %arg3[%c2, %c0_7, %c0_8] : memref<4x75x2176xf32, #tpu.memory_space<vmem>>, vector<1x75x2176xf32>
    %9 = vector.shape_cast %8 : vector<1x75x2176xf32> to vector<75x2176xf32>
    %cst_9 = arith.constant dense<0.000000e+00> : vector<6x2176xf32>
    %10 = tpu.matmul %0, %9, %cst_9 {dimension_numbers = #tpu.dot_dimension_numbers<[1], [0], [0], [1], [0, 0, 1, 1], [], []>} : vector<6x75xf32>, vector<75x2176xf32>, vector<6x2176xf32> -> vector<6x2176xf32>
    %11 = arith.maximumf %7, %10 : vector<6x2176xf32>
    %c3 = arith.constant 3 : index
    %c0_10 = arith.constant 0 : index
    %c0_11 = arith.constant 0 : index
    %12 = vector.load %arg3[%c3, %c0_10, %c0_11] : memref<4x75x2176xf32, #tpu.memory_space<vmem>>, vector<1x75x2176xf32>
    %13 = vector.shape_cast %12 : vector<1x75x2176xf32> to vector<75x2176xf32>
    %cst_12 = arith.constant dense<0.000000e+00> : vector<6x2176xf32>
    %14 = tpu.matmul %0, %13, %cst_12 {dimension_numbers = #tpu.dot_dimension_numbers<[1], [0], [0], [1], [0, 0, 1, 1], [], []>} : vector<6x75xf32>, vector<75x2176xf32>, vector<6x2176xf32> -> vector<6x2176xf32>
    %15 = arith.maximumf %11, %14 : vector<6x2176xf32>
    %c0_13 = arith.constant 0 : index
    %c0_14 = arith.constant 0 : index
    %16 = vector.load %arg2[%c0_13, %c0_14] : memref<6x1xf32, #tpu.memory_space<vmem>>, vector<6x1xf32>
    %17 = vector.broadcast %16 : vector<6x1xf32> to vector<6x2176xf32>
    %18 = arith.addf %15, %17 : vector<6x2176xf32>
    %cst_15 = arith.constant 0.000000e+00 : f32
    %19 = vector.broadcast %cst_15 : f32 to vector<6x2176xf32>
    %20 = arith.maximumf %18, %19 : vector<6x2176xf32>
    %c0_16 = arith.constant 0 : index
    %c0_17 = arith.constant 0 : index
    %21 = vector.load %arg4[%c0_16, %c0_17] : memref<6x2176xf32, #tpu.memory_space<vmem>>, vector<6x2176xf32>
    tpu.vector_store %arg4[%c0_16, %c0_17], %20 {strides = array<i32>} : memref<6x2176xf32, #tpu.memory_space<vmem>>, vector<6x2176xf32>,
    return
  }
  func.func @transform_0(%arg0: i32) -> (i32, i32) {
    %c0_i32 = arith.constant 0 : i32
    %c0_i32_0 = arith.constant 0 : i32
    %c0_i32_1 = arith.constant 0 : i32
    return %c0_i32, %c0_i32_0 : i32, i32
  }
  func.func @transform_1(%arg0: i32) -> (i32, i32) {
    %c0_i32 = arith.constant 0 : i32
    %c0_i32_0 = arith.constant 0 : i32
    %c0_i32_1 = arith.constant 0 : i32
    return %c0_i32, %c0_i32_0 : i32, i32
  }
  func.func @transform_2(%arg0: i32) -> (i32, i32, i32) {
    %c0_i32 = arith.constant 0 : i32
    %c0_i32_0 = arith.constant 0 : i32
    %c0_i32_1 = arith.constant 0 : i32
    return %c0_i32, %c0_i32_0, %arg0 : i32, i32, i32
  }
  func.func @transform_3(%arg0: i32) -> (i32, i32) {
    %c0_i32 = arith.constant 0 : i32
    %c0_i32_0 = arith.constant 0 : i32
    return %c0_i32, %arg0 : i32, i32
  }
}

module attributes {stable_mosaic.version = 11 : i64} {
  func.func @_conv2_mlp_kernel(%arg0: memref<8x150x198xf32, #tpu.memory_space<vmem>>, %arg1: memref<16x150xf32, #tpu.memory_space<vmem>>, %arg2: memref<16x1xf32, #tpu.memory_space<vmem>>, %arg3: memref<16x198x120xf32, #tpu.memory_space<vmem>>, %arg4: memref<1x120xf32, #tpu.memory_space<vmem>>, %arg5: memref<120x84xf32, #tpu.memory_space<vmem>>, %arg6: memref<1x84xf32, #tpu.memory_space<vmem>>, %arg7: memref<84x13xf32, #tpu.memory_space<vmem>>, %arg8: memref<1x13xf32, #tpu.memory_space<vmem>>, %arg9: memref<2x13xf32, #tpu.memory_space<vmem>>) attributes {dimension_semantics = [], scalar_prefetch = 0 : i64, scratch_operands = 0 : i64, tpu.core_type = #tpu.core_type<tc>} {
    %c0 = arith.constant 0 : index
    %c0_0 = arith.constant 0 : index
    %0 = vector.load %arg1[%c0, %c0_0] : memref<16x150xf32, #tpu.memory_space<vmem>>, vector<16x150xf32>
    %c0_1 = arith.constant 0 : index
    %c0_2 = arith.constant 0 : index
    %1 = vector.load %arg2[%c0_1, %c0_2] : memref<16x1xf32, #tpu.memory_space<vmem>>, vector<16x1xf32>
    %c0_3 = arith.constant 0 : index
    %c0_4 = arith.constant 0 : index
    %c0_5 = arith.constant 0 : index
    %2 = vector.load %arg0[%c0_3, %c0_4, %c0_5] : memref<8x150x198xf32, #tpu.memory_space<vmem>>, vector<1x150x198xf32>
    %3 = vector.shape_cast %2 : vector<1x150x198xf32> to vector<150x198xf32>
    %cst = arith.constant dense<0.000000e+00> : vector<16x198xf32>
    %4 = tpu.matmul %0, %3, %cst {dimension_numbers = #tpu.dot_dimension_numbers<[1], [0], [0], [1], [0, 0, 1, 1], [], []>} : vector<16x150xf32>, vector<150x198xf32>, vector<16x198xf32> -> vector<16x198xf32>
    %c2 = arith.constant 2 : index
    %c0_6 = arith.constant 0 : index
    %c0_7 = arith.constant 0 : index
    %5 = vector.load %arg0[%c2, %c0_6, %c0_7] : memref<8x150x198xf32, #tpu.memory_space<vmem>>, vector<1x150x198xf32>
    %6 = vector.shape_cast %5 : vector<1x150x198xf32> to vector<150x198xf32>
    %cst_8 = arith.constant dense<0.000000e+00> : vector<16x198xf32>
    %7 = tpu.matmul %0, %6, %cst_8 {dimension_numbers = #tpu.dot_dimension_numbers<[1], [0], [0], [1], [0, 0, 1, 1], [], []>} : vector<16x150xf32>, vector<150x198xf32>, vector<16x198xf32> -> vector<16x198xf32>
    %8 = arith.maximumf %4, %7 : vector<16x198xf32>
    %c4 = arith.constant 4 : index
    %c0_9 = arith.constant 0 : index
    %c0_10 = arith.constant 0 : index
    %9 = vector.load %arg0[%c4, %c0_9, %c0_10] : memref<8x150x198xf32, #tpu.memory_space<vmem>>, vector<1x150x198xf32>
    %10 = vector.shape_cast %9 : vector<1x150x198xf32> to vector<150x198xf32>
    %cst_11 = arith.constant dense<0.000000e+00> : vector<16x198xf32>
    %11 = tpu.matmul %0, %10, %cst_11 {dimension_numbers = #tpu.dot_dimension_numbers<[1], [0], [0], [1], [0, 0, 1, 1], [], []>} : vector<16x150xf32>, vector<150x198xf32>, vector<16x198xf32> -> vector<16x198xf32>
    %12 = arith.maximumf %8, %11 : vector<16x198xf32>
    %c6 = arith.constant 6 : index
    %c0_12 = arith.constant 0 : index
    %c0_13 = arith.constant 0 : index
    %13 = vector.load %arg0[%c6, %c0_12, %c0_13] : memref<8x150x198xf32, #tpu.memory_space<vmem>>, vector<1x150x198xf32>
    %14 = vector.shape_cast %13 : vector<1x150x198xf32> to vector<150x198xf32>
    %cst_14 = arith.constant dense<0.000000e+00> : vector<16x198xf32>
    %15 = tpu.matmul %0, %14, %cst_14 {dimension_numbers = #tpu.dot_dimension_numbers<[1], [0], [0], [1], [0, 0, 1, 1], [], []>} : vector<16x150xf32>, vector<150x198xf32>, vector<16x198xf32> -> vector<16x198xf32>
    %16 = arith.maximumf %12, %15 : vector<16x198xf32>
    %17 = vector.broadcast %1 : vector<16x1xf32> to vector<16x198xf32>
    %18 = arith.addf %16, %17 : vector<16x198xf32>
    %cst_15 = arith.constant 0.000000e+00 : f32
    %19 = vector.broadcast %cst_15 : f32 to vector<16x198xf32>
    %20 = arith.maximumf %18, %19 : vector<16x198xf32>
    %c1 = arith.constant 1 : index
    %c0_16 = arith.constant 0 : index
    %c0_17 = arith.constant 0 : index
    %21 = vector.load %arg0[%c1, %c0_16, %c0_17] : memref<8x150x198xf32, #tpu.memory_space<vmem>>, vector<1x150x198xf32>
    %22 = vector.shape_cast %21 : vector<1x150x198xf32> to vector<150x198xf32>
    %cst_18 = arith.constant dense<0.000000e+00> : vector<16x198xf32>
    %23 = tpu.matmul %0, %22, %cst_18 {dimension_numbers = #tpu.dot_dimension_numbers<[1], [0], [0], [1], [0, 0, 1, 1], [], []>} : vector<16x150xf32>, vector<150x198xf32>, vector<16x198xf32> -> vector<16x198xf32>
    %c3 = arith.constant 3 : index
    %c0_19 = arith.constant 0 : index
    %c0_20 = arith.constant 0 : index
    %24 = vector.load %arg0[%c3, %c0_19, %c0_20] : memref<8x150x198xf32, #tpu.memory_space<vmem>>, vector<1x150x198xf32>
    %25 = vector.shape_cast %24 : vector<1x150x198xf32> to vector<150x198xf32>
    %cst_21 = arith.constant dense<0.000000e+00> : vector<16x198xf32>
    %26 = tpu.matmul %0, %25, %cst_21 {dimension_numbers = #tpu.dot_dimension_numbers<[1], [0], [0], [1], [0, 0, 1, 1], [], []>} : vector<16x150xf32>, vector<150x198xf32>, vector<16x198xf32> -> vector<16x198xf32>
    %27 = arith.maximumf %23, %26 : vector<16x198xf32>
    %c5 = arith.constant 5 : index
    %c0_22 = arith.constant 0 : index
    %c0_23 = arith.constant 0 : index
    %28 = vector.load %arg0[%c5, %c0_22, %c0_23] : memref<8x150x198xf32, #tpu.memory_space<vmem>>, vector<1x150x198xf32>
    %29 = vector.shape_cast %28 : vector<1x150x198xf32> to vector<150x198xf32>
    %cst_24 = arith.constant dense<0.000000e+00> : vector<16x198xf32>
    %30 = tpu.matmul %0, %29, %cst_24 {dimension_numbers = #tpu.dot_dimension_numbers<[1], [0], [0], [1], [0, 0, 1, 1], [], []>} : vector<16x150xf32>, vector<150x198xf32>, vector<16x198xf32> -> vector<16x198xf32>
    %31 = arith.maximumf %27, %30 : vector<16x198xf32>
    %c7 = arith.constant 7 : index
    %c0_25 = arith.constant 0 : index
    %c0_26 = arith.constant 0 : index
    %32 = vector.load %arg0[%c7, %c0_25, %c0_26] : memref<8x150x198xf32, #tpu.memory_space<vmem>>, vector<1x150x198xf32>
    %33 = vector.shape_cast %32 : vector<1x150x198xf32> to vector<150x198xf32>
    %cst_27 = arith.constant dense<0.000000e+00> : vector<16x198xf32>
    %34 = tpu.matmul %0, %33, %cst_27 {dimension_numbers = #tpu.dot_dimension_numbers<[1], [0], [0], [1], [0, 0, 1, 1], [], []>} : vector<16x150xf32>, vector<150x198xf32>, vector<16x198xf32> -> vector<16x198xf32>
    %35 = arith.maximumf %31, %34 : vector<16x198xf32>
    %36 = vector.broadcast %1 : vector<16x1xf32> to vector<16x198xf32>
    %37 = arith.addf %35, %36 : vector<16x198xf32>
    %cst_28 = arith.constant 0.000000e+00 : f32
    %38 = vector.broadcast %cst_28 : f32 to vector<16x198xf32>
    %39 = arith.maximumf %37, %38 : vector<16x198xf32>
    %40 = vector.shape_cast %20 : vector<16x198xf32> to vector<16x1x198xf32>
    %41 = vector.shape_cast %39 : vector<16x198xf32> to vector<16x1x198xf32>
    %42 = tpu.concatenate %40, %41 in 1 : vector<16x1x198xf32>, vector<16x1x198xf32> -> vector<16x2x198xf32>
    %43 = vector.extract_strided_slice %42 {offsets = [0, 0, 0], sizes = [1, 2, 198], strides = [1, 1, 1]} : vector<16x2x198xf32> to vector<1x2x198xf32>
    %44 = vector.shape_cast %43 : vector<1x2x198xf32> to vector<2x198xf32>
    %c0_29 = arith.constant 0 : index
    %c0_30 = arith.constant 0 : index
    %c0_31 = arith.constant 0 : index
    %45 = vector.load %arg3[%c0_29, %c0_30, %c0_31] : memref<16x198x120xf32, #tpu.memory_space<vmem>>, vector<1x198x120xf32>
    %46 = vector.shape_cast %45 : vector<1x198x120xf32> to vector<198x120xf32>
    %cst_32 = arith.constant dense<0.000000e+00> : vector<2x120xf32>
    %47 = tpu.matmul %44, %46, %cst_32 {dimension_numbers = #tpu.dot_dimension_numbers<[1], [0], [0], [1], [0, 0, 1, 1], [], []>} : vector<2x198xf32>, vector<198x120xf32>, vector<2x120xf32> -> vector<2x120xf32>
    %48 = vector.extract_strided_slice %42 {offsets = [1, 0, 0], sizes = [1, 2, 198], strides = [1, 1, 1]} : vector<16x2x198xf32> to vector<1x2x198xf32>
    %49 = vector.shape_cast %48 : vector<1x2x198xf32> to vector<2x198xf32>
    %c1_33 = arith.constant 1 : index
    %c0_34 = arith.constant 0 : index
    %c0_35 = arith.constant 0 : index
    %50 = vector.load %arg3[%c1_33, %c0_34, %c0_35] : memref<16x198x120xf32, #tpu.memory_space<vmem>>, vector<1x198x120xf32>
    %51 = vector.shape_cast %50 : vector<1x198x120xf32> to vector<198x120xf32>
    %cst_36 = arith.constant dense<0.000000e+00> : vector<2x120xf32>
    %52 = tpu.matmul %49, %51, %cst_36 {dimension_numbers = #tpu.dot_dimension_numbers<[1], [0], [0], [1], [0, 0, 1, 1], [], []>} : vector<2x198xf32>, vector<198x120xf32>, vector<2x120xf32> -> vector<2x120xf32>
    %53 = arith.addf %47, %52 : vector<2x120xf32>
    %54 = vector.extract_strided_slice %42 {offsets = [2, 0, 0], sizes = [1, 2, 198], strides = [1, 1, 1]} : vector<16x2x198xf32> to vector<1x2x198xf32>
    %55 = vector.shape_cast %54 : vector<1x2x198xf32> to vector<2x198xf32>
    %c2_37 = arith.constant 2 : index
    %c0_38 = arith.constant 0 : index
    %c0_39 = arith.constant 0 : index
    %56 = vector.load %arg3[%c2_37, %c0_38, %c0_39] : memref<16x198x120xf32, #tpu.memory_space<vmem>>, vector<1x198x120xf32>
    %57 = vector.shape_cast %56 : vector<1x198x120xf32> to vector<198x120xf32>
    %cst_40 = arith.constant dense<0.000000e+00> : vector<2x120xf32>
    %58 = tpu.matmul %55, %57, %cst_40 {dimension_numbers = #tpu.dot_dimension_numbers<[1], [0], [0], [1], [0, 0, 1, 1], [], []>} : vector<2x198xf32>, vector<198x120xf32>, vector<2x120xf32> -> vector<2x120xf32>
    %59 = arith.addf %53, %58 : vector<2x120xf32>
    %60 = vector.extract_strided_slice %42 {offsets = [3, 0, 0], sizes = [1, 2, 198], strides = [1, 1, 1]} : vector<16x2x198xf32> to vector<1x2x198xf32>
    %61 = vector.shape_cast %60 : vector<1x2x198xf32> to vector<2x198xf32>
    %c3_41 = arith.constant 3 : index
    %c0_42 = arith.constant 0 : index
    %c0_43 = arith.constant 0 : index
    %62 = vector.load %arg3[%c3_41, %c0_42, %c0_43] : memref<16x198x120xf32, #tpu.memory_space<vmem>>, vector<1x198x120xf32>
    %63 = vector.shape_cast %62 : vector<1x198x120xf32> to vector<198x120xf32>
    %cst_44 = arith.constant dense<0.000000e+00> : vector<2x120xf32>
    %64 = tpu.matmul %61, %63, %cst_44 {dimension_numbers = #tpu.dot_dimension_numbers<[1], [0], [0], [1], [0, 0, 1, 1], [], []>} : vector<2x198xf32>, vector<198x120xf32>, vector<2x120xf32> -> vector<2x120xf32>
    %65 = arith.addf %59, %64 : vector<2x120xf32>
    %66 = vector.extract_strided_slice %42 {offsets = [4, 0, 0], sizes = [1, 2, 198], strides = [1, 1, 1]} : vector<16x2x198xf32> to vector<1x2x198xf32>
    %67 = vector.shape_cast %66 : vector<1x2x198xf32> to vector<2x198xf32>
    %c4_45 = arith.constant 4 : index
    %c0_46 = arith.constant 0 : index
    %c0_47 = arith.constant 0 : index
    %68 = vector.load %arg3[%c4_45, %c0_46, %c0_47] : memref<16x198x120xf32, #tpu.memory_space<vmem>>, vector<1x198x120xf32>
    %69 = vector.shape_cast %68 : vector<1x198x120xf32> to vector<198x120xf32>
    %cst_48 = arith.constant dense<0.000000e+00> : vector<2x120xf32>
    %70 = tpu.matmul %67, %69, %cst_48 {dimension_numbers = #tpu.dot_dimension_numbers<[1], [0], [0], [1], [0, 0, 1, 1], [], []>} : vector<2x198xf32>, vector<198x120xf32>, vector<2x120xf32> -> vector<2x120xf32>
    %71 = arith.addf %65, %70 : vector<2x120xf32>
    %72 = vector.extract_strided_slice %42 {offsets = [5, 0, 0], sizes = [1, 2, 198], strides = [1, 1, 1]} : vector<16x2x198xf32> to vector<1x2x198xf32>
    %73 = vector.shape_cast %72 : vector<1x2x198xf32> to vector<2x198xf32>
    %c5_49 = arith.constant 5 : index
    %c0_50 = arith.constant 0 : index
    %c0_51 = arith.constant 0 : index
    %74 = vector.load %arg3[%c5_49, %c0_50, %c0_51] : memref<16x198x120xf32, #tpu.memory_space<vmem>>, vector<1x198x120xf32>
    %75 = vector.shape_cast %74 : vector<1x198x120xf32> to vector<198x120xf32>
    %cst_52 = arith.constant dense<0.000000e+00> : vector<2x120xf32>
    %76 = tpu.matmul %73, %75, %cst_52 {dimension_numbers = #tpu.dot_dimension_numbers<[1], [0], [0], [1], [0, 0, 1, 1], [], []>} : vector<2x198xf32>, vector<198x120xf32>, vector<2x120xf32> -> vector<2x120xf32>
    %77 = arith.addf %71, %76 : vector<2x120xf32>
    %78 = vector.extract_strided_slice %42 {offsets = [6, 0, 0], sizes = [1, 2, 198], strides = [1, 1, 1]} : vector<16x2x198xf32> to vector<1x2x198xf32>
    %79 = vector.shape_cast %78 : vector<1x2x198xf32> to vector<2x198xf32>
    %c6_53 = arith.constant 6 : index
    %c0_54 = arith.constant 0 : index
    %c0_55 = arith.constant 0 : index
    %80 = vector.load %arg3[%c6_53, %c0_54, %c0_55] : memref<16x198x120xf32, #tpu.memory_space<vmem>>, vector<1x198x120xf32>
    %81 = vector.shape_cast %80 : vector<1x198x120xf32> to vector<198x120xf32>
    %cst_56 = arith.constant dense<0.000000e+00> : vector<2x120xf32>
    %82 = tpu.matmul %79, %81, %cst_56 {dimension_numbers = #tpu.dot_dimension_numbers<[1], [0], [0], [1], [0, 0, 1, 1], [], []>} : vector<2x198xf32>, vector<198x120xf32>, vector<2x120xf32> -> vector<2x120xf32>
    %83 = arith.addf %77, %82 : vector<2x120xf32>
    %84 = vector.extract_strided_slice %42 {offsets = [7, 0, 0], sizes = [1, 2, 198], strides = [1, 1, 1]} : vector<16x2x198xf32> to vector<1x2x198xf32>
    %85 = vector.shape_cast %84 : vector<1x2x198xf32> to vector<2x198xf32>
    %c7_57 = arith.constant 7 : index
    %c0_58 = arith.constant 0 : index
    %c0_59 = arith.constant 0 : index
    %86 = vector.load %arg3[%c7_57, %c0_58, %c0_59] : memref<16x198x120xf32, #tpu.memory_space<vmem>>, vector<1x198x120xf32>
    %87 = vector.shape_cast %86 : vector<1x198x120xf32> to vector<198x120xf32>
    %cst_60 = arith.constant dense<0.000000e+00> : vector<2x120xf32>
    %88 = tpu.matmul %85, %87, %cst_60 {dimension_numbers = #tpu.dot_dimension_numbers<[1], [0], [0], [1], [0, 0, 1, 1], [], []>} : vector<2x198xf32>, vector<198x120xf32>, vector<2x120xf32> -> vector<2x120xf32>
    %89 = arith.addf %83, %88 : vector<2x120xf32>
    %90 = vector.extract_strided_slice %42 {offsets = [8, 0, 0], sizes = [1, 2, 198], strides = [1, 1, 1]} : vector<16x2x198xf32> to vector<1x2x198xf32>
    %91 = vector.shape_cast %90 : vector<1x2x198xf32> to vector<2x198xf32>
    %c8 = arith.constant 8 : index
    %c0_61 = arith.constant 0 : index
    %c0_62 = arith.constant 0 : index
    %92 = vector.load %arg3[%c8, %c0_61, %c0_62] : memref<16x198x120xf32, #tpu.memory_space<vmem>>, vector<1x198x120xf32>
    %93 = vector.shape_cast %92 : vector<1x198x120xf32> to vector<198x120xf32>
    %cst_63 = arith.constant dense<0.000000e+00> : vector<2x120xf32>
    %94 = tpu.matmul %91, %93, %cst_63 {dimension_numbers = #tpu.dot_dimension_numbers<[1], [0], [0], [1], [0, 0, 1, 1], [], []>} : vector<2x198xf32>, vector<198x120xf32>, vector<2x120xf32> -> vector<2x120xf32>
    %95 = arith.addf %89, %94 : vector<2x120xf32>
    %96 = vector.extract_strided_slice %42 {offsets = [9, 0, 0], sizes = [1, 2, 198], strides = [1, 1, 1]} : vector<16x2x198xf32> to vector<1x2x198xf32>
    %97 = vector.shape_cast %96 : vector<1x2x198xf32> to vector<2x198xf32>
    %c9 = arith.constant 9 : index
    %c0_64 = arith.constant 0 : index
    %c0_65 = arith.constant 0 : index
    %98 = vector.load %arg3[%c9, %c0_64, %c0_65] : memref<16x198x120xf32, #tpu.memory_space<vmem>>, vector<1x198x120xf32>
    %99 = vector.shape_cast %98 : vector<1x198x120xf32> to vector<198x120xf32>
    %cst_66 = arith.constant dense<0.000000e+00> : vector<2x120xf32>
    %100 = tpu.matmul %97, %99, %cst_66 {dimension_numbers = #tpu.dot_dimension_numbers<[1], [0], [0], [1], [0, 0, 1, 1], [], []>} : vector<2x198xf32>, vector<198x120xf32>, vector<2x120xf32> -> vector<2x120xf32>
    %101 = arith.addf %95, %100 : vector<2x120xf32>
    %102 = vector.extract_strided_slice %42 {offsets = [10, 0, 0], sizes = [1, 2, 198], strides = [1, 1, 1]} : vector<16x2x198xf32> to vector<1x2x198xf32>
    %103 = vector.shape_cast %102 : vector<1x2x198xf32> to vector<2x198xf32>
    %c10 = arith.constant 10 : index
    %c0_67 = arith.constant 0 : index
    %c0_68 = arith.constant 0 : index
    %104 = vector.load %arg3[%c10, %c0_67, %c0_68] : memref<16x198x120xf32, #tpu.memory_space<vmem>>, vector<1x198x120xf32>
    %105 = vector.shape_cast %104 : vector<1x198x120xf32> to vector<198x120xf32>
    %cst_69 = arith.constant dense<0.000000e+00> : vector<2x120xf32>
    %106 = tpu.matmul %103, %105, %cst_69 {dimension_numbers = #tpu.dot_dimension_numbers<[1], [0], [0], [1], [0, 0, 1, 1], [], []>} : vector<2x198xf32>, vector<198x120xf32>, vector<2x120xf32> -> vector<2x120xf32>
    %107 = arith.addf %101, %106 : vector<2x120xf32>
    %108 = vector.extract_strided_slice %42 {offsets = [11, 0, 0], sizes = [1, 2, 198], strides = [1, 1, 1]} : vector<16x2x198xf32> to vector<1x2x198xf32>
    %109 = vector.shape_cast %108 : vector<1x2x198xf32> to vector<2x198xf32>
    %c11 = arith.constant 11 : index
    %c0_70 = arith.constant 0 : index
    %c0_71 = arith.constant 0 : index
    %110 = vector.load %arg3[%c11, %c0_70, %c0_71] : memref<16x198x120xf32, #tpu.memory_space<vmem>>, vector<1x198x120xf32>
    %111 = vector.shape_cast %110 : vector<1x198x120xf32> to vector<198x120xf32>
    %cst_72 = arith.constant dense<0.000000e+00> : vector<2x120xf32>
    %112 = tpu.matmul %109, %111, %cst_72 {dimension_numbers = #tpu.dot_dimension_numbers<[1], [0], [0], [1], [0, 0, 1, 1], [], []>} : vector<2x198xf32>, vector<198x120xf32>, vector<2x120xf32> -> vector<2x120xf32>
    %113 = arith.addf %107, %112 : vector<2x120xf32>
    %114 = vector.extract_strided_slice %42 {offsets = [12, 0, 0], sizes = [1, 2, 198], strides = [1, 1, 1]} : vector<16x2x198xf32> to vector<1x2x198xf32>
    %115 = vector.shape_cast %114 : vector<1x2x198xf32> to vector<2x198xf32>
    %c12 = arith.constant 12 : index
    %c0_73 = arith.constant 0 : index
    %c0_74 = arith.constant 0 : index
    %116 = vector.load %arg3[%c12, %c0_73, %c0_74] : memref<16x198x120xf32, #tpu.memory_space<vmem>>, vector<1x198x120xf32>
    %117 = vector.shape_cast %116 : vector<1x198x120xf32> to vector<198x120xf32>
    %cst_75 = arith.constant dense<0.000000e+00> : vector<2x120xf32>
    %118 = tpu.matmul %115, %117, %cst_75 {dimension_numbers = #tpu.dot_dimension_numbers<[1], [0], [0], [1], [0, 0, 1, 1], [], []>} : vector<2x198xf32>, vector<198x120xf32>, vector<2x120xf32> -> vector<2x120xf32>
    %119 = arith.addf %113, %118 : vector<2x120xf32>
    %120 = vector.extract_strided_slice %42 {offsets = [13, 0, 0], sizes = [1, 2, 198], strides = [1, 1, 1]} : vector<16x2x198xf32> to vector<1x2x198xf32>
    %121 = vector.shape_cast %120 : vector<1x2x198xf32> to vector<2x198xf32>
    %c13 = arith.constant 13 : index
    %c0_76 = arith.constant 0 : index
    %c0_77 = arith.constant 0 : index
    %122 = vector.load %arg3[%c13, %c0_76, %c0_77] : memref<16x198x120xf32, #tpu.memory_space<vmem>>, vector<1x198x120xf32>
    %123 = vector.shape_cast %122 : vector<1x198x120xf32> to vector<198x120xf32>
    %cst_78 = arith.constant dense<0.000000e+00> : vector<2x120xf32>
    %124 = tpu.matmul %121, %123, %cst_78 {dimension_numbers = #tpu.dot_dimension_numbers<[1], [0], [0], [1], [0, 0, 1, 1], [], []>} : vector<2x198xf32>, vector<198x120xf32>, vector<2x120xf32> -> vector<2x120xf32>
    %125 = arith.addf %119, %124 : vector<2x120xf32>
    %126 = vector.extract_strided_slice %42 {offsets = [14, 0, 0], sizes = [1, 2, 198], strides = [1, 1, 1]} : vector<16x2x198xf32> to vector<1x2x198xf32>
    %127 = vector.shape_cast %126 : vector<1x2x198xf32> to vector<2x198xf32>
    %c14 = arith.constant 14 : index
    %c0_79 = arith.constant 0 : index
    %c0_80 = arith.constant 0 : index
    %128 = vector.load %arg3[%c14, %c0_79, %c0_80] : memref<16x198x120xf32, #tpu.memory_space<vmem>>, vector<1x198x120xf32>
    %129 = vector.shape_cast %128 : vector<1x198x120xf32> to vector<198x120xf32>
    %cst_81 = arith.constant dense<0.000000e+00> : vector<2x120xf32>
    %130 = tpu.matmul %127, %129, %cst_81 {dimension_numbers = #tpu.dot_dimension_numbers<[1], [0], [0], [1], [0, 0, 1, 1], [], []>} : vector<2x198xf32>, vector<198x120xf32>, vector<2x120xf32> -> vector<2x120xf32>
    %131 = arith.addf %125, %130 : vector<2x120xf32>
    %132 = vector.extract_strided_slice %42 {offsets = [15, 0, 0], sizes = [1, 2, 198], strides = [1, 1, 1]} : vector<16x2x198xf32> to vector<1x2x198xf32>
    %133 = vector.shape_cast %132 : vector<1x2x198xf32> to vector<2x198xf32>
    %c15 = arith.constant 15 : index
    %c0_82 = arith.constant 0 : index
    %c0_83 = arith.constant 0 : index
    %134 = vector.load %arg3[%c15, %c0_82, %c0_83] : memref<16x198x120xf32, #tpu.memory_space<vmem>>, vector<1x198x120xf32>
    %135 = vector.shape_cast %134 : vector<1x198x120xf32> to vector<198x120xf32>
    %cst_84 = arith.constant dense<0.000000e+00> : vector<2x120xf32>
    %136 = tpu.matmul %133, %135, %cst_84 {dimension_numbers = #tpu.dot_dimension_numbers<[1], [0], [0], [1], [0, 0, 1, 1], [], []>} : vector<2x198xf32>, vector<198x120xf32>, vector<2x120xf32> -> vector<2x120xf32>
    %137 = arith.addf %131, %136 : vector<2x120xf32>
    %c0_85 = arith.constant 0 : index
    %c0_86 = arith.constant 0 : index
    %138 = vector.load %arg4[%c0_85, %c0_86] : memref<1x120xf32, #tpu.memory_space<vmem>>, vector<1x120xf32>
    %139 = vector.broadcast %138 : vector<1x120xf32> to vector<2x120xf32>
    %140 = arith.addf %137, %139 : vector<2x120xf32>
    %cst_87 = arith.constant 0.000000e+00 : f32
    %141 = vector.broadcast %cst_87 : f32 to vector<2x120xf32>
    %142 = arith.maximumf %140, %141 : vector<2x120xf32>
    %c0_88 = arith.constant 0 : index
    %c0_89 = arith.constant 0 : index
    %143 = vector.load %arg5[%c0_88, %c0_89] : memref<120x84xf32, #tpu.memory_space<vmem>>, vector<120x84xf32>
    %cst_90 = arith.constant dense<0.000000e+00> : vector<2x84xf32>
    %144 = tpu.matmul %142, %143, %cst_90 {dimension_numbers = #tpu.dot_dimension_numbers<[1], [0], [0], [1], [0, 0, 1, 1], [], []>} : vector<2x120xf32>, vector<120x84xf32>, vector<2x84xf32> -> vector<2x84xf32>
    %c0_91 = arith.constant 0 : index
    %c0_92 = arith.constant 0 : index
    %145 = vector.load %arg6[%c0_91, %c0_92] : memref<1x84xf32, #tpu.memory_space<vmem>>, vector<1x84xf32>
    %146 = vector.broadcast %145 : vector<1x84xf32> to vector<2x84xf32>
    %147 = arith.addf %144, %146 : vector<2x84xf32>
    %cst_93 = arith.constant 0.000000e+00 : f32
    %148 = vector.broadcast %cst_93 : f32 to vector<2x84xf32>
    %149 = arith.maximumf %147, %148 : vector<2x84xf32>
    %c0_94 = arith.constant 0 : index
    %c0_95 = arith.constant 0 : index
    %150 = vector.load %arg7[%c0_94, %c0_95] : memref<84x13xf32, #tpu.memory_space<vmem>>, vector<84x13xf32>
    %cst_96 = arith.constant dense<0.000000e+00> : vector<2x13xf32>
    %151 = tpu.matmul %149, %150, %cst_96 {dimension_numbers = #tpu.dot_dimension_numbers<[1], [0], [0], [1], [0, 0, 1, 1], [], []>} : vector<2x84xf32>, vector<84x13xf32>, vector<2x13xf32> -> vector<2x13xf32>
    %c0_97 = arith.constant 0 : index
    %c0_98 = arith.constant 0 : index
    %152 = vector.load %arg8[%c0_97, %c0_98] : memref<1x13xf32, #tpu.memory_space<vmem>>, vector<1x13xf32>
    %153 = vector.broadcast %152 : vector<1x13xf32> to vector<2x13xf32>
    %154 = arith.addf %151, %153 : vector<2x13xf32>
    %c0_99 = arith.constant 0 : index
    %c0_100 = arith.constant 0 : index
    %155 = vector.load %arg9[%c0_99, %c0_100] : memref<2x13xf32, #tpu.memory_space<vmem>>, vector<2x13xf32>
    tpu.vector_store %arg9[%c0_99, %c0_100], %154 {strides = array<i32>} : memref<2x13xf32, #tpu.memory_space<vmem>>, vector<2x13xf32>,
    return
  }
}

</mosaic_0001>

<bundles_post_ra>
// kernel: net_forward.2
= control target key start
LH: loop header
LB: loop body
LE: loop exit
PB: predicated region body
PF: predicated region fallthrough
CT: control target
= control target key end

     0   :  { %v5097_v3 = vmov 0.0   ;;  %vm189_vm0 = vcmask 1042432   ;;  %vm5098_vm1 = vmmov 1   ;;  %vm185_vm3 = vcmask 613376   ;;  %s7636_s2 = inlined_call_operand.vmem [shape: f32[4,75,2176], index: 2, kind: input, shape index: {}]   ;;  %s7637_s0 = inlined_call_operand.vmem [shape: f32[6,75], index: 0, kind: input, shape index: {}]   ;;  %s7638_s1 = inlined_call_operand.vmem [shape: f32[6,1], index: 1, kind: input, shape index: {}]   ;;  %s7639_s3 = inlined_call_operand.vmem [shape: f32[6,2176], index: 3, kind: output, shape index: {}]  }
   0x1   :  { %v16_v0 = vld [vmem:[%s7636_s2 + $0x8] sm:$0xff]  ;;  %v33_v1 = vld [vmem:[%s7636_s2 + $0x90] sm:$0xff]  ;;  %v18_v2 = vld [vmem:[%s7636_s2 + $0x18] sm:$0xff]  ;;  %305 = vmatprep.mubr.f32.mxu0 %v5097_v3  ;;  %376 = vmatprep.mubr.f32.mxu1 %v5097_v3  ;;  %vm5100_vm4 = vmmov 0  }
   0x2   :  { %v4321_v4 = vpack.c.bf16 %v33_v1, %v16_v0  ;;  %v35_v5 = vld [vmem:[%s7636_s2 + $0xa0] sm:$0xff]  ;;  %v32_v7 = vld [vmem:[%s7636_s2 + $0x88] sm:$0xff]  ;;  %v17_v10 = vld [vmem:[%s7636_s2 + $0x10] sm:$0xff] }
   0x3   :  { %v15_v6 = vld [vmem:[%s7636_s2] sm:$0xff]  ;;  %v4343_v8 = vpack.c.bf16 %v35_v5, %v18_v2  ;;  %v34_v11 = vld [vmem:[%s7636_s2 + $0x98] sm:$0xff]  ;;  %v52_v15 = vld [vmem:[%s7636_s2 + $0x128] sm:$0xff] }
   0x4   :  { %v4323_v9 = vpack.c.bf16 %v32_v7, %v15_v6  ;;  %v50_v12 = vld [vmem:[%s7636_s2 + $0x118] sm:$0xff]  ;;  %4322 = vmatprep.subr.bf16.mxu0 %v4321_v4  ;;  %v4345_v13 = vpack.c.bf16 %v34_v11, %v17_v10  ;;  %v67_v14 = vld [vmem:[%s7636_s2 + $0x1a0] sm:$0xff]  ;;  %v69_v16 = vld [vmem:[%s7636_s2 + $0x1b0] sm:$0xff] }
   0x5   :  { %4344 = vmatprep.subr.bf16.mxu1 %v4343_v8  ;;  %v4325_v17 = vpack.c.bf16 %v67_v14, %v50_v12  ;;  %v4347_v18 = vpack.c.bf16 %v69_v16, %v52_v15  ;;  %v49_v19 = vld [vmem:[%s7636_s2 + $0x110] sm:$0xff]  ;;  %v66_v20 = vld [vmem:[%s7636_s2 + $0x198] sm:$0xff]  ;;  %v51_v21 = vld [vmem:[%s7636_s2 + $0x120] sm:$0xff] }
   0x6   :  { %4324 = vmatpush1.bf16.msra.mxu0 %v4323_v9  ;;  %4346 = vmatpush1.bf16.msra.mxu1 %v4345_v13  ;;  %v4327_v22 = vpack.c.bf16 %v66_v20, %v49_v19  ;;  %v68_v23 = vld [vmem:[%s7636_s2 + $0x1a8] sm:$0xff]  ;;  %v101_v25 = vld [vmem:[%s7636_s2 + $0x2b0] sm:$0xff]  ;;  %v86_v28 = vld [vmem:[%s7636_s2 + $0x238] sm:$0xff] }
   0x7   :  { %v84_v24 = vld [vmem:[%s7636_s2 + $0x228] sm:$0xff]  ;;  %4326 = vmatprep.subr.bf16.mxu0 %v4325_v17  ;;  %4348 = vmatprep.subr.bf16.mxu1 %v4347_v18  ;;  %v4349_v26 = vpack.c.bf16 %v68_v23, %v51_v21  ;;  %v103_v29 = vld [vmem:[%s7636_s2 + $0x2c0] sm:$0xff]  ;;  %v85_v33 = vld [vmem:[%s7636_s2 + $0x230] sm:$0xff] }
   0x8   :  { %v4329_v27 = vpack.c.bf16 %v101_v25, %v84_v24  ;;  %v83_v30 = vld [vmem:[%s7636_s2 + $0x220] sm:$0xff]  ;;  %v4351_v31 = vpack.c.bf16 %v103_v29, %v86_v28  ;;  %v100_v32 = vld [vmem:[%s7636_s2 + $0x2a8] sm:$0xff]  ;;  %v102_v34 = vld [vmem:[%s7636_s2 + $0x2b8] sm:$0xff] }
   0x9   :  { %v4331_v35 = vpack.c.bf16 %v100_v32, %v83_v30  ;;  %v118_v36 = vld [vmem:[%s7636_s2 + $0x338] sm:$0xff]  ;;  %v135_v37 = vld [vmem:[%s7636_s2 + $0x3c0] sm:$0xff]  ;;  %v120_v38 = vld [vmem:[%s7636_s2 + $0x348] sm:$0xff]  ;;  %v4353_v39 = vpack.c.bf16 %v102_v34, %v85_v33 }
   0xa   :  { %4328 = vmatpush1.bf16.msra.mxu0 %v4327_v22  ;;  %4350 = vmatpush1.bf16.msra.mxu1 %v4349_v26  ;;  %v4333_v40 = vpack.c.bf16 %v135_v37, %v118_v36  ;;  %v137_v41 = vld [vmem:[%s7636_s2 + $0x3d0] sm:$0xff]  ;;  %v134_v43 = vld [vmem:[%s7636_s2 + $0x3b8] sm:$0xff]  ;;  %v119_v45 = vld [vmem:[%s7636_s2 + $0x340] sm:$0xff] }
   0xb   :  { %4330 = vmatprep.subr.bf16.mxu0 %v4329_v27  ;;  %v117_v42 = vld [vmem:[%s7636_s2 + $0x330] sm:$0xff]  ;;  %4352 = vmatprep.subr.bf16.mxu1 %v4351_v31  ;;  %v4355_v44 = vpack.c.bf16 %v137_v41, %v120_v38  ;;  %v136_v46 = vld [vmem:[%s7636_s2 + $0x3c8] sm:$0xff]  ;;  %v154_v49 = vld [vmem:[%s7636_s2 + $0x458] sm:$0xff] }
   0xc   :  { %v152_v47 = vld [vmem:[%s7636_s2 + $0x448] sm:$0xff]  ;;  %v169_v48 = vld [vmem:[%s7636_s2 + $0x4d0] sm:$0x7]  ;;  %v4335_v50 = vpack.c.bf16 %v134_v43, %v117_v42  ;;  %vm5229_vm2 = vmpackc.low %vm189_vm0, %vm5098_vm1  ;;  %v4357_v53 = vpack.c.bf16 %v136_v46, %v119_v45 }
   0xd   :  { %v171_v52 = vld [vmem:[%s7636_s2 + $0x4e0] sm:$0x7]  ;;  %v4337_v54 = vpack.c.bf16 %v169_v48, %v152_v47  ;;  %v168_v56 = vld [vmem:[%s7636_s2 + $0x4c8] sm:$0x7]  ;;  %v153_v57 = vld [vmem:[%s7636_s2 + $0x450] sm:$0xff] }
   0xe   :  { %4332 = vmatpush1.bf16.msra.mxu0 %v4331_v35  ;;  %4354 = vmatpush1.bf16.msra.mxu1 %v4353_v39  ;;  %v151_v55 = vld [vmem:[%s7636_s2 + $0x440] sm:$0xff]  ;;  %v4359_v58 = vpack.c.bf16 %v171_v52, %v154_v49  ;;  %v170_v59 = vld [vmem:[%s7636_s2 + $0x4d8] sm:$0x7]  ;;  %v20_v60 = vld [vmem:[%s7636_s2 + $0x28] sm:$0xff] }
   0xf   :  { %4334 = vmatprep.subr.bf16.mxu0 %v4333_v40  ;;  %4356 = vmatprep.subr.bf16.mxu1 %v4355_v44  ;;  %v37_v61 = vld [vmem:[%s7636_s2 + $0xb0] sm:$0xff]  ;;  %v22_v62 = vld [vmem:[%s7636_s2 + $0x38] sm:$0xff]  ;;  %v39_v63 = vld [vmem:[%s7636_s2 + $0xc0] sm:$0xff]  ;;  %v4340_v0 = vpack.c.bf16 %v168_v56, %v151_v55  ;;  %v4362_v1 = vpack.c.bf16 %v170_v59, %v153_v57 }
  0x10   :  { %v4365_v2 = vpack.c.bf16 %v37_v61, %v20_v60  ;;  %v19_v4 = vld [vmem:[%s7636_s2 + $0x20] sm:$0xff]  ;;  %v36_v5 = vld [vmem:[%s7636_s2 + $0xa8] sm:$0xff]  ;;  %v21_v6 = vld [vmem:[%s7636_s2 + $0x30] sm:$0xff]  ;;  %v4387_v7 = vpack.c.bf16 %v39_v63, %v22_v62 }
  0x11   :  { %v38_v8 = vld [vmem:[%s7636_s2 + $0xb8] sm:$0xff]  ;;  %v71_v10 = vld [vmem:[%s7636_s2 + $0x1c0] sm:$0xff]  ;;  %v56_v11 = vld [vmem:[%s7636_s2 + $0x148] sm:$0xff]  ;;  %v4367_v14 = vpack.c.bf16 %v36_v5, %v19_v4 }
  0x12   :  { %4336 = vmatpush1.bf16.msra.mxu0 %v4335_v50  ;;  %4358 = vmatpush1.bf16.msra.mxu1 %v4357_v53  ;;  %v54_v9 = vld [vmem:[%s7636_s2 + $0x138] sm:$0xff]  ;;  %v73_v12 = vld [vmem:[%s7636_s2 + $0x1d0] sm:$0xff]  ;;  %v5293_v13 = vld [vmem:[%s7637_s0] sm:$0x3f]  ;;  %v4389_v15 = vpack.c.bf16 %v38_v8, %v21_v6 }
  0x13   :  { %4339 = vmatprep.subr.msk.bf16.mxu0 %vm5229_vm2, %v4337_v54  ;;  %4361 = vmatprep.subr.msk.bf16.mxu1 %vm5229_vm2, %v4359_v58  ;;  %v4369_v16 = vpack.c.bf16 %v71_v10, %v54_v9  ;;  %v53_v17 = vld [vmem:[%s7636_s2 + $0x130] sm:$0xff]  ;;  %v70_v18 = vld [vmem:[%s7636_s2 + $0x1b8] sm:$0xff]  ;;  %v55_v19 = vld [vmem:[%s7636_s2 + $0x140] sm:$0xff]  ;;  %v4391_v20 = vpack.c.bf16 %v73_v12, %v56_v11 }
  0x14   :  { %v72_v21 = vld [vmem:[%s7636_s2 + $0x1c8] sm:$0xff]  ;;  %v105_v23 = vld [vmem:[%s7636_s2 + $0x2d0] sm:$0xff]  ;;  %v90_v24 = vld [vmem:[%s7636_s2 + $0x258] sm:$0xff]  ;;  %v4371_v26 = vpack.c.bf16 %v70_v18, %v53_v17 }
  0x15   :  { %v88_v22 = vld [vmem:[%s7636_s2 + $0x248] sm:$0xff]  ;;  %v107_v25 = vld [vmem:[%s7636_s2 + $0x2e0] sm:$0xff]  ;;  %v4393_v27 = vpack.c.bf16 %v72_v21, %v55_v19  ;;  %v89_v31 = vld [vmem:[%s7636_s2 + $0x250] sm:$0xff] }
  0x16   :  { %4342 = vmatpush1.bf16.msk.msra.mxu0 %vm5229_vm2, %v4340_v0  ;;  %4364 = vmatpush1.bf16.msk.msra.mxu1 %vm5229_vm2, %v4362_v1  ;;  %v4373_v28 = vpack.c.bf16 %v105_v23, %v88_v22  ;;  %v87_v29 = vld [vmem:[%s7636_s2 + $0x240] sm:$0xff]  ;;  %v104_v30 = vld [vmem:[%s7636_s2 + $0x2c8] sm:$0xff]  ;;  %v4395_v32 = vpack.c.bf16 %v107_v25, %v90_v24  ;;  %v106_v33 = vld [vmem:[%s7636_s2 + $0x2d8] sm:$0xff] }
  0x17   :  { %4366 = vmatprep.subr.bf16.mxu0 %v4365_v2  ;;  %4388 = vmatprep.subr.bf16.mxu1 %v4387_v7  ;;  %v122_v34 = vld [vmem:[%s7636_s2 + $0x358] sm:$0xff]  ;;  %v139_v35 = vld [vmem:[%s7636_s2 + $0x3e0] sm:$0xff]  ;;  %v124_v36 = vld [vmem:[%s7636_s2 + $0x368] sm:$0xff]  ;;  %v4375_v38 = vpack.c.bf16 %v104_v30, %v87_v29  ;;  %v4397_v39 = vpack.c.bf16 %v106_v33, %v89_v31 }
  0x18   :  { %v141_v37 = vld [vmem:[%s7636_s2 + $0x3f0] sm:$0xff]  ;;  %v4377_v40 = vpack.c.bf16 %v139_v35, %v122_v34  ;;  %v138_v42 = vld [vmem:[%s7636_s2 + $0x3d8] sm:$0xff]  ;;  %v123_v43 = vld [vmem:[%s7636_s2 + $0x360] sm:$0xff] }
  0x19   :  { %3573 = vmatmul.mubr.msk.f32.vlgmr.msra.gmra.mrb[0].mxu0 %vm185_vm3, %v5293_v13  ;;  %3576 = vmatmul.mubr.msk.f32.vlgmr.msra.gmra.mrb[0].mxu1 %vm185_vm3, %v5293_v13  ;;  %v121_v41 = vld [vmem:[%s7636_s2 + $0x350] sm:$0xff]  ;;  %v4399_v44 = vpack.c.bf16 %v141_v37, %v124_v36  ;;  %v140_v45 = vld [vmem:[%s7636_s2 + $0x3e8] sm:$0xff]  ;;  %v158_v48 = vld [vmem:[%s7636_s2 + $0x478] sm:$0xff] }
  0x1a   :  { %4368 = vmatpush1.bf16.msra.mxu0 %v4367_v14  ;;  %4390 = vmatpush1.bf16.msra.mxu1 %v4389_v15  ;;  %v156_v46 = vld [vmem:[%s7636_s2 + $0x468] sm:$0xff]  ;;  %v173_v47 = vld [vmem:[%s7636_s2 + $0x4f0] sm:$0x7]  ;;  %v175_v49 = vld [vmem:[%s7636_s2 + $0x500] sm:$0x7]  ;;  %v4379_v50 = vpack.c.bf16 %v138_v42, %v121_v41  ;;  %v4401_v52 = vpack.c.bf16 %v140_v45, %v123_v43 }
  0x1b   :  { %4370 = vmatprep.subr.bf16.mxu0 %v4369_v16  ;;  %4392 = vmatprep.subr.bf16.mxu1 %v4391_v20  ;;  %v4381_v53 = vpack.c.bf16 %v173_v47, %v156_v46  ;;  %v155_v54 = vld [vmem:[%s7636_s2 + $0x460] sm:$0xff]  ;;  %v172_v55 = vld [vmem:[%s7636_s2 + $0x4e8] sm:$0x7]  ;;  %v157_v56 = vld [vmem:[%s7636_s2 + $0x470] sm:$0xff]  ;;  %v4403_v57 = vpack.c.bf16 %v175_v49, %v158_v48 }
  0x1c   :  { %447 = vmatprep.mubr.f32.mxu0 %v5097_v3  ;;  %518 = vmatprep.mubr.f32.mxu1 %v5097_v3  ;;  %v174_v58 = vld [vmem:[%s7636_s2 + $0x4f8] sm:$0x7]  ;;  %v24_v59 = vld [vmem:[%s7636_s2 + $0x48] sm:$0xff]  ;;  %v41_v60 = vld [vmem:[%s7636_s2 + $0xd0] sm:$0xff]  ;;  %v4384_v63 = vpack.c.bf16 %v172_v55, %v155_v54 }
  0x1d   :  { %v26_v61 = vld [vmem:[%s7636_s2 + $0x58] sm:$0xff]  ;;  %v43_v62 = vld [vmem:[%s7636_s2 + $0xe0] sm:$0xff]  ;;  %v4406_v0 = vpack.c.bf16 %v174_v58, %v157_v56  ;;  %v4409_v1 = vpack.c.bf16 %v41_v60, %v24_v59  ;;  %v40_v4 = vld [vmem:[%s7636_s2 + $0xc8] sm:$0xff] }
  0x1e   :  { %4372 = vmatpush1.bf16.msra.mxu0 %v4371_v26  ;;  %4394 = vmatpush1.bf16.msra.mxu1 %v4393_v27  ;;  %v23_v2 = vld [vmem:[%s7636_s2 + $0x40] sm:$0xff]  ;;  %v25_v5 = vld [vmem:[%s7636_s2 + $0x50] sm:$0xff]  ;;  %v4431_v6 = vpack.c.bf16 %v43_v62, %v26_v61  ;;  %v42_v7 = vld [vmem:[%s7636_s2 + $0xd8] sm:$0xff] }
  0x1f   :  { %4374 = vmatprep.subr.bf16.mxu0 %v4373_v28  ;;  %4396 = vmatprep.subr.bf16.mxu1 %v4395_v32  ;;  %v58_v8 = vld [vmem:[%s7636_s2 + $0x158] sm:$0xff]  ;;  %v75_v9 = vld [vmem:[%s7636_s2 + $0x1e0] sm:$0xff]  ;;  %v60_v10 = vld [vmem:[%s7636_s2 + $0x168] sm:$0xff]  ;;  %v4411_v12 = vpack.c.bf16 %v40_v4, %v23_v2  ;;  %v4433_v14 = vpack.c.bf16 %v42_v7, %v25_v5 }
  0x20   :  { %v77_v11 = vld [vmem:[%s7636_s2 + $0x1f0] sm:$0xff]  ;;  %v4413_v15 = vpack.c.bf16 %v75_v9, %v58_v8  ;;  %v74_v17 = vld [vmem:[%s7636_s2 + $0x1d8] sm:$0xff]  ;;  %v59_v18 = vld [vmem:[%s7636_s2 + $0x160] sm:$0xff] }
  0x21   :  { %v57_v16 = vld [vmem:[%s7636_s2 + $0x150] sm:$0xff]  ;;  %v4435_v19 = vpack.c.bf16 %v77_v11, %v60_v10  ;;  %v76_v20 = vld [vmem:[%s7636_s2 + $0x1e8] sm:$0xff]  ;;  %v94_v23 = vld [vmem:[%s7636_s2 + $0x278] sm:$0xff] }
  0x22   :  { %4376 = vmatpush1.bf16.msra.mxu0 %v4375_v38  ;;  %4398 = vmatpush1.bf16.msra.mxu1 %v4397_v39  ;;  %v92_v21 = vld [vmem:[%s7636_s2 + $0x268] sm:$0xff]  ;;  %v109_v22 = vld [vmem:[%s7636_s2 + $0x2f0] sm:$0xff]  ;;  %v111_v24 = vld [vmem:[%s7636_s2 + $0x300] sm:$0xff]  ;;  %v4415_v25 = vpack.c.bf16 %v74_v17, %v57_v16  ;;  %v4437_v26 = vpack.c.bf16 %v76_v20, %v59_v18 }
  0x23   :  { %4378 = vmatprep.subr.bf16.mxu0 %v4377_v40  ;;  %4400 = vmatprep.subr.bf16.mxu1 %v4399_v44  ;;  %v4417_v27 = vpack.c.bf16 %v109_v22, %v92_v21  ;;  %v91_v28 = vld [vmem:[%s7636_s2 + $0x260] sm:$0xff]  ;;  %v108_v29 = vld [vmem:[%s7636_s2 + $0x2e8] sm:$0xff]  ;;  %v93_v30 = vld [vmem:[%s7636_s2 + $0x270] sm:$0xff]  ;;  %v4439_v31 = vpack.c.bf16 %v111_v24, %v94_v23 }
  0x24   :  { %v110_v32 = vld [vmem:[%s7636_s2 + $0x2f8] sm:$0xff]  ;;  %v143_v34 = vld [vmem:[%s7636_s2 + $0x400] sm:$0xff]  ;;  %v128_v35 = vld [vmem:[%s7636_s2 + $0x388] sm:$0xff]  ;;  %v4419_v37 = vpack.c.bf16 %v108_v29, %v91_v28 }
  0x25   :  { %v126_v33 = vld [vmem:[%s7636_s2 + $0x378] sm:$0xff]  ;;  %v145_v36 = vld [vmem:[%s7636_s2 + $0x410] sm:$0xff]  ;;  %v4441_v38 = vpack.c.bf16 %v110_v32, %v93_v30  ;;  %v127_v42 = vld [vmem:[%s7636_s2 + $0x380] sm:$0xff] }
  0x26   :  { %4380 = vmatpush1.bf16.msra.mxu0 %v4379_v50  ;;  %4402 = vmatpush1.bf16.msra.mxu1 %v4401_v52  ;;  %v4421_v39 = vpack.c.bf16 %v143_v34, %v126_v33  ;;  %v125_v40 = vld [vmem:[%s7636_s2 + $0x370] sm:$0xff]  ;;  %v142_v41 = vld [vmem:[%s7636_s2 + $0x3f8] sm:$0xff]  ;;  %v4443_v43 = vpack.c.bf16 %v145_v36, %v128_v35  ;;  %v144_v44 = vld [vmem:[%s7636_s2 + $0x408] sm:$0xff] }
  0x27   :  { %4383 = vmatprep.subr.msk.bf16.mxu0 %vm5229_vm2, %v4381_v53  ;;  %4405 = vmatprep.subr.msk.bf16.mxu1 %vm5229_vm2, %v4403_v57  ;;  %v160_v45 = vld [vmem:[%s7636_s2 + $0x488] sm:$0xff]  ;;  %v177_v46 = vld [vmem:[%s7636_s2 + $0x510] sm:$0x7]  ;;  %v162_v47 = vld [vmem:[%s7636_s2 + $0x498] sm:$0xff]  ;;  %v4423_v49 = vpack.c.bf16 %v142_v41, %v125_v40  ;;  %v4445_v50 = vpack.c.bf16 %v144_v44, %v127_v42 }
  0x28   :  { %v179_v48 = vld [vmem:[%s7636_s2 + $0x520] sm:$0x7]  ;;  %v4425_v52 = vpack.c.bf16 %v177_v46, %v160_v45  ;;  %v176_v54 = vld [vmem:[%s7636_s2 + $0x508] sm:$0x7]  ;;  %v161_v55 = vld [vmem:[%s7636_s2 + $0x490] sm:$0xff] }
  0x29   :  { %v159_v53 = vld [vmem:[%s7636_s2 + $0x480] sm:$0xff]  ;;  %v4447_v56 = vpack.c.bf16 %v179_v48, %v162_v47  ;;  %v178_v57 = vld [vmem:[%s7636_s2 + $0x518] sm:$0x7]  ;;  %v28_v58 = vld [vmem:[%s7636_s2 + $0x68] sm:$0xff] }
  0x2a   :  { %4386 = vmatpush1.bf16.msk.msra.mxu0 %vm5229_vm2, %v4384_v63  ;;  %4408 = vmatpush1.bf16.msk.msra.mxu1 %vm5229_vm2, %v4406_v0  ;;  %v45_v59 = vld [vmem:[%s7636_s2 + $0xf0] sm:$0xff]  ;;  %v30_v60 = vld [vmem:[%s7636_s2 + $0x78] sm:$0xff]  ;;  %v47_v61 = vld [vmem:[%s7636_s2 + $0x100] sm:$0xff]  ;;  %v4428_v62 = vpack.c.bf16 %v176_v54, %v159_v53  ;;  %v4450_v63 = vpack.c.bf16 %v178_v57, %v161_v55 }
  0x2b   :  { %4410 = vmatprep.subr.bf16.mxu0 %v4409_v1  ;;  %4432 = vmatprep.subr.bf16.mxu1 %v4431_v6  ;;  %v4453_v0 = vpack.c.bf16 %v45_v59, %v28_v58  ;;  %v27_v1 = vld [vmem:[%s7636_s2 + $0x60] sm:$0xff]  ;;  %v44_v2 = vld [vmem:[%s7636_s2 + $0xe8] sm:$0xff]  ;;  %v29_v4 = vld [vmem:[%s7636_s2 + $0x70] sm:$0xff]  ;;  %v4475_v5 = vpack.c.bf16 %v47_v61, %v30_v60 }
  0x2c   :  { %v46_v6 = vld [vmem:[%s7636_s2 + $0xf8] sm:$0xff]  ;;  %v79_v8 = vld [vmem:[%s7636_s2 + $0x200] sm:$0xff]  ;;  %v64_v9 = vld [vmem:[%s7636_s2 + $0x188] sm:$0xff]  ;;  %v4455_v11 = vpack.c.bf16 %v44_v2, %v27_v1 }
  0x2d   :  { %3579 = vmatmul.mubr.msk.f32.vlgmr.msra.gmra.mrb[2].mxu0 %vm185_vm3, %v5293_v13  ;;  %3582 = vmatmul.mubr.msk.f32.vlgmr.msra.gmra.mrb[2].mxu1 %vm185_vm3, %v5293_v13  ;;  %v62_v7 = vld [vmem:[%s7636_s2 + $0x178] sm:$0xff]  ;;  %v81_v10 = vld [vmem:[%s7636_s2 + $0x210] sm:$0xff]  ;;  %v63_v17 = vld [vmem:[%s7636_s2 + $0x180] sm:$0xff] }
  0x2e   :  { %4412 = vmatpush1.bf16.msra.mxu0 %v4411_v12  ;;  %4434 = vmatpush1.bf16.msra.mxu1 %v4433_v14  ;;  %v4477_v12 = vpack.c.bf16 %v46_v6, %v29_v4  ;;  %v4457_v14 = vpack.c.bf16 %v79_v8, %v62_v7  ;;  %v78_v16 = vld [vmem:[%s7636_s2 + $0x1f8] sm:$0xff]  ;;  %v4479_v18 = vpack.c.bf16 %v81_v10, %v64_v9  ;;  %v96_v20 = vld [vmem:[%s7636_s2 + $0x288] sm:$0xff]  ;;  %v113_v21 = vld [vmem:[%s7636_s2 + $0x310] sm:$0xff]  ;;  %v5099_v6 = vmov 0.0|0.0  }
  0x2f   :  { %4414 = vmatprep.subr.bf16.mxu0 %v4413_v15  ;;  %4436 = vmatprep.subr.bf16.mxu1 %v4435_v19  ;;  %v61_v15 = vld [vmem:[%s7636_s2 + $0x170] sm:$0xff]  ;;  %v80_v19 = vld [vmem:[%s7636_s2 + $0x208] sm:$0xff]  ;;  %v98_v22 = vld [vmem:[%s7636_s2 + $0x298] sm:$0xff] }
  0x30   :  { %589 = vmatprep.mubr.f32.mxu0 %v5097_v3  ;;  %660 = vmatprep.mubr.f32.mxu1 %v5097_v3  ;;  %v115_v23 = vld [vmem:[%s7636_s2 + $0x320] sm:$0xff]  ;;  %v4459_v24 = vpack.c.bf16 %v78_v16, %v61_v15  ;;  %v112_v28 = vld [vmem:[%s7636_s2 + $0x308] sm:$0xff]  ;;  %v97_v29 = vld [vmem:[%s7636_s2 + $0x290] sm:$0xff] }
  0x31   :  { %v4483_v30 = vpack.c.bf16 %v115_v23, %v98_v22  ;;  %v130_v32 = vld [vmem:[%s7636_s2 + $0x398] sm:$0xff]  ;;  %v147_v33 = vld [vmem:[%s7636_s2 + $0x420] sm:$0xff]  ;;  %v132_v34 = vld [vmem:[%s7636_s2 + $0x3a8] sm:$0xff] }
  0x32   :  { %4416 = vmatpush1.bf16.msra.mxu0 %v4415_v25  ;;  %4438 = vmatpush1.bf16.msra.mxu1 %v4437_v26  ;;  %v4481_v25 = vpack.c.bf16 %v80_v19, %v63_v17  ;;  %v4461_v26 = vpack.c.bf16 %v113_v21, %v96_v20  ;;  %v149_v35 = vld [vmem:[%s7636_s2 + $0x430] sm:$0xff]  ;;  %v146_v40 = vld [vmem:[%s7636_s2 + $0x418] sm:$0xff]  ;;  %v131_v41 = vld [vmem:[%s7636_s2 + $0x3a0] sm:$0xff] }
  0x33   :  { %4418 = vmatprep.subr.bf16.mxu0 %v4417_v27  ;;  %4440 = vmatprep.subr.bf16.mxu1 %v4439_v31  ;;  %v95_v27 = vld [vmem:[%s7636_s2 + $0x280] sm:$0xff]  ;;  %v114_v31 = vld [vmem:[%s7636_s2 + $0x318] sm:$0xff]  ;;  %v4487_v42 = vpack.c.bf16 %v149_v35, %v132_v34  ;;  %v164_v44 = vld [vmem:[%s7636_s2 + $0x4a8] sm:$0xff] }
  0x34   :  { %v4463_v36 = vpack.c.bf16 %v112_v28, %v95_v27  ;;  %v181_v45 = vld [vmem:[%s7636_s2 + $0x530] sm:$0x7]  ;;  %v166_v46 = vld [vmem:[%s7636_s2 + $0x4b8] sm:$0xff]  ;;  %v183_v47 = vld [vmem:[%s7636_s2 + $0x540] sm:$0x7] }
  0x35   :  { %v180_v53 = vld [vmem:[%s7636_s2 + $0x528] sm:$0x7]  ;;  %v4491_v54 = vpack.c.bf16 %v183_v47, %v166_v46  ;;  %v165_v55 = vld [vmem:[%s7636_s2 + $0x4b0] sm:$0xff]  ;;  %v3598_v57 = vld [vmem:[%s7636_s2 + $0x558] sm:$0xff] }
  0x36   :  { %4420 = vmatpush1.bf16.msra.mxu0 %v4419_v37  ;;  %4442 = vmatpush1.bf16.msra.mxu1 %v4441_v38  ;;  %v4485_v37 = vpack.c.bf16 %v114_v31, %v97_v29  ;;  %v4465_v38 = vpack.c.bf16 %v147_v33, %v130_v32  ;;  %v3615_v58 = vld [vmem:[%s7636_s2 + $0x5e0] sm:$0xff]  ;;  %v3614_v1 = vld [vmem:[%s7636_s2 + $0x5d8] sm:$0xff]  ;;  %v3632_v2 = vld [vmem:[%s7636_s2 + $0x668] sm:$0xff] }
  0x37   :  { %4422 = vmatprep.subr.bf16.mxu0 %v4421_v39  ;;  %4444 = vmatprep.subr.bf16.mxu1 %v4443_v43  ;;  %v129_v39 = vld [vmem:[%s7636_s2 + $0x390] sm:$0xff]  ;;  %v148_v43 = vld [vmem:[%s7636_s2 + $0x428] sm:$0xff]  ;;  %v31_v61 = vld [vmem:[%s7636_s2 + $0x80] sm:$0xff] }
  0x38   :  { %v4467_v48 = vpack.c.bf16 %v146_v40, %v129_v39  ;;  %v3649_v4 = vld [vmem:[%s7636_s2 + $0x6f0] sm:$0xff]  ;;  %v82_v9 = vld [vmem:[%s7636_s2 + $0x218] sm:$0xff]  ;;  %v3683_v15 = vld [vmem:[%s7636_s2 + $0x800] sm:$0xff] }
  0x39   :  { %v65_v8 = vld [vmem:[%s7636_s2 + $0x190] sm:$0xff]  ;;  %v4517_v10 = vpack.c.bf16 %v3649_v4, %v3632_v2  ;;  %v116_v19 = vld [vmem:[%s7636_s2 + $0x328] sm:$0xff]  ;;  %v3682_v22 = vld [vmem:[%s7636_s2 + $0x7f8] sm:$0xff] }
  0x3a   :  { %4424 = vmatpush1.bf16.msra.mxu0 %v4423_v49  ;;  %4446 = vmatpush1.bf16.msra.mxu1 %v4445_v50  ;;  %v4489_v49 = vpack.c.bf16 %v148_v43, %v131_v41  ;;  %v4469_v50 = vpack.c.bf16 %v181_v45, %v164_v44  ;;  %v4501_v16 = vpack.c.bf16 %v82_v9, %v65_v8  ;;  %v3665_v21 = vld [vmem:[%s7636_s2 + $0x770] sm:$0xff]  ;;  %v3700_v23 = vld [vmem:[%s7636_s2 + $0x888] sm:$0xff]  ;;  %v150_v28 = vld [vmem:[%s7636_s2 + $0x438] sm:$0xff] }
  0x3b   :  { %4427 = vmatprep.subr.msk.bf16.mxu0 %vm5229_vm2, %v4425_v52  ;;  %4449 = vmatprep.subr.msk.bf16.mxu1 %vm5229_vm2, %v4447_v56  ;;  %v163_v52 = vld [vmem:[%s7636_s2 + $0x4a0] sm:$0xff]  ;;  %v182_v56 = vld [vmem:[%s7636_s2 + $0x538] sm:$0x7]  ;;  %v133_v27 = vld [vmem:[%s7636_s2 + $0x3b0] sm:$0xff] }
  0x3c   :  { %v4472_v59 = vpack.c.bf16 %v180_v53, %v163_v52  ;;  %v4494_v60 = vpack.c.bf16 %v182_v56, %v165_v55  ;;  %v3716_v31 = vld [vmem:[%s7636_s2 + $0x908] sm:$0xff]  ;;  %v3734_v32 = vld [vmem:[%s7636_s2 + $0x998] sm:$0xff]  ;;  %v3751_v33 = vld [vmem:[%s7636_s2 + $0xa20] sm:$0x7]  ;;  %v4507_v34 = vpack.c.bf16 %v150_v28, %v133_v27 }
  0x3d   :  { %v4529_v39 = vpack.c.bf16 %v3751_v33, %v3734_v32  ;;  %v3750_v40 = vld [vmem:[%s7636_s2 + $0xa18] sm:$0x7]  ;;  %v3600_v41 = vld [vmem:[%s7636_s2 + $0x568] sm:$0xff]  ;;  %v3619_v44 = vld [vmem:[%s7636_s2 + $0x600] sm:$0xff] }
  0x3e   :  { %4430 = vmatpush1.bf16.msk.msra.mxu0 %vm5229_vm2, %v4428_v62  ;;  %4452 = vmatpush1.bf16.msk.msra.mxu1 %vm5229_vm2, %v4450_v63  ;;  %v48_v62 = vld [vmem:[%s7636_s2 + $0x108] sm:$0xff]  ;;  %v4513_v63 = vpack.c.bf16 %v3615_v58, %v3598_v57  ;;  %v3602_v43 = vld [vmem:[%s7636_s2 + $0x578] sm:$0xff]  ;;  %v3651_v55 = vld [vmem:[%s7636_s2 + $0x700] sm:$0xff] }
  0x3f   :  { %4454 = vmatprep.subr.bf16.mxu0 %v4453_v0  ;;  %4476 = vmatprep.subr.bf16.mxu1 %v4475_v5  ;;  %v3597_v0 = vld [vmem:[%s7636_s2 + $0x550] sm:$0xff]  ;;  %v4498_v5 = vpack.c.bf16 %v48_v62, %v31_v61  ;;  %v4557_v52 = vpack.c.bf16 %v3619_v44, %v3602_v43  ;;  %v3618_v53 = vld [vmem:[%s7636_s2 + $0x5f8] sm:$0xff]  ;;  %v3636_v56 = vld [vmem:[%s7636_s2 + $0x688] sm:$0xff] }
  0x40   :  { %v4515_v7 = vpack.c.bf16 %v3614_v1, %v3597_v0  ;;  %v3653_v57 = vld [vmem:[%s7636_s2 + $0x710] sm:$0xff]  ;;  %v3650_v62 = vld [vmem:[%s7636_s2 + $0x6f8] sm:$0xff]  ;;  %v3652_v1 = vld [vmem:[%s7636_s2 + $0x708] sm:$0xff] }
  0x41   :  { %3585 = vmatmul.mubr.msk.f32.vlgmr.msra.gmra.mrb[4].mxu0 %vm185_vm3, %v5293_v13  ;;  %3588 = vmatmul.mubr.msk.f32.vlgmr.msra.gmra.mrb[4].mxu1 %vm185_vm3, %v5293_v13  ;;  %v3633_v61 = vld [vmem:[%s7636_s2 + $0x670] sm:$0xff]  ;;  %v4561_v0 = vpack.c.bf16 %v3653_v57, %v3636_v56  ;;  %v3668_v2 = vld [vmem:[%s7636_s2 + $0x788] sm:$0xff]  ;;  %v3755_v32 = vld [vmem:[%s7636_s2 + $0xa40] sm:$0x7] }
  0x42   :  { %4456 = vmatpush1.bf16.msra.mxu0 %v4455_v11  ;;  %4478 = vmatpush1.bf16.msra.mxu1 %v4477_v12  ;;  %v3631_v11 = vld [vmem:[%s7636_s2 + $0x660] sm:$0xff]  ;;  %v3648_v12 = vld [vmem:[%s7636_s2 + $0x6e8] sm:$0xff]  ;;  %v3685_v4 = vld [vmem:[%s7636_s2 + $0x810] sm:$0xff]  ;;  %v4541_v8 = vpack.c.bf16 %v3650_v62, %v3633_v61 }
  0x43   :  { %4458 = vmatprep.subr.bf16.mxu0 %v4457_v14  ;;  %4480 = vmatprep.subr.bf16.mxu1 %v4479_v18  ;;  %v3666_v14 = vld [vmem:[%s7636_s2 + $0x778] sm:$0xff]  ;;  %v4519_v17 = vpack.c.bf16 %v3648_v12, %v3631_v11  ;;  %v99_v18 = vld [vmem:[%s7636_s2 + $0x2a0] sm:$0xff]  ;;  %v3684_v12 = vld [vmem:[%s7636_s2 + $0x808] sm:$0xff] }
  0x44   :  { %731 = vmatprep.mubr.f32.mxu0 %v5097_v3  ;;  %802 = vmatprep.mubr.f32.mxu1 %v5097_v3  ;;  %v4521_v20 = vpack.c.bf16 %v3683_v15, %v3666_v14  ;;  %v3667_v11 = vld [vmem:[%s7636_s2 + $0x780] sm:$0xff]  ;;  %v3669_v14 = vld [vmem:[%s7636_s2 + $0x790] sm:$0xff]  ;;  %v3720_v28 = vld [vmem:[%s7636_s2 + $0x928] sm:$0xff] }
  0x45   :  { %v3606_v43 = vld [vmem:[%s7636_s2 + $0x598] sm:$0xff]  ;;  %v3623_v44 = vld [vmem:[%s7636_s2 + $0x620] sm:$0xff]  ;;  %v3640_v56 = vld [vmem:[%s7636_s2 + $0x6a8] sm:$0xff] }
  0x46   :  { %4460 = vmatpush1.bf16.msra.mxu0 %v4459_v24  ;;  %4482 = vmatpush1.bf16.msra.mxu1 %v4481_v25  ;;  %v3717_v24 = vld [vmem:[%s7636_s2 + $0x910] sm:$0xff]  ;;  %v4504_v25 = vpack.c.bf16 %v116_v19, %v99_v18  ;;  %v3719_v18 = vld [vmem:[%s7636_s2 + $0x920] sm:$0xff]  ;;  %v3704_v19 = vld [vmem:[%s7636_s2 + $0x8a8] sm:$0xff] }
  0x47   :  { %4462 = vmatprep.subr.bf16.mxu0 %v4461_v26  ;;  %4484 = vmatprep.subr.bf16.mxu1 %v4483_v30  ;;  %v4523_v26 = vpack.c.bf16 %v3682_v22, %v3665_v21  ;;  %v4525_v29 = vpack.c.bf16 %v3717_v24, %v3700_v23  ;;  %v3699_v30 = vld [vmem:[%s7636_s2 + $0x880] sm:$0xff]  ;;  %v4545_v21 = vpack.c.bf16 %v3684_v12, %v3667_v11  ;;  %v3701_v24 = vld [vmem:[%s7636_s2 + $0x890] sm:$0xff]  ;;  %v3654_v62 = vld [vmem:[%s7636_s2 + $0x718] sm:$0xff] }
  0x48   :  { %v4527_v35 = vpack.c.bf16 %v3716_v31, %v3699_v30  ;;  %v3753_v30 = vld [vmem:[%s7636_s2 + $0xa30] sm:$0x7]  ;;  %v3738_v31 = vld [vmem:[%s7636_s2 + $0x9b8] sm:$0xff]  ;;  %v3671_v11 = vld [vmem:[%s7636_s2 + $0x7a0] sm:$0xff] }
  0x49   :  { %v3657_v57 = vld [vmem:[%s7636_s2 + $0x730] sm:$0xff]  ;;  %v3688_v12 = vld [vmem:[%s7636_s2 + $0x828] sm:$0xff] }
  0x4a   :  { %4464 = vmatpush1.bf16.msra.mxu0 %v4463_v36  ;;  %4486 = vmatpush1.bf16.msra.mxu1 %v4485_v37  ;;  %v167_v36 = vld [vmem:[%s7636_s2 + $0x4c0] sm:$0xff]  ;;  %v184_v37 = vld [vmem:[%s7636_s2 + $0x548] sm:$0x7]  ;;  %v3637_v61 = vld [vmem:[%s7636_s2 + $0x690] sm:$0xff] }
  0x4b   :  { %4466 = vmatprep.subr.bf16.mxu0 %v4465_v38  ;;  %4488 = vmatprep.subr.bf16.mxu1 %v4487_v42  ;;  %v3733_v38 = vld [vmem:[%s7636_s2 + $0x990] sm:$0xff]  ;;  %v4510_v45 = vpack.c.bf16 %v184_v37, %v167_v36  ;;  %v3735_v36 = vld [vmem:[%s7636_s2 + $0x9a0] sm:$0xff]  ;;  %v3752_v37 = vld [vmem:[%s7636_s2 + $0xa28] sm:$0x7] }
  0x4c   :  { %v3617_v42 = vld [vmem:[%s7636_s2 + $0x5f0] sm:$0xff]  ;;  %v4532_v46 = vpack.c.bf16 %v3750_v40, %v3733_v38  ;;  %v3754_v40 = vld [vmem:[%s7636_s2 + $0xa38] sm:$0x7] }
  0x4d   :  { %v4535_v47 = vpack.c.bf16 %v3617_v42, %v3600_v41  ;;  %v3737_v38 = vld [vmem:[%s7636_s2 + $0x9b0] sm:$0xff]  ;;  %v3604_v41 = vld [vmem:[%s7636_s2 + $0x588] sm:$0xff] }
  0x4e   :  { %4468 = vmatpush1.bf16.msra.mxu0 %v4467_v48  ;;  %4490 = vmatpush1.bf16.msra.mxu1 %v4489_v49  ;;  %v3599_v48 = vld [vmem:[%s7636_s2 + $0x560] sm:$0xff]  ;;  %v3616_v49 = vld [vmem:[%s7636_s2 + $0x5e8] sm:$0xff]  ;;  %v3621_v42 = vld [vmem:[%s7636_s2 + $0x610] sm:$0xff] }
  0x4f   :  { %4471 = vmatprep.subr.msk.bf16.mxu0 %vm5229_vm2, %v4469_v50  ;;  %4493 = vmatprep.subr.msk.bf16.mxu1 %vm5229_vm2, %v4491_v54  ;;  %v3601_v50 = vld [vmem:[%s7636_s2 + $0x570] sm:$0xff]  ;;  %v3634_v54 = vld [vmem:[%s7636_s2 + $0x678] sm:$0xff]  ;;  %v4537_v58 = vpack.c.bf16 %v3616_v49, %v3599_v48  ;;  %v3603_v48 = vld [vmem:[%s7636_s2 + $0x580] sm:$0xff] }
  0x50   :  { %v3620_v49 = vld [vmem:[%s7636_s2 + $0x608] sm:$0xff] }
  0x52   :  { %4474 = vmatpush1.bf16.msk.msra.mxu0 %vm5229_vm2, %v4472_v59  ;;  %4496 = vmatpush1.bf16.msk.msra.mxu1 %vm5229_vm2, %v4494_v60  ;;  %v4559_v59 = vpack.c.bf16 %v3618_v53, %v3601_v50  ;;  %v4539_v60 = vpack.c.bf16 %v3651_v55, %v3634_v54  ;;  %v3605_v50 = vld [vmem:[%s7636_s2 + $0x590] sm:$0xff]  ;;  %v3622_v53 = vld [vmem:[%s7636_s2 + $0x618] sm:$0xff]  ;;  %v3655_v55 = vld [vmem:[%s7636_s2 + $0x720] sm:$0xff] }
  0x53   :  { %4497 = vmatprep.subr.bf16.mxu0 %v5099_v6  ;;  %4514 = vmatprep.subr.bf16.mxu1 %v4513_v63  ;;  %v3635_v63 = vld [vmem:[%s7636_s2 + $0x680] sm:$0xff]  ;;  %v3638_v54 = vld [vmem:[%s7636_s2 + $0x698] sm:$0xff] }
  0x54   :  { %v4563_v9 = vpack.c.bf16 %v3652_v1, %v3635_v63  ;;  %v3639_v63 = vld [vmem:[%s7636_s2 + $0x6a0] sm:$0xff]  ;;  %v3656_v1 = vld [vmem:[%s7636_s2 + $0x728] sm:$0xff] }
  0x55   :  { %3591 = vmatmul.mubr.msk.f32.vlgmr.msra.gmra.mrb[6].mxu0 %vm185_vm3, %v5293_v13  ;;  %3594 = vmatmul.mubr.msk.f32.vlgmr.msra.gmra.mrb[6].mxu1 %vm185_vm3, %v5293_v13 }
  0x56   :  { %4499 = vmatpush3.bf16.msra.mxu0 %v4498_v5  ;;  %4516 = vmatpush1.bf16.msra.mxu1 %v4515_v7  ;;  %v3670_v5 = vld [vmem:[%s7636_s2 + $0x798] sm:$0xff]  ;;  %v3687_v7 = vld [vmem:[%s7636_s2 + $0x820] sm:$0xff] }
  0x57   :  { %4500 = vmatprep.subr.bf16.mxu0 %v5099_v6  ;;  %4518 = vmatprep.subr.bf16.mxu1 %v4517_v10  ;;  %v4543_v10 = vpack.c.bf16 %v3685_v4, %v3668_v2  ;;  %v4565_v15 = vpack.c.bf16 %v3687_v7, %v3670_v5  ;;  %v3672_v2 = vld [vmem:[%s7636_s2 + $0x7a8] sm:$0xff]  ;;  %v3689_v4 = vld [vmem:[%s7636_s2 + $0x830] sm:$0xff]  ;;  %v3674_v5 = vld [vmem:[%s7636_s2 + $0x7b8] sm:$0xff] }
  0x58   :  { %4249 = vmatprep.mubr.msk.f32.mxu0 %vm5100_vm4, %v5097_v3  ;;  %1165 = vmatprep.mubr.f32.mxu1 %v5097_v3  ;;  %v3691_v7 = vld [vmem:[%s7636_s2 + $0x840] sm:$0xff] }
  0x5a   :  { %4502 = vmatpush3.bf16.msra.mxu0 %v4501_v16  ;;  %4520 = vmatpush1.bf16.msra.mxu1 %v4519_v17  ;;  %v3686_v16 = vld [vmem:[%s7636_s2 + $0x818] sm:$0xff] }
  0x5b   :  { %4503 = vmatprep.subr.bf16.mxu0 %v5099_v6  ;;  %4522 = vmatprep.subr.bf16.mxu1 %v4521_v20  ;;  %v3702_v17 = vld [vmem:[%s7636_s2 + $0x898] sm:$0xff]  ;;  %v3721_v20 = vld [vmem:[%s7636_s2 + $0x930] sm:$0xff]  ;;  %v4567_v22 = vpack.c.bf16 %v3686_v16, %v3669_v14 }
  0x5c   :  { %v4547_v23 = vpack.c.bf16 %v3719_v18, %v3702_v17  ;;  %v4569_v27 = vpack.c.bf16 %v3721_v20, %v3704_v19  ;;  %v3673_v14 = vld [vmem:[%s7636_s2 + $0x7b0] sm:$0xff]  ;;  %v3690_v16 = vld [vmem:[%s7636_s2 + $0x838] sm:$0xff]  ;;  %v3723_v18 = vld [vmem:[%s7636_s2 + $0x940] sm:$0xff] }
  0x5d   :  { %v3706_v17 = vld [vmem:[%s7636_s2 + $0x8b8] sm:$0xff]  ;;  %v3708_v19 = vld [vmem:[%s7636_s2 + $0x8c8] sm:$0xff]  ;;  %v3725_v20 = vld [vmem:[%s7636_s2 + $0x950] sm:$0xff] }
  0x5e   :  { %4505 = vmatpush3.bf16.msra.mxu0 %v4504_v25  ;;  %4524 = vmatpush1.bf16.msra.mxu1 %v4523_v26  ;;  %v3718_v25 = vld [vmem:[%s7636_s2 + $0x918] sm:$0xff]  ;;  %v3703_v26 = vld [vmem:[%s7636_s2 + $0x8a0] sm:$0xff] }
  0x5f   :  { %4506 = vmatprep.subr.bf16.mxu0 %v5099_v6  ;;  %4526 = vmatprep.subr.bf16.mxu1 %v4525_v29  ;;  %v3736_v29 = vld [vmem:[%s7636_s2 + $0x9a8] sm:$0xff]  ;;  %v4549_v33 = vpack.c.bf16 %v3718_v25, %v3701_v24  ;;  %v3705_v24 = vld [vmem:[%s7636_s2 + $0x8b0] sm:$0xff]  ;;  %v3722_v25 = vld [vmem:[%s7636_s2 + $0x938] sm:$0xff] }
  0x62   :  { %4508 = vmatpush3.bf16.msra.mxu0 %v4507_v34  ;;  %4528 = vmatpush1.bf16.msra.mxu1 %v4527_v35  ;;  %v4571_v34 = vpack.c.bf16 %v3720_v28, %v3703_v26  ;;  %v4551_v35 = vpack.c.bf16 %v3753_v30, %v3736_v29  ;;  %v3707_v26 = vld [vmem:[%s7636_s2 + $0x8c0] sm:$0xff]  ;;  %v3724_v28 = vld [vmem:[%s7636_s2 + $0x948] sm:$0xff]  ;;  %v3757_v30 = vld [vmem:[%s7636_s2 + $0xa50] sm:$0x7] }
  0x63   :  { %4509 = vmatprep.subr.bf16.mxu0 %v5099_v6  ;;  %4531 = vmatprep.subr.msk.bf16.mxu1 %vm5229_vm2, %v4529_v39  ;;  %v4573_v39 = vpack.c.bf16 %v3755_v32, %v3738_v31  ;;  %v3740_v29 = vld [vmem:[%s7636_s2 + $0x9c8] sm:$0xff]  ;;  %v3742_v31 = vld [vmem:[%s7636_s2 + $0x9d8] sm:$0xff]  ;;  %v3759_v32 = vld [vmem:[%s7636_s2 + $0xa60] sm:$0x7] }
  0x66   :  { %4512 = vmatpush3.bf16.msk.msra.mxu0 %vm5229_vm2, %v4510_v45  ;;  %4534 = vmatpush1.bf16.msk.msra.mxu1 %vm5229_vm2, %v4532_v46  ;;  %v4554_v45 = vpack.c.bf16 %v3752_v37, %v3735_v36  ;;  %v4576_v46 = vpack.c.bf16 %v3754_v40, %v3737_v38  ;;  %v3739_v36 = vld [vmem:[%s7636_s2 + $0x9c0] sm:$0xff]  ;;  %v3756_v37 = vld [vmem:[%s7636_s2 + $0xa48] sm:$0x7]  ;;  %v3741_v38 = vld [vmem:[%s7636_s2 + $0x9d0] sm:$0xff] }
  0x67   :  { %4536 = vmatprep.subr.bf16.mxu0 %v4535_v47  ;;  %4558 = vmatprep.subr.bf16.mxu1 %v4557_v52  ;;  %v4579_v47 = vpack.c.bf16 %v3621_v42, %v3604_v41  ;;  %v4601_v52 = vpack.c.bf16 %v3623_v44, %v3606_v43  ;;  %v3758_v40 = vld [vmem:[%s7636_s2 + $0xa58] sm:$0x7]  ;;  %v3608_v41 = vld [vmem:[%s7636_s2 + $0x5a8] sm:$0xff]  ;;  %v3625_v42 = vld [vmem:[%s7636_s2 + $0x630] sm:$0xff] }
  0x68   :  { %v3610_v43 = vld [vmem:[%s7636_s2 + $0x5b8] sm:$0xff]  ;;  %v3627_v44 = vld [vmem:[%s7636_s2 + $0x640] sm:$0xff] }
  0x69   :  { %4250 = vmatmul.mubr.msk.f32.vlgmr.msra.gmra.mrb[8].mxu0 %vm185_vm3, %v5293_v13  ;;  %3769 = vmatmul.mubr.msk.f32.vlgmr.msra.gmra.mrb[8].mxu1 %vm185_vm3, %v5293_v13 }
  0x6a   :  { %4538 = vmatpush1.bf16.msra.mxu0 %v4537_v58  ;;  %4560 = vmatpush1.bf16.msra.mxu1 %v4559_v59  ;;  %v4581_v58 = vpack.c.bf16 %v3620_v49, %v3603_v48  ;;  %v4603_v59 = vpack.c.bf16 %v3622_v53, %v3605_v50  ;;  %v3607_v48 = vld [vmem:[%s7636_s2 + $0x5a0] sm:$0xff]  ;;  %v3624_v49 = vld [vmem:[%s7636_s2 + $0x628] sm:$0xff]  ;;  %v3609_v50 = vld [vmem:[%s7636_s2 + $0x5b0] sm:$0xff] }
  0x6b   :  { %4540 = vmatprep.subr.bf16.mxu0 %v4539_v60  ;;  %4562 = vmatprep.subr.bf16.mxu1 %v4561_v0  ;;  %v4583_v60 = vpack.c.bf16 %v3655_v55, %v3638_v54  ;;  %v4605_v0 = vpack.c.bf16 %v3657_v57, %v3640_v56  ;;  %v3626_v53 = vld [vmem:[%s7636_s2 + $0x638] sm:$0xff]  ;;  %v3659_v55 = vld [vmem:[%s7636_s2 + $0x740] sm:$0xff]  ;;  %v3644_v56 = vld [vmem:[%s7636_s2 + $0x6c8] sm:$0xff] }
  0x6c   :  { %1236 = vmatprep.mubr.f32.mxu0 %v5097_v3  ;;  %1307 = vmatprep.mubr.f32.mxu1 %v5097_v3  ;;  %v3642_v54 = vld [vmem:[%s7636_s2 + $0x6b8] sm:$0xff]  ;;  %v3661_v57 = vld [vmem:[%s7636_s2 + $0x750] sm:$0xff] }
  0x6e   :  { %4542 = vmatpush1.bf16.msra.mxu0 %v4541_v8  ;;  %4564 = vmatpush1.bf16.msra.mxu1 %v4563_v9  ;;  %v4585_v8 = vpack.c.bf16 %v3654_v62, %v3637_v61  ;;  %v4607_v9 = vpack.c.bf16 %v3656_v1, %v3639_v63  ;;  %v3641_v61 = vld [vmem:[%s7636_s2 + $0x6b0] sm:$0xff]  ;;  %v3658_v62 = vld [vmem:[%s7636_s2 + $0x738] sm:$0xff]  ;;  %v3643_v63 = vld [vmem:[%s7636_s2 + $0x6c0] sm:$0xff] }
  0x6f   :  { %4544 = vmatprep.subr.bf16.mxu0 %v4543_v10  ;;  %4566 = vmatprep.subr.bf16.mxu1 %v4565_v15  ;;  %v4587_v10 = vpack.c.bf16 %v3689_v4, %v3672_v2  ;;  %v4609_v15 = vpack.c.bf16 %v3691_v7, %v3674_v5  ;;  %v3660_v1 = vld [vmem:[%s7636_s2 + $0x748] sm:$0xff]  ;;  %v3693_v4 = vld [vmem:[%s7636_s2 + $0x850] sm:$0xff]  ;;  %v3678_v5 = vld [vmem:[%s7636_s2 + $0x7d8] sm:$0xff] }
  0x70   :  { %v3676_v2 = vld [vmem:[%s7636_s2 + $0x7c8] sm:$0xff]  ;;  %v3695_v7 = vld [vmem:[%s7636_s2 + $0x860] sm:$0xff] }
  0x72   :  { %4546 = vmatpush1.bf16.msra.mxu0 %v4545_v21  ;;  %4568 = vmatpush1.bf16.msra.mxu1 %v4567_v22  ;;  %v4589_v21 = vpack.c.bf16 %v3688_v12, %v3671_v11  ;;  %v4611_v22 = vpack.c.bf16 %v3690_v16, %v3673_v14  ;;  %v3675_v11 = vld [vmem:[%s7636_s2 + $0x7c0] sm:$0xff]  ;;  %v3692_v12 = vld [vmem:[%s7636_s2 + $0x848] sm:$0xff]  ;;  %v3677_v14 = vld [vmem:[%s7636_s2 + $0x7d0] sm:$0xff] }
  0x73   :  { %4548 = vmatprep.subr.bf16.mxu0 %v4547_v23  ;;  %4570 = vmatprep.subr.bf16.mxu1 %v4569_v27  ;;  %v4591_v23 = vpack.c.bf16 %v3723_v18, %v3706_v17  ;;  %v4613_v27 = vpack.c.bf16 %v3725_v20, %v3708_v19  ;;  %v3710_v16 = vld [vmem:[%s7636_s2 + $0x8d8] sm:$0xff]  ;;  %v3727_v17 = vld [vmem:[%s7636_s2 + $0x960] sm:$0xff]  ;;  %v3712_v18 = vld [vmem:[%s7636_s2 + $0x8e8] sm:$0xff]  ;;  %v4633_v20 = vpack.c.bf16 %v3692_v12, %v3675_v11 }
  0x74   :  { %v3729_v19 = vld [vmem:[%s7636_s2 + $0x970] sm:$0xff] }
  0x75   :  { %v3713_v12 = vld [vmem:[%s7636_s2 + $0x8f0] sm:$0xff] }
  0x76   :  { %4550 = vmatpush1.bf16.msra.mxu0 %v4549_v33  ;;  %4572 = vmatpush1.bf16.msra.mxu1 %v4571_v34  ;;  %v4593_v33 = vpack.c.bf16 %v3722_v25, %v3705_v24  ;;  %v4615_v34 = vpack.c.bf16 %v3724_v28, %v3707_v26  ;;  %v3726_v24 = vld [vmem:[%s7636_s2 + $0x958] sm:$0xff]  ;;  %v3711_v25 = vld [vmem:[%s7636_s2 + $0x8e0] sm:$0xff]  ;;  %v4657_v26 = vpack.c.bf16 %v3729_v19, %v3712_v18  ;;  %v3744_v28 = vld [vmem:[%s7636_s2 + $0x9e8] sm:$0xff] }
  0x77   :  { %4553 = vmatprep.subr.msk.bf16.mxu0 %vm5229_vm2, %v4551_v35  ;;  %4575 = vmatprep.subr.msk.bf16.mxu1 %vm5229_vm2, %v4573_v39  ;;  %v4595_v35 = vpack.c.bf16 %v3757_v30, %v3740_v29  ;;  %v4617_v39 = vpack.c.bf16 %v3759_v32, %v3742_v31  ;;  %v3761_v29 = vld [vmem:[%s7636_s2 + $0xa70] sm:$0x7]  ;;  %v3746_v30 = vld [vmem:[%s7636_s2 + $0x9f8] sm:$0xff]  ;;  %v3763_v31 = vld [vmem:[%s7636_s2 + $0xa80] sm:$0x7] }
  0x7a   :  { %4556 = vmatpush1.bf16.msk.msra.mxu0 %vm5229_vm2, %v4554_v45  ;;  %4578 = vmatpush1.bf16.msk.msra.mxu1 %vm5229_vm2, %v4576_v46  ;;  %v4598_v45 = vpack.c.bf16 %v3756_v37, %v3739_v36  ;;  %v4620_v46 = vpack.c.bf16 %v3758_v40, %v3741_v38  ;;  %v3760_v36 = vld [vmem:[%s7636_s2 + $0xa68] sm:$0x7]  ;;  %v3745_v37 = vld [vmem:[%s7636_s2 + $0x9f0] sm:$0xff]  ;;  %v4661_v38 = vpack.c.bf16 %v3763_v31, %v3746_v30 }
  0x7b   :  { %4580 = vmatprep.subr.bf16.mxu0 %v4579_v47  ;;  %4602 = vmatprep.subr.bf16.mxu1 %v4601_v52  ;;  %v4623_v47 = vpack.c.bf16 %v3625_v42, %v3608_v41  ;;  %v4645_v52 = vpack.c.bf16 %v3627_v44, %v3610_v43  ;;  %v3612_v40 = vld [vmem:[%s7636_s2 + $0x5c8] sm:$0xff]  ;;  %v3629_v41 = vld [vmem:[%s7636_s2 + $0x650] sm:$0xff] }
  0x7c   :  { %v4667_v44 = vpack.c.bf16 %v3629_v41, %v3612_v40  ;;  %v3847_v40 = vld [vmem:[%s7636_s2 + $0xc50] sm:$0xff] }
  0x7d   :  { %3772 = vmatmul.mubr.msk.f32.vlgmr.msra.gmra.mrb[10].mxu0 %vm185_vm3, %v5293_v13  ;;  %3775 = vmatmul.mubr.msk.f32.vlgmr.msra.gmra.mrb[10].mxu1 %vm185_vm3, %v5293_v13 }
  0x7e   :  { %4582 = vmatpush1.bf16.msra.mxu0 %v4581_v58  ;;  %4604 = vmatpush1.bf16.msra.mxu1 %v4603_v59  ;;  %v4625_v58 = vpack.c.bf16 %v3624_v49, %v3607_v48  ;;  %v4647_v59 = vpack.c.bf16 %v3626_v53, %v3609_v50  ;;  %v3630_v48 = vld [vmem:[%s7636_s2 + $0x658] sm:$0xff]  ;;  %v3663_v50 = vld [vmem:[%s7636_s2 + $0x760] sm:$0xff] }
  0x7f   :  { %4584 = vmatprep.subr.bf16.mxu0 %v4583_v60  ;;  %4606 = vmatprep.subr.bf16.mxu1 %v4605_v0  ;;  %v4627_v60 = vpack.c.bf16 %v3659_v55, %v3642_v54  ;;  %v4649_v0 = vpack.c.bf16 %v3661_v57, %v3644_v56  ;;  %v3646_v49 = vld [vmem:[%s7636_s2 + $0x6d8] sm:$0xff]  ;;  %v3645_v55 = vld [vmem:[%s7636_s2 + $0x6d0] sm:$0xff]  ;;  %v3647_v57 = vld [vmem:[%s7636_s2 + $0x6e0] sm:$0xff] }
  0x80   :  { %1378 = vmatprep.mubr.f32.mxu0 %v5097_v3  ;;  %1449 = vmatprep.mubr.f32.mxu1 %v5097_v3  ;;  %v4671_v54 = vpack.c.bf16 %v3663_v50, %v3646_v49  ;;  %v3662_v56 = vld [vmem:[%s7636_s2 + $0x758] sm:$0xff]  ;;  %v3862_v49 = vld [vmem:[%s7636_s2 + $0xcc8] sm:$0xff]  ;;  %v3879_v50 = vld [vmem:[%s7636_s2 + $0xd50] sm:$0xff] }
  0x82   :  { %4586 = vmatpush1.bf16.msra.mxu0 %v4585_v8  ;;  %4608 = vmatpush1.bf16.msra.mxu1 %v4607_v9  ;;  %v4629_v8 = vpack.c.bf16 %v3658_v62, %v3641_v61  ;;  %v4651_v9 = vpack.c.bf16 %v3660_v1, %v3643_v63  ;;  %v6219_v61 = vld [vmem:[%s7637_s0] sm:$0x3f]  ;;  %v4673_v62 = vpack.c.bf16 %v3662_v56, %v3645_v55 }
  0x83   :  { %4588 = vmatprep.subr.bf16.mxu0 %v4587_v10  ;;  %4610 = vmatprep.subr.bf16.mxu1 %v4609_v15  ;;  %v4631_v10 = vpack.c.bf16 %v3693_v4, %v3676_v2  ;;  %v3694_v15 = vld [vmem:[%s7636_s2 + $0x858] sm:$0xff]  ;;  %v3679_v1 = vld [vmem:[%s7636_s2 + $0x7e0] sm:$0xff]  ;;  %v3696_v2 = vld [vmem:[%s7636_s2 + $0x868] sm:$0xff]  ;;  %v4713_v56 = vpack.c.bf16 %v3879_v50, %v3862_v49 }
  0x84   :  { %v3681_v4 = vld [vmem:[%s7636_s2 + $0x7f0] sm:$0xff]  ;;  %v3866_v49 = vld [vmem:[%s7636_s2 + $0xce8] sm:$0xff] }
  0x85   :  { %v3883_v50 = vld [vmem:[%s7636_s2 + $0xd70] sm:$0xff] }
  0x86   :  { %4590 = vmatpush1.bf16.msra.mxu0 %v4589_v21  ;;  %4612 = vmatpush1.bf16.msra.mxu1 %v4611_v22  ;;  %v4655_v21 = vpack.c.bf16 %v3694_v15, %v3677_v14  ;;  %v4635_v22 = vpack.c.bf16 %v3727_v17, %v3710_v16  ;;  %v3730_v14 = vld [vmem:[%s7636_s2 + $0x978] sm:$0xff]  ;;  %v3732_v15 = vld [vmem:[%s7636_s2 + $0x988] sm:$0xff]  ;;  %v3765_v17 = vld [vmem:[%s7636_s2 + $0xa90] sm:$0x7] }
  0x87   :  { %4592 = vmatprep.subr.bf16.mxu0 %v4591_v23  ;;  %4614 = vmatprep.subr.bf16.mxu1 %v4613_v27  ;;  %v3709_v23 = vld [vmem:[%s7636_s2 + $0x8d0] sm:$0xff]  ;;  %v3728_v27 = vld [vmem:[%s7636_s2 + $0x968] sm:$0xff]  ;;  %v4681_v18 = vpack.c.bf16 %v3730_v14, %v3713_v12 }
  0x88   :  { %v4637_v32 = vpack.c.bf16 %v3726_v24, %v3709_v23  ;;  %v3748_v16 = vld [vmem:[%s7636_s2 + $0xa08] sm:$0xff]  ;;  %v3749_v23 = vld [vmem:[%s7636_s2 + $0xa10] sm:$0xff]  ;;  %v3766_v24 = vld [vmem:[%s7636_s2 + $0xa98] sm:$0x7] }
  0x89   :  { %v4702_v30 = vpack.c.bf16 %v3766_v24, %v3749_v23  ;;  %v3914_v12 = vld [vmem:[%s7636_s2 + $0xe68] sm:$0xff]  ;;  %v3948_v24 = vld [vmem:[%s7636_s2 + $0xf78] sm:$0x7] }
  0x8a   :  { %4594 = vmatpush1.bf16.msra.mxu0 %v4593_v33  ;;  %4616 = vmatpush1.bf16.msra.mxu1 %v4615_v34  ;;  %v4659_v33 = vpack.c.bf16 %v3728_v27, %v3711_v25  ;;  %v4639_v34 = vpack.c.bf16 %v3761_v29, %v3744_v28  ;;  %v3794_v25 = vld [vmem:[%s7636_s2 + $0xaa8] sm:$0xff]  ;;  %v3796_v27 = vld [vmem:[%s7636_s2 + $0xab8] sm:$0xff]  ;;  %v3813_v28 = vld [vmem:[%s7636_s2 + $0xb40] sm:$0xff] }
  0x8b   :  { %4597 = vmatprep.subr.msk.bf16.mxu0 %vm5229_vm2, %v4595_v35  ;;  %4619 = vmatprep.subr.msk.bf16.mxu1 %vm5229_vm2, %v4617_v39  ;;  %v3743_v35 = vld [vmem:[%s7636_s2 + $0x9e0] sm:$0xff]  ;;  %v3762_v39 = vld [vmem:[%s7636_s2 + $0xa78] sm:$0x7]  ;;  %v3930_v14 = vld [vmem:[%s7636_s2 + $0xee8] sm:$0xff] }
  0x8c   :  { %v4642_v42 = vpack.c.bf16 %v3760_v36, %v3743_v35  ;;  %v4664_v43 = vpack.c.bf16 %v3762_v39, %v3745_v37  ;;  %v4727_v35 = vpack.c.bf16 %v3813_v28, %v3796_v27  ;;  %v3812_v36 = vld [vmem:[%s7636_s2 + $0xb38] sm:$0xff]  ;;  %v3830_v39 = vld [vmem:[%s7636_s2 + $0xbc8] sm:$0xff]  ;;  %v3817_v28 = vld [vmem:[%s7636_s2 + $0xb60] sm:$0xff] }
  0x8d   :  { %v3828_v37 = vld [vmem:[%s7636_s2 + $0xbb8] sm:$0xff] }
  0x8e   :  { %4600 = vmatpush1.bf16.msk.msra.mxu0 %vm5229_vm2, %v4598_v45  ;;  %4622 = vmatpush1.bf16.msk.msra.mxu1 %vm5229_vm2, %v4620_v46  ;;  %v3611_v45 = vld [vmem:[%s7636_s2 + $0x5c0] sm:$0xff]  ;;  %v3628_v46 = vld [vmem:[%s7636_s2 + $0x648] sm:$0xff]  ;;  %v3800_v27 = vld [vmem:[%s7636_s2 + $0xad8] sm:$0xff] }
  0x8f   :  { %4624 = vmatprep.subr.bf16.mxu0 %v4623_v47  ;;  %4646 = vmatprep.subr.bf16.mxu1 %v4645_v52  ;;  %v3613_v47 = vld [vmem:[%s7636_s2 + $0x5d0] sm:$0xff]  ;;  %v4669_v52 = vpack.c.bf16 %v3628_v46, %v3611_v45  ;;  %v3844_v45 = vld [vmem:[%s7636_s2 + $0xc38] sm:$0xff]  ;;  %v3829_v46 = vld [vmem:[%s7636_s2 + $0xbc0] sm:$0xff] }
  0x90   :  { %v4690_v53 = vpack.c.bf16 %v3630_v48, %v3613_v47  ;;  %v4731_v47 = vpack.c.bf16 %v3847_v40, %v3830_v39  ;;  %v3846_v48 = vld [vmem:[%s7636_s2 + $0xc48] sm:$0xff]  ;;  %v3851_v40 = vld [vmem:[%s7636_s2 + $0xc70] sm:$0xff] }
  0x91   :  { %3778 = vmatmul.mubr.msk.f32.vlgmr.msra.gmra.mrb[12].mxu0 %vm185_vm3, %v5293_v13  ;;  %3781 = vmatmul.mubr.msk.f32.vlgmr.msra.gmra.mrb[12].mxu1 %vm185_vm3, %v5293_v13  ;;  %v4653_v13 = vpack.c.bf16 %v3695_v7, %v3678_v5  ;;  %v3698_v5 = vld [vmem:[%s7636_s2 + $0x878] sm:$0xff]  ;;  %v4733_v55 = vpack.c.bf16 %v3846_v48, %v3829_v46  ;;  %v3834_v39 = vld [vmem:[%s7636_s2 + $0xbe8] sm:$0xff]  ;;  %v3833_v46 = vld [vmem:[%s7636_s2 + $0xbe0] sm:$0xff] }
  0x92   :  { %4626 = vmatpush1.bf16.msra.mxu0 %v4625_v58  ;;  %4648 = vmatpush1.bf16.msra.mxu1 %v4647_v59  ;;  %v3664_v58 = vld [vmem:[%s7636_s2 + $0x768] sm:$0xff]  ;;  %v3714_v7 = vld [vmem:[%s7636_s2 + $0x8f8] sm:$0xff] }
  0x93   :  { %4628 = vmatprep.subr.bf16.mxu0 %v4627_v60  ;;  %4650 = vmatprep.subr.bf16.mxu1 %v4649_v0  ;;  %v3680_v59 = vld [vmem:[%s7636_s2 + $0x7e8] sm:$0xff]  ;;  %v3697_v60 = vld [vmem:[%s7636_s2 + $0x870] sm:$0xff]  ;;  %v4693_v63 = vpack.c.bf16 %v3664_v58, %v3647_v57  ;;  %v3861_v57 = vld [vmem:[%s7636_s2 + $0xcc0] sm:$0xff] }
  0x94   :  { %1520 = vmatprep.mubr.f32.mxu0 %v5097_v3  ;;  %1591 = vmatprep.mubr.f32.mxu1 %v5097_v3  ;;  %v4675_v0 = vpack.c.bf16 %v3697_v60, %v3680_v59  ;;  %v3878_v58 = vld [vmem:[%s7636_s2 + $0xd48] sm:$0xff]  ;;  %v3863_v59 = vld [vmem:[%s7636_s2 + $0xcd0] sm:$0xff] }
  0x95   :  { %v3850_v48 = vld [vmem:[%s7636_s2 + $0xc68] sm:$0xff] }
  0x96   :  { %4630 = vmatpush1.bf16.msra.mxu0 %v4629_v8  ;;  %4652 = vmatpush1.bf16.msra.mxu1 %v4651_v9  ;;  %v3731_v8 = vld [vmem:[%s7636_s2 + $0x980] sm:$0xff]  ;;  %v4677_v9 = vpack.c.bf16 %v3696_v2, %v3679_v1  ;;  %v3898_v1 = vld [vmem:[%s7636_s2 + $0xde8] sm:$0xff]  ;;  %v3915_v2 = vld [vmem:[%s7636_s2 + $0xe70] sm:$0xff] }
  0x97   :  { %4632 = vmatprep.subr.bf16.mxu0 %v4631_v10  ;;  %4654 = vmatprep.subr.bf16.mxu1 %v4653_v13  ;;  %v4696_v10 = vpack.c.bf16 %v3698_v5, %v3681_v4  ;;  %v4679_v11 = vpack.c.bf16 %v3731_v8, %v3714_v7  ;;  %v3715_v13 = vld [vmem:[%s7636_s2 + $0x900] sm:$0xff]  ;;  %v4715_v4 = vpack.c.bf16 %v3878_v58, %v3861_v57  ;;  %v3895_v8 = vld [vmem:[%s7636_s2 + $0xdd0] sm:$0xff]  ;;  %v3882_v58 = vld [vmem:[%s7636_s2 + $0xd68] sm:$0xff] }
  0x98   :  { %v4699_v19 = vpack.c.bf16 %v3732_v15, %v3715_v13  ;;  %v3947_v13 = vld [vmem:[%s7636_s2 + $0xf70] sm:$0x7]  ;;  %v3932_v15 = vld [vmem:[%s7636_s2 + $0xef8] sm:$0xff]  ;;  %v3865_v57 = vld [vmem:[%s7636_s2 + $0xce0] sm:$0xff] }
  0x9a   :  { %4634 = vmatpush1.bf16.msra.mxu0 %v4633_v20  ;;  %4656 = vmatpush1.bf16.msra.mxu1 %v4655_v21  ;;  %v4683_v20 = vpack.c.bf16 %v3765_v17, %v3748_v16  ;;  %v3747_v21 = vld [vmem:[%s7636_s2 + $0xa00] sm:$0xff] }
  0x9b   :  { %4636 = vmatprep.subr.bf16.mxu0 %v4635_v22  ;;  %4658 = vmatprep.subr.bf16.mxu1 %v4657_v26  ;;  %v3764_v22 = vld [vmem:[%s7636_s2 + $0xa88] sm:$0x7]  ;;  %v3811_v26 = vld [vmem:[%s7636_s2 + $0xb30] sm:$0xff]  ;;  %v3949_v16 = vld [vmem:[%s7636_s2 + $0xf80] sm:$0x7] }
  0x9c   :  { %v4686_v29 = vpack.c.bf16 %v3764_v22, %v3747_v21  ;;  %v4705_v31 = vpack.c.bf16 %v3811_v26, %v3794_v25  ;;  %v3946_v21 = vld [vmem:[%s7636_s2 + $0xf68] sm:$0x7]  ;;  %v3931_v22 = vld [vmem:[%s7636_s2 + $0xef0] sm:$0xff]  ;;  %v4743_v23 = vpack.c.bf16 %v3949_v16, %v3932_v15  ;;  %v3936_v15 = vld [vmem:[%s7636_s2 + $0xf18] sm:$0xff] }
  0x9d   :  { %v3798_v25 = vld [vmem:[%s7636_s2 + $0xac8] sm:$0xff]  ;;  %v3815_v26 = vld [vmem:[%s7636_s2 + $0xb50] sm:$0xff]  ;;  %v3953_v16 = vld [vmem:[%s7636_s2 + $0xfa0] sm:$0x7] }
  0x9e   :  { %4638 = vmatpush1.bf16.msra.mxu0 %v4637_v32  ;;  %4660 = vmatpush1.bf16.msra.mxu1 %v4659_v33  ;;  %v3793_v32 = vld [vmem:[%s7636_s2 + $0xaa0] sm:$0xff]  ;;  %v3810_v33 = vld [vmem:[%s7636_s2 + $0xb28] sm:$0xff] }
  0x9f   :  { %4641 = vmatprep.subr.msk.bf16.mxu0 %vm5229_vm2, %v4639_v34  ;;  %4663 = vmatprep.subr.msk.bf16.mxu1 %vm5229_vm2, %v4661_v38  ;;  %v3795_v34 = vld [vmem:[%s7636_s2 + $0xab0] sm:$0xff]  ;;  %v3845_v38 = vld [vmem:[%s7636_s2 + $0xc40] sm:$0xff]  ;;  %v4707_v41 = vpack.c.bf16 %v3810_v33, %v3793_v32  ;;  %v3814_v33 = vld [vmem:[%s7636_s2 + $0xb48] sm:$0xff] }
  0xa0   :  { %v3797_v32 = vld [vmem:[%s7636_s2 + $0xac0] sm:$0xff] }
  0xa2   :  { %4644 = vmatpush1.bf16.msk.msra.mxu0 %vm5229_vm2, %v4642_v42  ;;  %4666 = vmatpush1.bf16.msk.msra.mxu1 %vm5229_vm2, %v4664_v43  ;;  %v4729_v42 = vpack.c.bf16 %v3812_v36, %v3795_v34  ;;  %v4709_v43 = vpack.c.bf16 %v3845_v38, %v3828_v37  ;;  %v3799_v34 = vld [vmem:[%s7636_s2 + $0xad0] sm:$0xff]  ;;  %v3816_v36 = vld [vmem:[%s7636_s2 + $0xb58] sm:$0xff]  ;;  %v3849_v38 = vld [vmem:[%s7636_s2 + $0xc60] sm:$0xff] }
  0xa3   :  { %4668 = vmatprep.subr.bf16.mxu0 %v4667_v44  ;;  %4689 = vmatprep.subr.bf16.mxu1 %v5099_v6  ;;  %v3827_v44 = vld [vmem:[%s7636_s2 + $0xbb0] sm:$0xff]  ;;  %v3832_v37 = vld [vmem:[%s7636_s2 + $0xbd8] sm:$0xff] }
  0xa5   :  { %3784 = vmatmul.mubr.msk.f32.vlgmr.msra.gmra.mrb[14].mxu0 %vm185_vm3, %v6219_v61  ;;  %3787 = vmatmul.mubr.msk.f32.vlgmr.msra.gmra.mrb[14].mxu1 %vm185_vm3, %v6219_v61 }
  0xa6   :  { %4670 = vmatpush1.bf16.msra.mxu0 %v4669_v52  ;;  %4691 = vmatpush3.bf16.msra.mxu1 %v4690_v53  ;;  %v3864_v52 = vld [vmem:[%s7636_s2 + $0xcd8] sm:$0xff]  ;;  %v3881_v53 = vld [vmem:[%s7636_s2 + $0xd60] sm:$0xff] }
  0xa7   :  { %4672 = vmatprep.subr.bf16.mxu0 %v4671_v54  ;;  %4692 = vmatprep.subr.bf16.mxu1 %v5099_v6  ;;  %v4711_v54 = vpack.c.bf16 %v3844_v45, %v3827_v44  ;;  %v4735_v60 = vpack.c.bf16 %v3881_v53, %v3864_v52  ;;  %v3831_v44 = vld [vmem:[%s7636_s2 + $0xbd0] sm:$0xff]  ;;  %v3848_v45 = vld [vmem:[%s7636_s2 + $0xc58] sm:$0xff]  ;;  %v3885_v53 = vld [vmem:[%s7636_s2 + $0xd80] sm:$0xff] }
  0xa8   :  { %1662 = vmatprep.mubr.f32.mxu0 %v5097_v3  ;;  %4272 = vmatprep.mubr.msk.f32.mxu1 %vm5100_vm4, %v5097_v3  ;;  %v3868_v52 = vld [vmem:[%s7636_s2 + $0xcf8] sm:$0xff] }
  0xaa   :  { %4674 = vmatpush1.bf16.msra.mxu0 %v4673_v62  ;;  %4694 = vmatpush3.bf16.msra.mxu1 %v4693_v63  ;;  %v3880_v62 = vld [vmem:[%s7636_s2 + $0xd58] sm:$0xff] }
  0xab   :  { %4676 = vmatprep.subr.bf16.mxu0 %v4675_v0  ;;  %4695 = vmatprep.subr.bf16.mxu1 %v5099_v6  ;;  %v3896_v63 = vld [vmem:[%s7636_s2 + $0xdd8] sm:$0xff]  ;;  %v3913_v0 = vld [vmem:[%s7636_s2 + $0xe60] sm:$0xff]  ;;  %v4737_v5 = vpack.c.bf16 %v3880_v62, %v3863_v59  ;;  %v3867_v59 = vld [vmem:[%s7636_s2 + $0xcf0] sm:$0xff] }
  0xac   :  { %v4717_v7 = vpack.c.bf16 %v3913_v0, %v3896_v63  ;;  %v3884_v62 = vld [vmem:[%s7636_s2 + $0xd78] sm:$0xff]  ;;  %v3917_v0 = vld [vmem:[%s7636_s2 + $0xe80] sm:$0xff] }
  0xad   :  { %v3900_v63 = vld [vmem:[%s7636_s2 + $0xdf8] sm:$0xff] }
  0xae   :  { %4678 = vmatpush1.bf16.msra.mxu0 %v4677_v9  ;;  %4697 = vmatpush3.bf16.msra.mxu1 %v4696_v10  ;;  %v3912_v9 = vld [vmem:[%s7636_s2 + $0xe58] sm:$0xff]  ;;  %v3897_v10 = vld [vmem:[%s7636_s2 + $0xde0] sm:$0xff] }
  0xaf   :  { %4680 = vmatprep.subr.bf16.mxu0 %v4679_v11  ;;  %4698 = vmatprep.subr.bf16.mxu1 %v5099_v6  ;;  %v4739_v11 = vpack.c.bf16 %v3915_v2, %v3898_v1  ;;  %v4719_v17 = vpack.c.bf16 %v3912_v9, %v3895_v8  ;;  %v3902_v1 = vld [vmem:[%s7636_s2 + $0xe08] sm:$0xff]  ;;  %v3919_v2 = vld [vmem:[%s7636_s2 + $0xe90] sm:$0xff]  ;;  %v3916_v9 = vld [vmem:[%s7636_s2 + $0xe78] sm:$0xff] }
  0xb0   :  { %v3899_v8 = vld [vmem:[%s7636_s2 + $0xdf0] sm:$0xff] }
  0xb2   :  { %4682 = vmatpush1.bf16.msra.mxu0 %v4681_v18  ;;  %4700 = vmatpush3.bf16.msra.mxu1 %v4699_v19  ;;  %v4741_v18 = vpack.c.bf16 %v3914_v12, %v3897_v10  ;;  %v4721_v19 = vpack.c.bf16 %v3947_v13, %v3930_v14  ;;  %v3901_v10 = vld [vmem:[%s7636_s2 + $0xe00] sm:$0xff]  ;;  %v3918_v12 = vld [vmem:[%s7636_s2 + $0xe88] sm:$0xff]  ;;  %v3951_v13 = vld [vmem:[%s7636_s2 + $0xf90] sm:$0x7] }
  0xb3   :  { %4685 = vmatprep.subr.msk.bf16.mxu0 %vm5229_vm2, %v4683_v20  ;;  %4701 = vmatprep.subr.bf16.mxu1 %v5099_v6  ;;  %v3929_v20 = vld [vmem:[%s7636_s2 + $0xee0] sm:$0xff]  ;;  %v3934_v14 = vld [vmem:[%s7636_s2 + $0xf08] sm:$0xff] }
  0xb6   :  { %4688 = vmatpush1.bf16.msk.msra.mxu0 %vm5229_vm2, %v4686_v29  ;;  %4704 = vmatpush3.bf16.msk.msra.mxu1 %vm5229_vm2, %v4702_v30  ;;  %v4724_v29 = vpack.c.bf16 %v3946_v21, %v3929_v20  ;;  %v4746_v30 = vpack.c.bf16 %v3948_v24, %v3931_v22  ;;  %v3933_v20 = vld [vmem:[%s7636_s2 + $0xf00] sm:$0xff]  ;;  %v3950_v21 = vld [vmem:[%s7636_s2 + $0xf88] sm:$0x7]  ;;  %v3935_v22 = vld [vmem:[%s7636_s2 + $0xf10] sm:$0xff] }
  0xb7   :  { %4706 = vmatprep.subr.bf16.mxu0 %v4705_v31  ;;  %4728 = vmatprep.subr.bf16.mxu1 %v4727_v35  ;;  %v4749_v31 = vpack.c.bf16 %v3815_v26, %v3798_v25  ;;  %v4771_v35 = vpack.c.bf16 %v3817_v28, %v3800_v27  ;;  %v3952_v24 = vld [vmem:[%s7636_s2 + $0xf98] sm:$0x7]  ;;  %v3802_v25 = vld [vmem:[%s7636_s2 + $0xae8] sm:$0xff]  ;;  %v3819_v26 = vld [vmem:[%s7636_s2 + $0xb70] sm:$0xff] }
  0xb8   :  { %v3804_v27 = vld [vmem:[%s7636_s2 + $0xaf8] sm:$0xff]  ;;  %v3821_v28 = vld [vmem:[%s7636_s2 + $0xb80] sm:$0xff] }
  0xb9   :  { %3790 = vmatmul.mubr.msk.f32.vlgmr.msra.gmra.mrb[16].mxu0 %vm185_vm3, %v6219_v61  ;;  %4273 = vmatmul.mubr.msk.f32.vlgmr.msra.gmra.mrb[16].mxu1 %vm185_vm3, %v6219_v61 }
  0xba   :  { %4708 = vmatpush1.bf16.msra.mxu0 %v4707_v41  ;;  %4730 = vmatpush1.bf16.msra.mxu1 %v4729_v42  ;;  %v4751_v41 = vpack.c.bf16 %v3814_v33, %v3797_v32  ;;  %v4773_v42 = vpack.c.bf16 %v3816_v36, %v3799_v34  ;;  %v3801_v32 = vld [vmem:[%s7636_s2 + $0xae0] sm:$0xff]  ;;  %v3818_v33 = vld [vmem:[%s7636_s2 + $0xb68] sm:$0xff]  ;;  %v3803_v34 = vld [vmem:[%s7636_s2 + $0xaf0] sm:$0xff] }
  0xbb   :  { %4710 = vmatprep.subr.bf16.mxu0 %v4709_v43  ;;  %4732 = vmatprep.subr.bf16.mxu1 %v4731_v47  ;;  %v4753_v43 = vpack.c.bf16 %v3849_v38, %v3832_v37  ;;  %v4775_v47 = vpack.c.bf16 %v3851_v40, %v3834_v39  ;;  %v3820_v36 = vld [vmem:[%s7636_s2 + $0xb78] sm:$0xff]  ;;  %v3853_v38 = vld [vmem:[%s7636_s2 + $0xc80] sm:$0xff]  ;;  %v3838_v39 = vld [vmem:[%s7636_s2 + $0xc08] sm:$0xff] }
  0xbc   :  { %2042 = vmatprep.mubr.f32.mxu0 %v5097_v3  ;;  %2113 = vmatprep.mubr.f32.mxu1 %v5097_v3  ;;  %v3836_v37 = vld [vmem:[%s7636_s2 + $0xbf8] sm:$0xff]  ;;  %v3855_v40 = vld [vmem:[%s7636_s2 + $0xc90] sm:$0xff] }
  0xbe   :  { %4712 = vmatpush1.bf16.msra.mxu0 %v4711_v54  ;;  %4734 = vmatpush1.bf16.msra.mxu1 %v4733_v55  ;;  %v4755_v54 = vpack.c.bf16 %v3848_v45, %v3831_v44  ;;  %v4777_v55 = vpack.c.bf16 %v3850_v48, %v3833_v46  ;;  %v3835_v44 = vld [vmem:[%s7636_s2 + $0xbf0] sm:$0xff]  ;;  %v3852_v45 = vld [vmem:[%s7636_s2 + $0xc78] sm:$0xff]  ;;  %v3837_v46 = vld [vmem:[%s7636_s2 + $0xc00] sm:$0xff] }
  0xbf   :  { %4714 = vmatprep.subr.bf16.mxu0 %v4713_v56  ;;  %4736 = vmatprep.subr.bf16.mxu1 %v4735_v60  ;;  %v4757_v56 = vpack.c.bf16 %v3883_v50, %v3866_v49  ;;  %v4779_v60 = vpack.c.bf16 %v3885_v53, %v3868_v52  ;;  %v3854_v48 = vld [vmem:[%s7636_s2 + $0xc88] sm:$0xff]  ;;  %v3887_v50 = vld [vmem:[%s7636_s2 + $0xd90] sm:$0xff]  ;;  %v3872_v52 = vld [vmem:[%s7636_s2 + $0xd18] sm:$0xff] }
  0xc0   :  { %v3870_v49 = vld [vmem:[%s7636_s2 + $0xd08] sm:$0xff]  ;;  %v3889_v53 = vld [vmem:[%s7636_s2 + $0xda0] sm:$0xff] }
  0xc2   :  { %4716 = vmatpush1.bf16.msra.mxu0 %v4715_v4  ;;  %4738 = vmatpush1.bf16.msra.mxu1 %v4737_v5  ;;  %v4759_v4 = vpack.c.bf16 %v3882_v58, %v3865_v57  ;;  %v4781_v5 = vpack.c.bf16 %v3884_v62, %v3867_v59  ;;  %v3869_v57 = vld [vmem:[%s7636_s2 + $0xd00] sm:$0xff]  ;;  %v3886_v58 = vld [vmem:[%s7636_s2 + $0xd88] sm:$0xff]  ;;  %v3871_v59 = vld [vmem:[%s7636_s2 + $0xd10] sm:$0xff] }
  0xc3   :  { %4718 = vmatprep.subr.bf16.mxu0 %v4717_v7  ;;  %4740 = vmatprep.subr.bf16.mxu1 %v4739_v11  ;;  %v4761_v7 = vpack.c.bf16 %v3917_v0, %v3900_v63  ;;  %v4783_v11 = vpack.c.bf16 %v3919_v2, %v3902_v1  ;;  %v3888_v62 = vld [vmem:[%s7636_s2 + $0xd98] sm:$0xff]  ;;  %v3921_v0 = vld [vmem:[%s7636_s2 + $0xea0] sm:$0xff]  ;;  %v3906_v1 = vld [vmem:[%s7636_s2 + $0xe28] sm:$0xff] }
  0xc4   :  { %v3904_v63 = vld [vmem:[%s7636_s2 + $0xe18] sm:$0xff]  ;;  %v3923_v2 = vld [vmem:[%s7636_s2 + $0xeb0] sm:$0xff] }
  0xc6   :  { %4720 = vmatpush1.bf16.msra.mxu0 %v4719_v17  ;;  %4742 = vmatpush1.bf16.msra.mxu1 %v4741_v18  ;;  %v4763_v17 = vpack.c.bf16 %v3916_v9, %v3899_v8  ;;  %v4785_v18 = vpack.c.bf16 %v3918_v12, %v3901_v10  ;;  %v3903_v8 = vld [vmem:[%s7636_s2 + $0xe10] sm:$0xff]  ;;  %v3920_v9 = vld [vmem:[%s7636_s2 + $0xe98] sm:$0xff]  ;;  %v3905_v10 = vld [vmem:[%s7636_s2 + $0xe20] sm:$0xff] }
  0xc7   :  { %4723 = vmatprep.subr.msk.bf16.mxu0 %vm5229_vm2, %v4721_v19  ;;  %4745 = vmatprep.subr.msk.bf16.mxu1 %vm5229_vm2, %v4743_v23  ;;  %v4765_v19 = vpack.c.bf16 %v3951_v13, %v3934_v14  ;;  %v4787_v23 = vpack.c.bf16 %v3953_v16, %v3936_v15  ;;  %v3922_v12 = vld [vmem:[%s7636_s2 + $0xea8] sm:$0xff]  ;;  %v3955_v13 = vld [vmem:[%s7636_s2 + $0xfb0] sm:$0x7]  ;;  %v3940_v15 = vld [vmem:[%s7636_s2 + $0xf38] sm:$0xff] }
  0xc8   :  { %v3938_v14 = vld [vmem:[%s7636_s2 + $0xf28] sm:$0xff]  ;;  %v3957_v16 = vld [vmem:[%s7636_s2 + $0xfc0] sm:$0x7] }
  0xca   :  { %4726 = vmatpush1.bf16.msk.msra.mxu0 %vm5229_vm2, %v4724_v29  ;;  %4748 = vmatpush1.bf16.msk.msra.mxu1 %vm5229_vm2, %v4746_v30  ;;  %v4768_v29 = vpack.c.bf16 %v3950_v21, %v3933_v20  ;;  %v4790_v30 = vpack.c.bf16 %v3952_v24, %v3935_v22  ;;  %v3937_v20 = vld [vmem:[%s7636_s2 + $0xf20] sm:$0xff]  ;;  %v3954_v21 = vld [vmem:[%s7636_s2 + $0xfa8] sm:$0x7]  ;;  %v3939_v22 = vld [vmem:[%s7636_s2 + $0xf30] sm:$0xff]  ;;  %v4831_v24 = vpack.c.bf16 %v3957_v16, %v3940_v15 }
  0xcb   :  { %4750 = vmatprep.subr.bf16.mxu0 %v4749_v31  ;;  %4772 = vmatprep.subr.bf16.mxu1 %v4771_v35  ;;  %v4793_v31 = vpack.c.bf16 %v3819_v26, %v3802_v25  ;;  %v4815_v35 = vpack.c.bf16 %v3821_v28, %v3804_v27  ;;  %v3956_v25 = vld [vmem:[%s7636_s2 + $0xfb8] sm:$0x7]  ;;  %v3806_v26 = vld [vmem:[%s7636_s2 + $0xb08] sm:$0xff]  ;;  %v3823_v27 = vld [vmem:[%s7636_s2 + $0xb90] sm:$0xff] }
  0xcc   :  { %v3924_v15 = vld [vmem:[%s7636_s2 + $0xeb8] sm:$0xff]  ;;  %v3909_v16 = vld [vmem:[%s7636_s2 + $0xe40] sm:$0xff] }
  0xcd   :  { %3965 = vmatmul.mubr.msk.f32.vlgmr.msra.gmra.mrb[18].mxu0 %vm185_vm3, %v6219_v61  ;;  %3968 = vmatmul.mubr.msk.f32.vlgmr.msra.gmra.mrb[18].mxu1 %vm185_vm3, %v6219_v61 }
  0xce   :  { %4752 = vmatpush1.bf16.msra.mxu0 %v4751_v41  ;;  %4774 = vmatpush1.bf16.msra.mxu1 %v4773_v42  ;;  %v4795_v41 = vpack.c.bf16 %v3818_v33, %v3801_v32  ;;  %v4817_v42 = vpack.c.bf16 %v3820_v36, %v3803_v34  ;;  %v4812_v33 = vpack.c.bf16 %v3954_v21, %v3937_v20  ;;  %v3805_v34 = vld [vmem:[%s7636_s2 + $0xb00] sm:$0xff]  ;;  %v3959_v20 = vld [vmem:[%s7636_s2 + $0xfd0] sm:$0x7]  ;;  %v3944_v21 = vld [vmem:[%s7636_s2 + $0xf58] sm:$0xff] }
  0xcf   :  { %4754 = vmatprep.subr.bf16.mxu0 %v4753_v43  ;;  %4776 = vmatprep.subr.bf16.mxu1 %v4775_v47  ;;  %v4797_v43 = vpack.c.bf16 %v3853_v38, %v3836_v37  ;;  %v4819_v47 = vpack.c.bf16 %v3855_v40, %v3838_v39  ;;  %v4837_v36 = vpack.c.bf16 %v3823_v27, %v3806_v26  ;;  %v3822_v37 = vld [vmem:[%s7636_s2 + $0xb88] sm:$0xff]  ;;  %v3807_v38 = vld [vmem:[%s7636_s2 + $0xb10] sm:$0xff]  ;;  %v3510_v39 = vld [vmem:[%s7638_s1] sm:$0x3f] }
  0xd0   :  { %2184 = vmatprep.mubr.f32.mxu0 %v5097_v3  ;;  %2255 = vmatprep.mubr.f32.mxu1 %v5097_v3  ;;  %v3941_v27 = vld [vmem:[%s7636_s2 + $0xf40] sm:$0xff] }
  0xd2   :  { %4756 = vmatpush1.bf16.msra.mxu0 %v4755_v54  ;;  %4778 = vmatpush1.bf16.msra.mxu1 %v4777_v55  ;;  %v4799_v54 = vpack.c.bf16 %v3852_v45, %v3835_v44  ;;  %v4821_v55 = vpack.c.bf16 %v3854_v48, %v3837_v46  ;;  %v5101_v44 = vmov 0   ;;  %v3842_v45 = vld [vmem:[%s7636_s2 + $0xc28] sm:$0xff]  ;;  %v3859_v46 = vld [vmem:[%s7636_s2 + $0xcb0] sm:$0xff] }
  0xd3   :  { %4758 = vmatprep.subr.bf16.mxu0 %v4757_v56  ;;  %4780 = vmatprep.subr.bf16.mxu1 %v4779_v60  ;;  %v4801_v56 = vpack.c.bf16 %v3887_v50, %v3870_v49  ;;  %v4823_v60 = vpack.c.bf16 %v3889_v53, %v3872_v52  ;;  %v3839_v50 = vld [vmem:[%s7636_s2 + $0xc10] sm:$0xff]  ;;  %v3856_v52 = vld [vmem:[%s7636_s2 + $0xc98] sm:$0xff]  ;;  %v3841_v53 = vld [vmem:[%s7636_s2 + $0xc20] sm:$0xff] }
  0xd4   :  { %5094 = vset.pattern.permute.xlu0 %v5101_v44  ;;  %v3826_v44 = vld [vmem:[%s7636_s2 + $0xba8] sm:$0xff] }
  0xd5   :  { %3513 = vperm.xlu0 %5094, %v3510_v39   ;;  %v4007_v39 = vld [vmem:[%s7636_s2 + $0x1080] sm:$0xff] }
  0xd6   :  { %4760 = vmatpush1.bf16.msra.mxu0 %v4759_v4  ;;  %4782 = vmatpush1.bf16.msra.mxu1 %v4781_v5  ;;  %v4803_v4 = vpack.c.bf16 %v3886_v58, %v3869_v57  ;;  %v4825_v5 = vpack.c.bf16 %v3888_v62, %v3871_v59  ;;  %v3891_v57 = vld [vmem:[%s7636_s2 + $0xdb0] sm:$0xff]  ;;  %v3876_v58 = vld [vmem:[%s7636_s2 + $0xd38] sm:$0xff]  ;;  %v3893_v59 = vld [vmem:[%s7636_s2 + $0xdc0] sm:$0xff] }
  0xd7   :  { %4762 = vmatprep.subr.bf16.mxu0 %v4761_v7  ;;  %4784 = vmatprep.subr.bf16.mxu1 %v4783_v11  ;;  %v4805_v7 = vpack.c.bf16 %v3921_v0, %v3904_v63  ;;  %v4827_v11 = vpack.c.bf16 %v3923_v2, %v3906_v1  ;;  %v3873_v0 = vld [vmem:[%s7636_s2 + $0xd20] sm:$0xff]  ;;  %v3890_v1 = vld [vmem:[%s7636_s2 + $0xda8] sm:$0xff]  ;;  %v3875_v2 = vld [vmem:[%s7636_s2 + $0xd30] sm:$0xff] }
  0xda   :  { %4764 = vmatpush1.bf16.msra.mxu0 %v4763_v17  ;;  %4786 = vmatpush1.bf16.msra.mxu1 %v4785_v18  ;;  %v4807_v17 = vpack.c.bf16 %v3920_v9, %v3903_v8  ;;  %v4829_v18 = vpack.c.bf16 %v3922_v12, %v3905_v10  ;;  %v3925_v8 = vld [vmem:[%s7636_s2 + $0xec0] sm:$0xff]  ;;  %v3910_v9 = vld [vmem:[%s7636_s2 + $0xe48] sm:$0xff]  ;;  %v3927_v10 = vld [vmem:[%s7636_s2 + $0xed0] sm:$0xff] }
  0xdb   :  { %4767 = vmatprep.subr.msk.bf16.mxu0 %vm5229_vm2, %v4765_v19  ;;  %4789 = vmatprep.subr.msk.bf16.mxu1 %vm5229_vm2, %v4787_v23  ;;  %v4809_v19 = vpack.c.bf16 %v3955_v13, %v3938_v14  ;;  %v3907_v13 = vld [vmem:[%s7636_s2 + $0xe30] sm:$0xff] }
  0xde   :  { %4770 = vmatpush1.bf16.msk.msra.mxu0 %vm5229_vm2, %v4768_v29  ;;  %4792 = vmatpush1.bf16.msk.msra.mxu1 %vm5229_vm2, %v4790_v30  ;;  %v3808_v30 = vld [vmem:[%s7636_s2 + $0xb18] sm:$0xff] }
  0xdf   :  { %4794 = vmatprep.subr.bf16.mxu0 %v4793_v31  ;;  %4816 = vmatprep.subr.bf16.mxu1 %v4815_v35  ;;  %v3825_v31 = vld [vmem:[%s7636_s2 + $0xba0] sm:$0xff]  ;;  %v4834_v35 = vpack.c.bf16 %v3956_v25, %v3939_v22 }
  0xe0   :  { %v4859_v40 = vpack.c.bf16 %v3825_v31, %v3808_v30  ;;  %v3961_v22 = vld [vmem:[%s7636_s2 + $0xfe0] sm:$0x7]  ;;  %v3958_v30 = vld [vmem:[%s7636_s2 + $0xfc8] sm:$0x7] }
  0xe1   :  { %3971 = vmatmul.mubr.msk.f32.vlgmr.msra.gmra.mrb[20].mxu0 %vm185_vm3, %v6219_v61  ;;  %3974 = vmatmul.mubr.msk.f32.vlgmr.msra.gmra.mrb[20].mxu1 %vm185_vm3, %v6219_v61 }
  0xe2   :  { %4796 = vmatpush1.bf16.msra.mxu0 %v4795_v41  ;;  %4818 = vmatpush1.bf16.msra.mxu1 %v4817_v42  ;;  %v3824_v41 = vld [vmem:[%s7636_s2 + $0xb98] sm:$0xff] }
  0xe3   :  { %4798 = vmatprep.subr.bf16.mxu0 %v4797_v43  ;;  %4820 = vmatprep.subr.bf16.mxu1 %v4819_v47  ;;  %v3840_v42 = vld [vmem:[%s7636_s2 + $0xc18] sm:$0xff]  ;;  %v3857_v43 = vld [vmem:[%s7636_s2 + $0xca0] sm:$0xff]  ;;  %v4839_v47 = vpack.c.bf16 %v3822_v37, %v3805_v34  ;;  %v4861_v48 = vpack.c.bf16 %v3824_v41, %v3807_v38  ;;  %v3943_v34 = vld [vmem:[%s7636_s2 + $0xf50] sm:$0xff]  ;;  %v4856_v41 = vpack.c.bf16 %v3958_v30, %v3941_v27 }
  0xe4   :  { %2326 = vmatprep.mubr.f32.mxu0 %v5097_v3  ;;  %2397 = vmatprep.mubr.f32.mxu1 %v5097_v3  ;;  %v4841_v49 = vpack.c.bf16 %v3857_v43, %v3840_v42  ;;  %v3990_v38 = vld [vmem:[%s7636_s2 + $0xff8] sm:$0xff]  ;;  %v3809_v43 = vld [vmem:[%s7636_s2 + $0xb20] sm:$0xff]  ;;  %v4009_v27 = vld [vmem:[%s7636_s2 + $0x1090] sm:$0xff] }
  0xe6   :  { %4800 = vmatpush1.bf16.msra.mxu0 %v4799_v54  ;;  %4822 = vmatpush1.bf16.msra.mxu1 %v4821_v55  ;;  %v4863_v54 = vpack.c.bf16 %v3859_v46, %v3842_v45  ;;  %v3858_v55 = vld [vmem:[%s7636_s2 + $0xca8] sm:$0xff]  ;;  %v4897_v45 = vpack.c.bf16 %v4007_v39, %v3990_v38  ;;  %v3989_v46 = vld [vmem:[%s7636_s2 + $0xff0] sm:$0xff] }
  0xe7   :  { %4802 = vmatprep.subr.bf16.mxu0 %v4801_v56  ;;  %4824 = vmatprep.subr.bf16.mxu1 %v4823_v60  ;;  %v3874_v56 = vld [vmem:[%s7636_s2 + $0xd28] sm:$0xff]  ;;  %v4843_v60 = vpack.c.bf16 %v3856_v52, %v3839_v50  ;;  %v4865_v62 = vpack.c.bf16 %v3858_v55, %v3841_v53  ;;  %v4882_v50 = vpack.c.bf16 %v3826_v44, %v3809_v43  ;;  %v3843_v53 = vld [vmem:[%s7636_s2 + $0xc30] sm:$0xff]  ;;  %v3991_v43 = vld [vmem:[%s7636_s2 + $0x1000] sm:$0xff] }
  0xe8   :  { %v4845_v63 = vpack.c.bf16 %v3891_v57, %v3874_v56  ;;  %v4023_v56 = vld [vmem:[%s7636_s2 + $0x1100] sm:$0xff]  ;;  %v4040_v57 = vld [vmem:[%s7636_s2 + $0x1188] sm:$0xff] }
  0xe9   :  { %v4008_v44 = vld [vmem:[%s7636_s2 + $0x1088] sm:$0xff] }
  0xea   :  { %4804 = vmatpush1.bf16.msra.mxu0 %v4803_v4  ;;  %4826 = vmatpush1.bf16.msra.mxu1 %v4825_v5  ;;  %v4867_v4 = vpack.c.bf16 %v3893_v59, %v3876_v58  ;;  %v3892_v5 = vld [vmem:[%s7636_s2 + $0xdb8] sm:$0xff]  ;;  %v4075_v59 = vld [vmem:[%s7636_s2 + $0x12a0] sm:$0xff] }
  0xeb   :  { %4806 = vmatprep.subr.bf16.mxu0 %v4805_v7  ;;  %4828 = vmatprep.subr.bf16.mxu1 %v4827_v11  ;;  %v3908_v7 = vld [vmem:[%s7636_s2 + $0xe38] sm:$0xff]  ;;  %v4847_v11 = vpack.c.bf16 %v3890_v1, %v3873_v0  ;;  %v4869_v12 = vpack.c.bf16 %v3892_v5, %v3875_v2  ;;  %v3894_v0 = vld [vmem:[%s7636_s2 + $0xdc8] sm:$0xff]  ;;  %v4057_v2 = vld [vmem:[%s7636_s2 + $0x1210] sm:$0xff] }
  0xec   :  { %v6677_v23 = vpop.f32.mrb[0].mxu0  ;;  %v6690_v29 = vpop.f32.mrb[0].mxu1  ;;  %v4849_v14 = vpack.c.bf16 %v3925_v8, %v3908_v7  ;;  %v4058_v58 = vld [vmem:[%s7636_s2 + $0x1218] sm:$0xff]  ;;  %v4092_v5 = vld [vmem:[%s7636_s2 + $0x1328] sm:$0xff]  ;;  %v4109_v7 = vld [vmem:[%s7636_s2 + $0x13b0] sm:$0xff] }
  0xed   :  { %v6688_v28 = vpop.f32.mrb[1].mxu0  ;;  %v6698_v32 = vpop.f32.mrb[1].mxu1  ;;  %v4905_v1 = vpack.c.bf16 %v4075_v59, %v4058_v58  ;;  %v4027_v58 = vld [vmem:[%s7636_s2 + $0x1120] sm:$0xff] }
  0xee   :  { %4808 = vmatpush1.bf16.msra.mxu0 %v4807_v17  ;;  %4830 = vmatpush1.bf16.msra.mxu1 %v4829_v18  ;;  %v4871_v17 = vpack.c.bf16 %v3927_v10, %v3910_v9  ;;  %v3926_v18 = vld [vmem:[%s7636_s2 + $0xec8] sm:$0xff]  ;;  %v3911_v10 = vld [vmem:[%s7636_s2 + $0xe50] sm:$0xff] }
  0xef   :  { %4811 = vmatprep.subr.msk.bf16.mxu0 %vm5229_vm2, %v4809_v19  ;;  %4833 = vmatprep.subr.msk.bf16.mxu1 %vm5229_vm2, %v4831_v24  ;;  %v3942_v19 = vld [vmem:[%s7636_s2 + $0xf48] sm:$0xff]  ;;  %v4851_v24 = vpack.c.bf16 %v3924_v15, %v3907_v13  ;;  %v4873_v25 = vpack.c.bf16 %v3926_v18, %v3909_v16  ;;  %v4126_v15 = vld [vmem:[%s7636_s2 + $0x1438] sm:$0xff]  ;;  %v4143_v16 = vld [vmem:[%s7636_s2 + $0x14c0] sm:$0x7] }
  0xf0   :  { %v4853_v26 = vpack.c.bf16 %v3959_v20, %v3942_v19  ;;  %v4108_v13 = vld [vmem:[%s7636_s2 + $0x13a8] sm:$0xff]  ;;  %v3945_v19 = vld [vmem:[%s7636_s2 + $0xf60] sm:$0xff] }
  0xf1   :  { %v3962_v20 = vld [vmem:[%s7636_s2 + $0xfe8] sm:$0x7] }
  0xf2   :  { %4814 = vmatpush1.bf16.msk.msra.mxu0 %vm5229_vm2, %v4812_v33  ;;  %4836 = vmatpush1.bf16.msk.msra.mxu1 %vm5229_vm2, %v4834_v35  ;;  %v4875_v33 = vpack.c.bf16 %v3961_v22, %v3944_v21  ;;  %v3960_v35 = vld [vmem:[%s7636_s2 + $0xfd8] sm:$0x7]  ;;  %v4125_v21 = vld [vmem:[%s7636_s2 + $0x1430] sm:$0xff]  ;;  %v4894_v39 = vpack.c.bf16 %v3962_v20, %v3945_v19  ;;  %v4095_v20 = vld [vmem:[%s7636_s2 + $0x1340] sm:$0xff] }
  0xf3   :  { %4838 = vmatprep.subr.bf16.mxu0 %v4837_v36  ;;  %4860 = vmatprep.subr.bf16.mxu1 %v4859_v40  ;;  %v4878_v42 = vpack.c.bf16 %v3960_v35, %v3943_v34  ;;  %v3994_v34 = vld [vmem:[%s7636_s2 + $0x1018] sm:$0xff]  ;;  %v4011_v35 = vld [vmem:[%s7636_s2 + $0x10a0] sm:$0xff] }
  0xf4   :  { %v4110_v19 = vld [vmem:[%s7636_s2 + $0x13b8] sm:$0xff] }
  0xf5   :  { %3977 = vmatmul.mubr.msk.f32.vlgmr.msra.gmra.mrb[22].mxu0 %vm185_vm3, %v6219_v61  ;;  %3980 = vmatmul.mubr.msk.f32.vlgmr.msra.gmra.mrb[22].mxu1 %vm185_vm3, %v6219_v61 }
  0xf6   :  { %4840 = vmatpush1.bf16.msra.mxu0 %v4839_v47  ;;  %4862 = vmatpush1.bf16.msra.mxu1 %v4861_v48  ;;  %v4006_v47 = vld [vmem:[%s7636_s2 + $0x1078] sm:$0xff]  ;;  %v4024_v48 = vld [vmem:[%s7636_s2 + $0x1108] sm:$0xff] }
  0xf7   :  { %4842 = vmatprep.subr.bf16.mxu0 %v4841_v49  ;;  %4864 = vmatprep.subr.bf16.mxu1 %v4863_v54  ;;  %v4041_v49 = vld [vmem:[%s7636_s2 + $0x1190] sm:$0xff]  ;;  %v4899_v52 = vpack.c.bf16 %v4006_v47, %v3989_v46  ;;  %v3860_v54 = vld [vmem:[%s7636_s2 + $0xcb8] sm:$0xff]  ;;  %v4941_v46 = vpack.c.bf16 %v4011_v35, %v3994_v34  ;;  %v4147_v34 = vld [vmem:[%s7636_s2 + $0x14e0] sm:$0x7] }
  0xf8   :  { %2468 = vmatprep.mubr.f32.mxu0 %v5097_v3  ;;  %2539 = vmatprep.mubr.f32.mxu1 %v5097_v3  ;;  %v4901_v55 = vpack.c.bf16 %v4041_v49, %v4024_v48  ;;  %v4010_v47 = vld [vmem:[%s7636_s2 + $0x1098] sm:$0xff]  ;;  %v4043_v49 = vld [vmem:[%s7636_s2 + $0x11a0] sm:$0xff] }
  0xf9   :  { %v4026_v48 = vld [vmem:[%s7636_s2 + $0x1118] sm:$0xff] }
  0xfa   :  { %4844 = vmatpush1.bf16.msra.mxu0 %v4843_v60  ;;  %4866 = vmatpush1.bf16.msra.mxu1 %v4865_v62  ;;  %v4885_v60 = vpack.c.bf16 %v3860_v54, %v3843_v53  ;;  %v4903_v62 = vpack.c.bf16 %v4040_v57, %v4023_v56  ;;  %v4921_v53 = vpack.c.bf16 %v4008_v44, %v3991_v43  ;;  %v4025_v56 = vld [vmem:[%s7636_s2 + $0x1110] sm:$0xff]  ;;  %v4042_v57 = vld [vmem:[%s7636_s2 + $0x1198] sm:$0xff]  ;;  %v4144_v43 = vld [vmem:[%s7636_s2 + $0x14c8] sm:$0x7] }
  0xfb   :  { %4846 = vmatprep.subr.bf16.mxu0 %v4845_v63  ;;  %4868 = vmatprep.subr.bf16.mxu1 %v4867_v4  ;;  %v3877_v63 = vld [vmem:[%s7636_s2 + $0xd40] sm:$0xff]  ;;  %v4074_v4 = vld [vmem:[%s7636_s2 + $0x1298] sm:$0xff]  ;;  %v4129_v44 = vld [vmem:[%s7636_s2 + $0x1450] sm:$0xff] }
  0xfc   :  { %v4888_v8 = vpack.c.bf16 %v3894_v0, %v3877_v63  ;;  %v4907_v9 = vpack.c.bf16 %v4074_v4, %v4057_v2  ;;  %v4077_v63 = vld [vmem:[%s7636_s2 + $0x12b0] sm:$0xff]  ;;  %v4062_v0 = vld [vmem:[%s7636_s2 + $0x1238] sm:$0xff]  ;;  %v4925_v2 = vpack.c.bf16 %v4042_v57, %v4025_v56 }
  0xfe   :  { %4848 = vmatpush1.bf16.msra.mxu0 %v4847_v11  ;;  %4870 = vmatpush1.bf16.msra.mxu1 %v4869_v12  ;;  %v3928_v11 = vld [vmem:[%s7636_s2 + $0xed8] sm:$0xff]  ;;  %v4909_v12 = vpack.c.bf16 %v4109_v7, %v4092_v5  ;;  %v4059_v7 = vld [vmem:[%s7636_s2 + $0x1220] sm:$0xff] }
  0xff   :  { %4850 = vmatprep.subr.bf16.mxu0 %v4849_v14  ;;  %4872 = vmatprep.subr.bf16.mxu1 %v4871_v17  ;;  %v4091_v14 = vld [vmem:[%s7636_s2 + $0x1320] sm:$0xff]  ;;  %v4891_v17 = vpack.c.bf16 %v3928_v11, %v3911_v10  ;;  %v4078_v10 = vld [vmem:[%s7636_s2 + $0x12b8] sm:$0xff] }
 0x100   :  { %v6819_v31 = vpop.f32.mrb[2].mxu0  ;;  %v6829_v37 = vpop.f32.mrb[2].mxu1  ;;  %v4911_v18 = vpack.c.bf16 %v4108_v13, %v4091_v14  ;;  %v4094_v11 = vld [vmem:[%s7636_s2 + $0x1338] sm:$0xff]  ;;  %v4096_v14 = vld [vmem:[%s7636_s2 + $0x1348] sm:$0xff]  ;;  %v4113_v13 = vld [vmem:[%s7636_s2 + $0x13d0] sm:$0xff] }
 0x101   :  { %v6827_v36 = vpop.f32.mrb[3].mxu0  ;;  %v6837_v40 = vpop.f32.mrb[3].mxu1 }
 0x102   :  { %4852 = vmatpush1.bf16.msra.mxu0 %v4851_v24  ;;  %4874 = vmatpush1.bf16.msra.mxu1 %v4873_v25  ;;  %v4913_v24 = vpack.c.bf16 %v4143_v16, %v4126_v15  ;;  %v4142_v25 = vld [vmem:[%s7636_s2 + $0x14b8] sm:$0x7] }
 0x103   :  { %4855 = vmatprep.subr.msk.bf16.mxu0 %vm5229_vm2, %v4853_v26  ;;  %4877 = vmatprep.subr.msk.bf16.mxu1 %vm5229_vm2, %v4875_v33  ;;  %v3992_v26 = vld [vmem:[%s7636_s2 + $0x1008] sm:$0xff] }
 0x106   :  { %4858 = vmatpush1.bf16.msk.msra.mxu0 %vm5229_vm2, %v4856_v41  ;;  %4880 = vmatpush1.bf16.msk.msra.mxu1 %vm5229_vm2, %v4878_v42  ;;  %v4916_v41 = vpack.c.bf16 %v4142_v25, %v4125_v21  ;;  %v4919_v42 = vpack.c.bf16 %v4009_v27, %v3992_v26  ;;  %v4953_v21 = vpack.c.bf16 %v4113_v13, %v4096_v14  ;;  %v4128_v25 = vld [vmem:[%s7636_s2 + $0x1448] sm:$0xff]  ;;  %v4145_v26 = vld [vmem:[%s7636_s2 + $0x14d0] sm:$0x7]  ;;  %v4130_v27 = vld [vmem:[%s7636_s2 + $0x1458] sm:$0xff] }
 0x107   :  { %4881 = vmatprep.subr.bf16.mxu0 %v5099_v6  ;;  %4898 = vmatprep.subr.bf16.mxu1 %v4897_v45  ;;  %v3993_v45 = vld [vmem:[%s7636_s2 + $0x1010] sm:$0xff]  ;;  %v4048_v14 = vld [vmem:[%s7636_s2 + $0x11c8] sm:$0xff] }
 0x108   :  { %v4943_v54 = vpack.c.bf16 %v4010_v47, %v3993_v45  ;;  %v4146_v47 = vld [vmem:[%s7636_s2 + $0x14d8] sm:$0x7]  ;;  %v4064_v13 = vld [vmem:[%s7636_s2 + $0x1248] sm:$0xff] }
 0x109   :  { %3983 = vmatmul.mubr.msk.f32.vlgmr.msra.gmra.mrb[24].mxu0 %vm185_vm3, %v6219_v61  ;;  %3986 = vmatmul.mubr.msk.f32.vlgmr.msra.gmra.mrb[24].mxu1 %vm185_vm3, %v6219_v61  ;;  %v4960_v57 = vpack.c.bf16 %v4146_v47, %v4129_v44  ;;  %v4097_v47 = vld [vmem:[%s7636_s2 + $0x1350] sm:$0xff] }
 0x10a   :  { %4883 = vmatpush3.bf16.msra.mxu0 %v4882_v50  ;;  %4900 = vmatpush1.bf16.msra.mxu1 %v4899_v52  ;;  %v4028_v50 = vld [vmem:[%s7636_s2 + $0x1128] sm:$0xff]  ;;  %v4045_v52 = vld [vmem:[%s7636_s2 + $0x11b0] sm:$0xff] }
 0x10b   :  { %4884 = vmatprep.subr.bf16.mxu0 %v5099_v6  ;;  %4902 = vmatprep.subr.bf16.mxu1 %v4901_v55  ;;  %v4923_v55 = vpack.c.bf16 %v4043_v49, %v4026_v48  ;;  %v4945_v59 = vpack.c.bf16 %v4045_v52, %v4028_v50  ;;  %v3996_v48 = vld [vmem:[%s7636_s2 + $0x1028] sm:$0xff]  ;;  %v4013_v49 = vld [vmem:[%s7636_s2 + $0x10b0] sm:$0xff] }
 0x10c   :  { %4295 = vmatprep.mubr.msk.f32.mxu0 %vm5100_vm4, %v5097_v3  ;;  %2919 = vmatprep.mubr.f32.mxu1 %v5097_v3 }
 0x10e   :  { %4886 = vmatpush3.bf16.msra.mxu0 %v4885_v60  ;;  %4904 = vmatpush1.bf16.msra.mxu1 %v4903_v62  ;;  %v4044_v60 = vld [vmem:[%s7636_s2 + $0x11a8] sm:$0xff] }
 0x10f   :  { %4887 = vmatprep.subr.bf16.mxu0 %v5099_v6  ;;  %4906 = vmatprep.subr.bf16.mxu1 %v4905_v1  ;;  %v4060_v62 = vld [vmem:[%s7636_s2 + $0x1228] sm:$0xff]  ;;  %v4079_v1 = vld [vmem:[%s7636_s2 + $0x12c0] sm:$0xff]  ;;  %v4947_v4 = vpack.c.bf16 %v4044_v60, %v4027_v58  ;;  %v4963_v58 = vpack.c.bf16 %v4013_v49, %v3996_v48  ;;  %v4114_v48 = vld [vmem:[%s7636_s2 + $0x13d8] sm:$0xff] }
 0x110   :  { %v4927_v5 = vpack.c.bf16 %v4077_v63, %v4060_v62  ;;  %v4012_v60 = vld [vmem:[%s7636_s2 + $0x10a8] sm:$0xff]  ;;  %v3997_v62 = vld [vmem:[%s7636_s2 + $0x1030] sm:$0xff]  ;;  %v4099_v49 = vld [vmem:[%s7636_s2 + $0x1360] sm:$0xff] }
 0x112   :  { %4889 = vmatpush3.bf16.msra.mxu0 %v4888_v8  ;;  %4908 = vmatpush1.bf16.msra.mxu1 %v4907_v9  ;;  %v4076_v8 = vld [vmem:[%s7636_s2 + $0x12a8] sm:$0xff]  ;;  %v4061_v9 = vld [vmem:[%s7636_s2 + $0x1230] sm:$0xff] }
 0x113   :  { %4890 = vmatprep.subr.bf16.mxu0 %v5099_v6  ;;  %4910 = vmatprep.subr.bf16.mxu1 %v4909_v12  ;;  %v4111_v12 = vld [vmem:[%s7636_s2 + $0x13c0] sm:$0xff]  ;;  %v4929_v15 = vpack.c.bf16 %v4076_v8, %v4059_v7  ;;  %v4951_v16 = vpack.c.bf16 %v4078_v10, %v4061_v9  ;;  %v4046_v10 = vld [vmem:[%s7636_s2 + $0x11b8] sm:$0xff] }
 0x114   :  { %v6939_v22 = vpop.f32.mrb[4].mxu0  ;;  %v6952_v33 = vpop.f32.mrb[4].mxu1 }
 0x115   :  { %v6950_v30 = vpop.f32.mrb[5].mxu0  ;;  %v6960_v38 = vpop.f32.mrb[5].mxu1 }
 0x116   :  { %4892 = vmatpush3.bf16.msra.mxu0 %v4891_v17  ;;  %4912 = vmatpush1.bf16.msra.mxu1 %v4911_v18  ;;  %v4931_v17 = vpack.c.bf16 %v4111_v12, %v4094_v11  ;;  %v4093_v18 = vld [vmem:[%s7636_s2 + $0x1330] sm:$0xff]  ;;  %v4031_v11 = vld [vmem:[%s7636_s2 + $0x1140] sm:$0xff] }
 0x117   :  { %4893 = vmatprep.subr.bf16.mxu0 %v5099_v6  ;;  %4915 = vmatprep.subr.msk.bf16.mxu1 %vm5229_vm2, %v4913_v24  ;;  %v4112_v24 = vld [vmem:[%s7636_s2 + $0x13c8] sm:$0xff]  ;;  %v4933_v35 = vpack.c.bf16 %v4110_v19, %v4093_v18  ;;  %v4083_v18 = vld [vmem:[%s7636_s2 + $0x12e0] sm:$0xff] }
 0x11a   :  { %4896 = vmatpush3.bf16.msk.msra.mxu0 %vm5229_vm2, %v4894_v39  ;;  %4918 = vmatpush1.bf16.msk.msra.mxu1 %vm5229_vm2, %v4916_v41  ;;  %v4955_v39 = vpack.c.bf16 %v4112_v24, %v4095_v20  ;;  %v4935_v41 = vpack.c.bf16 %v4145_v26, %v4128_v25  ;;  %v4991_v20 = vpack.c.bf16 %v4048_v14, %v4031_v11  ;;  %v4063_v24 = vld [vmem:[%s7636_s2 + $0x1240] sm:$0xff]  ;;  %v4080_v25 = vld [vmem:[%s7636_s2 + $0x12c8] sm:$0xff]  ;;  %v4065_v26 = vld [vmem:[%s7636_s2 + $0x1250] sm:$0xff] }
 0x11b   :  { %4920 = vmatprep.subr.bf16.mxu0 %v4919_v42  ;;  %4942 = vmatprep.subr.bf16.mxu1 %v4941_v46  ;;  %v4127_v42 = vld [vmem:[%s7636_s2 + $0x1440] sm:$0xff]  ;;  %v4957_v46 = vpack.c.bf16 %v4147_v34, %v4130_v27  ;;  %v4082_v34 = vld [vmem:[%s7636_s2 + $0x12d8] sm:$0xff] }
 0x11c   :  { %v4938_v56 = vpack.c.bf16 %v4144_v43, %v4127_v42  ;;  %v4117_v42 = vld [vmem:[%s7636_s2 + $0x13f0] sm:$0xff]  ;;  %v4973_v43 = vpack.c.bf16 %v4080_v25, %v4063_v24  ;;  %v4995_v44 = vpack.c.bf16 %v4082_v34, %v4065_v26  ;;  %v4002_v11 = vld [vmem:[%s7636_s2 + $0x1058] sm:$0xff]  ;;  %v4051_v34 = vld [vmem:[%s7636_s2 + $0x11e0] sm:$0xff] }
 0x11d   :  { %4296 = vmatmul.mubr.msk.f32.vlgmr.msra.gmra.mrb[26].mxu0 %vm185_vm3, %v6219_v61  ;;  %4161 = vmatmul.mubr.msk.f32.vlgmr.msra.gmra.mrb[26].mxu1 %vm185_vm3, %v6219_v61  ;;  %v4949_v61 = vpack.c.bf16 %v4079_v1, %v4062_v0  ;;  %v4014_v0 = vld [vmem:[%s7636_s2 + $0x10b8] sm:$0xff]  ;;  %v4001_v24 = vld [vmem:[%s7636_s2 + $0x1050] sm:$0xff] }
 0x11e   :  { %4922 = vmatpush1.bf16.msra.mxu0 %v4921_v53  ;;  %4944 = vmatpush1.bf16.msra.mxu1 %v4943_v54  ;;  %v3998_v53 = vld [vmem:[%s7636_s2 + $0x1038] sm:$0xff]  ;;  %v4015_v54 = vld [vmem:[%s7636_s2 + $0x10c0] sm:$0xff]  ;;  %v4987_v8 = vpack.c.bf16 %v4014_v0, %v3997_v62 }
 0x11f   :  { %4924 = vmatprep.subr.bf16.mxu0 %v4923_v55  ;;  %4946 = vmatprep.subr.bf16.mxu1 %v4945_v59  ;;  %v3995_v59 = vld [vmem:[%s7636_s2 + $0x1020] sm:$0xff]  ;;  %v4985_v63 = vpack.c.bf16 %v4015_v54, %v3998_v53  ;;  %v4030_v1 = vld [vmem:[%s7636_s2 + $0x1138] sm:$0xff]  ;;  %v4116_v54 = vld [vmem:[%s7636_s2 + $0x13e8] sm:$0xff] }
 0x120   :  { %2990 = vmatprep.mubr.f32.mxu0 %v5097_v3  ;;  %3061 = vmatprep.mubr.f32.mxu1 %v5097_v3  ;;  %v4965_v7 = vpack.c.bf16 %v4012_v60, %v3995_v59  ;;  %v4151_v59 = vld [vmem:[%s7636_s2 + $0x1500] sm:$0x7]  ;;  %v4977_v60 = vpack.c.bf16 %v4114_v48, %v4097_v47  ;;  %v4999_v62 = vpack.c.bf16 %v4116_v54, %v4099_v49  ;;  %v4018_v26 = vld [vmem:[%s7636_s2 + $0x10d8] sm:$0xff]  ;;  %v4052_v49 = vld [vmem:[%s7636_s2 + $0x11e8] sm:$0xff] }
 0x121   :  { %v4131_v0 = vld [vmem:[%s7636_s2 + $0x1460] sm:$0xff]  ;;  %v4085_v54 = vld [vmem:[%s7636_s2 + $0x12f0] sm:$0xff] }
 0x122   :  { %4926 = vmatpush1.bf16.msra.mxu0 %v4925_v2  ;;  %4948 = vmatpush1.bf16.msra.mxu1 %v4947_v4  ;;  %v4047_v2 = vld [vmem:[%s7636_s2 + $0x11c0] sm:$0xff]  ;;  %v4032_v4 = vld [vmem:[%s7636_s2 + $0x1148] sm:$0xff] }
 0x123   :  { %4928 = vmatprep.subr.bf16.mxu0 %v4927_v5  ;;  %4950 = vmatprep.subr.bf16.mxu1 %v4949_v61  ;;  %v4049_v5 = vld [vmem:[%s7636_s2 + $0x11d0] sm:$0xff]  ;;  %v4967_v9 = vpack.c.bf16 %v4047_v2, %v4030_v1  ;;  %v4148_v1 = vld [vmem:[%s7636_s2 + $0x14e8] sm:$0x7]  ;;  %v4035_v47 = vld [vmem:[%s7636_s2 + $0x1160] sm:$0xff] }
 0x124   :  { %v4029_v61 = vld [vmem:[%s7636_s2 + $0x1130] sm:$0xff]  ;;  %v4989_v12 = vpack.c.bf16 %v4049_v5, %v4032_v4 }
 0x125   :  { %v4969_v19 = vpack.c.bf16 %v4046_v10, %v4029_v61  ;;  %v4133_v2 = vld [vmem:[%s7636_s2 + $0x1470] sm:$0xff] }
 0x126   :  { %4930 = vmatpush1.bf16.msra.mxu0 %v4929_v15  ;;  %4952 = vmatpush1.bf16.msra.mxu1 %v4951_v16  ;;  %v4081_v15 = vld [vmem:[%s7636_s2 + $0x12d0] sm:$0xff]  ;;  %v7156_v16 = vld [vmem:[%s7637_s0] sm:$0x3f] }
 0x127   :  { %4932 = vmatprep.subr.bf16.mxu0 %v4931_v17  ;;  %4954 = vmatprep.subr.bf16.mxu1 %v4953_v21  ;;  %v4066_v17 = vld [vmem:[%s7636_s2 + $0x1258] sm:$0xff]  ;;  %v4971_v21 = vpack.c.bf16 %v4081_v15, %v4064_v13  ;;  %v4982_v15 = vpack.c.bf16 %v4148_v1, %v4131_v0  ;;  %v4069_v0 = vld [vmem:[%s7636_s2 + $0x1270] sm:$0xff] }
 0x128   :  { %v7080_v45 = vpop.f32.mrb[6].mxu0  ;;  %v7093_v52 = vpop.f32.mrb[6].mxu1  ;;  %v4993_v27 = vpack.c.bf16 %v4083_v18, %v4066_v17 }
 0x129   :  { %v7091_v50 = vpop.f32.mrb[7].mxu0  ;;  %v7101_v55 = vpop.f32.mrb[7].mxu1 }
 0x12a   :  { %4934 = vmatpush1.bf16.msra.mxu0 %v4933_v35  ;;  %4956 = vmatpush1.bf16.msra.mxu1 %v4955_v39  ;;  %v4098_v35 = vld [vmem:[%s7636_s2 + $0x1358] sm:$0xff]  ;;  %v4115_v39 = vld [vmem:[%s7636_s2 + $0x13e0] sm:$0xff] }
 0x12b   :  { %4937 = vmatprep.subr.msk.bf16.mxu0 %vm5229_vm2, %v4935_v41  ;;  %4959 = vmatprep.subr.msk.bf16.mxu1 %vm5229_vm2, %v4957_v46  ;;  %v4100_v41 = vld [vmem:[%s7636_s2 + $0x1368] sm:$0xff]  ;;  %v4975_v46 = vpack.c.bf16 %v4115_v39, %v4098_v35  ;;  %v4053_v39 = vld [vmem:[%s7636_s2 + $0x11f0] sm:$0xff] }
 0x12c   :  { %v4997_v53 = vpack.c.bf16 %v4117_v42, %v4100_v41  ;;  %v4036_v35 = vld [vmem:[%s7636_s2 + $0x1168] sm:$0xff]  ;;  %v5031_v42 = vpack.c.bf16 %v4018_v26, %v4001_v24  ;;  %v4138_v26 = vld [vmem:[%s7636_s2 + $0x1498] sm:$0xff] }
 0x12d   :  { %v5033_v48 = vpack.c.bf16 %v4053_v39, %v4036_v35  ;;  %v4136_v24 = vld [vmem:[%s7636_s2 + $0x1488] sm:$0xff] }
 0x12e   :  { %4940 = vmatpush1.bf16.msk.msra.mxu0 %vm5229_vm2, %v4938_v56  ;;  %4962 = vmatpush1.bf16.msk.msra.mxu1 %vm5229_vm2, %v4960_v57  ;;  %v4132_v56 = vld [vmem:[%s7636_s2 + $0x1468] sm:$0xff]  ;;  %v4149_v57 = vld [vmem:[%s7636_s2 + $0x14f0] sm:$0x7] }
 0x12f   :  { %4964 = vmatprep.subr.bf16.mxu0 %v4963_v58  ;;  %4986 = vmatprep.subr.bf16.mxu1 %v4985_v63  ;;  %v4134_v58 = vld [vmem:[%s7636_s2 + $0x1478] sm:$0xff]  ;;  %v4979_v63 = vpack.c.bf16 %v4149_v57, %v4132_v56  ;;  %v4087_v57 = vld [vmem:[%s7636_s2 + $0x1300] sm:$0xff] }
 0x130   :  { %v5001_v5 = vpack.c.bf16 %v4151_v59, %v4134_v58  ;;  %v4070_v56 = vld [vmem:[%s7636_s2 + $0x1278] sm:$0xff]  ;;  %v5035_v59 = vpack.c.bf16 %v4052_v49, %v4035_v47  ;;  %v4021_v49 = vld [vmem:[%s7636_s2 + $0x10f0] sm:$0xff] }
 0x131   :  { %4164 = vmatmul.mubr.msk.f32.vlgmr.msra.gmra.mrb[28].mxu0 %vm185_vm3, %v7156_v16  ;;  %4167 = vmatmul.mubr.msk.f32.vlgmr.msra.gmra.mrb[28].mxu1 %vm185_vm3, %v7156_v16  ;;  %v5037_v1 = vpack.c.bf16 %v4087_v57, %v4070_v56  ;;  %v4154_v47 = vld [vmem:[%s7636_s2 + $0x1518] sm:$0x7] }
 0x132   :  { %4966 = vmatpush1.bf16.msra.mxu0 %v4965_v7  ;;  %4988 = vmatpush1.bf16.msra.mxu1 %v4987_v8  ;;  %v4150_v7 = vld [vmem:[%s7636_s2 + $0x14f8] sm:$0x7]  ;;  %v4000_v8 = vld [vmem:[%s7636_s2 + $0x1048] sm:$0xff] }
 0x133   :  { %4968 = vmatprep.subr.bf16.mxu0 %v4967_v9  ;;  %4990 = vmatprep.subr.bf16.mxu1 %v4989_v12  ;;  %v4017_v9 = vld [vmem:[%s7636_s2 + $0x10d0] sm:$0xff]  ;;  %v4019_v12 = vld [vmem:[%s7636_s2 + $0x10e0] sm:$0xff]  ;;  %v5004_v18 = vpack.c.bf16 %v4150_v7, %v4133_v2  ;;  %v4086_v2 = vld [vmem:[%s7636_s2 + $0x12f8] sm:$0xff] }
 0x134   :  { %3132 = vmatprep.mubr.f32.mxu0 %v5097_v3  ;;  %3203 = vmatprep.mubr.f32.mxu1 %v5097_v3  ;;  %v5029_v25 = vpack.c.bf16 %v4019_v12, %v4002_v11  ;;  %v4119_v7 = vld [vmem:[%s7636_s2 + $0x1400] sm:$0xff]  ;;  %v5039_v11 = vpack.c.bf16 %v4086_v2, %v4069_v0  ;;  %v4020_v2 = vld [vmem:[%s7636_s2 + $0x10e8] sm:$0xff] }
 0x136   :  { %4970 = vmatpush1.bf16.msra.mxu0 %v4969_v19  ;;  %4992 = vmatpush1.bf16.msra.mxu1 %v4991_v20  ;;  %v5007_v19 = vpack.c.bf16 %v4017_v9, %v4000_v8  ;;  %v3999_v20 = vld [vmem:[%s7636_s2 + $0x1040] sm:$0xff]  ;;  %v4104_v8 = vld [vmem:[%s7636_s2 + $0x1388] sm:$0xff]  ;;  %v4121_v9 = vld [vmem:[%s7636_s2 + $0x1410] sm:$0xff] }
 0x137   :  { %4972 = vmatprep.subr.bf16.mxu0 %v4971_v21  ;;  %4994 = vmatprep.subr.bf16.mxu1 %v4993_v27  ;;  %v4016_v21 = vld [vmem:[%s7636_s2 + $0x10c8] sm:$0xff]  ;;  %v4034_v27 = vld [vmem:[%s7636_s2 + $0x1158] sm:$0xff] }
 0x138   :  { %v5009_v41 = vpack.c.bf16 %v4016_v21, %v3999_v20  ;;  %v5041_v20 = vpack.c.bf16 %v4121_v9, %v4104_v8  ;;  %v4120_v21 = vld [vmem:[%s7636_s2 + $0x1408] sm:$0xff]  ;;  %v4038_v8 = vld [vmem:[%s7636_s2 + $0x1178] sm:$0xff]  ;;  %v4055_v9 = vld [vmem:[%s7636_s2 + $0x1200] sm:$0xff] }
 0x13a   :  { %4974 = vmatpush1.bf16.msra.mxu0 %v4973_v43  ;;  %4996 = vmatpush1.bf16.msra.mxu1 %v4995_v44  ;;  %v5011_v43 = vpack.c.bf16 %v4051_v34, %v4034_v27  ;;  %v4033_v44 = vld [vmem:[%s7636_s2 + $0x1150] sm:$0xff]  ;;  %v4155_v27 = vld [vmem:[%s7636_s2 + $0x1520] sm:$0x7] }
 0x13b   :  { %4976 = vmatprep.subr.bf16.mxu0 %v4975_v46  ;;  %4998 = vmatprep.subr.bf16.mxu1 %v4997_v53  ;;  %v4050_v46 = vld [vmem:[%s7636_s2 + $0x11d8] sm:$0xff]  ;;  %v4068_v53 = vld [vmem:[%s7636_s2 + $0x1268] sm:$0xff] }
 0x13c   :  { %v7227_v4 = vpop.f32.mrb[8].mxu0  ;;  %v7238_v61 = vpop.f32.mrb[8].mxu1  ;;  %v5013_v58 = vpack.c.bf16 %v4050_v46, %v4033_v44  ;;  %v5045_v46 = vpack.c.bf16 %v4155_v27, %v4138_v26 }
 0x13d   :  { %v4251_v10 = vpop.f32.mrb[9].mxu0  ;;  %v1739_v14 = vmax.f32 %v6677_v23, %v7238_v61  ;;  %v7248_v13 = vpop.f32.mrb[9].mxu1 }
 0x13e   :  { %4978 = vmatpush1.bf16.msra.mxu0 %v4977_v60  ;;  %v1740_v17 = vmax.f32 %v6688_v28, %v7248_v13  ;;  %5000 = vmatpush1.bf16.msra.mxu1 %v4999_v62  ;;  %v5015_v60 = vpack.c.bf16 %v4085_v54, %v4068_v53  ;;  %v4067_v62 = vld [vmem:[%s7636_s2 + $0x1260] sm:$0xff] }
 0x13f   :  { %4981 = vmatprep.subr.msk.bf16.mxu0 %vm5229_vm2, %v4979_v63  ;;  %5003 = vmatprep.subr.msk.bf16.mxu1 %vm5229_vm2, %v5001_v5  ;;  %v4084_v63 = vld [vmem:[%s7636_s2 + $0x12e8] sm:$0xff]  ;;  %v4102_v5 = vld [vmem:[%s7636_s2 + $0x1378] sm:$0xff] }
 0x140   :  { %v5017_v10 = vpack.c.bf16 %v4084_v63, %v4067_v62  ;;  %v5019_v12 = vpack.c.bf16 %v4119_v7, %v4102_v5  ;;  %v4005_v5 = vld [vmem:[%s7636_s2 + $0x1070] sm:$0xff]  ;;  %v4022_v7 = vld [vmem:[%s7636_s2 + $0x10f8] sm:$0xff] }
 0x142   :  { %4984 = vmatpush1.bf16.msk.msra.mxu0 %vm5229_vm2, %v4982_v15  ;;  %5006 = vmatpush1.bf16.msk.msra.mxu1 %vm5229_vm2, %v5004_v18  ;;  %v4101_v15 = vld [vmem:[%s7636_s2 + $0x1370] sm:$0xff]  ;;  %v4118_v18 = vld [vmem:[%s7636_s2 + $0x13f8] sm:$0xff] }
 0x143   :  { %5008 = vmatprep.subr.bf16.mxu0 %v5007_v19  ;;  %5030 = vmatprep.subr.bf16.mxu1 %v5029_v25  ;;  %v4103_v19 = vld [vmem:[%s7636_s2 + $0x1380] sm:$0xff]  ;;  %v4153_v25 = vld [vmem:[%s7636_s2 + $0x1510] sm:$0x7]  ;;  %v5021_v34 = vpack.c.bf16 %v4118_v18, %v4101_v15  ;;  %v4054_v18 = vld [vmem:[%s7636_s2 + $0x11f8] sm:$0xff] }
 0x144   :  { %v5043_v35 = vpack.c.bf16 %v4120_v21, %v4103_v19  ;;  %v5023_v39 = vpack.c.bf16 %v4153_v25, %v4136_v24  ;;  %v4037_v15 = vld [vmem:[%s7636_s2 + $0x1170] sm:$0xff]  ;;  %v4039_v19 = vld [vmem:[%s7636_s2 + $0x1180] sm:$0xff]  ;;  %v4072_v21 = vld [vmem:[%s7636_s2 + $0x1288] sm:$0xff] }
 0x145   :  { %4170 = vmatmul.mubr.msk.f32.vlgmr.msra.gmra.mrb[30].mxu0 %vm185_vm3, %v7156_v16  ;;  %4173 = vmatmul.mubr.msk.f32.vlgmr.msra.gmra.mrb[30].mxu1 %vm185_vm3, %v7156_v16  ;;  %v4089_v24 = vld [vmem:[%s7636_s2 + $0x1310] sm:$0xff]  ;;  %v5057_v25 = vpack.c.bf16 %v4054_v18, %v4037_v15 }
 0x146   :  { %5010 = vmatpush1.bf16.msra.mxu0 %v5009_v41  ;;  %5032 = vmatpush1.bf16.msra.mxu1 %v5031_v42  ;;  %v4135_v41 = vld [vmem:[%s7636_s2 + $0x1480] sm:$0xff]  ;;  %v4152_v42 = vld [vmem:[%s7636_s2 + $0x1508] sm:$0x7]  ;;  %v5059_v27 = vpack.c.bf16 %v4089_v24, %v4072_v21 }
 0x147   :  { %5012 = vmatprep.subr.bf16.mxu0 %v5011_v43  ;;  %5034 = vmatprep.subr.bf16.mxu1 %v5033_v48  ;;  %v4137_v43 = vld [vmem:[%s7636_s2 + $0x1490] sm:$0xff]  ;;  %v4004_v48 = vld [vmem:[%s7636_s2 + $0x1068] sm:$0xff] }
 0x148   :  { %3274 = vmatprep.mubr.f32.mxu0 %v5097_v3  ;;  %3345 = vmatprep.mubr.f32.mxu1 %v5097_v3  ;;  %v5048_v63 = vpack.c.bf16 %v4154_v47, %v4137_v43  ;;  %v5051_v0 = vpack.c.bf16 %v4021_v49, %v4004_v48  ;;  %v4123_v43 = vld [vmem:[%s7636_s2 + $0x1420] sm:$0xff]  ;;  %v4105_v49 = vld [vmem:[%s7636_s2 + $0x1390] sm:$0xff] }
 0x14a   :  { %5014 = vmatpush1.bf16.msra.mxu0 %v5013_v58  ;;  %5036 = vmatpush1.bf16.msra.mxu1 %v5035_v59 }
 0x14b   :  { %5016 = vmatprep.subr.bf16.mxu0 %v5015_v60  ;;  %5038 = vmatprep.subr.bf16.mxu1 %v5037_v1  ;;  %v5026_v60 = vpack.c.bf16 %v4152_v42, %v4135_v41  ;;  %v4003_v1 = vld [vmem:[%s7636_s2 + $0x1060] sm:$0xff]  ;;  %v4090_v41 = vld [vmem:[%s7636_s2 + $0x1318] sm:$0xff] }
 0x14c   :  { %v4106_v42 = vld [vmem:[%s7636_s2 + $0x1398] sm:$0xff] }
 0x14d   :  { %v5063_v48 = vpack.c.bf16 %v4123_v43, %v4106_v42 }
 0x14e   :  { %5018 = vmatpush1.bf16.msra.mxu0 %v5017_v10  ;;  %5040 = vmatpush1.bf16.msra.mxu1 %v5039_v11  ;;  %v5053_v10 = vpack.c.bf16 %v4020_v2, %v4003_v1  ;;  %v5074_v11 = vpack.c.bf16 %v4022_v7, %v4005_v5  ;;  %v4157_v1 = vld [vmem:[%s7636_s2 + $0x1530] sm:$0x7] }
 0x14f   :  { %5020 = vmatprep.subr.bf16.mxu0 %v5019_v12  ;;  %5042 = vmatprep.subr.bf16.mxu1 %v5041_v20  ;;  %v5055_v12 = vpack.c.bf16 %v4055_v9, %v4038_v8  ;;  %v4056_v20 = vld [vmem:[%s7636_s2 + $0x1208] sm:$0xff]  ;;  %v4139_v8 = vld [vmem:[%s7636_s2 + $0x14a0] sm:$0xff] }
 0x150   :  { %v7371_v44 = vpop.f32.mrb[10].mxu0  ;;  %v7384_v54 = vpop.f32.mrb[10].mxu1  ;;  %v5077_v26 = vpack.c.bf16 %v4056_v20, %v4039_v19  ;;  %v4156_v9 = vld [vmem:[%s7636_s2 + $0x1528] sm:$0x7] }
 0x151   :  { %v1741_v53 = vmax.f32 %v6690_v29, %v7371_v44  ;;  %v7386_v56 = vpop.f32.mrb[11].mxu0  ;;  %v1743_v57 = vmax.f32 %v6819_v31, %v7384_v54  ;;  %v7392_v59 = vpop.f32.mrb[11].mxu1 }
 0x152   :  { %v1742_v58 = vmax.f32 %v6698_v32, %v7386_v56  ;;  %5022 = vmatpush1.bf16.msra.mxu0 %v5021_v34  ;;  %v1744_v62 = vmax.f32 %v6827_v36, %v7392_v59  ;;  %5044 = vmatpush1.bf16.msra.mxu1 %v5043_v35  ;;  %v4071_v34 = vld [vmem:[%s7636_s2 + $0x1280] sm:$0xff]  ;;  %v4088_v35 = vld [vmem:[%s7636_s2 + $0x1308] sm:$0xff] }
 0x153   :  { %5025 = vmatprep.subr.msk.bf16.mxu0 %vm5229_vm2, %v5023_v39  ;;  %5047 = vmatprep.subr.msk.bf16.mxu1 %vm5229_vm2, %v5045_v46  ;;  %v4073_v39 = vld [vmem:[%s7636_s2 + $0x1290] sm:$0xff]  ;;  %v5061_v46 = vpack.c.bf16 %v4088_v35, %v4071_v34 }
 0x154   :  { %v5080_v47 = vpack.c.bf16 %v4090_v41, %v4073_v39 }
 0x156   :  { %5028 = vmatpush1.bf16.msk.msra.mxu0 %vm5229_vm2, %v5026_v60  ;;  %5050 = vmatpush1.bf16.msk.msra.mxu1 %vm5229_vm2, %v5048_v63  ;;  %v4122_v60 = vld [vmem:[%s7636_s2 + $0x1418] sm:$0xff]  ;;  %v4107_v63 = vld [vmem:[%s7636_s2 + $0x13a0] sm:$0xff] }
 0x157   :  { %5052 = vmatprep.subr.bf16.mxu0 %v5051_v0  ;;  %5073 = vmatprep.subr.bf16.mxu1 %v5099_v6  ;;  %v4140_v0 = vld [vmem:[%s7636_s2 + $0x14a8] sm:$0xff]  ;;  %v5065_v2 = vpack.c.bf16 %v4122_v60, %v4105_v49 }
 0x158   :  { %v5067_v7 = vpack.c.bf16 %v4157_v1, %v4140_v0 }
 0x159   :  { %4176 = vmatmul.mubr.msk.f32.vlgmr.msra.gmra.mrb[32].mxu0 %vm185_vm3, %v7156_v16  ;;  %4179 = vmatmul.mubr.msk.f32.vlgmr.msra.gmra.mrb[32].mxu1 %vm185_vm3, %v7156_v16 }
 0x15a   :  { %5054 = vmatpush1.bf16.msra.mxu0 %v5053_v10  ;;  %5075 = vmatpush3.bf16.msra.mxu1 %v5074_v11  ;;  %v4141_v11 = vld [vmem:[%s7636_s2 + $0x14b0] sm:$0xff] }
 0x15b   :  { %5056 = vmatprep.subr.bf16.mxu0 %v5055_v12  ;;  %5076 = vmatprep.subr.bf16.mxu1 %v5099_v6  ;;  %v4158_v12 = vld [vmem:[%s7636_s2 + $0x1538] sm:$0x7] }
 0x15c   :  { %3416 = vmatprep.mubr.f32.mxu0 %v5097_v3  ;;  %4318 = vmatprep.mubr.msk.f32.mxu1 %vm5100_vm4, %v5097_v3  ;;  %v4124_v3 = vld [vmem:[%s7636_s2 + $0x1428] sm:$0xff] }
 0x15d   :  { %v5083_v5 = vpack.c.bf16 %v4124_v3, %v4107_v63 }
 0x15e   :  { %5058 = vmatpush1.bf16.msra.mxu0 %v5057_v25  ;;  %5078 = vmatpush3.bf16.msra.mxu1 %v5077_v26  ;;  %v5070_v25 = vpack.c.bf16 %v4156_v9, %v4139_v8 }
 0x15f   :  { %5060 = vmatprep.subr.bf16.mxu0 %v5059_v27  ;;  %5079 = vmatprep.subr.bf16.mxu1 %v5099_v6  ;;  %v5086_v27 = vpack.c.bf16 %v4158_v12, %v4141_v11 }
 0x162   :  { %5062 = vmatpush1.bf16.msra.mxu0 %v5061_v46  ;;  %5081 = vmatpush3.bf16.msra.mxu1 %v5080_v47 }
 0x163   :  { %5064 = vmatprep.subr.bf16.mxu0 %v5063_v48  ;;  %5082 = vmatprep.subr.bf16.mxu1 %v5099_v6 }
 0x164   :  { %v1380_v10 = vpop.f32.mrb[12].mxu0  ;;  %v1451_v18 = vpop.f32.mrb[12].mxu1 }
 0x165   :  { %v1745_v15 = vmax.f32 %v6829_v37, %v1380_v10  ;;  %v1382_v19 = vpop.f32.mrb[13].mxu0  ;;  %v1747_v20 = vmax.f32 %v6939_v22, %v1451_v18  ;;  %v1453_v24 = vpop.f32.mrb[13].mxu1 }
 0x166   :  { %v1746_v21 = vmax.f32 %v6837_v40, %v1382_v19  ;;  %5066 = vmatpush1.bf16.msra.mxu0 %v5065_v2  ;;  %v1748_v26 = vmax.f32 %v6950_v30, %v1453_v24  ;;  %5084 = vmatpush3.bf16.msra.mxu1 %v5083_v5  ;;  %v7555_v5 = vpop.permute.xlu0 %3513 }
 0x167   :  { %5069 = vmatprep.subr.msk.bf16.mxu0 %vm5229_vm2, %v5067_v7  ;;  %5085 = vmatprep.subr.bf16.mxu1 %v5099_v6 }
 0x16a   :  { %5072 = vmatpush1.bf16.msk.msra.mxu0 %vm5229_vm2, %v5070_v25  ;;  %5088 = vmatpush3.bf16.msk.msra.mxu1 %vm5229_vm2, %v5086_v27 }
 0x16d   :  { %4182 = vmatmul.mubr.msk.f32.vlgmr.msra.gmra.mrb[34].mxu0 %vm185_vm3, %v7156_v16  ;;  %4319 = vmatmul.mubr.msk.f32.vlgmr.msra.gmra.mrb[34].mxu1 %vm185_vm3, %v7156_v16 }
 0x178   :  { %v1522_v37 = vpop.f32.mrb[14].mxu0  ;;  %v1593_v22 = vpop.f32.mrb[14].mxu1 }
 0x179   :  { %v1749_v40 = vmax.f32 %v6952_v33, %v1522_v37  ;;  %v1524_v30 = vpop.f32.mrb[15].mxu0  ;;  %v1751_v34 = vmax.f32 %v7080_v45, %v1593_v22  ;;  %v1595_v35 = vpop.f32.mrb[15].mxu1 }
 0x17a   :  { %v1750_v6 = vmax.f32 %v6960_v38, %v1524_v30  ;;  %v1752_v39 = vmax.f32 %v7091_v50, %v1595_v35 }
 0x18c   :  { %v1664_v51 = vpop.f32.mrb[16].mxu0  ;;  %v1735_v42 = vpop.f32.mrb[16].mxu1 }
 0x18d   :  { %v1753_v41 = vmax.f32 %v7093_v52, %v1664_v51  ;;  %v1666_v43 = vpop.f32.mrb[17].mxu0  ;;  %v1755_v46 = vmax.f32 %v7227_v4, %v1735_v42  ;;  %v4274_v47 = vpop.f32.mrb[17].mxu1 }
 0x18e   :  { %v1754_v16 = vmax.f32 %v7101_v55, %v1666_v43 }
 0x1a0   :  { %v2044_v33 = vpop.f32.mrb[18].mxu0  ;;  %v2115_v48 = vpop.f32.mrb[18].mxu1 }
 0x1a1   :  { %v2616_v45 = vmax.f32 %v1739_v14, %v2044_v33  ;;  %v2046_v38 = vpop.f32.mrb[19].mxu0  ;;  %v2618_v50 = vmax.f32 %v1741_v53, %v2115_v48  ;;  %v2117_v49 = vpop.f32.mrb[19].mxu1 }
 0x1a2   :  { %v2617_v52 = vmax.f32 %v1740_v17, %v2046_v38  ;;  %v2619_v55 = vmax.f32 %v1742_v58, %v2117_v49 }
 0x1b4   :  { %v2186_v4 = vpop.f32.mrb[20].mxu0  ;;  %v2257_v61 = vpop.f32.mrb[20].mxu1 }
 0x1b5   :  { %v2620_v23 = vmax.f32 %v1743_v57, %v2186_v4  ;;  %v2188_v14 = vpop.f32.mrb[21].mxu0  ;;  %v7536_v60 = vmax.f32 %v1745_v15, %v2257_v61  ;;  %v2259_v28 = vpop.f32.mrb[21].mxu1 }
 0x1b6   :  { %v2621_v29 = vmax.f32 %v1744_v62, %v2188_v14  ;;  %v7541_v13 = vmax.f32 %v1746_v21, %v2259_v28 }
 0x1c8   :  { %v2328_v17 = vpop.f32.mrb[22].mxu0  ;;  %v2399_v32 = vpop.f32.mrb[22].mxu1 }
 0x1c9   :  { %v2624_v44 = vmax.f32 %v1747_v20, %v2328_v17  ;;  %v2330_v53 = vpop.f32.mrb[23].mxu0  ;;  %v7543_v56 = vmax.f32 %v1749_v40, %v2399_v32  ;;  %v2401_v31 = vpop.f32.mrb[23].mxu1 }
 0x1ca   :  { %v2625_v58 = vmax.f32 %v1748_v26, %v2330_v53  ;;  %v7545_v54 = vmax.f32 %v1750_v6, %v2401_v31 }
 0x1dc   :  { %v2470_v57 = vpop.f32.mrb[24].mxu0  ;;  %v2541_v3 = vpop.f32.mrb[24].mxu1 }
 0x1dd   :  { %v7547_v63 = vmax.f32 %v1751_v34, %v2470_v57  ;;  %v2472_v0 = vpop.f32.mrb[25].mxu0  ;;  %v7549_v36 = vmax.f32 %v1753_v41, %v2541_v3  ;;  %v2543_v62 = vpop.f32.mrb[25].mxu1 }
 0x1de   :  { %v7551_v59 = vmax.f32 %v1752_v39, %v2472_v0  ;;  %v7553_v1 = vmax.f32 %v1754_v16, %v2543_v62 }
 0x1f0   :  { %v2612_v2 = vpop.f32.mrb[26].mxu0  ;;  %v2921_v8 = vpop.f32.mrb[26].mxu1 }
 0x1f1   :  { %v7557_v7 = vmax.f32 %v1755_v46, %v2612_v2  ;;  %v4297_v9 = vpop.f32.mrb[27].mxu0  ;;  %v3493_v10 = vmax.f32 %v2616_v45, %v2921_v8  ;;  %v2923_v11 = vpop.f32.mrb[27].mxu1 }
 0x1f2   :  { %v3494_v12 = vmax.f32 %v2617_v52, %v2923_v11 }
 0x1f3   :  { %v3516_v15 = vadd.f32 %v7555_v5, %v3493_v10 }
 0x1f4   :  { %v3517_v18 = vadd.f32 %v7555_v5, %v3494_v12 }
 0x1f5   :  { %v3533_v19 = vmax.f32 %v3516_v15, 0.0 }
 0x1f6   :  { %v3534_v20 = vmax.f32 %v3517_v18, 0.0 }
 0x1f7   :  { %3550 = vst [vmem:[%s7639_s3] sm:$0x3f] %v3533_v19 }
 0x1f8   :  { %3551 = vst [vmem:[%s7639_s3 + $0x8] sm:$0x3f] %v3534_v20 }
 0x204   :  { %v2992_v21 = vpop.f32.mrb[28].mxu0  ;;  %v3063_v25 = vpop.f32.mrb[28].mxu1 }
 0x205   :  { %v3495_v24 = vmax.f32 %v2618_v50, %v2992_v21  ;;  %v2994_v26 = vpop.f32.mrb[29].mxu0  ;;  %v3497_v27 = vmax.f32 %v2620_v23, %v3063_v25  ;;  %v3065_v40 = vpop.f32.mrb[29].mxu1 }
 0x206   :  { %v3496_v37 = vmax.f32 %v2619_v55, %v2994_v26  ;;  %v3498_v30 = vmax.f32 %v2621_v29, %v3065_v40 }
 0x207   :  { %v3518_v22 = vadd.f32 %v7555_v5, %v3495_v24  ;;  %v3520_v34 = vadd.f32 %v7555_v5, %v3497_v27 }
 0x208   :  { %v3519_v6 = vadd.f32 %v7555_v5, %v3496_v37  ;;  %v3521_v39 = vadd.f32 %v7555_v5, %v3498_v30 }
 0x209   :  { %v3535_v35 = vmax.f32 %v3518_v22, 0.0  ;;  %v3537_v51 = vmax.f32 %v3520_v34, 0.0 }
 0x20a   :  { %v3536_v41 = vmax.f32 %v3519_v6, 0.0  ;;  %v3538_v42 = vmax.f32 %v3521_v39, 0.0 }
 0x20b   :  { %3552 = vst [vmem:[%s7639_s3 + $0x10] sm:$0x3f] %v3535_v35  ;;  %3554 = vst [vmem:[%s7639_s3 + $0x20] sm:$0x3f] %v3537_v51 }
 0x20c   :  { %3553 = vst [vmem:[%s7639_s3 + $0x18] sm:$0x3f] %v3536_v41  ;;  %3555 = vst [vmem:[%s7639_s3 + $0x28] sm:$0x3f] %v3538_v42 }
 0x218   :  { %v3134_v43 = vpop.f32.mrb[30].mxu0  ;;  %v3205_v16 = vpop.f32.mrb[30].mxu1 }
 0x219   :  { %v3499_v46 = vmax.f32 %v7536_v60, %v3134_v43  ;;  %v3136_v47 = vpop.f32.mrb[31].mxu0  ;;  %v3501_v33 = vmax.f32 %v2624_v44, %v3205_v16  ;;  %v3207_v48 = vpop.f32.mrb[31].mxu1 }
 0x21a   :  { %v3500_v45 = vmax.f32 %v7541_v13, %v3136_v47  ;;  %v3502_v50 = vmax.f32 %v2625_v58, %v3207_v48 }
 0x21b   :  { %v3522_v38 = vadd.f32 %v7555_v5, %v3499_v46  ;;  %v3524_v52 = vadd.f32 %v7555_v5, %v3501_v33 }
 0x21c   :  { %v3523_v49 = vadd.f32 %v7555_v5, %v3500_v45  ;;  %v3525_v4 = vadd.f32 %v7555_v5, %v3502_v50 }
 0x21d   :  { %v3539_v55 = vmax.f32 %v3522_v38, 0.0  ;;  %v3541_v23 = vmax.f32 %v3524_v52, 0.0 }
 0x21e   :  { %v3540_v61 = vmax.f32 %v3523_v49, 0.0  ;;  %v3542_v14 = vmax.f32 %v3525_v4, 0.0 }
 0x21f   :  { %3556 = vst [vmem:[%s7639_s3 + $0x30] sm:$0x3f] %v3539_v55  ;;  %3558 = vst [vmem:[%s7639_s3 + $0x40] sm:$0x3f] %v3541_v23 }
 0x220   :  { %3557 = vst [vmem:[%s7639_s3 + $0x38] sm:$0x3f] %v3540_v61  ;;  %3559 = vst [vmem:[%s7639_s3 + $0x48] sm:$0x3f] %v3542_v14 }
 0x22c   :  { %v3276_v60 = vpop.f32.mrb[32].mxu0  ;;  %v3347_v28 = vpop.f32.mrb[32].mxu1 }
 0x22d   :  { %v3503_v29 = vmax.f32 %v7543_v56, %v3276_v60  ;;  %v3278_v13 = vpop.f32.mrb[33].mxu0  ;;  %v3505_v17 = vmax.f32 %v7547_v63, %v3347_v28  ;;  %v3349_v32 = vpop.f32.mrb[33].mxu1 }
 0x22e   :  { %v3504_v44 = vmax.f32 %v7545_v54, %v3278_v13  ;;  %v3506_v58 = vmax.f32 %v7551_v59, %v3349_v32 }
 0x22f   :  { %v3526_v53 = vadd.f32 %v7555_v5, %v3503_v29  ;;  %v3528_v31 = vadd.f32 %v7555_v5, %v3505_v17 }
 0x230   :  { %v3527_v57 = vadd.f32 %v7555_v5, %v3504_v44  ;;  %v3529_v0 = vadd.f32 %v7555_v5, %v3506_v58 }
 0x231   :  { %v3543_v3 = vmax.f32 %v3526_v53, 0.0  ;;  %v3545_v62 = vmax.f32 %v3528_v31, 0.0 }
 0x232   :  { %v3544_v56 = vmax.f32 %v3527_v57, 0.0  ;;  %v3546_v63 = vmax.f32 %v3529_v0, 0.0 }
 0x233   :  { %3560 = vst [vmem:[%s7639_s3 + $0x50] sm:$0x3f] %v3543_v3  ;;  %3562 = vst [vmem:[%s7639_s3 + $0x60] sm:$0x3f] %v3545_v62 }
 0x234   :  { %3561 = vst [vmem:[%s7639_s3 + $0x58] sm:$0x3f] %v3544_v56  ;;  %3563 = vst [vmem:[%s7639_s3 + $0x68] sm:$0x3f] %v3546_v63 }
 0x240   :  { %v3418_v54 = vpop.f32.mrb[34].mxu0  ;;  %v3489_v2 = vpop.f32.mrb[34].mxu1 }
 0x241   :  { %v3507_v59 = vmax.f32 %v7549_v36, %v3418_v54  ;;  %v3420_v8 = vpop.f32.mrb[35].mxu0  ;;  %v3509_v9 = vmax.f32 %v7557_v7, %v3489_v2  ;;  %v4320_v11 = vpop.f32.mrb[35].mxu1 }
 0x242   :  { %v3508_v10 = vmax.f32 %v7553_v1, %v3420_v8 }
 0x243   :  { %v3530_v12 = vadd.f32 %v7555_v5, %v3507_v59  ;;  %v3532_v15 = vadd.f32 %v7555_v5, %v3509_v9 }
 0x244   :  { %v3531_v18 = vadd.f32 %v7555_v5, %v3508_v10 }
 0x245   :  { %v3547_v19 = vmax.f32 %v3530_v12, 0.0  ;;  %v3549_v20 = vmax.f32 %v3532_v15, 0.0 }
 0x246   :  { %v3548_v21 = vmax.f32 %v3531_v18, 0.0 }
 0x247   :  { %3564 = vst [vmem:[%s7639_s3 + $0x70] sm:$0x3f] %v3547_v19  ;;  %3566 = vst [vmem:[%s7639_s3 + $0x80] sm:$0x3f] %v3549_v20 }
 0x248   :  { %3565 = vst [vmem:[%s7639_s3 + $0x78] sm:$0x3f] %v3548_v21 }

// kernel: net_forward.3
= control target key start
LH: loop header
LB: loop body
LE: loop exit
PB: predicated region body
PF: predicated region fallthrough
CT: control target
= control target key end

     0   :  { %vm77_vm0 = vcmask 179200   ;;  %vm84_vm1 = vcmask 1045504   ;;  %s8352_s0 = inlined_call_operand.vmem [shape: f32[8,150,198], index: 0, kind: input, shape index: {}]   ;;  %s8353_s1 = inlined_call_operand.vmem [shape: f32[16,150], index: 1, kind: input, shape index: {}]   ;;  %s8354_s2 = inlined_call_operand.vmem [shape: f32[16,1], index: 2, kind: input, shape index: {}]   ;;  %s8355_s3 = inlined_call_operand.vmem [shape: f32[16,198,120], index: 3, kind: input, shape index: {}]   ;;  %s8356_s4 = inlined_call_operand.vmem [shape: f32[1,120], index: 4, kind: input, shape index: {}]   ;;  %s8357_s5 = inlined_call_operand.vmem [shape: f32[120,84], index: 5, kind: input, shape index: {}]   ;;  %s8358_s6 = inlined_call_operand.vmem [shape: f32[1,84], index: 6, kind: input, shape index: {}]   ;;  %s8359_s7 = inlined_call_operand.vmem [shape: f32[84,13], index: 7, kind: input, shape index: {}]   ;;  %s8360_s8 = inlined_call_operand.vmem [shape: f32[1,13], index: 8, kind: input, shape index: {}]   ;;  %s8361_s9 = inlined_call_operand.hbm [shape: f32[2,13], index: 9, kind: output, shape index: {}]  }
   0x1   :  { %v40_v0 = vld [vmem:[%s8352_s0 + $0x8] sm:$0xff]  ;;  %v42_v1 = vld [vmem:[%s8352_s0 + $0x18] sm:$0xff]  ;;  %v39_v5 = vld [vmem:[%s8352_s0] sm:$0xff] }
   0x2   :  { %v3502_v2 = vld [vmem:[%s8352_s0 + $0x268] sm:$0xff]  ;;  %v4294_v3 = vpack.c.bf16 %v42_v1, %v40_v0  ;;  %v3504_v4 = vld [vmem:[%s8352_s0 + $0x278] sm:$0xff]  ;;  %v41_v6 = vld [vmem:[%s8352_s0 + $0x10] sm:$0xff] }
   0x3   :  { %v4330_v7 = vpack.c.bf16 %v3504_v4, %v3502_v2  ;;  %v4296_v8 = vpack.c.bf16 %v41_v6, %v39_v5  ;;  %v3501_v9 = vld [vmem:[%s8352_s0 + $0x260] sm:$0xff]  ;;  %v3503_v10 = vld [vmem:[%s8352_s0 + $0x270] sm:$0xff]  ;;  %v44_v11 = vld [vmem:[%s8352_s0 + $0x28] sm:$0xff] }
   0x4   :  { %4295 = vmatprep.subr.bf16.mxu0 %v4294_v3  ;;  %v4332_v12 = vpack.c.bf16 %v3503_v10, %v3501_v9  ;;  %v46_v13 = vld [vmem:[%s8352_s0 + $0x38] sm:$0xff]  ;;  %v3506_v14 = vld [vmem:[%s8352_s0 + $0x288] sm:$0xff]  ;;  %v43_v18 = vld [vmem:[%s8352_s0 + $0x20] sm:$0xff] }
   0x5   :  { %v3508_v15 = vld [vmem:[%s8352_s0 + $0x298] sm:$0xff]  ;;  %4331 = vmatprep.subr.bf16.mxu1 %v4330_v7  ;;  %4297 = vmatpush1.bf16.msra.mxu0 %v4296_v8  ;;  %v4298_v16 = vpack.c.bf16 %v46_v13, %v44_v11  ;;  %v45_v19 = vld [vmem:[%s8352_s0 + $0x30] sm:$0xff]  ;;  %v3505_v20 = vld [vmem:[%s8352_s0 + $0x280] sm:$0xff] }
   0x6   :  { %v4334_v17 = vpack.c.bf16 %v3508_v15, %v3506_v14  ;;  %4333 = vmatpush1.bf16.msra.mxu1 %v4332_v12  ;;  %v4300_v21 = vpack.c.bf16 %v45_v19, %v43_v18  ;;  %v3507_v22 = vld [vmem:[%s8352_s0 + $0x290] sm:$0xff]  ;;  %v48_v23 = vld [vmem:[%s8352_s0 + $0x48] sm:$0xff]  ;;  %v50_v24 = vld [vmem:[%s8352_s0 + $0x58] sm:$0xff] }
   0x7   :  { %4299 = vmatprep.subr.bf16.mxu0 %v4298_v16  ;;  %v4336_v25 = vpack.c.bf16 %v3507_v22, %v3505_v20  ;;  %v4302_v26 = vpack.c.bf16 %v50_v24, %v48_v23  ;;  %v3510_v27 = vld [vmem:[%s8352_s0 + $0x2a8] sm:$0xff]  ;;  %v3512_v28 = vld [vmem:[%s8352_s0 + $0x2b8] sm:$0xff]  ;;  %v47_v29 = vld [vmem:[%s8352_s0 + $0x40] sm:$0xff] }
   0x8   :  { %4335 = vmatprep.subr.bf16.mxu1 %v4334_v17  ;;  %v4338_v30 = vpack.c.bf16 %v3512_v28, %v3510_v27  ;;  %v49_v31 = vld [vmem:[%s8352_s0 + $0x50] sm:$0xff]  ;;  %v3509_v32 = vld [vmem:[%s8352_s0 + $0x2a0] sm:$0xff]  ;;  %v52_v35 = vld [vmem:[%s8352_s0 + $0x68] sm:$0xff] }
   0x9   :  { %v3511_v33 = vld [vmem:[%s8352_s0 + $0x2b0] sm:$0xff]  ;;  %4301 = vmatpush1.bf16.msra.mxu0 %v4300_v21  ;;  %v4304_v34 = vpack.c.bf16 %v49_v31, %v47_v29  ;;  %v54_v36 = vld [vmem:[%s8352_s0 + $0x78] sm:$0xff]  ;;  %v3514_v37 = vld [vmem:[%s8352_s0 + $0x2c8] sm:$0xff] }
   0xa   :  { %4337 = vmatpush1.bf16.msra.mxu1 %v4336_v25  ;;  %4303 = vmatprep.subr.bf16.mxu0 %v4302_v26  ;;  %v4340_v38 = vpack.c.bf16 %v3511_v33, %v3509_v32  ;;  %v4306_v39 = vpack.c.bf16 %v54_v36, %v52_v35  ;;  %v3516_v40 = vld [vmem:[%s8352_s0 + $0x2d8] sm:$0xff]  ;;  %v51_v41 = vld [vmem:[%s8352_s0 + $0x60] sm:$0xff]  ;;  %v53_v42 = vld [vmem:[%s8352_s0 + $0x70] sm:$0xff] }
   0xb   :  { %4339 = vmatprep.subr.bf16.mxu1 %v4338_v30  ;;  %v4342_v43 = vpack.c.bf16 %v3516_v40, %v3514_v37  ;;  %v3513_v44 = vld [vmem:[%s8352_s0 + $0x2c0] sm:$0xff]  ;;  %v3515_v45 = vld [vmem:[%s8352_s0 + $0x2d0] sm:$0xff]  ;;  %v56_v46 = vld [vmem:[%s8352_s0 + $0x88] sm:$0xff]  ;;  %v4308_v50 = vpack.c.bf16 %v53_v42, %v51_v41 }
   0xc   :  { %v58_v47 = vld [vmem:[%s8352_s0 + $0x98] sm:$0xff]  ;;  %v3518_v48 = vld [vmem:[%s8352_s0 + $0x2e8] sm:$0xff]  ;;  %v4344_v51 = vpack.c.bf16 %v3515_v45, %v3513_v44  ;;  %v55_v53 = vld [vmem:[%s8352_s0 + $0x80] sm:$0xff] }
   0xd   :  { %v3520_v49 = vld [vmem:[%s8352_s0 + $0x2f8] sm:$0xff]  ;;  %4305 = vmatpush1.bf16.msra.mxu0 %v4304_v34  ;;  %v4310_v52 = vpack.c.bf16 %v58_v47, %v56_v46  ;;  %v57_v54 = vld [vmem:[%s8352_s0 + $0x90] sm:$0xff]  ;;  %v3517_v55 = vld [vmem:[%s8352_s0 + $0x2e0] sm:$0xff] }
   0xe   :  { %4341 = vmatpush1.bf16.msra.mxu1 %v4340_v38  ;;  %4307 = vmatprep.subr.bf16.mxu0 %v4306_v39  ;;  %v4346_v56 = vpack.c.bf16 %v3520_v49, %v3518_v48  ;;  %v3519_v57 = vld [vmem:[%s8352_s0 + $0x2f0] sm:$0xff]  ;;  %v60_v58 = vld [vmem:[%s8352_s0 + $0xa8] sm:$0xff]  ;;  %v62_v59 = vld [vmem:[%s8352_s0 + $0xb8] sm:$0xff]  ;;  %v4312_v62 = vpack.c.bf16 %v57_v54, %v55_v53 }
   0xf   :  { %4343 = vmatprep.subr.bf16.mxu1 %v4342_v43  ;;  %v3522_v60 = vld [vmem:[%s8352_s0 + $0x308] sm:$0xff]  ;;  %v3524_v61 = vld [vmem:[%s8352_s0 + $0x318] sm:$0xff]  ;;  %v4348_v63 = vpack.c.bf16 %v3519_v57, %v3517_v55  ;;  %v4314_v0 = vpack.c.bf16 %v62_v59, %v60_v58  ;;  %v59_v1 = vld [vmem:[%s8352_s0 + $0xa0] sm:$0xff] }
  0x10   :  { %v61_v2 = vld [vmem:[%s8352_s0 + $0xb0] sm:$0xff]  ;;  %v3521_v3 = vld [vmem:[%s8352_s0 + $0x300] sm:$0xff]  ;;  %v4350_v4 = vpack.c.bf16 %v3524_v61, %v3522_v60  ;;  %v64_v6 = vld [vmem:[%s8352_s0 + $0xc8] sm:$0xff] }
  0x11   :  { %4309 = vmatpush1.bf16.msra.mxu0 %v4308_v50  ;;  %v3523_v5 = vld [vmem:[%s8352_s0 + $0x310] sm:$0xff]  ;;  %v66_v7 = vld [vmem:[%s8352_s0 + $0xd8] sm:$0xff]  ;;  %v3526_v8 = vld [vmem:[%s8352_s0 + $0x328] sm:$0xff]  ;;  %v4316_v10 = vpack.c.bf16 %v61_v2, %v59_v1 }
  0x12   :  { %4345 = vmatpush1.bf16.msra.mxu1 %v4344_v51  ;;  %4311 = vmatprep.subr.bf16.mxu0 %v4310_v52  ;;  %v3528_v9 = vld [vmem:[%s8352_s0 + $0x338] sm:$0xff]  ;;  %v4352_v11 = vpack.c.bf16 %v3523_v5, %v3521_v3  ;;  %v4318_v12 = vpack.c.bf16 %v66_v7, %v64_v6  ;;  %v63_v13 = vld [vmem:[%s8352_s0 + $0xc0] sm:$0xff]  ;;  %v65_v14 = vld [vmem:[%s8352_s0 + $0xd0] sm:$0xff] }
  0x13   :  { %4347 = vmatprep.subr.bf16.mxu1 %v4346_v56  ;;  %v3525_v15 = vld [vmem:[%s8352_s0 + $0x320] sm:$0xff]  ;;  %v4354_v16 = vpack.c.bf16 %v3528_v9, %v3526_v8  ;;  %v3527_v17 = vld [vmem:[%s8352_s0 + $0x330] sm:$0xff]  ;;  %v68_v18 = vld [vmem:[%s8352_s0 + $0xe8] sm:$0xff]  ;;  %v4320_v22 = vpack.c.bf16 %v65_v14, %v63_v13  ;;  %v5225_v56 = vmov 0  }
  0x14   :  { %v70_v19 = vld [vmem:[%s8352_s0 + $0xf8] sm:$0xff]  ;;  %v3530_v20 = vld [vmem:[%s8352_s0 + $0x348] sm:$0xff]  ;;  %v67_v23 = vld [vmem:[%s8352_s0 + $0xe0] sm:$0xff]  ;;  %v4356_v24 = vpack.c.bf16 %v3527_v17, %v3525_v15  ;;  %5200 = vset.pattern.permute.xlu0 %v5225_v56 }
  0x15   :  { %4313 = vmatpush1.bf16.msra.mxu0 %v4312_v62  ;;  %v3532_v21 = vld [vmem:[%s8352_s0 + $0x358] sm:$0xff]  ;;  %v4322_v25 = vpack.c.bf16 %v70_v19, %v68_v18  ;;  %v69_v26 = vld [vmem:[%s8352_s0 + $0xf0] sm:$0xff]  ;;  %v3529_v27 = vld [vmem:[%s8352_s0 + $0x340] sm:$0xff] }
  0x16   :  { %4349 = vmatpush1.bf16.msra.mxu1 %v4348_v63  ;;  %4315 = vmatprep.subr.bf16.mxu0 %v4314_v0  ;;  %v5473_v28 = vld [vmem:[%s8353_s1 + $0x8] sm:$0xff]  ;;  %v4358_v29 = vpack.c.bf16 %v3532_v21, %v3530_v20  ;;  %v3531_v30 = vld [vmem:[%s8352_s0 + $0x350] sm:$0xff]  ;;  %v74_v32 = vld [vmem:[%s8352_s0 + $0x118] sm:$0xff]  ;;  %v4324_v35 = vpack.c.bf16 %v69_v26, %v67_v23 }
  0x17   :  { %4351 = vmatprep.subr.bf16.mxu1 %v4350_v4  ;;  %v72_v31 = vld [vmem:[%s8352_s0 + $0x108] sm:$0xff]  ;;  %3499 = vmatprep.mubr.msk.f32.mxu0 %vm77_vm0, %v5473_v28  ;;  %v3536_v34 = vld [vmem:[%s8352_s0 + $0x378] sm:$0xff]  ;;  %v4360_v36 = vpack.c.bf16 %v3531_v30, %v3529_v27  ;;  %v71_v38 = vld [vmem:[%s8352_s0 + $0x100] sm:$0xff] }
  0x18   :  { %v3534_v33 = vld [vmem:[%s8352_s0 + $0x368] sm:$0xff]  ;;  %3541 = vmatprep.mubr.msk.f32.mxu1 %vm77_vm0, %v5473_v28  ;;  %v4326_v37 = vpack.c.bf16 %v74_v32, %v72_v31  ;;  %v73_v39 = vld [vmem:[%s8352_s0 + $0x110] sm:$0xff]  ;;  %v3533_v41 = vld [vmem:[%s8352_s0 + $0x360] sm:$0xff] }
  0x19   :  { %4317 = vmatpush1.bf16.msra.mxu0 %v4316_v10  ;;  %v4362_v40 = vpack.c.bf16 %v3536_v34, %v3534_v33  ;;  %v3535_v42 = vld [vmem:[%s8352_s0 + $0x370] sm:$0xff]  ;;  %v4328_v43 = vpack.c.bf16 %v73_v39, %v71_v38  ;;  %v76_v45 = vld [vmem:[%s8352_s0 + $0x128] sm:$0x3f]  ;;  %v75_v48 = vld [vmem:[%s8352_s0 + $0x120] sm:$0x3f] }
  0x1a   :  { %4353 = vmatpush1.bf16.msra.mxu1 %v4352_v11  ;;  %4319 = vmatprep.subr.bf16.mxu0 %v4318_v12  ;;  %v4364_v44 = vpack.c.bf16 %v3535_v42, %v3533_v41  ;;  %v3538_v46 = vld [vmem:[%s8352_s0 + $0x388] sm:$0x3f]  ;;  %v3546_v49 = vld [vmem:[%s8352_s0 + $0x4d8] sm:$0xff]  ;;  %v3537_v52 = vld [vmem:[%s8352_s0 + $0x380] sm:$0x3f] }
  0x1b   :  { %4355 = vmatprep.subr.bf16.mxu1 %v4354_v16  ;;  %v3544_v47 = vld [vmem:[%s8352_s0 + $0x4c8] sm:$0xff]  ;;  %v3588_v51 = vld [vmem:[%s8352_s0 + $0x738] sm:$0xff]  ;;  %v3543_v53 = vld [vmem:[%s8352_s0 + $0x4c0] sm:$0xff] }
  0x1c   :  { %v3586_v50 = vld [vmem:[%s8352_s0 + $0x728] sm:$0xff]  ;;  %v3545_v54 = vld [vmem:[%s8352_s0 + $0x4d0] sm:$0xff]  ;;  %v3585_v55 = vld [vmem:[%s8352_s0 + $0x720] sm:$0xff]  ;;  %v4366_v61 = vpack.c.bf16 %v3546_v49, %v3544_v47 }
  0x1d   :  { %4321 = vmatpush1.bf16.msra.mxu0 %v4320_v22  ;;  %v3587_v57 = vld [vmem:[%s8352_s0 + $0x730] sm:$0xff]  ;;  %v3548_v58 = vld [vmem:[%s8352_s0 + $0x4e8] sm:$0xff]  ;;  %v3550_v59 = vld [vmem:[%s8352_s0 + $0x4f8] sm:$0xff]  ;;  %v4402_v0 = vpack.c.bf16 %v3588_v51, %v3586_v50  ;;  %v4368_v1 = vpack.c.bf16 %v3545_v54, %v3543_v53 }
  0x1e   :  { %4357 = vmatpush1.bf16.msra.mxu1 %v4356_v24  ;;  %4323 = vmatprep.subr.bf16.mxu0 %v4322_v25  ;;  %v5553_v60 = vld [vmem:[%s8353_s1] sm:$0xff]  ;;  %v3590_v62 = vld [vmem:[%s8352_s0 + $0x748] sm:$0xff]  ;;  %v3592_v63 = vld [vmem:[%s8352_s0 + $0x758] sm:$0xff]  ;;  %v4404_v2 = vpack.c.bf16 %v3587_v57, %v3585_v55  ;;  %v4370_v3 = vpack.c.bf16 %v3550_v59, %v3548_v58 }
  0x1f   :  { %4359 = vmatprep.subr.bf16.mxu1 %v4358_v29  ;;  %v3547_v4 = vld [vmem:[%s8352_s0 + $0x4e0] sm:$0xff]  ;;  %v3549_v5 = vld [vmem:[%s8352_s0 + $0x4f0] sm:$0xff]  ;;  %v4406_v7 = vpack.c.bf16 %v3592_v63, %v3590_v62  ;;  %v3552_v9 = vld [vmem:[%s8352_s0 + $0x508] sm:$0xff] }
  0x20   :  { %v3589_v6 = vld [vmem:[%s8352_s0 + $0x740] sm:$0xff]  ;;  %v3591_v8 = vld [vmem:[%s8352_s0 + $0x750] sm:$0xff]  ;;  %v3554_v10 = vld [vmem:[%s8352_s0 + $0x518] sm:$0xff]  ;;  %v4372_v13 = vpack.c.bf16 %v3549_v5, %v3547_v4 }
  0x21   :  { %4325 = vmatpush1.bf16.msra.mxu0 %v4324_v35  ;;  %v3594_v11 = vld [vmem:[%s8352_s0 + $0x768] sm:$0xff]  ;;  %v3596_v12 = vld [vmem:[%s8352_s0 + $0x778] sm:$0xff]  ;;  %v4408_v14 = vpack.c.bf16 %v3591_v8, %v3589_v6  ;;  %v4374_v15 = vpack.c.bf16 %v3554_v10, %v3552_v9  ;;  %v3551_v16 = vld [vmem:[%s8352_s0 + $0x500] sm:$0xff] }
  0x22   :  { %4361 = vmatpush1.bf16.msra.mxu1 %v4360_v36  ;;  %4327 = vmatprep.subr.bf16.mxu0 %v4326_v37  ;;  %v3553_v17 = vld [vmem:[%s8352_s0 + $0x510] sm:$0xff]  ;;  %v3593_v18 = vld [vmem:[%s8352_s0 + $0x760] sm:$0xff]  ;;  %v4410_v19 = vpack.c.bf16 %v3596_v12, %v3594_v11  ;;  %v3556_v21 = vld [vmem:[%s8352_s0 + $0x528] sm:$0xff] }
  0x23   :  { %4363 = vmatprep.subr.bf16.mxu1 %v4362_v40  ;;  %v3595_v20 = vld [vmem:[%s8352_s0 + $0x770] sm:$0xff]  ;;  %v3558_v22 = vld [vmem:[%s8352_s0 + $0x538] sm:$0xff]  ;;  %v3598_v23 = vld [vmem:[%s8352_s0 + $0x788] sm:$0xff]  ;;  %v4376_v25 = vpack.c.bf16 %v3553_v17, %v3551_v16 }
  0x24   :  { %v3600_v24 = vld [vmem:[%s8352_s0 + $0x798] sm:$0xff]  ;;  %v3555_v26 = vld [vmem:[%s8352_s0 + $0x520] sm:$0xff]  ;;  %v4412_v27 = vpack.c.bf16 %v3595_v20, %v3593_v18  ;;  %v4378_v29 = vpack.c.bf16 %v3558_v22, %v3556_v21  ;;  %v3557_v30 = vld [vmem:[%s8352_s0 + $0x530] sm:$0xff] }
  0x25   :  { %4329 = vmatpush1.bf16.msra.mxu0 %v4328_v43  ;;  %v3597_v31 = vld [vmem:[%s8352_s0 + $0x780] sm:$0xff]  ;;  %v5625_v32 = vld [vmem:[%s8353_s1 + $0x18] sm:$0xff]  ;;  %v4414_v33 = vpack.c.bf16 %v3600_v24, %v3598_v23  ;;  %v3599_v34 = vld [vmem:[%s8352_s0 + $0x790] sm:$0xff]  ;;  %v4380_v40 = vpack.c.bf16 %v3557_v30, %v3555_v26 }
  0x26   :  { %4365 = vmatpush1.bf16.msra.mxu1 %v4364_v44  ;;  %3497 = vmatprep.subr.msk.mxu0 %vm84_vm1, %v76_v45  ;;  %v3560_v35 = vld [vmem:[%s8352_s0 + $0x548] sm:$0xff]  ;;  %v3562_v36 = vld [vmem:[%s8352_s0 + $0x558] sm:$0xff]  ;;  %v5649_v39 = vld [vmem:[%s8353_s1 + $0x10] sm:$0xff]  ;;  %v4416_v41 = vpack.c.bf16 %v3599_v34, %v3597_v31 }
  0x27   :  { %3539 = vmatprep.subr.msk.mxu1 %vm84_vm1, %v3538_v46  ;;  %v3602_v37 = vld [vmem:[%s8352_s0 + $0x7a8] sm:$0xff]  ;;  %v3604_v38 = vld [vmem:[%s8352_s0 + $0x7b8] sm:$0xff]  ;;  %v4382_v42 = vpack.c.bf16 %v3562_v36, %v3560_v35  ;;  %v3559_v43 = vld [vmem:[%s8352_s0 + $0x540] sm:$0xff] }
  0x28   :  { %v3561_v44 = vld [vmem:[%s8352_s0 + $0x550] sm:$0xff]  ;;  %v3601_v45 = vld [vmem:[%s8352_s0 + $0x7a0] sm:$0xff]  ;;  %v4418_v46 = vpack.c.bf16 %v3604_v38, %v3602_v37  ;;  %v3566_v49 = vld [vmem:[%s8352_s0 + $0x578] sm:$0xff] }
  0x29   :  { %3498 = vmatpush1.msk.msra.mxu0 %vm84_vm1, %v75_v48  ;;  %v3603_v47 = vld [vmem:[%s8352_s0 + $0x7b0] sm:$0xff]  ;;  %v3564_v48 = vld [vmem:[%s8352_s0 + $0x568] sm:$0xff]  ;;  %v3608_v51 = vld [vmem:[%s8352_s0 + $0x7d8] sm:$0xff] }
  0x2a   :  { %3540 = vmatpush1.msk.msra.mxu1 %vm84_vm1, %v3537_v52  ;;  %156 = vmatmul.mubr.f32.vlgmr.msra.gmra.mrb[0].mxu0 %v5553_v60  ;;  %v3606_v50 = vld [vmem:[%s8352_s0 + $0x7c8] sm:$0xff]  ;;  %v4384_v52 = vpack.c.bf16 %v3561_v44, %v3559_v43  ;;  %v4420_v53 = vpack.c.bf16 %v3603_v47, %v3601_v45  ;;  %v4386_v54 = vpack.c.bf16 %v3566_v49, %v3564_v48  ;;  %v3563_v55 = vld [vmem:[%s8352_s0 + $0x560] sm:$0xff]  ;;  %v3565_v56 = vld [vmem:[%s8352_s0 + $0x570] sm:$0xff] }
  0x2b   :  { %278 = vmatmul.mubr.f32.vlgmr.msra.gmra.mrb[0].mxu1 %v5553_v60  ;;  %4367 = vmatprep.subr.bf16.mxu0 %v4366_v61  ;;  %v3605_v57 = vld [vmem:[%s8352_s0 + $0x7c0] sm:$0xff]  ;;  %v4422_v58 = vpack.c.bf16 %v3608_v51, %v3606_v50  ;;  %v3607_v59 = vld [vmem:[%s8352_s0 + $0x7d0] sm:$0xff]  ;;  %v3568_v61 = vld [vmem:[%s8352_s0 + $0x588] sm:$0xff] }
  0x2c   :  { %4403 = vmatprep.subr.bf16.mxu1 %v4402_v0  ;;  %4369 = vmatpush1.bf16.msra.mxu0 %v4368_v1  ;;  %v3570_v62 = vld [vmem:[%s8352_s0 + $0x598] sm:$0xff]  ;;  %v3610_v63 = vld [vmem:[%s8352_s0 + $0x7e8] sm:$0xff]  ;;  %v4388_v1 = vpack.c.bf16 %v3565_v56, %v3563_v55  ;;  %v3567_v4 = vld [vmem:[%s8352_s0 + $0x580] sm:$0xff] }
  0x2d   :  { %4405 = vmatpush1.bf16.msra.mxu1 %v4404_v2  ;;  %4371 = vmatprep.subr.bf16.mxu0 %v4370_v3  ;;  %v3612_v0 = vld [vmem:[%s8352_s0 + $0x7f8] sm:$0xff]  ;;  %v4424_v2 = vpack.c.bf16 %v3607_v59, %v3605_v57  ;;  %v4390_v3 = vpack.c.bf16 %v3570_v62, %v3568_v61  ;;  %v3569_v5 = vld [vmem:[%s8352_s0 + $0x590] sm:$0xff]  ;;  %v3609_v6 = vld [vmem:[%s8352_s0 + $0x7e0] sm:$0xff] }
  0x2e   :  { %4407 = vmatprep.subr.bf16.mxu1 %v4406_v7  ;;  %3500 = vmatprep.mubr.msk.f32.mxu0 %vm77_vm0, %v5625_v32  ;;  %v4426_v7 = vpack.c.bf16 %v3612_v0, %v3610_v63  ;;  %v3611_v8 = vld [vmem:[%s8352_s0 + $0x7f0] sm:$0xff]  ;;  %v3572_v9 = vld [vmem:[%s8352_s0 + $0x5a8] sm:$0xff]  ;;  %v3574_v10 = vld [vmem:[%s8352_s0 + $0x5b8] sm:$0xff] }
  0x2f   :  { %3542 = vmatprep.mubr.msk.f32.mxu1 %vm77_vm0, %v5625_v32  ;;  %162 = vmatmul.mubr.f32.gmra.mrb[2].mxu0 %v5649_v39  ;;  %v3614_v11 = vld [vmem:[%s8352_s0 + $0x808] sm:$0xff]  ;;  %v3616_v12 = vld [vmem:[%s8352_s0 + $0x818] sm:$0xff]  ;;  %v3571_v16 = vld [vmem:[%s8352_s0 + $0x5a0] sm:$0xff] }
  0x30   :  { %4373 = vmatpush1.bf16.msra.mxu0 %v4372_v13  ;;  %284 = vmatmul.mubr.f32.gmra.mrb[2].mxu1 %v5649_v39  ;;  %v4392_v13 = vpack.c.bf16 %v3569_v5, %v3567_v4  ;;  %v3573_v17 = vld [vmem:[%s8352_s0 + $0x5b0] sm:$0xff]  ;;  %v3613_v18 = vld [vmem:[%s8352_s0 + $0x800] sm:$0xff]  ;;  %v3576_v21 = vld [vmem:[%s8352_s0 + $0x5c8] sm:$0xff] }
  0x31   :  { %4409 = vmatpush1.bf16.msra.mxu1 %v4408_v14  ;;  %4375 = vmatprep.subr.bf16.mxu0 %v4374_v15  ;;  %v4428_v14 = vpack.c.bf16 %v3611_v8, %v3609_v6  ;;  %v4394_v15 = vpack.c.bf16 %v3574_v10, %v3572_v9  ;;  %v3615_v20 = vld [vmem:[%s8352_s0 + $0x810] sm:$0xff]  ;;  %v3578_v22 = vld [vmem:[%s8352_s0 + $0x5d8] sm:$0xff]  ;;  %v3618_v23 = vld [vmem:[%s8352_s0 + $0x828] sm:$0xff] }
  0x32   :  { %4411 = vmatprep.subr.bf16.mxu1 %v4410_v19  ;;  %3583 = vmatprep.mubr.msk.f32.mxu0 %vm77_vm0, %v5473_v28  ;;  %v4430_v19 = vpack.c.bf16 %v3616_v12, %v3614_v11  ;;  %v3620_v24 = vld [vmem:[%s8352_s0 + $0x838] sm:$0xff]  ;;  %v4432_v26 = vpack.c.bf16 %v3615_v20, %v3613_v18  ;;  %v3577_v30 = vld [vmem:[%s8352_s0 + $0x5d0] sm:$0xff]  ;;  %v3580_v37 = vld [vmem:[%s8352_s0 + $0x5e8] sm:$0x3f] }
  0x33   :  { %3625 = vmatprep.mubr.msk.f32.mxu1 %vm77_vm0, %v5473_v28  ;;  %v4434_v31 = vpack.c.bf16 %v3620_v24, %v3618_v23  ;;  %v3619_v34 = vld [vmem:[%s8352_s0 + $0x830] sm:$0xff]  ;;  %v3622_v38 = vld [vmem:[%s8352_s0 + $0x848] sm:$0x3f]  ;;  %v3629_v45 = vld [vmem:[%s8352_s0 + $0x140] sm:$0xff] }
  0x34   :  { %4377 = vmatpush1.bf16.msra.mxu0 %v4376_v25  ;;  %v4396_v25 = vpack.c.bf16 %v3573_v17, %v3571_v16  ;;  %v3672_v43 = vld [vmem:[%s8352_s0 + $0x3a8] sm:$0xff]  ;;  %v3627_v44 = vld [vmem:[%s8352_s0 + $0x130] sm:$0xff]  ;;  %v3671_v48 = vld [vmem:[%s8352_s0 + $0x3a0] sm:$0xff] }
  0x35   :  { %4413 = vmatpush1.bf16.msra.mxu1 %v4412_v27  ;;  %4379 = vmatprep.subr.bf16.mxu0 %v4378_v29  ;;  %v4398_v27 = vpack.c.bf16 %v3578_v22, %v3576_v21  ;;  %v3575_v29 = vld [vmem:[%s8352_s0 + $0x5c0] sm:$0xff]  ;;  %v3669_v47 = vld [vmem:[%s8352_s0 + $0x390] sm:$0xff]  ;;  %v3674_v55 = vld [vmem:[%s8352_s0 + $0x3b8] sm:$0xff] }
  0x36   :  { %4415 = vmatprep.subr.bf16.mxu1 %v4414_v33  ;;  %v3617_v33 = vld [vmem:[%s8352_s0 + $0x820] sm:$0xff]  ;;  %v4400_v35 = vpack.c.bf16 %v3577_v30, %v3575_v29  ;;  %v3676_v56 = vld [vmem:[%s8352_s0 + $0x3c8] sm:$0xff]  ;;  %v4476_v57 = vpack.c.bf16 %v3671_v48, %v3669_v47  ;;  %v3673_v61 = vld [vmem:[%s8352_s0 + $0x3b0] sm:$0xff] }
  0x37   :  { %v4436_v36 = vpack.c.bf16 %v3619_v34, %v3617_v33  ;;  %v3621_v49 = vld [vmem:[%s8352_s0 + $0x840] sm:$0x3f]  ;;  %v3636_v0 = vld [vmem:[%s8352_s0 + $0x178] sm:$0xff]  ;;  %v3680_v4 = vld [vmem:[%s8352_s0 + $0x3e8] sm:$0xff] }
  0x38   :  { %4381 = vmatpush1.bf16.msra.mxu0 %v4380_v40  ;;  %v3628_v40 = vld [vmem:[%s8352_s0 + $0x138] sm:$0xff]  ;;  %v3633_v59 = vld [vmem:[%s8352_s0 + $0x160] sm:$0xff]  ;;  %v3635_v8 = vld [vmem:[%s8352_s0 + $0x170] sm:$0xff] }
  0x39   :  { %4417 = vmatpush1.bf16.msra.mxu1 %v4416_v41  ;;  %4383 = vmatprep.subr.bf16.mxu0 %v4382_v42  ;;  %v3630_v41 = vld [vmem:[%s8352_s0 + $0x148] sm:$0xff]  ;;  %v3670_v42 = vld [vmem:[%s8352_s0 + $0x398] sm:$0xff]  ;;  %v3675_v63 = vld [vmem:[%s8352_s0 + $0x3c0] sm:$0xff] }
  0x3a   :  { %4419 = vmatprep.subr.bf16.mxu1 %v4418_v46  ;;  %v3579_v46 = vld [vmem:[%s8352_s0 + $0x5e0] sm:$0x3f]  ;;  %v4438_v50 = vpack.c.bf16 %v3630_v41, %v3628_v40  ;;  %v4474_v51 = vpack.c.bf16 %v3672_v43, %v3670_v42  ;;  %v4480_v6 = vpack.c.bf16 %v3675_v63, %v3673_v61  ;;  %v3677_v10 = vld [vmem:[%s8352_s0 + $0x3d0] sm:$0xff]  ;;  %v3684_v16 = vld [vmem:[%s8352_s0 + $0x408] sm:$0xff] }
  0x3b   :  { %v3637_v9 = vld [vmem:[%s8352_s0 + $0x180] sm:$0xff]  ;;  %v3639_v20 = vld [vmem:[%s8352_s0 + $0x190] sm:$0xff]  ;;  %v3688_v29 = vld [vmem:[%s8352_s0 + $0x428] sm:$0xff] }
  0x3c   :  { %4385 = vmatpush1.bf16.msra.mxu0 %v4384_v52  ;;  %v3632_v52 = vld [vmem:[%s8352_s0 + $0x158] sm:$0xff]  ;;  %v3679_v12 = vld [vmem:[%s8352_s0 + $0x3e0] sm:$0xff]  ;;  %v4448_v17 = vpack.c.bf16 %v3637_v9, %v3635_v8  ;;  %v3681_v22 = vld [vmem:[%s8352_s0 + $0x3f0] sm:$0xff] }
  0x3d   :  { %4421 = vmatpush1.bf16.msra.mxu1 %v4420_v53  ;;  %4387 = vmatprep.subr.bf16.mxu0 %v4386_v54  ;;  %v3634_v53 = vld [vmem:[%s8352_s0 + $0x168] sm:$0xff]  ;;  %v4440_v54 = vpack.c.bf16 %v3629_v45, %v3627_v44  ;;  %v4484_v18 = vpack.c.bf16 %v3679_v12, %v3677_v10  ;;  %v3641_v21 = vld [vmem:[%s8352_s0 + $0x1a0] sm:$0xff]  ;;  %v3643_v34 = vld [vmem:[%s8352_s0 + $0x1b0] sm:$0xff] }
  0x3e   :  { %4423 = vmatprep.subr.bf16.mxu1 %v4422_v58  ;;  %v3631_v58 = vld [vmem:[%s8352_s0 + $0x150] sm:$0xff]  ;;  %v4442_v62 = vpack.c.bf16 %v3634_v53, %v3632_v52  ;;  %v3683_v24 = vld [vmem:[%s8352_s0 + $0x400] sm:$0xff]  ;;  %v4452_v30 = vpack.c.bf16 %v3641_v21, %v3639_v20  ;;  %v3648_v40 = vld [vmem:[%s8352_s0 + $0x1d8] sm:$0xff] }
  0x3f   :  { %v4444_v5 = vpack.c.bf16 %v3633_v59, %v3631_v58  ;;  %v3650_v41 = vld [vmem:[%s8352_s0 + $0x1e8] sm:$0xff]  ;;  %v3690_v42 = vld [vmem:[%s8352_s0 + $0x438] sm:$0xff]  ;;  %v3647_v47 = vld [vmem:[%s8352_s0 + $0x1d0] sm:$0xff] }
  0x40   :  { %4389 = vmatpush1.bf16.msra.mxu0 %v4388_v1  ;;  %v3638_v1 = vld [vmem:[%s8352_s0 + $0x188] sm:$0xff]  ;;  %v3649_v48 = vld [vmem:[%s8352_s0 + $0x1e0] sm:$0xff]  ;;  %v3652_v52 = vld [vmem:[%s8352_s0 + $0x1f8] sm:$0xff] }
  0x41   :  { %4425 = vmatpush1.bf16.msra.mxu1 %v4424_v2  ;;  %4391 = vmatprep.subr.bf16.mxu0 %v4390_v3  ;;  %v4478_v2 = vpack.c.bf16 %v3676_v56, %v3674_v55  ;;  %v3678_v3 = vld [vmem:[%s8352_s0 + $0x3d8] sm:$0xff]  ;;  %v3692_v43 = vld [vmem:[%s8352_s0 + $0x448] sm:$0xff]  ;;  %v4460_v56 = vpack.c.bf16 %v3649_v48, %v3647_v47  ;;  %v3651_v59 = vld [vmem:[%s8352_s0 + $0x1f0] sm:$0xff] }
  0x42   :  { %4427 = vmatprep.subr.bf16.mxu1 %v4426_v7  ;;  %v4446_v7 = vpack.c.bf16 %v3638_v1, %v3636_v0  ;;  %v4482_v11 = vpack.c.bf16 %v3680_v4, %v3678_v3  ;;  %v3654_v53 = vld [vmem:[%s8352_s0 + $0x208] sm:$0xff]  ;;  %v3653_v61 = vld [vmem:[%s8352_s0 + $0x200] sm:$0xff]  ;;  %v3656_v1 = vld [vmem:[%s8352_s0 + $0x218] sm:$0xff] }
  0x43   :  { %v3696_v55 = vld [vmem:[%s8352_s0 + $0x468] sm:$0xff]  ;;  %v4462_v58 = vpack.c.bf16 %v3654_v53, %v3652_v52  ;;  %v3695_v0 = vld [vmem:[%s8352_s0 + $0x460] sm:$0xff]  ;;  %v3698_v3 = vld [vmem:[%s8352_s0 + $0x478] sm:$0xff] }
  0x44   :  { %4393 = vmatpush1.bf16.msra.mxu0 %v4392_v13  ;;  %v3640_v13 = vld [vmem:[%s8352_s0 + $0x198] sm:$0xff]  ;;  %v3700_v4 = vld [vmem:[%s8352_s0 + $0x488] sm:$0xff]  ;;  %v3657_v10 = vld [vmem:[%s8352_s0 + $0x220] sm:$0xff] }
  0x45   :  { %4429 = vmatpush1.bf16.msra.mxu1 %v4428_v14  ;;  %4395 = vmatprep.subr.bf16.mxu0 %v4394_v15  ;;  %v3642_v14 = vld [vmem:[%s8352_s0 + $0x1a8] sm:$0xff]  ;;  %v3682_v15 = vld [vmem:[%s8352_s0 + $0x3f8] sm:$0xff] }
  0x46   :  { %4431 = vmatprep.subr.bf16.mxu1 %v4430_v19  ;;  %v4450_v19 = vpack.c.bf16 %v3642_v14, %v3640_v13  ;;  %v4486_v23 = vpack.c.bf16 %v3684_v16, %v3682_v15 }
  0x48   :  { %4397 = vmatpush1.bf16.msra.mxu0 %v4396_v25  ;;  %v3644_v25 = vld [vmem:[%s8352_s0 + $0x1b8] sm:$0xff] }
  0x49   :  { %4433 = vmatpush1.bf16.msra.mxu1 %v4432_v26  ;;  %4399 = vmatprep.subr.bf16.mxu0 %v4398_v27  ;;  %v3646_v26 = vld [vmem:[%s8352_s0 + $0x1c8] sm:$0xff]  ;;  %v3686_v27 = vld [vmem:[%s8352_s0 + $0x418] sm:$0xff] }
  0x4a   :  { %4435 = vmatprep.subr.bf16.mxu1 %v4434_v31  ;;  %v4488_v31 = vpack.c.bf16 %v3683_v24, %v3681_v22  ;;  %v4454_v33 = vpack.c.bf16 %v3646_v26, %v3644_v25 }
  0x4c   :  { %4401 = vmatpush1.bf16.msra.mxu0 %v4400_v35  ;;  %v3645_v35 = vld [vmem:[%s8352_s0 + $0x1c0] sm:$0xff] }
  0x4d   :  { %4437 = vmatpush1.bf16.msra.mxu1 %v4436_v36  ;;  %3581 = vmatprep.subr.msk.mxu0 %vm84_vm1, %v3580_v37  ;;  %v3685_v36 = vld [vmem:[%s8352_s0 + $0x410] sm:$0xff]  ;;  %v4490_v37 = vpack.c.bf16 %v3688_v29, %v3686_v27  ;;  %v4456_v44 = vpack.c.bf16 %v3645_v35, %v3643_v34 }
  0x4e   :  { %3623 = vmatprep.subr.msk.mxu1 %vm84_vm1, %v3622_v38  ;;  %v3687_v38 = vld [vmem:[%s8352_s0 + $0x420] sm:$0xff] }
  0x4f   :  { %v4492_v45 = vpack.c.bf16 %v3687_v38, %v3685_v36 }
  0x50   :  { %3582 = vmatpush1.msk.msra.mxu0 %vm84_vm1, %v3579_v46  ;;  %v4458_v46 = vpack.c.bf16 %v3650_v41, %v3648_v40 }
  0x51   :  { %3624 = vmatpush1.msk.msra.mxu1 %vm84_vm1, %v3621_v49  ;;  %404 = vmatmul.mubr.f32.vlgmr.msra.gmra.mrb[4].mxu0 %v5553_v60  ;;  %v3689_v49 = vld [vmem:[%s8352_s0 + $0x430] sm:$0xff] }
  0x52   :  { %4439 = vmatprep.subr.bf16.mxu0 %v4438_v50  ;;  %4475 = vmatprep.subr.bf16.mxu1 %v4474_v51  ;;  %v4494_v50 = vpack.c.bf16 %v3692_v43, %v3690_v42  ;;  %v3691_v51 = vld [vmem:[%s8352_s0 + $0x440] sm:$0xff] }
  0x53   :  { %530 = vmatmul.mubr.f32.vlgmr.msra.gmra.mrb[4].mxu1 %v5553_v60  ;;  %4441 = vmatpush1.bf16.msra.mxu0 %v4440_v54  ;;  %v3694_v54 = vld [vmem:[%s8352_s0 + $0x458] sm:$0xff] }
  0x54   :  { %4477 = vmatpush1.bf16.msra.mxu1 %v4476_v57  ;;  %3584 = vmatprep.mubr.msk.f32.mxu0 %vm77_vm0, %v5625_v32  ;;  %v4496_v57 = vpack.c.bf16 %v3691_v51, %v3689_v49  ;;  %v4498_v63 = vpack.c.bf16 %v3696_v55, %v3694_v54 }
  0x55   :  { %410 = vmatmul.mubr.f32.gmra.mrb[6].mxu0 %v5649_v39  ;;  %4443 = vmatprep.subr.bf16.mxu0 %v4442_v62  ;;  %v3693_v62 = vld [vmem:[%s8352_s0 + $0x450] sm:$0xff] }
  0x56   :  { %4479 = vmatprep.subr.bf16.mxu1 %v4478_v2  ;;  %3626 = vmatprep.mubr.msk.f32.mxu1 %vm77_vm0, %v5625_v32  ;;  %v3658_v2 = vld [vmem:[%s8352_s0 + $0x228] sm:$0xff]  ;;  %v4500_v8 = vpack.c.bf16 %v3695_v0, %v3693_v62 }
  0x57   :  { %4445 = vmatpush1.bf16.msra.mxu0 %v4444_v5  ;;  %536 = vmatmul.mubr.f32.gmra.mrb[6].mxu1 %v5649_v39  ;;  %v4464_v5 = vpack.c.bf16 %v3653_v61, %v3651_v59  ;;  %v4466_v9 = vpack.c.bf16 %v3658_v2, %v3656_v1 }
  0x58   :  { %4481 = vmatpush1.bf16.msra.mxu1 %v4480_v6  ;;  %4447 = vmatprep.subr.bf16.mxu0 %v4446_v7  ;;  %v3655_v6 = vld [vmem:[%s8352_s0 + $0x210] sm:$0xff]  ;;  %v37_v7 = vld [vmem:[%s8354_s2] sm:$0xff] }
  0x59   :  { %4483 = vmatprep.subr.bf16.mxu1 %v4482_v11  ;;  %3667 = vmatprep.mubr.msk.f32.mxu0 %vm77_vm0, %v5473_v28  ;;  %v3697_v11 = vld [vmem:[%s8352_s0 + $0x470] sm:$0xff] }
  0x5a   :  { %3709 = vmatprep.mubr.msk.f32.mxu1 %vm77_vm0, %v5473_v28 }
  0x5b   :  { %4449 = vmatpush1.bf16.msra.mxu0 %v4448_v17 }
  0x5c   :  { %4485 = vmatpush1.bf16.msra.mxu1 %v4484_v18  ;;  %4451 = vmatprep.subr.bf16.mxu0 %v4450_v19 }
  0x5d   :  { %4487 = vmatprep.subr.bf16.mxu1 %v4486_v23 }
  0x5f   :  { %4453 = vmatpush1.bf16.msra.mxu0 %v4452_v30 }
  0x60   :  { %4489 = vmatpush1.bf16.msra.mxu1 %v4488_v31  ;;  %4455 = vmatprep.subr.bf16.mxu0 %v4454_v33 }
  0x61   :  { %4491 = vmatprep.subr.bf16.mxu1 %v4490_v37 }
  0x63   :  { %4457 = vmatpush1.bf16.msra.mxu0 %v4456_v44 }
  0x64   :  { %4493 = vmatpush1.bf16.msra.mxu1 %v4492_v45  ;;  %4459 = vmatprep.subr.bf16.mxu0 %v4458_v46 }
  0x65   :  { %4495 = vmatprep.subr.bf16.mxu1 %v4494_v50 }
  0x67   :  { %4461 = vmatpush1.bf16.msra.mxu0 %v4460_v56 }
  0x68   :  { %4497 = vmatpush1.bf16.msra.mxu1 %v4496_v57  ;;  %4463 = vmatprep.subr.bf16.mxu0 %v4462_v58 }
  0x69   :  { %14 = vsyncpa [#allocation3], 0  ;;  %4499 = vmatprep.subr.bf16.mxu1 %v4498_v63  ;;  %v4502_v12 = vpack.c.bf16 %v3700_v4, %v3698_v3  ;;  %v3699_v13 = vld [vmem:[%s8352_s0 + $0x480] sm:$0xff]  ;;  %v3660_v14 = vld [vmem:[%s8352_s0 + $0x238] sm:$0xff]  ;;  %548 = vperm.xlu0 %5200, %v37_v7   ;;  %v4468_v19 = vpack.c.bf16 %v3657_v10, %v3655_v6  ;;  %vm1600_vm2 = vcmask 1040384   ;;  %vm1684_vm3 = vcmask 572416  }
  0x6a   :  { %v3662_v15 = vld [vmem:[%s8352_s0 + $0x248] sm:$0xff]  ;;  %v3702_v16 = vld [vmem:[%s8352_s0 + $0x498] sm:$0xff]  ;;  %v4504_v20 = vpack.c.bf16 %v3699_v13, %v3697_v11  ;;  %v3659_v22 = vld [vmem:[%s8352_s0 + $0x230] sm:$0xff]  ;;  %vm5229_vm4 = vmmov 0   ;;  %vm3310_vm5 = vcmask 982016   ;;  %vm3407_vm6 = vcmask 1043456  }
  0x6b   :  { %v3704_v17 = vld [vmem:[%s8352_s0 + $0x4a8] sm:$0xff]  ;;  %4465 = vmatpush1.bf16.msra.mxu0 %v4464_v5  ;;  %v4470_v21 = vpack.c.bf16 %v3662_v15, %v3660_v14  ;;  %v3661_v23 = vld [vmem:[%s8352_s0 + $0x240] sm:$0xff]  ;;  %v3701_v25 = vld [vmem:[%s8352_s0 + $0x490] sm:$0xff]  ;;  %vm3403_vm7 = vcmask 687104   ;;  %s5230_s27 = smov [#allocation2]   ;;  %vm3481_vm8 = vcmask 99328  }
  0x6c   :  { %v38_v18 = vld [vmem:[%s8354_s2 + $0x8] sm:$0xff]  ;;  %4501 = vmatpush1.bf16.msra.mxu1 %v4500_v8  ;;  %4467 = vmatprep.subr.bf16.mxu0 %v4466_v9  ;;  %v4506_v24 = vpack.c.bf16 %v3704_v17, %v3702_v16  ;;  %v3703_v26 = vld [vmem:[%s8352_s0 + $0x4a0] sm:$0xff]  ;;  %v4472_v27 = vpack.c.bf16 %v3661_v23, %v3659_v22  ;;  %v3664_v30 = vld [vmem:[%s8352_s0 + $0x258] sm:$0x3f]  ;;  %s3489_s28 = sshll.u32 %s5230_s27, 4  ;;  %s3490_s28 = int_to_ptr.vmem [resolvable:$true] %s3489_s28 }
  0x6d   :  { %4503 = vmatprep.subr.bf16.mxu1 %v4502_v12  ;;  %553 = vperm.xlu0 %5200, %v38_v18   ;;  %v4508_v29 = vpack.c.bf16 %v3703_v26, %v3701_v25  ;;  %v3706_v31 = vld [vmem:[%s8352_s0 + $0x4b8] sm:$0x3f]  ;;  %v3663_v34 = vld [vmem:[%s8352_s0 + $0x250] sm:$0x3f]  ;;  %v3714_v35 = vld [vmem:[%s8352_s0 + $0x608] sm:$0xff]  ;;  %p5206_p1 = scmp.lt.s32.totalorder %s3490_s28, %s3490_s28 }
  0x6e   :  { %v3712_v33 = vld [vmem:[%s8352_s0 + $0x5f8] sm:$0xff]  ;;  %v3711_v36 = vld [vmem:[%s8352_s0 + $0x5f0] sm:$0xff]  ;;  %v3713_v37 = vld [vmem:[%s8352_s0 + $0x600] sm:$0xff] }
  0x6f   :  { %4469 = vmatpush1.bf16.msra.mxu0 %v4468_v19  ;;  %v3754_v38 = vld [vmem:[%s8352_s0 + $0x858] sm:$0xff]  ;;  %v3756_v40 = vld [vmem:[%s8352_s0 + $0x868] sm:$0xff]  ;;  %v3753_v41 = vld [vmem:[%s8352_s0 + $0x850] sm:$0xff]  ;;  %v4510_v46 = vpack.c.bf16 %v3714_v35, %v3712_v33  ;;  %v4512_v49 = vpack.c.bf16 %v3713_v37, %v3711_v36 }
  0x70   :  { %4505 = vmatpush1.bf16.msra.mxu1 %v4504_v20  ;;  %4471 = vmatprep.subr.bf16.mxu0 %v4470_v21  ;;  %v3755_v42 = vld [vmem:[%s8352_s0 + $0x860] sm:$0xff]  ;;  %v3716_v43 = vld [vmem:[%s8352_s0 + $0x618] sm:$0xff]  ;;  %v3718_v44 = vld [vmem:[%s8352_s0 + $0x628] sm:$0xff]  ;;  %v4546_v50 = vpack.c.bf16 %v3756_v40, %v3754_v38 }
  0x71   :  { %4507 = vmatprep.subr.bf16.mxu1 %v4506_v24  ;;  %v3705_v45 = vld [vmem:[%s8352_s0 + $0x4b0] sm:$0x3f]  ;;  %v3758_v47 = vld [vmem:[%s8352_s0 + $0x878] sm:$0xff]  ;;  %v3760_v48 = vld [vmem:[%s8352_s0 + $0x888] sm:$0xff]  ;;  %v4548_v51 = vpack.c.bf16 %v3755_v42, %v3753_v41  ;;  %v4514_v52 = vpack.c.bf16 %v3718_v44, %v3716_v43 }
  0x72   :  { %v3715_v53 = vld [vmem:[%s8352_s0 + $0x610] sm:$0xff]  ;;  %v3717_v54 = vld [vmem:[%s8352_s0 + $0x620] sm:$0xff]  ;;  %v4550_v56 = vpack.c.bf16 %v3760_v48, %v3758_v47  ;;  %v3720_v58 = vld [vmem:[%s8352_s0 + $0x638] sm:$0xff] }
  0x73   :  { %4473 = vmatpush1.bf16.msra.mxu0 %v4472_v27  ;;  %v3757_v55 = vld [vmem:[%s8352_s0 + $0x870] sm:$0xff]  ;;  %v3759_v57 = vld [vmem:[%s8352_s0 + $0x880] sm:$0xff]  ;;  %v3722_v59 = vld [vmem:[%s8352_s0 + $0x648] sm:$0xff]  ;;  %v4516_v63 = vpack.c.bf16 %v3717_v54, %v3715_v53 }
  0x74   :  { %4509 = vmatpush1.bf16.msra.mxu1 %v4508_v29  ;;  %3665 = vmatprep.subr.msk.mxu0 %vm84_vm1, %v3664_v30  ;;  %v3762_v61 = vld [vmem:[%s8352_s0 + $0x898] sm:$0xff]  ;;  %v3764_v62 = vld [vmem:[%s8352_s0 + $0x8a8] sm:$0xff]  ;;  %v4552_v0 = vpack.c.bf16 %v3759_v57, %v3757_v55  ;;  %v4518_v1 = vpack.c.bf16 %v3722_v59, %v3720_v58  ;;  %v3719_v2 = vld [vmem:[%s8352_s0 + $0x630] sm:$0xff] }
  0x75   :  { %3707 = vmatprep.subr.msk.mxu1 %vm84_vm1, %v3706_v31  ;;  %v3721_v3 = vld [vmem:[%s8352_s0 + $0x640] sm:$0xff]  ;;  %v3761_v4 = vld [vmem:[%s8352_s0 + $0x890] sm:$0xff]  ;;  %v4554_v5 = vpack.c.bf16 %v3764_v62, %v3762_v61  ;;  %v3724_v7 = vld [vmem:[%s8352_s0 + $0x658] sm:$0xff] }
  0x76   :  { %v3763_v6 = vld [vmem:[%s8352_s0 + $0x8a0] sm:$0xff]  ;;  %v3726_v8 = vld [vmem:[%s8352_s0 + $0x668] sm:$0xff]  ;;  %v3766_v9 = vld [vmem:[%s8352_s0 + $0x8b8] sm:$0xff]  ;;  %v4520_v11 = vpack.c.bf16 %v3721_v3, %v3719_v2 }
  0x77   :  { %3666 = vmatpush1.msk.msra.mxu0 %vm84_vm1, %v3663_v34  ;;  %v3768_v10 = vld [vmem:[%s8352_s0 + $0x8c8] sm:$0xff]  ;;  %v4556_v12 = vpack.c.bf16 %v3763_v6, %v3761_v4  ;;  %v4522_v13 = vpack.c.bf16 %v3726_v8, %v3724_v7  ;;  %v3723_v14 = vld [vmem:[%s8352_s0 + $0x650] sm:$0xff]  ;;  %v3725_v15 = vld [vmem:[%s8352_s0 + $0x660] sm:$0xff] }
  0x78   :  { %3708 = vmatpush1.msk.msra.mxu1 %vm84_vm1, %v3705_v45  ;;  %674 = vmatmul.mubr.f32.vlgmr.msra.gmra.mrb[8].mxu0 %v5553_v60  ;;  %v3765_v16 = vld [vmem:[%s8352_s0 + $0x8b0] sm:$0xff]  ;;  %v4558_v17 = vpack.c.bf16 %v3768_v10, %v3766_v9  ;;  %v3767_v18 = vld [vmem:[%s8352_s0 + $0x8c0] sm:$0xff]  ;;  %v3728_v19 = vld [vmem:[%s8352_s0 + $0x678] sm:$0xff]  ;;  %v4524_v23 = vpack.c.bf16 %v3725_v15, %v3723_v14 }
  0x79   :  { %796 = vmatmul.mubr.f32.vlgmr.msra.gmra.mrb[8].mxu1 %v5553_v60  ;;  %4511 = vmatprep.subr.bf16.mxu0 %v4510_v46  ;;  %v3730_v20 = vld [vmem:[%s8352_s0 + $0x688] sm:$0xff]  ;;  %v3770_v21 = vld [vmem:[%s8352_s0 + $0x8d8] sm:$0xff]  ;;  %v4560_v24 = vpack.c.bf16 %v3767_v18, %v3765_v16  ;;  %v3727_v26 = vld [vmem:[%s8352_s0 + $0x670] sm:$0xff] }
  0x7a   :  { %4513 = vmatpush1.bf16.msra.mxu0 %v4512_v49  ;;  %4547 = vmatprep.subr.bf16.mxu1 %v4546_v50  ;;  %v3772_v22 = vld [vmem:[%s8352_s0 + $0x8e8] sm:$0xff]  ;;  %v4526_v25 = vpack.c.bf16 %v3730_v20, %v3728_v19  ;;  %v3729_v27 = vld [vmem:[%s8352_s0 + $0x680] sm:$0xff]  ;;  %v3769_v29 = vld [vmem:[%s8352_s0 + $0x8d0] sm:$0xff] }
  0x7b   :  { %4549 = vmatpush1.bf16.msra.mxu1 %v4548_v51  ;;  %4515 = vmatprep.subr.bf16.mxu0 %v4514_v52  ;;  %v3771_v30 = vld [vmem:[%s8352_s0 + $0x8e0] sm:$0xff]  ;;  %v3732_v31 = vld [vmem:[%s8352_s0 + $0x698] sm:$0xff]  ;;  %v3734_v33 = vld [vmem:[%s8352_s0 + $0x6a8] sm:$0xff]  ;;  %v4528_v36 = vpack.c.bf16 %v3729_v27, %v3727_v26  ;;  %v5226_v26 = vmov 0.0|0.0  }
  0x7c   :  { %4551 = vmatprep.subr.bf16.mxu1 %v4550_v56  ;;  %3668 = vmatprep.mubr.msk.f32.mxu0 %vm77_vm0, %v5625_v32  ;;  %v3774_v34 = vld [vmem:[%s8352_s0 + $0x8f8] sm:$0xff]  ;;  %v3776_v35 = vld [vmem:[%s8352_s0 + $0x908] sm:$0xff]  ;;  %v4564_v37 = vpack.c.bf16 %v3771_v30, %v3769_v29  ;;  %v4530_v38 = vpack.c.bf16 %v3734_v33, %v3732_v31  ;;  %v3731_v40 = vld [vmem:[%s8352_s0 + $0x690] sm:$0xff] }
  0x7d   :  { %3710 = vmatprep.mubr.msk.f32.mxu1 %vm77_vm0, %v5625_v32  ;;  %680 = vmatmul.mubr.f32.gmra.mrb[10].mxu0 %v5649_v39  ;;  %v3733_v41 = vld [vmem:[%s8352_s0 + $0x6a0] sm:$0xff]  ;;  %v3773_v42 = vld [vmem:[%s8352_s0 + $0x8f0] sm:$0xff]  ;;  %v4566_v43 = vpack.c.bf16 %v3776_v35, %v3774_v34  ;;  %v3736_v45 = vld [vmem:[%s8352_s0 + $0x6b8] sm:$0xff] }
  0x7e   :  { %4517 = vmatpush1.bf16.msra.mxu0 %v4516_v63  ;;  %802 = vmatmul.mubr.f32.gmra.mrb[10].mxu1 %v5649_v39  ;;  %v3775_v44 = vld [vmem:[%s8352_s0 + $0x900] sm:$0xff]  ;;  %v3738_v46 = vld [vmem:[%s8352_s0 + $0x6c8] sm:$0xff]  ;;  %v3778_v47 = vld [vmem:[%s8352_s0 + $0x918] sm:$0xff]  ;;  %v4532_v49 = vpack.c.bf16 %v3733_v41, %v3731_v40 }
  0x7f   :  { %4553 = vmatpush1.bf16.msra.mxu1 %v4552_v0  ;;  %4519 = vmatprep.subr.bf16.mxu0 %v4518_v1  ;;  %v3780_v48 = vld [vmem:[%s8352_s0 + $0x928] sm:$0xff]  ;;  %v4568_v50 = vpack.c.bf16 %v3775_v44, %v3773_v42  ;;  %v4534_v51 = vpack.c.bf16 %v3738_v46, %v3736_v45  ;;  %v3735_v52 = vld [vmem:[%s8352_s0 + $0x6b0] sm:$0xff]  ;;  %v3737_v53 = vld [vmem:[%s8352_s0 + $0x6c0] sm:$0xff] }
  0x80   :  { %4555 = vmatprep.subr.bf16.mxu1 %v4554_v5  ;;  %3751 = vmatprep.mubr.msk.f32.mxu0 %vm77_vm0, %v5473_v28  ;;  %v3777_v54 = vld [vmem:[%s8352_s0 + $0x910] sm:$0xff]  ;;  %v4570_v55 = vpack.c.bf16 %v3780_v48, %v3778_v47  ;;  %v3779_v56 = vld [vmem:[%s8352_s0 + $0x920] sm:$0xff]  ;;  %v3740_v57 = vld [vmem:[%s8352_s0 + $0x6d8] sm:$0xff]  ;;  %v4536_v62 = vpack.c.bf16 %v3737_v53, %v3735_v52 }
  0x81   :  { %3793 = vmatprep.mubr.msk.f32.mxu1 %vm77_vm0, %v5473_v28  ;;  %v4562_v28 = vpack.c.bf16 %v3772_v22, %v3770_v21  ;;  %v3742_v58 = vld [vmem:[%s8352_s0 + $0x6e8] sm:$0xff]  ;;  %v3782_v59 = vld [vmem:[%s8352_s0 + $0x938] sm:$0xff]  ;;  %v4572_v63 = vpack.c.bf16 %v3779_v56, %v3777_v54  ;;  %v3739_v1 = vld [vmem:[%s8352_s0 + $0x6d0] sm:$0xff] }
  0x82   :  { %4521 = vmatpush1.bf16.msra.mxu0 %v4520_v11  ;;  %v3784_v61 = vld [vmem:[%s8352_s0 + $0x948] sm:$0xff]  ;;  %v4538_v0 = vpack.c.bf16 %v3742_v58, %v3740_v57  ;;  %v3741_v2 = vld [vmem:[%s8352_s0 + $0x6e0] sm:$0xff]  ;;  %v3781_v3 = vld [vmem:[%s8352_s0 + $0x930] sm:$0xff] }
  0x83   :  { %4557 = vmatpush1.bf16.msra.mxu1 %v4556_v12  ;;  %4523 = vmatprep.subr.bf16.mxu0 %v4522_v13  ;;  %v4574_v4 = vpack.c.bf16 %v3784_v61, %v3782_v59  ;;  %v3783_v5 = vld [vmem:[%s8352_s0 + $0x940] sm:$0xff]  ;;  %v3744_v6 = vld [vmem:[%s8352_s0 + $0x6f8] sm:$0xff]  ;;  %v3746_v7 = vld [vmem:[%s8352_s0 + $0x708] sm:$0xff]  ;;  %v4540_v10 = vpack.c.bf16 %v3741_v2, %v3739_v1 }
  0x84   :  { %4559 = vmatprep.subr.bf16.mxu1 %v4558_v17  ;;  %v3786_v8 = vld [vmem:[%s8352_s0 + $0x958] sm:$0xff]  ;;  %v3788_v9 = vld [vmem:[%s8352_s0 + $0x968] sm:$0xff]  ;;  %v4576_v11 = vpack.c.bf16 %v3783_v5, %v3781_v3  ;;  %v4542_v12 = vpack.c.bf16 %v3746_v7, %v3744_v6  ;;  %v3743_v13 = vld [vmem:[%s8352_s0 + $0x6f0] sm:$0xff] }
  0x85   :  { %v3745_v14 = vld [vmem:[%s8352_s0 + $0x700] sm:$0xff]  ;;  %v4578_v15 = vpack.c.bf16 %v3788_v9, %v3786_v8  ;;  %v3785_v16 = vld [vmem:[%s8352_s0 + $0x950] sm:$0xff]  ;;  %v3748_v20 = vld [vmem:[%s8352_s0 + $0x718] sm:$0x3f] }
  0x86   :  { %4525 = vmatpush1.bf16.msra.mxu0 %v4524_v23  ;;  %v3787_v17 = vld [vmem:[%s8352_s0 + $0x960] sm:$0xff]  ;;  %v4544_v18 = vpack.c.bf16 %v3745_v14, %v3743_v13  ;;  %v3790_v21 = vld [vmem:[%s8352_s0 + $0x978] sm:$0x3f]  ;;  %v3747_v22 = vld [vmem:[%s8352_s0 + $0x710] sm:$0x3f] }
  0x87   :  { %4561 = vmatpush1.bf16.msra.mxu1 %v4560_v24  ;;  %4527 = vmatprep.subr.bf16.mxu0 %v4526_v25  ;;  %v4580_v19 = vpack.c.bf16 %v3787_v17, %v3785_v16  ;;  %v3789_v23 = vld [vmem:[%s8352_s0 + $0x970] sm:$0x3f]  ;;  %v1633_v24 = vld [vmem:[%s8355_s3] sm:$0xff]  ;;  %v1634_v25 = vld [vmem:[%s8355_s3 + $0x8] sm:$0xff] }
  0x88   :  { %4563 = vmatprep.subr.bf16.mxu1 %v4562_v28  ;;  %v1635_v27 = vld [vmem:[%s8355_s3 + $0x10] sm:$0xff]  ;;  %v1636_v29 = vld [vmem:[%s8355_s3 + $0x18] sm:$0xff]  ;;  %v3798_v31 = vld [vmem:[%s8355_s3 + $0xe0] sm:$0xff] }
  0x89   :  { %v3797_v30 = vld [vmem:[%s8355_s3 + $0xd8] sm:$0xff]  ;;  %v4622_v33 = vpack.c.bf16 %v1636_v29, %v1635_v27  ;;  %v1637_v35 = vld [vmem:[%s8355_s3 + $0x20] sm:$0xff]  ;;  %v1639_v42 = vld [vmem:[%s8355_s3 + $0x30] sm:$0xff] }
  0x8a   :  { %4529 = vmatpush1.bf16.msra.mxu0 %v4528_v36  ;;  %v4586_v34 = vpack.c.bf16 %v3798_v31, %v3797_v30  ;;  %v1638_v36 = vld [vmem:[%s8355_s3 + $0x28] sm:$0xff]  ;;  %v3801_v44 = vld [vmem:[%s8355_s3 + $0xf8] sm:$0xff]  ;;  %v3802_v45 = vld [vmem:[%s8355_s3 + $0x100] sm:$0xff] }
  0x8b   :  { %4565 = vmatpush1.bf16.msra.mxu1 %v4564_v37  ;;  %4531 = vmatprep.subr.bf16.mxu0 %v4530_v38  ;;  %v3799_v37 = vld [vmem:[%s8355_s3 + $0xe8] sm:$0xff]  ;;  %v3800_v38 = vld [vmem:[%s8355_s3 + $0xf0] sm:$0xff]  ;;  %v4625_v40 = vpack.c.bf16 %v1638_v36, %v1637_v35  ;;  %v4592_v47 = vpack.c.bf16 %v3802_v45, %v3801_v44  ;;  %v1641_v48 = vld [vmem:[%s8355_s3 + $0x40] sm:$0xff] }
  0x8c   :  { %4567 = vmatprep.subr.bf16.mxu1 %v4566_v43  ;;  %v4589_v41 = vpack.c.bf16 %v3800_v38, %v3799_v37  ;;  %v1640_v43 = vld [vmem:[%s8355_s3 + $0x38] sm:$0xff]  ;;  %v1643_v54 = vld [vmem:[%s8355_s3 + $0x50] sm:$0xff]  ;;  %v3806_v57 = vld [vmem:[%s8355_s3 + $0x120] sm:$0xff]  ;;  %v8362_v38 = vmov 0.0  }
  0x8d   :  { %v4628_v46 = vpack.c.bf16 %v1640_v43, %v1639_v42  ;;  %v3805_v56 = vld [vmem:[%s8355_s3 + $0x118] sm:$0xff]  ;;  %v1645_v61 = vld [vmem:[%s8355_s3 + $0x60] sm:$0xff]  ;;  %v1647_v3 = vld [vmem:[%s8355_s3 + $0x70] sm:$0xff] }
  0x8e   :  { %4533 = vmatpush1.bf16.msra.mxu0 %v4532_v49  ;;  %v1642_v49 = vld [vmem:[%s8355_s3 + $0x48] sm:$0xff]  ;;  %v4598_v59 = vpack.c.bf16 %v3806_v57, %v3805_v56  ;;  %v3809_v6 = vld [vmem:[%s8355_s3 + $0x138] sm:$0xff]  ;;  %v3810_v7 = vld [vmem:[%s8355_s3 + $0x140] sm:$0xff] }
  0x8f   :  { %4569 = vmatpush1.bf16.msra.mxu1 %v4568_v50  ;;  %4535 = vmatprep.subr.bf16.mxu0 %v4534_v51  ;;  %v3803_v50 = vld [vmem:[%s8355_s3 + $0x108] sm:$0xff]  ;;  %v3804_v51 = vld [vmem:[%s8355_s3 + $0x110] sm:$0xff]  ;;  %v4631_v52 = vpack.c.bf16 %v1642_v49, %v1641_v48  ;;  %v4604_v8 = vpack.c.bf16 %v3810_v7, %v3809_v6  ;;  %v1649_v9 = vld [vmem:[%s8355_s3 + $0x80] sm:$0xff] }
  0x90   :  { %4571 = vmatprep.subr.bf16.mxu1 %v4570_v55  ;;  %v4595_v53 = vpack.c.bf16 %v3804_v51, %v3803_v50  ;;  %v1644_v55 = vld [vmem:[%s8355_s3 + $0x58] sm:$0xff]  ;;  %v3812_v13 = vld [vmem:[%s8355_s3 + $0x150] sm:$0xff]  ;;  %v3818_v36 = vld [vmem:[%s8355_s3 + $0x180] sm:$0xff] }
  0x91   :  { %v4634_v58 = vpack.c.bf16 %v1644_v55, %v1643_v54  ;;  %v1652_v16 = vld [vmem:[%s8355_s3 + $0x98] sm:$0xff]  ;;  %v1655_v29 = vld [vmem:[%s8355_s3 + $0xb0] sm:$0xff] }
  0x92   :  { %4537 = vmatpush1.bf16.msra.mxu0 %v4536_v62  ;;  %v1646_v62 = vld [vmem:[%s8355_s3 + $0x68] sm:$0xff]  ;;  %v3817_v35 = vld [vmem:[%s8355_s3 + $0x178] sm:$0xff] }
  0x93   :  { %4573 = vmatpush1.bf16.msra.mxu1 %v4572_v63  ;;  %4539 = vmatprep.subr.bf16.mxu0 %v4538_v0  ;;  %v3807_v63 = vld [vmem:[%s8355_s3 + $0x128] sm:$0xff]  ;;  %v3808_v0 = vld [vmem:[%s8355_s3 + $0x130] sm:$0xff]  ;;  %v4637_v1 = vpack.c.bf16 %v1646_v62, %v1645_v61  ;;  %v4616_v37 = vpack.c.bf16 %v3818_v36, %v3817_v35  ;;  %v6516_v36 = vld [vmem:[%s8355_s3 + $0x198] sm:$0xff] }
  0x94   :  { %4575 = vmatprep.subr.bf16.mxu1 %v4574_v4  ;;  %v4601_v2 = vpack.c.bf16 %v3808_v0, %v3807_v63  ;;  %v1648_v4 = vld [vmem:[%s8355_s3 + $0x78] sm:$0xff]  ;;  %v6511_v35 = vld [vmem:[%s8355_s3 + $0x190] sm:$0xff] }
  0x95   :  { %v4640_v5 = vpack.c.bf16 %v1648_v4, %v1647_v3 }
  0x96   :  { %4541 = vmatpush1.bf16.msra.mxu0 %v4540_v10  ;;  %v1650_v10 = vld [vmem:[%s8355_s3 + $0x88] sm:$0xff] }
  0x97   :  { %4577 = vmatpush1.bf16.msra.mxu1 %v4576_v11  ;;  %4543 = vmatprep.subr.bf16.mxu0 %v4542_v12  ;;  %v4643_v11 = vpack.c.bf16 %v1650_v10, %v1649_v9  ;;  %v3811_v12 = vld [vmem:[%s8355_s3 + $0x148] sm:$0xff] }
  0x98   :  { %4579 = vmatprep.subr.bf16.mxu1 %v4578_v15  ;;  %v4607_v14 = vpack.c.bf16 %v3812_v13, %v3811_v12  ;;  %v1651_v15 = vld [vmem:[%s8355_s3 + $0x90] sm:$0xff] }
  0x99   :  { %v4646_v17 = vpack.c.bf16 %v1652_v16, %v1651_v15 }
  0x9a   :  { %4545 = vmatpush1.bf16.msra.mxu0 %v4544_v18  ;;  %v3813_v18 = vld [vmem:[%s8355_s3 + $0x158] sm:$0xff] }
  0x9b   :  { %4581 = vmatpush1.bf16.msra.mxu1 %v4580_v19  ;;  %3749 = vmatprep.subr.msk.mxu0 %vm84_vm1, %v3748_v20  ;;  %v3814_v19 = vld [vmem:[%s8355_s3 + $0x160] sm:$0xff] }
  0x9c   :  { %3791 = vmatprep.subr.msk.mxu1 %vm84_vm1, %v3790_v21  ;;  %v4610_v20 = vpack.c.bf16 %v3814_v19, %v3813_v18  ;;  %v1653_v21 = vld [vmem:[%s8355_s3 + $0xa0] sm:$0xff] }
  0x9e   :  { %3750 = vmatpush1.msk.msra.mxu0 %vm84_vm1, %v3747_v22  ;;  %v1654_v22 = vld [vmem:[%s8355_s3 + $0xa8] sm:$0xff] }
  0x9f   :  { %922 = vmatmul.mubr.f32.vlgmr.msra.gmra.mrb[12].mxu0 %v5553_v60  ;;  %3792 = vmatpush1.msk.msra.mxu1 %vm84_vm1, %v3789_v23  ;;  %v4649_v23 = vpack.c.bf16 %v1654_v22, %v1653_v21 }
  0xa0   :  { %1048 = vmatmul.mubr.f32.vlgmr.msra.gmra.mrb[12].mxu1 %v5553_v60  ;;  %3752 = vmatprep.mubr.msk.f32.mxu0 %vm77_vm0, %v5625_v32  ;;  %v3795_v60 = vld [vmem:[%s8355_s3 + $0xc8] sm:$0xff] }
  0xa1   :  { %3794 = vmatprep.mubr.msk.f32.mxu1 %vm77_vm0, %v5625_v32  ;;  %4618 = vmatprep.subr.bf16.mxu1 %v5226_v26  ;;  %v4619_v32 = vpack.c.bf16 %v1634_v25, %v1633_v24  ;;  %v3815_v24 = vld [vmem:[%s8355_s3 + $0x168] sm:$0xff]  ;;  %v3816_v25 = vld [vmem:[%s8355_s3 + $0x170] sm:$0xff] }
  0xa2   :  { %4582 = vmatprep.subr.bf16.mxu0 %v5226_v26 }
  0xa3   :  { %928 = vmatmul.mubr.f32.gmra.mrb[14].mxu0 %v5649_v39  ;;  %4620 = vmatpush1.bf16.msra.mxu1 %v4619_v32  ;;  %v4613_v32 = vpack.c.bf16 %v3816_v25, %v3815_v24 }
  0xa4   :  { %1054 = vmatmul.mubr.f32.gmra.mrb[14].mxu1 %v5649_v39  ;;  %v3796_v39 = vld [vmem:[%s8355_s3 + $0xd0] sm:$0xff]  ;;  %4621 = vmatprep.subr.bf16.mxu1 %v5226_v26 }
  0xa5   :  { %v4583_v28 = vpack.c.bf16 %v3796_v39, %v3795_v60 }
  0xa7   :  { %4584 = vmatpush1.bf16.msra.mxu0 %v4583_v28  ;;  %4623 = vmatpush1.bf16.msra.mxu1 %v4622_v33  ;;  %v1656_v28 = vld [vmem:[%s8355_s3 + $0xb8] sm:$0xff] }
  0xa8   :  { %4585 = vmatprep.subr.bf16.mxu0 %v5226_v26  ;;  %4624 = vmatprep.subr.bf16.mxu1 %v5226_v26  ;;  %v4652_v33 = vpack.c.bf16 %v1656_v28, %v1655_v29 }
  0xab   :  { %4587 = vmatpush1.bf16.msra.mxu0 %v4586_v34  ;;  %4626 = vmatpush1.bf16.msra.mxu1 %v4625_v40  ;;  %v1657_v40 = vld [vmem:[%s8355_s3 + $0xc0] sm:$0x3f] }
  0xac   :  { %4588 = vmatprep.subr.bf16.mxu0 %v5226_v26  ;;  %4627 = vmatprep.subr.bf16.mxu1 %v5226_v26 }
  0xaf   :  { %4590 = vmatpush1.bf16.msra.mxu0 %v4589_v41  ;;  %4629 = vmatpush1.bf16.msra.mxu1 %v4628_v46  ;;  %v3819_v41 = vld [vmem:[%s8355_s3 + $0x188] sm:$0x3f] }
  0xb0   :  { %4591 = vmatprep.subr.bf16.mxu0 %v5226_v26  ;;  %4630 = vmatprep.subr.bf16.mxu1 %v5226_v26 }
  0xb3   :  { %4593 = vmatpush1.bf16.msra.mxu0 %v4592_v47  ;;  %4632 = vmatpush1.bf16.msra.mxu1 %v4631_v52 }
  0xb4   :  { %4594 = vmatprep.subr.bf16.mxu0 %v5226_v26  ;;  %4633 = vmatprep.subr.bf16.mxu1 %v5226_v26 }
  0xb7   :  { %4596 = vmatpush1.bf16.msra.mxu0 %v4595_v53  ;;  %4635 = vmatpush1.bf16.msra.mxu1 %v4634_v58 }
  0xb8   :  { %4597 = vmatprep.subr.bf16.mxu0 %v5226_v26  ;;  %4636 = vmatprep.subr.bf16.mxu1 %v5226_v26 }
  0xbb   :  { %4599 = vmatpush1.bf16.msra.mxu0 %v4598_v59  ;;  %4638 = vmatpush1.bf16.msra.mxu1 %v4637_v1 }
  0xbc   :  { %4600 = vmatprep.subr.bf16.mxu0 %v5226_v26  ;;  %4639 = vmatprep.subr.bf16.mxu1 %v5226_v26 }
  0xbf   :  { %4602 = vmatpush1.bf16.msra.mxu0 %v4601_v2  ;;  %4641 = vmatpush1.bf16.msra.mxu1 %v4640_v5 }
  0xc0   :  { %4603 = vmatprep.subr.bf16.mxu0 %v5226_v26  ;;  %4642 = vmatprep.subr.bf16.mxu1 %v5226_v26 }
  0xc3   :  { %4605 = vmatpush1.bf16.msra.mxu0 %v4604_v8  ;;  %4644 = vmatpush1.bf16.msra.mxu1 %v4643_v11 }
  0xc4   :  { %4606 = vmatprep.subr.bf16.mxu0 %v5226_v26  ;;  %4645 = vmatprep.subr.bf16.mxu1 %v5226_v26 }
  0xc7   :  { %4608 = vmatpush1.bf16.msra.mxu0 %v4607_v14  ;;  %4647 = vmatpush1.bf16.msra.mxu1 %v4646_v17 }
  0xc8   :  { %4609 = vmatprep.subr.bf16.mxu0 %v5226_v26  ;;  %4648 = vmatprep.subr.bf16.mxu1 %v5226_v26 }
  0xcb   :  { %4611 = vmatpush1.bf16.msra.mxu0 %v4610_v20  ;;  %4650 = vmatpush1.bf16.msra.mxu1 %v4649_v23 }
  0xcc   :  { %4612 = vmatprep.subr.bf16.mxu0 %v5226_v26  ;;  %4651 = vmatprep.subr.bf16.mxu1 %v5226_v26 }
  0xcf   :  { %4614 = vmatpush1.bf16.msra.mxu0 %v4613_v32  ;;  %4653 = vmatpush1.bf16.msra.mxu1 %v4652_v33  ;;  %v5228_v32 = vmov 1966171168   ;;  %v6501_v33 = vld [vmem:[%s8355_s3 + $0x258] sm:$0xff] }
  0xd0   :  { %4615 = vmatprep.subr.bf16.mxu0 %v5226_v26  ;;  %1815 = vmatprep.subr.mxu1 %v8362_v38 }
  0xd3   :  { %4617 = vmatpush1.bf16.msra.mxu0 %v4616_v37  ;;  %3822 = vmatpush1.msk.msra.mxu1 %vm84_vm1, %v1657_v40  ;;  %v6521_v37 = vld [vmem:[%s8355_s3 + $0x268] sm:$0xff]  ;;  %v6526_v40 = vld [vmem:[%s8355_s3 + $0x270] sm:$0xff] }
  0xd4   :  { %1739 = vmatprep.subr.mxu0 %v8362_v38  ;;  %4690 = vmatprep.subr.bf16.mxu1 %v5226_v26 }
  0xd7   :  { %3820 = vmatpush1.msk.msra.mxu0 %vm84_vm1, %v3819_v41 }
  0xd8   :  { %4654 = vmatprep.subr.bf16.mxu0 %v5226_v26 }
  0xe8   :  { %v6463_v49 = vpop.permute.xlu0 %548 }
  0xec   :  { %v6467_v1 = vpop.permute.xlu0 %553 }
  0xfd   :  { %v157_v60 = vpop.f32.mrb[0].mxu0 }
  0xfe   :  { %v279_v39 = vpop.f32.mrb[0].mxu1  ;;  %v159_v27 = vpop.f32.mrb[1].mxu0 }
  0xff   :  { %v290_v30 = vmax.f32 %v157_v60, %v279_v39  ;;  %v281_v31 = vpop.f32.mrb[1].mxu1  ;;  %v1079_v39 = vunpack.c.l.s4 %v5228_v32 }
 0x100   :  { %v291_v34 = vmax.f32 %v159_v27, %v281_v31  ;;  %v1081_v27 = vlaneseq }
 0x101   :  { %v1080_v29 = vunpack.c.0.s8 %v1079_v39 }
 0x102   :  { %v163_v44 = vpop.f32.mrb[2].mxu0  ;;  %v1082_v28 = vshrl.u32 %v1081_v27, 7 }
 0x103   :  { %v285_v42 = vpop.f32.mrb[2].mxu1  ;;  %v165_v46 = vpop.f32.mrb[3].mxu0 }
 0x104   :  { %v287_v43 = vpop.f32.mrb[3].mxu1  ;;  %v292_v45 = vmax.f32 %v163_v44, %v285_v42  ;;  %v6531_v42 = vld [vmem:[%s8355_s3 + $0x1a0] sm:$0xff]  ;;  %v6541_v44 = vld [vmem:[%s8355_s3 + $0x278] sm:$0xff] }
 0x105   :  { %v293_v47 = vmax.f32 %v165_v46, %v287_v43  ;;  %v6536_v43 = vld [vmem:[%s8355_s3 + $0x1a8] sm:$0xff]  ;;  %v6551_v46 = vld [vmem:[%s8355_s3 + $0x1b0] sm:$0xff] }
 0x124   :  { %v405_v48 = vpop.f32.mrb[4].mxu0 }
 0x125   :  { %v416_v50 = vmax.f32 %v290_v30, %v405_v48  ;;  %v407_v51 = vpop.f32.mrb[5].mxu0  ;;  %v6495_v30 = vsub.s32 %v1080_v29, %v1082_v28  ;;  %v6561_v48 = vld [vmem:[%s8355_s3 + $0x288] sm:$0xff] }
 0x126   :  { %v417_v52 = vmax.f32 %v291_v34, %v407_v51  ;;  %v531_v53 = vpop.f32.mrb[4].mxu1  ;;  %v6506_v34 = vld [vmem:[%s8355_s3 + $0x260] sm:$0xff]  ;;  %v6567_v51 = vld [vmem:[%s8355_s3 + $0x290] sm:$0xff] }
 0x127   :  { %v542_v54 = vmax.f32 %v416_v50, %v531_v53  ;;  %v533_v55 = vpop.f32.mrb[5].mxu1  ;;  %v6577_v53 = vld [vmem:[%s8355_s3 + $0x1c8] sm:$0xff] }
 0x128   :  { %v543_v56 = vmax.f32 %v417_v52, %v533_v55  ;;  %v411_v57 = vpop.f32.mrb[6].mxu0  ;;  %v6572_v52 = vld [vmem:[%s8355_s3 + $0x1c0] sm:$0xff]  ;;  %v6582_v55 = vsub.s32 0, %v1082_v28 }
 0x129   :  { %v556_v58 = vadd.f32 %v6463_v49, %v542_v54  ;;  %v418_v59 = vmax.f32 %v292_v45, %v411_v57  ;;  %v413_v61 = vpop.f32.mrb[7].mxu0  ;;  %v6546_v45 = vld [vmem:[%s8355_s3 + $0x280] sm:$0xff]  ;;  %v6589_v57 = vld [vmem:[%s8355_s3 + $0x298] sm:$0xff] }
 0x12a   :  { %v557_v62 = vadd.f32 %v6463_v49, %v543_v56  ;;  %v419_v63 = vmax.f32 %v293_v47, %v413_v61  ;;  %v537_v0 = vpop.f32.mrb[6].mxu1  ;;  %v6556_v47 = vld [vmem:[%s8355_s3 + $0x1b8] sm:$0xff]  ;;  %v6584_v56 = vsub.s32 1, %v1082_v28  ;;  %v4691_v61 = vpack.c.bf16 %v6506_v34, %v6501_v33 }
 0x12b   :  { %v560_v2 = vmax.f32 %v556_v58, 0.0  ;;  %v544_v3 = vmax.f32 %v418_v59, %v537_v0  ;;  %v539_v4 = vpop.f32.mrb[7].mxu1  ;;  %v6594_v58 = vld [vmem:[%s8355_s3 + $0x2a0] sm:$0xff]  ;;  %v6599_v59 = vld [vmem:[%s8355_s3 + $0x1d0] sm:$0xff]  ;;  %v8364_v33 = vpack.c.bf16 %v6516_v36, %v6511_v35 }
 0x12c   :  { %v561_v5 = vmax.f32 %v557_v62, 0.0  ;;  %v545_v6 = vmax.f32 %v419_v63, %v539_v4  ;;  %v6623_v4 = vld [vmem:[%s8355_s3 + $0x2b0] sm:$0xff] }
 0x12d   :  { %v558_v7 = vadd.f32 %v6467_v1, %v544_v3  ;;  %v6618_v3 = vld [vmem:[%s8355_s3 + $0x2a8] sm:$0xff] }
 0x12e   :  { %v1076_v8 = vcombine.low %v560_v2, %v561_v5  ;;  %v1077_v9 = vcombine.high %v560_v2, %v561_v5  ;;  %v559_v10 = vadd.f32 %v6467_v1, %v545_v6  ;;  %v6613_v2 = vld [vmem:[%s8355_s3 + $0x1d8] sm:$0xff] }
 0x12f   :  { %v562_v11 = vmax.f32 %v558_v7, 0.0 }
 0x130   :  { %v563_v12 = vmax.f32 %v559_v10, 0.0  ;;  %v1084_v31 = vrot.slane %v1076_v8, %v6495_v30  ;;  %v1091_v50 = vrot.slane %v1077_v9, %v6495_v30  ;;  %v6635_v9 = vld [vmem:[%s8355_s3 + $0x1e0] sm:$0xff]  ;;  %v6640_v10 = vld [vmem:[%s8355_s3 + $0x1e8] sm:$0xff] }
 0x132   :  { %v1126_v13 = vcombine.low %v562_v11, %v563_v12  ;;  %v1127_v14 = vcombine.high %v562_v11, %v563_v12  ;;  %v1092_v41 = vcombine.high %v1084_v31, %v1084_v31  ;;  %v6580_v54 = vrot.slane %v1084_v31, %v6495_v30 }
 0x133   :  { %v1093_v11 = vcombine.high %v1091_v50, %v1091_v50  ;;  %v6658_v31 = vrot.slane %v1091_v50, %v6495_v30 }
 0x134   :  { %v6604_v62 = vrot.slane %v1092_v41, %v6495_v30  ;;  %v1134_v5 = vrot.slane %v1126_v13, %v6495_v30  ;;  %v1141_v12 = vrot.slane %v1127_v14, %v6495_v30  ;;  %v6649_v27 = vcombine.high %v6580_v54, %v6580_v54 }
 0x135   :  { %v1287_v8 = vrot.slane %v6580_v54, %v6584_v56  ;;  %v6679_v7 = vrot.slane %v1093_v11, %v6495_v30 }
 0x136   :  { %v6665_v13 = vcombine.high %v6604_v62, %v6604_v62  ;;  %v1142_v28 = vcombine.high %v1134_v5, %v1134_v5  ;;  %v6682_v29 = vrot.slane %v1134_v5, %v6495_v30  ;;  %v6689_v6 = vrot.slane %v1141_v12, %v6495_v30 }
 0x137   :  { %v8365_v34 = vrot.slane %v6679_v7, %v6584_v56 }
 0x138   :  { %v8367_v35 = vrot.slane %v6665_v13, %v6584_v56 }
 0x14b   :  { %v6471_v15 = vpop.f32.mrb[8].mxu0 }
 0x14c   :  { %v6473_v16 = vpop.f32.mrb[8].mxu1  ;;  %v6475_v17 = vpop.f32.mrb[9].mxu0 }
 0x14d   :  { %v808_v18 = vmax.f32 %v6471_v15, %v6473_v16  ;;  %v6479_v19 = vpop.f32.mrb[9].mxu1  ;;  %v1283_v15 = vrot.slane %v6580_v54, %v6582_v55  ;;  %v1143_v16 = vcombine.high %v1141_v12, %v1141_v12 }
 0x14e   :  { %v809_v20 = vmax.f32 %v6475_v17, %v6479_v19  ;;  %v1291_v19 = vrot.slane %v6604_v62, %v6582_v55 }
 0x150   :  { %v6483_v21 = vpop.f32.mrb[10].mxu0 }
 0x151   :  { %v6485_v22 = vpop.f32.mrb[10].mxu1  ;;  %v6487_v23 = vpop.f32.mrb[11].mxu0 }
 0x152   :  { %v810_v24 = vmax.f32 %v6483_v21, %v6485_v22  ;;  %v6491_v25 = vpop.f32.mrb[11].mxu1  ;;  %v6707_v21 = vrot.slane %v1143_v16, %v6495_v30  ;;  %v6720_v16 = vcombine.high %v6679_v7, %v6679_v7 }
 0x153   :  { %v811_v60 = vmax.f32 %v6487_v23, %v6491_v25  ;;  %v6760_v23 = vcombine.high %v6682_v29, %v6682_v29 }
 0x172   :  { %v923_v39 = vpop.f32.mrb[12].mxu0 }
 0x173   :  { %v934_v41 = vmax.f32 %v808_v18, %v923_v39  ;;  %v925_v38 = vpop.f32.mrb[13].mxu0  ;;  %v1049_v32 = vpop.f32.mrb[12].mxu1  ;;  %v1295_v39 = vrot.slane %v6604_v62, %v6584_v56 }
 0x174   :  { %v935_v14 = vmax.f32 %v809_v20, %v925_v38  ;;  %v1051_v50 = vpop.f32.mrb[13].mxu1  ;;  %v1303_v20 = vrot.slane %v6649_v27, %v6584_v56 }
 0x175   :  { %v1060_v18 = vmax.f32 %v934_v41, %v1049_v32 }
 0x176   :  { %v1061_v17 = vmax.f32 %v935_v14, %v1051_v50  ;;  %v929_v38 = vpop.f32.mrb[14].mxu0  ;;  %v6698_v50 = vrot.slane %v1142_v28, %v6495_v30 }
 0x177   :  { %v1064_v32 = vadd.f32 %v1060_v18, %v6463_v49  ;;  %v936_v11 = vmax.f32 %v810_v24, %v929_v38  ;;  %v931_v41 = vpop.f32.mrb[15].mxu0  ;;  %v1055_v5 = vpop.f32.mrb[14].mxu1 }
 0x178   :  { %v1065_v0 = vadd.f32 %v1061_v17, %v6463_v49  ;;  %v937_v12 = vmax.f32 %v811_v60, %v931_v41  ;;  %v1057_v63 = vpop.f32.mrb[15].mxu1 }
 0x179   :  { %v1068_v22 = vmax.f32 %v1064_v32, 0.0  ;;  %v1062_v24 = vmax.f32 %v936_v11, %v1055_v5  ;;  %v6729_v11 = vcombine.high %v6698_v50, %v6698_v50 }
 0x17a   :  { %v1069_v38 = vmax.f32 %v1065_v0, 0.0  ;;  %v1063_v14 = vmax.f32 %v937_v12, %v1057_v63  ;;  %v6724_v0 = vcombine.high %v6658_v31, %v6658_v31 }
 0x17b   :  { %v1066_v25 = vadd.f32 %v1062_v24, %v6467_v1 }
 0x17c   :  { %v1180_v63 = vcombine.low %v1068_v22, %v1069_v38  ;;  %v1181_v17 = vcombine.high %v1068_v22, %v1069_v38  ;;  %v1067_v32 = vadd.f32 %v1063_v14, %v6467_v1 }
 0x17d   :  { %v1070_v41 = vmax.f32 %v1066_v25, 0.0 }
 0x17e   :  { %v1188_v60 = vrot.slane %v1180_v63, %v6495_v30  ;;  %v1195_v22 = vrot.slane %v1181_v17, %v6495_v30  ;;  %v1071_v38 = vmax.f32 %v1067_v32, 0.0 }
 0x180   :  { %v1196_v5 = vcombine.high %v1188_v60, %v1188_v60  ;;  %v1197_v63 = vcombine.high %v1195_v22, %v1195_v22  ;;  %v1204_v17 = vrot.slane %v1188_v60, %v6495_v30  ;;  %v1211_v1 = vrot.slane %v1195_v22, %v6495_v30 }
 0x181   :  { %v1230_v49 = vcombine.low %v1070_v41, %v1071_v38  ;;  %v1231_v14 = vcombine.high %v1070_v41, %v1071_v38 }
 0x182   :  { %v1218_v18 = vrot.slane %v1196_v5, %v6495_v30  ;;  %v1447_v12 = vrot.slane %v1204_v17, %v6584_v56  ;;  %v1443_v24 = vrot.slane %v1204_v17, %v6582_v55  ;;  %v1225_v60 = vrot.slane %v1197_v63, %v6495_v30 }
 0x183   :  { %v1238_v32 = vrot.slane %v1230_v49, %v6495_v30  ;;  %v1245_v22 = vrot.slane %v1231_v14, %v6495_v30  ;;  %v1226_v41 = vcombine.high %v1204_v17, %v1204_v17  ;;  %v1479_v49 = vrot.slane %v1211_v1, %v6584_v56 }
 0x184   :  { %v1602_v5 = vsel %vm1600_vm2, %v1287_v8, %v1447_v12  ;;  %v1601_v38 = vsel %vm1600_vm2, %v1283_v15, %v1443_v24  ;;  %v1455_v25 = vrot.slane %v1218_v18, %v6584_v56  ;;  %v1451_v28 = vrot.slane %v1218_v18, %v6582_v55 }
 0x185   :  { %v1246_v63 = vcombine.high %v1238_v32, %v1238_v32  ;;  %3823 = vmatprep.mubr.msk.f32.mxu1 %vm1684_vm3, %v1602_v5  ;;  %v1371_v14 = vrot.slane %v6729_v11, %v6582_v55  ;;  %v1391_v8 = vrot.slane %v6707_v21, %v6584_v56  ;;  %v1463_v12 = vrot.slane %v1226_v41, %v6584_v56 }
 0x186   :  { %1832 = vmatmul.mubr.f32.vlgmr.msra.gmra.mrb[16].mxu1 %v1601_v38  ;;  %v1604_v54 = vsel %vm1600_vm2, %v1295_v39, %v1455_v25  ;;  %v1603_v15 = vsel %vm1600_vm2, %v1291_v19, %v1451_v28  ;;  %v1228_v24 = vcombine.high %v1218_v18, %v1218_v18  ;;  %v1247_v17 = vcombine.high %v1245_v22, %v1245_v22 }
 0x187   :  { %v1268_v5 = vrot.slane %v1246_v63, %v6495_v30  ;;  %4692 = vmatpush1.bf16.msra.mxu1 %v4691_v61  ;;  %3821 = vmatprep.mubr.msk.f32.mxu0 %vm1684_vm3, %v1604_v54  ;;  %v1487_v38 = vrot.slane %v1225_v60, %v6584_v56  ;;  %v1606_v62 = vsel %vm1600_vm2, %v1303_v20, %v1463_v12 }
 0x188   :  { %1756 = vmatmul.mubr.f32.vlgmr.msra.gmra.mrb[16].mxu0 %v1603_v15  ;;  %4693 = vmatprep.subr.bf16.mxu1 %v5226_v26  ;;  %v1471_v39 = vrot.slane %v1228_v24, %v6584_v56  ;;  %v1467_v19 = vrot.slane %v1228_v24, %v6582_v55  ;;  %v1459_v20 = vrot.slane %v1226_v41, %v6582_v55 }
 0x189   :  { %4656 = vmatpush1.bf16.msra.mxu0 %v8364_v33  ;;  %3850 = vmatprep.mubr.msk.f32.mxu0 %vm1684_vm3, %v1606_v62  ;;  %v6811_v61 = vsel %vm1600_vm2, %v8365_v34, %v1487_v38  ;;  %v8366_v18 = vrot.slane %v6658_v31, %v6584_v56  ;;  %v8368_v25 = vrot.slane %v6665_v13, %v6582_v55 }
 0x18a   :  { %v1608_v36 = vsel %vm1600_vm2, %v8367_v35, %v1471_v39  ;;  %4657 = vmatprep.subr.bf16.mxu0 %v5226_v26  ;;  %v1483_v41 = vrot.slane %v1225_v60, %v6582_v55  ;;  %v1229_v54 = vcombine.high %v1225_v60, %v1225_v60  ;;  %v8370_v15 = vrot.slane %v6649_v27, %v6582_v55 }
 0x18b   :  { %v6818_v28 = vsel %vm1600_vm2, %v8366_v18, %v1479_v49  ;;  %v6829_v63 = vsel %vm1600_vm2, %v8368_v25, %v1467_v19  ;;  %3877 = vmatprep.mubr.msk.f32.mxu1 %vm1684_vm3, %v1608_v36  ;;  %v8369_v49 = vpack.c.bf16 %v6526_v40, %v6521_v37  ;;  %v1475_v13 = vrot.slane %v1211_v1, %v6582_v55 }
 0x18c   :  { %v6840_v12 = vsel %vm1600_vm2, %v8370_v15, %v1459_v20  ;;  %v1227_v24 = vcombine.high %v1211_v1, %v1211_v1  ;;  %v1254_v38 = vrot.slane %v1238_v32, %v6495_v30  ;;  %v8371_v60 = vrot.slane %v6679_v7, %v6582_v55 }
 0x18d   :  { %4695 = vmatpush1.bf16.msra.mxu1 %v8369_v49  ;;  %v1503_v37 = vrot.slane %v1229_v54, %v6584_v56  ;;  %v1383_v40 = vrot.slane %v6689_v6, %v6584_v56  ;;  %v8372_v27 = vpack.c.bf16 %v6536_v43, %v6531_v42  ;;  %v8373_v1 = vrot.slane %v6658_v31, %v6582_v55 }
 0x18e   :  { %4696 = vmatprep.subr.bf16.mxu1 %v5226_v26  ;;  %v6849_v62 = vsel %vm1600_vm2, %v8371_v60, %v1483_v41  ;;  %v1495_v7 = vrot.slane %v1227_v24, %v6584_v56  ;;  %v1387_v39 = vrot.slane %v6707_v21, %v6582_v55  ;;  %v6868_v19 = vcombine.high %v6707_v21, %v6707_v21 }
 0x18f   :  { %4659 = vmatpush1.bf16.msra.mxu0 %v8372_v27  ;;  %v6861_v32 = vsel %vm1600_vm2, %v8373_v1, %v1475_v13  ;;  %v1275_v33 = vrot.slane %v1247_v17, %v6495_v30  ;;  %v8374_v42 = vrot.slane %v6720_v16, %v6584_v56  ;;  %v1499_v31 = vrot.slane %v1229_v54, %v6582_v55 }
 0x190   :  { %4660 = vmatprep.subr.bf16.mxu0 %v5226_v26  ;;  %v1379_v34 = vrot.slane %v6689_v6, %v6582_v55  ;;  %v8375_v20 = vpack.c.bf16 %v6546_v45, %v6541_v44  ;;  %v8376_v17 = vrot.slane %v6724_v0, %v6584_v56  ;;  %v1519_v35 = vrot.slane %v1268_v5, %v6584_v56 }
 0x191   :  { %v6876_v43 = vsel %vm1600_vm2, %v8374_v42, %v1503_v37  ;;  %v1491_v36 = vrot.slane %v1227_v24, %v6582_v55  ;;  %v1367_v25 = vrot.slane %v6760_v23, %v6584_v56  ;;  %v1261_v41 = vrot.slane %v1245_v22, %v6495_v30 }
 0x192   :  { %4698 = vmatpush1.bf16.msra.mxu1 %v8375_v20  ;;  %v6888_v18 = vsel %vm1600_vm2, %v8376_v17, %v1495_v7  ;;  %v8377_v44 = vrot.slane %v6720_v16, %v6582_v55  ;;  %v1511_v54 = vrot.slane %v1254_v38, %v6584_v56  ;;  %v1515_v49 = vrot.slane %v1268_v5, %v6582_v55 }
 0x193   :  { %4699 = vmatprep.subr.bf16.mxu1 %v5226_v26  ;;  %v8378_v15 = vpack.c.bf16 %v6556_v47, %v6551_v46  ;;  %v8379_v13 = vrot.slane %v6698_v50, %v6584_v56  ;;  %v8380_v16 = vrot.slane %v6724_v0, %v6582_v55  ;;  %v1278_v24 = vcombine.high %v1268_v5, %v1268_v5 }
 0x194   :  { %v6900_v45 = vsel %vm1600_vm2, %v8377_v44, %v1499_v31  ;;  %v1507_v60 = vrot.slane %v1254_v38, %v6582_v55  ;;  %v8381_v46 = vrot.slane %v6682_v29, %v6584_v56  ;;  %v8382_v37 = vrot.slane %v6698_v50, %v6582_v55 }
 0x195   :  { %4662 = vmatpush1.bf16.msra.mxu0 %v8378_v15  ;;  %v6911_v30 = vsel %vm1600_vm2, %v8379_v13, %v1519_v35  ;;  %v6917_v22 = vsel %vm1600_vm2, %v8380_v16, %v1491_v36  ;;  %v1276_v0 = vcombine.high %v1254_v38, %v1254_v38  ;;  %v1551_v1 = vrot.slane %v1275_v33, %v6584_v56 }
 0x196   :  { %4663 = vmatprep.subr.bf16.mxu0 %v5226_v26  ;;  %v6925_v47 = vsel %vm1600_vm2, %v8381_v46, %v1511_v54  ;;  %v6931_v27 = vsel %vm1600_vm2, %v8382_v37, %v1515_v49  ;;  %v8383_v5 = vpack.c.bf16 %v6567_v51, %v6561_v48  ;;  %v1535_v7 = vrot.slane %v1278_v24, %v6584_v56 }
 0x197   :  { %v8384_v42 = vrot.slane %v6682_v29, %v6582_v55  ;;  %v1531_v50 = vrot.slane %v1278_v24, %v6582_v55  ;;  %v1363_v20 = vrot.slane %v6760_v23, %v6582_v55  ;;  %v1527_v38 = vrot.slane %v1276_v0, %v6584_v56 }
 0x198   :  { %4701 = vmatpush1.bf16.msra.mxu1 %v8383_v5  ;;  %v6953_v48 = vsel %vm1600_vm2, %v1391_v8, %v1551_v1  ;;  %v1523_v51 = vrot.slane %v1276_v0, %v6582_v55  ;;  %v1173_v29 = vcombine.high %v6689_v6, %v6689_v6  ;;  %v8385_v17 = vpack.c.bf16 %v6577_v53, %v6572_v52  ;;  %v3865_v0 = vld [vmem:[%s8355_s3 + $0x2c8] sm:$0xff]  ;;  %v3866_v1 = vld [vmem:[%s8355_s3 + $0x2d0] sm:$0xff]  ;;  %v3838_v5 = vld [vmem:[%s8355_s3 + $0x200] sm:$0xff] }
 0x199   :  { %v6942_v31 = vsel %vm1600_vm2, %v8384_v42, %v1507_v60  ;;  %4702 = vmatprep.subr.bf16.mxu1 %v5226_v26  ;;  %v8386_v23 = vrot.slane %v6729_v11, %v6584_v56  ;;  %v6971_v21 = vsel %vm1600_vm2, %v1371_v14, %v1531_v50  ;;  %v1543_v8 = vrot.slane %v1261_v41, %v6584_v56 }
 0x19a   :  { %4665 = vmatpush1.bf16.msra.mxu0 %v8385_v17  ;;  %v1547_v6 = vrot.slane %v1275_v33, %v6582_v55  ;;  %v6977_v52 = vsel %vm1600_vm2, %v1367_v25, %v1527_v38  ;;  %v6980_v53 = vsel %vm1600_vm2, %v1363_v20, %v1523_v51  ;;  %v1279_v36 = vcombine.high %v1275_v33, %v1275_v33  ;;  %v3863_v33 = vld [vmem:[%s8355_s3 + $0x2b8] sm:$0xff]  ;;  %v3840_v20 = vld [vmem:[%s8355_s3 + $0x210] sm:$0xff] }
 0x19b   :  { %v6965_v35 = vsel %vm1600_vm2, %v8386_v23, %v1535_v7  ;;  %4666 = vmatprep.subr.bf16.mxu0 %v5226_v26  ;;  %v1539_v44 = vrot.slane %v1261_v41, %v6582_v55  ;;  %v8387_v11 = vpack.c.bf16 %v6594_v58, %v6589_v57  ;;  %v6987_v14 = vsel %vm1600_vm2, %v1383_v40, %v1543_v8  ;;  %v3864_v57 = vld [vmem:[%s8355_s3 + $0x2c0] sm:$0xff]  ;;  %v3839_v7 = vld [vmem:[%s8355_s3 + $0x208] sm:$0xff]  ;;  %v3841_v38 = vld [vmem:[%s8355_s3 + $0x218] sm:$0xff] }
 0x19c   :  { %v6990_v54 = vsel %vm1600_vm2, %v1387_v39, %v1547_v6  ;;  %v1407_v25 = vrot.slane %v6868_v19, %v6584_v56  ;;  %v1277_v49 = vcombine.high %v1261_v41, %v1261_v41  ;;  %v1567_v58 = vrot.slane %v1279_v36, %v6584_v56  ;;  %v3870_v17 = vld [vmem:[%s8355_s3 + $0x2f0] sm:$0xff]  ;;  %v3842_v8 = vld [vmem:[%s8355_s3 + $0x220] sm:$0xff]  ;;  %v3843_v6 = vld [vmem:[%s8355_s3 + $0x228] sm:$0xff] }
 0x19d   :  { %4704 = vmatpush1.bf16.msra.mxu1 %v8387_v11  ;;  %v7003_v40 = vsel %vm1600_vm2, %v1379_v34, %v1539_v44  ;;  %v1403_v39 = vrot.slane %v6868_v19, %v6582_v55  ;;  %v1563_v41 = vrot.slane %v1279_v36, %v6582_v55  ;;  %v8388_v15 = vpack.c.bf16 %v6613_v2, %v6599_v59  ;;  %v3836_v19 = vld [vmem:[%s8355_s3 + $0x1f0] sm:$0xff]  ;;  %v3837_v34 = vld [vmem:[%s8355_s3 + $0x1f8] sm:$0xff]  ;;  %v3872_v11 = vld [vmem:[%s8355_s3 + $0x300] sm:$0xff] }
 0x19e   :  { %4705 = vmatprep.subr.bf16.mxu1 %v5226_v26  ;;  %v1399_v13 = vrot.slane %v1173_v29, %v6584_v56  ;;  %v1559_v16 = vrot.slane %v1277_v49, %v6584_v56  ;;  %v1395_v24 = vrot.slane %v1173_v29, %v6582_v55  ;;  %v1555_v60 = vrot.slane %v1277_v49, %v6582_v55  ;;  %v3869_v29 = vld [vmem:[%s8355_s3 + $0x2e8] sm:$0xff]  ;;  %v3871_v44 = vld [vmem:[%s8355_s3 + $0x2f8] sm:$0xff]  ;;  %v3844_v49 = vld [vmem:[%s8355_s3 + $0x230] sm:$0xff] }
 0x19f   :  { %4668 = vmatpush1.bf16.msra.mxu0 %v8388_v15  ;;  %v7023_v59 = vsel %vm1600_vm2, %v1407_v25, %v1567_v58  ;;  %v7026_v2 = vsel %vm1600_vm2, %v1403_v39, %v1563_v41  ;;  %v8389_v56 = vpack.c.bf16 %v6623_v4, %v6618_v3  ;;  %v4709_v55 = vpack.c.bf16 %v3864_v57, %v3863_v33  ;;  %v3845_v33 = vld [vmem:[%s8355_s3 + $0x238] sm:$0xff]  ;;  %v3873_v58 = vld [vmem:[%s8355_s3 + $0x308] sm:$0xff]  ;;  %v3874_v39 = vld [vmem:[%s8355_s3 + $0x310] sm:$0xff] }
 0x1a0   :  { %4669 = vmatprep.subr.bf16.mxu0 %v5226_v26  ;;  %v7032_v46 = vsel %vm1600_vm2, %v1399_v13, %v1559_v16  ;;  %v7035_v37 = vsel %vm1600_vm2, %v1395_v24, %v1555_v60  ;;  %v8390_v3 = vpack.c.bf16 %v6640_v10, %v6635_v9  ;;  %v4673_v4 = vpack.c.bf16 %v3837_v34, %v3836_v19  ;;  %v3867_v9 = vld [vmem:[%s8355_s3 + $0x2d8] sm:$0xff]  ;;  %v3868_v10 = vld [vmem:[%s8355_s3 + $0x2e0] sm:$0xff]  ;;  %v3847_v13 = vld [vmem:[%s8355_s3 + $0x248] sm:$0xff] }
 0x1a1   :  { %4707 = vmatpush1.bf16.msra.mxu1 %v8389_v56  ;;  %v4712_v42 = vpack.c.bf16 %v3866_v1, %v3865_v0  ;;  %v4676_v50 = vpack.c.bf16 %v3839_v7, %v3838_v5  ;;  %v4715_v51 = vpack.c.bf16 %v3868_v10, %v3867_v9  ;;  %v4679_v23 = vpack.c.bf16 %v3841_v38, %v3840_v20  ;;  %v3846_v15 = vld [vmem:[%s8355_s3 + $0x240] sm:$0xff]  ;;  %v3905_v60 = vld [vmem:[%s8355_s3 + $0x3e8] sm:$0xff]  ;;  %v3906_v19 = vld [vmem:[%s8355_s3 + $0x3f0] sm:$0xff] }
 0x1a2   :  { %4708 = vmatprep.subr.bf16.mxu1 %v5226_v26  ;;  %v4718_v36 = vpack.c.bf16 %v3870_v17, %v3869_v29  ;;  %v4682_v25 = vpack.c.bf16 %v3843_v6, %v3842_v8  ;;  %v4721_v57 = vpack.c.bf16 %v3872_v11, %v3871_v44  ;;  %v4685_v41 = vpack.c.bf16 %v3845_v33, %v3844_v49  ;;  %v3875_v56 = vld [vmem:[%s8355_s3 + $0x318] sm:$0x3f]  ;;  %v3878_v0 = vld [vmem:[%s8355_s3 + $0x320] sm:$0xff]  ;;  %v3879_v1 = vld [vmem:[%s8355_s3 + $0x328] sm:$0xff] }
 0x1a3   :  { %4671 = vmatpush1.bf16.msra.mxu0 %v8390_v3  ;;  %v4724_v16 = vpack.c.bf16 %v3874_v39, %v3873_v58  ;;  %v4688_v24 = vpack.c.bf16 %v3847_v13, %v3846_v15  ;;  %v8391_v34 = vmov 0.0   ;;  %v3848_v3 = vld [vmem:[%s8355_s3 + $0x250] sm:$0x3f]  ;;  %v3908_v5 = vld [vmem:[%s8355_s3 + $0x400] sm:$0xff]  ;;  %v4727_v7 = vpack.c.bf16 %v3879_v1, %v3878_v0  ;;  %v3881_v10 = vld [vmem:[%s8355_s3 + $0x338] sm:$0xff] }
 0x1a4   :  { %4672 = vmatprep.subr.bf16.mxu0 %v5226_v26  ;;  %v3880_v9 = vld [vmem:[%s8355_s3 + $0x330] sm:$0xff]  ;;  %v3883_v38 = vld [vmem:[%s8355_s3 + $0x348] sm:$0xff]  ;;  %v3885_v8 = vld [vmem:[%s8355_s3 + $0x358] sm:$0xff] }
 0x1a5   :  { %4710 = vmatpush1.bf16.msra.mxu1 %v4709_v55  ;;  %v4763_v55 = vpack.c.bf16 %v3906_v19, %v3905_v60  ;;  %v4730_v20 = vpack.c.bf16 %v3881_v10, %v3880_v9  ;;  %v3913_v6 = vld [vmem:[%s8355_s3 + $0x428] sm:$0xff]  ;;  %v3915_v33 = vld [vmem:[%s8355_s3 + $0x438] sm:$0xff]  ;;  %v3890_v19 = vld [vmem:[%s8355_s3 + $0x380] sm:$0xff] }
 0x1a6   :  { %4711 = vmatprep.subr.bf16.mxu1 %v5226_v26  ;;  %v3887_v49 = vld [vmem:[%s8355_s3 + $0x368] sm:$0xff]  ;;  %v3889_v15 = vld [vmem:[%s8355_s3 + $0x378] sm:$0xff]  ;;  %v3920_v0 = vld [vmem:[%s8355_s3 + $0x460] sm:$0xff] }
 0x1a7   :  { %4674 = vmatpush1.bf16.msra.mxu0 %v4673_v4  ;;  %v3907_v4 = vld [vmem:[%s8355_s3 + $0x3f8] sm:$0xff]  ;;  %v3917_v13 = vld [vmem:[%s8355_s3 + $0x448] sm:$0xff] }
 0x1a8   :  { %4675 = vmatprep.subr.bf16.mxu0 %v5226_v26 }
 0x1a9   :  { %4713 = vmatpush1.bf16.msra.mxu1 %v4712_v42  ;;  %v4766_v42 = vpack.c.bf16 %v3908_v5, %v3907_v4  ;;  %v3892_v4 = vld [vmem:[%s8355_s3 + $0x390] sm:$0xff]  ;;  %v3893_v5 = vld [vmem:[%s8355_s3 + $0x398] sm:$0xff] }
 0x1aa   :  { %4714 = vmatprep.subr.bf16.mxu1 %v5226_v26  ;;  %v4748_v9 = vpack.c.bf16 %v3893_v5, %v3892_v4 }
 0x1ab   :  { %4677 = vmatpush1.bf16.msra.mxu0 %v4676_v50  ;;  %v3910_v50 = vld [vmem:[%s8355_s3 + $0x410] sm:$0xff] }
 0x1ac   :  { %4678 = vmatprep.subr.bf16.mxu0 %v5226_v26 }
 0x1ad   :  { %4716 = vmatpush1.bf16.msra.mxu1 %v4715_v51  ;;  %v3912_v51 = vld [vmem:[%s8355_s3 + $0x420] sm:$0xff] }
 0x1ae   :  { %4717 = vmatprep.subr.bf16.mxu1 %v5226_v26 }
 0x1af   :  { %4680 = vmatpush1.bf16.msra.mxu0 %v4679_v23  ;;  %v3884_v23 = vld [vmem:[%s8355_s3 + $0x350] sm:$0xff] }
 0x1b0   :  { %4681 = vmatprep.subr.bf16.mxu0 %v5226_v26  ;;  %v4736_v44 = vpack.c.bf16 %v3885_v8, %v3884_v23 }
 0x1b1   :  { %4719 = vmatpush1.bf16.msra.mxu1 %v4718_v36  ;;  %v3914_v36 = vld [vmem:[%s8355_s3 + $0x430] sm:$0xff] }
 0x1b2   :  { %4720 = vmatprep.subr.bf16.mxu1 %v5226_v26  ;;  %v4775_v11 = vpack.c.bf16 %v3914_v36, %v3913_v6  ;;  %v3898_v6 = vld [vmem:[%s8355_s3 + $0x3c0] sm:$0xff]  ;;  %v3899_v36 = vld [vmem:[%s8355_s3 + $0x3c8] sm:$0xff] }
 0x1b3   :  { %4683 = vmatpush1.bf16.msra.mxu0 %v4682_v25  ;;  %v3886_v25 = vld [vmem:[%s8355_s3 + $0x360] sm:$0xff] }
 0x1b4   :  { %4684 = vmatprep.subr.bf16.mxu0 %v5226_v26  ;;  %v4739_v58 = vpack.c.bf16 %v3887_v49, %v3886_v25  ;;  %v4757_v25 = vpack.c.bf16 %v3899_v36, %v3898_v6  ;;  %v3942_v6 = vld [vmem:[%s8355_s3 + $0x500] sm:$0xff]  ;;  %v3943_v36 = vld [vmem:[%s8355_s3 + $0x508] sm:$0xff] }
 0x1b5   :  { %4722 = vmatpush1.bf16.msra.mxu1 %v4721_v57  ;;  %v3916_v57 = vld [vmem:[%s8355_s3 + $0x440] sm:$0xff] }
 0x1b6   :  { %4723 = vmatprep.subr.bf16.mxu1 %v5226_v26  ;;  %v4778_v39 = vpack.c.bf16 %v3916_v57, %v3915_v33  ;;  %v3900_v33 = vld [vmem:[%s8355_s3 + $0x3d0] sm:$0xff]  ;;  %v3901_v57 = vld [vmem:[%s8355_s3 + $0x3d8] sm:$0xff] }
 0x1b7   :  { %4686 = vmatpush1.bf16.msra.mxu0 %v4685_v41  ;;  %v3888_v41 = vld [vmem:[%s8355_s3 + $0x370] sm:$0xff] }
 0x1b8   :  { %4687 = vmatprep.subr.bf16.mxu0 %v5226_v26 }
 0x1b9   :  { %4725 = vmatpush1.bf16.msra.mxu1 %v4724_v16  ;;  %v3918_v16 = vld [vmem:[%s8355_s3 + $0x450] sm:$0xff] }
 0x1ba   :  { %2020 = vmatprep.subr.mxu1 %v8391_v34  ;;  %v4781_v60 = vpack.c.bf16 %v3918_v16, %v3917_v13  ;;  %v3932_v16 = vld [vmem:[%s8355_s3 + $0x4b0] sm:$0xff] }
 0x1bb   :  { %4689 = vmatpush1.bf16.msra.mxu0 %v4688_v24  ;;  %v4742_v24 = vpack.c.bf16 %v3889_v15, %v3888_v41  ;;  %v3960_v41 = vld [vmem:[%s8355_s3 + $0x580] sm:$0xff]  ;;  %v3929_v15 = vld [vmem:[%s8355_s3 + $0x4a8] sm:$0x3f] }
 0x1bc   :  { %1917 = vmatprep.subr.mxu0 %v8391_v34 }
 0x1bd   :  { %3876 = vmatpush1.msk.msra.mxu1 %vm84_vm1, %v3875_v56  ;;  %v3891_v56 = vld [vmem:[%s8355_s3 + $0x388] sm:$0xff] }
 0x1be   :  { %2037 = vmatmul.mubr.f32.vlgmr.msra.gmra.mrb[18].mxu1 %v6829_v63  ;;  %4762 = vmatprep.subr.bf16.mxu1 %v5226_v26  ;;  %v3909_v63 = vld [vmem:[%s8355_s3 + $0x408] sm:$0xff]  ;;  %v4745_v1 = vpack.c.bf16 %v3891_v56, %v3890_v19  ;;  %v3962_v19 = vld [vmem:[%s8355_s3 + $0x590] sm:$0xff]  ;;  %v3902_v56 = vld [vmem:[%s8355_s3 + $0x3e0] sm:$0x3f] }
 0x1bf   :  { %3849 = vmatpush1.msk.msra.mxu0 %vm84_vm1, %v3848_v3  ;;  %4764 = vmatpush1.bf16.msra.mxu1 %v4763_v55  ;;  %v3919_v55 = vld [vmem:[%s8355_s3 + $0x458] sm:$0xff] }
 0x1c0   :  { %3931 = vmatprep.mubr.msk.f32.mxu1 %vm1684_vm3, %v6811_v61  ;;  %1934 = vmatmul.mubr.f32.vlgmr.msra.gmra.mrb[18].mxu0 %v6840_v12  ;;  %v4769_v61 = vpack.c.bf16 %v3910_v50, %v3909_v63  ;;  %v3882_v12 = vld [vmem:[%s8355_s3 + $0x340] sm:$0xff]  ;;  %v4784_v3 = vpack.c.bf16 %v3920_v0, %v3919_v55  ;;  %v3895_v50 = vld [vmem:[%s8355_s3 + $0x3a8] sm:$0xff] }
 0x1c1   :  { %4726 = vmatprep.subr.bf16.mxu0 %v5226_v26  ;;  %3904 = vmatprep.mubr.msk.f32.mxu0 %vm1684_vm3, %v6818_v28  ;;  %v3911_v28 = vld [vmem:[%s8355_s3 + $0x418] sm:$0xff]  ;;  %v4733_v29 = vpack.c.bf16 %v3883_v38, %v3882_v12  ;;  %v3894_v63 = vld [vmem:[%s8355_s3 + $0x3a0] sm:$0xff] }
 0x1c2   :  { %4728 = vmatpush1.bf16.msra.mxu0 %v4727_v7  ;;  %4765 = vmatprep.subr.bf16.mxu1 %v5226_v26  ;;  %v4772_v17 = vpack.c.bf16 %v3912_v51, %v3911_v28  ;;  %v3921_v7 = vld [vmem:[%s8355_s3 + $0x468] sm:$0xff]  ;;  %v4751_v12 = vpack.c.bf16 %v3895_v50, %v3894_v63  ;;  %v3896_v28 = vld [vmem:[%s8355_s3 + $0x3b0] sm:$0xff]  ;;  %v3897_v51 = vld [vmem:[%s8355_s3 + $0x3b8] sm:$0xff] }
 0x1c3   :  { %4767 = vmatpush1.bf16.msra.mxu1 %v4766_v42  ;;  %4729 = vmatprep.subr.bf16.mxu0 %v5226_v26  ;;  %v3922_v42 = vld [vmem:[%s8355_s3 + $0x470] sm:$0xff]  ;;  %v4754_v23 = vpack.c.bf16 %v3897_v51, %v3896_v28  ;;  %v3938_v63 = vld [vmem:[%s8355_s3 + $0x4e0] sm:$0xff]  ;;  %v3939_v50 = vld [vmem:[%s8355_s3 + $0x4e8] sm:$0xff] }
 0x1c4   :  { %4768 = vmatprep.subr.bf16.mxu1 %v5226_v26  ;;  %v4787_v10 = vpack.c.bf16 %v3922_v42, %v3921_v7  ;;  %v3936_v7 = vld [vmem:[%s8355_s3 + $0x4d0] sm:$0xff]  ;;  %v3937_v42 = vld [vmem:[%s8355_s3 + $0x4d8] sm:$0xff] }
 0x1c5   :  { %v3940_v28 = vld [vmem:[%s8355_s3 + $0x4f0] sm:$0xff]  ;;  %v3941_v51 = vld [vmem:[%s8355_s3 + $0x4f8] sm:$0xff] }
 0x1c6   :  { %4731 = vmatpush1.bf16.msra.mxu0 %v4730_v20  ;;  %v3923_v20 = vld [vmem:[%s8355_s3 + $0x478] sm:$0xff] }
 0x1c7   :  { %4770 = vmatpush1.bf16.msra.mxu1 %v4769_v61  ;;  %4732 = vmatprep.subr.bf16.mxu0 %v5226_v26  ;;  %v3924_v61 = vld [vmem:[%s8355_s3 + $0x480] sm:$0xff] }
 0x1c8   :  { %4771 = vmatprep.subr.bf16.mxu1 %v5226_v26  ;;  %v4790_v38 = vpack.c.bf16 %v3924_v61, %v3923_v20  ;;  %v3967_v20 = vld [vmem:[%s8355_s3 + $0x5b8] sm:$0xff]  ;;  %v3968_v61 = vld [vmem:[%s8355_s3 + $0x5c0] sm:$0xff] }
 0x1ca   :  { %4734 = vmatpush1.bf16.msra.mxu0 %v4733_v29  ;;  %v3925_v29 = vld [vmem:[%s8355_s3 + $0x488] sm:$0xff] }
 0x1cb   :  { %4773 = vmatpush1.bf16.msra.mxu1 %v4772_v17  ;;  %4735 = vmatprep.subr.bf16.mxu0 %v5226_v26  ;;  %v3926_v17 = vld [vmem:[%s8355_s3 + $0x490] sm:$0xff] }
 0x1cc   :  { %4774 = vmatprep.subr.bf16.mxu1 %v5226_v26  ;;  %v4793_v8 = vpack.c.bf16 %v3926_v17, %v3925_v29  ;;  %v3969_v29 = vld [vmem:[%s8355_s3 + $0x5c8] sm:$0xff]  ;;  %v3970_v17 = vld [vmem:[%s8355_s3 + $0x5d0] sm:$0xff] }
 0x1ce   :  { %4737 = vmatpush1.bf16.msra.mxu0 %v4736_v44  ;;  %v3927_v44 = vld [vmem:[%s8355_s3 + $0x498] sm:$0xff] }
 0x1cf   :  { %4776 = vmatpush1.bf16.msra.mxu1 %v4775_v11  ;;  %4738 = vmatprep.subr.bf16.mxu0 %v5226_v26  ;;  %v3928_v11 = vld [vmem:[%s8355_s3 + $0x4a0] sm:$0xff] }
 0x1d0   :  { %4777 = vmatprep.subr.bf16.mxu1 %v5226_v26  ;;  %v4796_v49 = vpack.c.bf16 %v3928_v11, %v3927_v44  ;;  %v3971_v44 = vld [vmem:[%s8355_s3 + $0x5d8] sm:$0xff]  ;;  %v3972_v11 = vld [vmem:[%s8355_s3 + $0x5e0] sm:$0xff] }
 0x1d2   :  { %4740 = vmatpush1.bf16.msra.mxu0 %v4739_v58  ;;  %v4760_v58 = vpack.c.bf16 %v3901_v57, %v3900_v33  ;;  %v3944_v33 = vld [vmem:[%s8355_s3 + $0x510] sm:$0xff]  ;;  %v3945_v57 = vld [vmem:[%s8355_s3 + $0x518] sm:$0xff] }
 0x1d3   :  { %4779 = vmatpush1.bf16.msra.mxu1 %v4778_v39  ;;  %4741 = vmatprep.subr.bf16.mxu0 %v5226_v26  ;;  %v3959_v39 = vld [vmem:[%s8355_s3 + $0x578] sm:$0xff] }
 0x1d4   :  { %4780 = vmatprep.subr.bf16.mxu1 %v5226_v26  ;;  %v4835_v13 = vpack.c.bf16 %v3960_v41, %v3959_v39  ;;  %v3974_v39 = vld [vmem:[%s8355_s3 + $0x5f0] sm:$0xff]  ;;  %v4817_v41 = vpack.c.bf16 %v3945_v57, %v3944_v33  ;;  %v3989_v57 = vld [vmem:[%s8355_s3 + $0x658] sm:$0xff] }
 0x1d5   :  { %v3988_v33 = vld [vmem:[%s8355_s3 + $0x650] sm:$0xff] }
 0x1d6   :  { %4743 = vmatpush1.bf16.msra.mxu0 %v4742_v24  ;;  %v3933_v24 = vld [vmem:[%s8355_s3 + $0x4b8] sm:$0xff] }
 0x1d7   :  { %4782 = vmatpush1.bf16.msra.mxu1 %v4781_v60  ;;  %4744 = vmatprep.subr.bf16.mxu0 %v5226_v26  ;;  %v3961_v60 = vld [vmem:[%s8355_s3 + $0x588] sm:$0xff]  ;;  %v4799_v55 = vpack.c.bf16 %v3933_v24, %v3932_v16  ;;  %v3975_v24 = vld [vmem:[%s8355_s3 + $0x5f8] sm:$0xff] }
 0x1d8   :  { %4783 = vmatprep.subr.bf16.mxu1 %v5226_v26  ;;  %v4838_v0 = vpack.c.bf16 %v3962_v19, %v3961_v60  ;;  %v3947_v16 = vld [vmem:[%s8355_s3 + $0x528] sm:$0xff]  ;;  %v3976_v60 = vld [vmem:[%s8355_s3 + $0x600] sm:$0xff] }
 0x1da   :  { %4746 = vmatpush1.bf16.msra.mxu0 %v4745_v1  ;;  %v3934_v1 = vld [vmem:[%s8355_s3 + $0x4c0] sm:$0xff] }
 0x1db   :  { %4785 = vmatpush1.bf16.msra.mxu1 %v4784_v3  ;;  %4747 = vmatprep.subr.bf16.mxu0 %v5226_v26  ;;  %v3935_v3 = vld [vmem:[%s8355_s3 + $0x4c8] sm:$0xff] }
 0x1dc   :  { %4786 = vmatprep.subr.bf16.mxu1 %v5226_v26  ;;  %v4802_v4 = vpack.c.bf16 %v3935_v3, %v3934_v1  ;;  %v3977_v1 = vld [vmem:[%s8355_s3 + $0x608] sm:$0xff]  ;;  %v3978_v3 = vld [vmem:[%s8355_s3 + $0x610] sm:$0xff] }
 0x1de   :  { %4749 = vmatpush1.bf16.msra.mxu0 %v4748_v9  ;;  %v4805_v9 = vpack.c.bf16 %v3937_v42, %v3936_v7  ;;  %v3979_v7 = vld [vmem:[%s8355_s3 + $0x618] sm:$0xff]  ;;  %v3980_v42 = vld [vmem:[%s8355_s3 + $0x620] sm:$0xff] }
 0x1df   :  { %4788 = vmatpush1.bf16.msra.mxu1 %v4787_v10  ;;  %4750 = vmatprep.subr.bf16.mxu0 %v5226_v26 }
 0x1e0   :  { %4789 = vmatprep.subr.bf16.mxu1 %v5226_v26 }
 0x1e2   :  { %4752 = vmatpush1.bf16.msra.mxu0 %v4751_v12  ;;  %v4808_v12 = vpack.c.bf16 %v3939_v50, %v3938_v63  ;;  %v3981_v63 = vld [vmem:[%s8355_s3 + $0x628] sm:$0xff]  ;;  %v3982_v50 = vld [vmem:[%s8355_s3 + $0x630] sm:$0xff] }
 0x1e3   :  { %4791 = vmatpush1.bf16.msra.mxu1 %v4790_v38  ;;  %4753 = vmatprep.subr.bf16.mxu0 %v5226_v26  ;;  %v4847_v38 = vpack.c.bf16 %v3968_v61, %v3967_v20  ;;  %v4868_v61 = vpack.c.bf16 %v3982_v50, %v3981_v63  ;;  %v3998_v63 = vld [vmem:[%s8355_s3 + $0x6a0] sm:$0xff]  ;;  %v3999_v50 = vld [vmem:[%s8355_s3 + $0x6a8] sm:$0xff] }
 0x1e4   :  { %4792 = vmatprep.subr.bf16.mxu1 %v5226_v26 }
 0x1e6   :  { %4755 = vmatpush1.bf16.msra.mxu0 %v4754_v23  ;;  %v4811_v23 = vpack.c.bf16 %v3941_v51, %v3940_v28  ;;  %v4013_v51 = vld [vmem:[%s8355_s3 + $0x708] sm:$0xff] }
 0x1e7   :  { %4794 = vmatpush1.bf16.msra.mxu1 %v4793_v8  ;;  %4756 = vmatprep.subr.bf16.mxu0 %v5226_v26  ;;  %v4850_v8 = vpack.c.bf16 %v3970_v17, %v3969_v29  ;;  %v4014_v29 = vld [vmem:[%s8355_s3 + $0x710] sm:$0xff]  ;;  %v3983_v17 = vld [vmem:[%s8355_s3 + $0x638] sm:$0x3f] }
 0x1e8   :  { %4795 = vmatprep.subr.bf16.mxu1 %v5226_v26 }
 0x1ea   :  { %4758 = vmatpush1.bf16.msra.mxu0 %v4757_v25  ;;  %v4814_v25 = vpack.c.bf16 %v3943_v36, %v3942_v6  ;;  %v3987_v6 = vld [vmem:[%s8355_s3 + $0x648] sm:$0xff]  ;;  %v4015_v36 = vld [vmem:[%s8355_s3 + $0x718] sm:$0xff] }
 0x1eb   :  { %4797 = vmatpush1.bf16.msra.mxu1 %v4796_v49  ;;  %4759 = vmatprep.subr.bf16.mxu0 %v5226_v26  ;;  %v4853_v49 = vpack.c.bf16 %v3972_v11, %v3971_v44  ;;  %v4016_v44 = vld [vmem:[%s8355_s3 + $0x720] sm:$0xff]  ;;  %v3956_v11 = vld [vmem:[%s8355_s3 + $0x570] sm:$0x3f] }
 0x1ec   :  { %2226 = vmatprep.subr.mxu1 %v8391_v34 }
 0x1ee   :  { %4761 = vmatpush1.bf16.msra.mxu0 %v4760_v58  ;;  %v3973_v58 = vld [vmem:[%s8355_s3 + $0x5e8] sm:$0xff] }
 0x1ef   :  { %3930 = vmatpush1.msk.msra.mxu1 %vm84_vm1, %v3929_v15  ;;  %2123 = vmatprep.subr.mxu0 %v8391_v34  ;;  %v4856_v15 = vpack.c.bf16 %v3974_v39, %v3973_v58  ;;  %v4874_v58 = vpack.c.bf16 %v3989_v57, %v3988_v33  ;;  %v4004_v33 = vld [vmem:[%s8355_s3 + $0x6d0] sm:$0xff]  ;;  %v4005_v57 = vld [vmem:[%s8355_s3 + $0x6d8] sm:$0xff] }
 0x1f0   :  { %2243 = vmatmul.mubr.f32.vlgmr.msra.gmra.mrb[20].mxu1 %v6849_v62  ;;  %4834 = vmatprep.subr.bf16.mxu1 %v5226_v26  ;;  %v3963_v62 = vld [vmem:[%s8355_s3 + $0x598] sm:$0xff] }
 0x1f1   :  { %4836 = vmatpush1.bf16.msra.mxu1 %v4835_v13  ;;  %3985 = vmatprep.mubr.msk.f32.mxu1 %vm1684_vm3, %v6876_v43  ;;  %v3964_v43 = vld [vmem:[%s8355_s3 + $0x5a0] sm:$0xff] }
 0x1f2   :  { %3903 = vmatpush1.msk.msra.mxu0 %vm84_vm1, %v3902_v56  ;;  %4837 = vmatprep.subr.bf16.mxu1 %v5226_v26  ;;  %v4841_v5 = vpack.c.bf16 %v3964_v43, %v3963_v62  ;;  %v3946_v13 = vld [vmem:[%s8355_s3 + $0x520] sm:$0xff]  ;;  %v4859_v56 = vpack.c.bf16 %v3976_v60, %v3975_v24  ;;  %v4862_v43 = vpack.c.bf16 %v3978_v3, %v3977_v1  ;;  %v3992_v24 = vld [vmem:[%s8355_s3 + $0x670] sm:$0xff]  ;;  %v3993_v60 = vld [vmem:[%s8355_s3 + $0x678] sm:$0xff] }
 0x1f3   :  { %2140 = vmatmul.mubr.f32.vlgmr.msra.gmra.mrb[20].mxu0 %v6861_v32  ;;  %4798 = vmatprep.subr.bf16.mxu0 %v5226_v26  ;;  %v3965_v32 = vld [vmem:[%s8355_s3 + $0x5a8] sm:$0xff]  ;;  %v4820_v19 = vpack.c.bf16 %v3947_v16, %v3946_v13  ;;  %v3994_v1 = vld [vmem:[%s8355_s3 + $0x680] sm:$0xff] }
 0x1f4   :  { %4800 = vmatpush1.bf16.msra.mxu0 %v4799_v55  ;;  %3958 = vmatprep.mubr.msk.f32.mxu0 %vm1684_vm3, %v6888_v18  ;;  %v3966_v18 = vld [vmem:[%s8355_s3 + $0x5b0] sm:$0xff]  ;;  %v3995_v3 = vld [vmem:[%s8355_s3 + $0x688] sm:$0xff] }
 0x1f5   :  { %4839 = vmatpush1.bf16.msra.mxu1 %v4838_v0  ;;  %4801 = vmatprep.subr.bf16.mxu0 %v5226_v26  ;;  %v4844_v10 = vpack.c.bf16 %v3966_v18, %v3965_v32  ;;  %v3948_v55 = vld [vmem:[%s8355_s3 + $0x530] sm:$0xff]  ;;  %v3949_v0 = vld [vmem:[%s8355_s3 + $0x538] sm:$0xff]  ;;  %v4865_v18 = vpack.c.bf16 %v3980_v42, %v3979_v7 }
 0x1f6   :  { %4840 = vmatprep.subr.bf16.mxu1 %v5226_v26  ;;  %v4823_v62 = vpack.c.bf16 %v3949_v0, %v3948_v55  ;;  %v4880_v55 = vpack.c.bf16 %v3993_v60, %v3992_v24  ;;  %v3996_v7 = vld [vmem:[%s8355_s3 + $0x690] sm:$0xff]  ;;  %v3997_v42 = vld [vmem:[%s8355_s3 + $0x698] sm:$0xff] }
 0x1f7   :  { %v4008_v24 = vld [vmem:[%s8355_s3 + $0x6f0] sm:$0xff]  ;;  %v4009_v60 = vld [vmem:[%s8355_s3 + $0x6f8] sm:$0xff] }
 0x1f8   :  { %4803 = vmatpush1.bf16.msra.mxu0 %v4802_v4  ;;  %v3950_v4 = vld [vmem:[%s8355_s3 + $0x540] sm:$0xff] }
 0x1f9   :  { %4842 = vmatpush1.bf16.msra.mxu1 %v4841_v5  ;;  %4804 = vmatprep.subr.bf16.mxu0 %v5226_v26  ;;  %v3951_v5 = vld [vmem:[%s8355_s3 + $0x548] sm:$0xff] }
 0x1fa   :  { %4843 = vmatprep.subr.bf16.mxu1 %v5226_v26  ;;  %v4826_v32 = vpack.c.bf16 %v3951_v5, %v3950_v4  ;;  %v4883_v4 = vpack.c.bf16 %v3995_v3, %v3994_v1  ;;  %v4040_v3 = vld [vmem:[%s8355_s3 + $0x7d0] sm:$0xff] }
 0x1fc   :  { %4806 = vmatpush1.bf16.msra.mxu0 %v4805_v9  ;;  %v3952_v9 = vld [vmem:[%s8355_s3 + $0x550] sm:$0xff] }
 0x1fd   :  { %4845 = vmatpush1.bf16.msra.mxu1 %v4844_v10  ;;  %4807 = vmatprep.subr.bf16.mxu0 %v5226_v26  ;;  %v3953_v10 = vld [vmem:[%s8355_s3 + $0x558] sm:$0xff] }
 0x1fe   :  { %4846 = vmatprep.subr.bf16.mxu1 %v5226_v26  ;;  %v4829_v20 = vpack.c.bf16 %v3953_v10, %v3952_v9  ;;  %v4886_v9 = vpack.c.bf16 %v3997_v42, %v3996_v7 }
 0x200   :  { %4809 = vmatpush1.bf16.msra.mxu0 %v4808_v12  ;;  %v3954_v12 = vld [vmem:[%s8355_s3 + $0x560] sm:$0xff] }
 0x201   :  { %4848 = vmatpush1.bf16.msra.mxu1 %v4847_v38  ;;  %4810 = vmatprep.subr.bf16.mxu0 %v5226_v26  ;;  %v3955_v38 = vld [vmem:[%s8355_s3 + $0x568] sm:$0xff] }
 0x202   :  { %4849 = vmatprep.subr.bf16.mxu1 %v5226_v26  ;;  %v4832_v28 = vpack.c.bf16 %v3955_v38, %v3954_v12  ;;  %v4889_v12 = vpack.c.bf16 %v3999_v50, %v3998_v63  ;;  %v4044_v63 = vld [vmem:[%s8355_s3 + $0x7f0] sm:$0xff]  ;;  %v4045_v50 = vld [vmem:[%s8355_s3 + $0x7f8] sm:$0xff] }
 0x204   :  { %4812 = vmatpush1.bf16.msra.mxu0 %v4811_v23  ;;  %v4907_v23 = vpack.c.bf16 %v4014_v29, %v4013_v51  ;;  %v4001_v51 = vld [vmem:[%s8355_s3 + $0x6b8] sm:$0xff]  ;;  %v4029_v29 = vld [vmem:[%s8355_s3 + $0x788] sm:$0xff] }
 0x205   :  { %4851 = vmatpush1.bf16.msra.mxu1 %v4850_v8  ;;  %4813 = vmatprep.subr.bf16.mxu0 %v5226_v26  ;;  %v3986_v8 = vld [vmem:[%s8355_s3 + $0x640] sm:$0xff] }
 0x206   :  { %4852 = vmatprep.subr.bf16.mxu1 %v5226_v26 }
 0x208   :  { %4815 = vmatpush1.bf16.msra.mxu0 %v4814_v25  ;;  %v4871_v25 = vpack.c.bf16 %v3987_v6, %v3986_v8  ;;  %v4002_v6 = vld [vmem:[%s8355_s3 + $0x6c0] sm:$0xff] }
 0x209   :  { %4854 = vmatpush1.bf16.msra.mxu1 %v4853_v49  ;;  %4816 = vmatprep.subr.bf16.mxu0 %v5226_v26  ;;  %v4910_v49 = vpack.c.bf16 %v4016_v44, %v4015_v36  ;;  %v4003_v36 = vld [vmem:[%s8355_s3 + $0x6c8] sm:$0xff]  ;;  %v4031_v44 = vld [vmem:[%s8355_s3 + $0x798] sm:$0xff] }
 0x20a   :  { %4855 = vmatprep.subr.bf16.mxu1 %v5226_v26 }
 0x20c   :  { %4818 = vmatpush1.bf16.msra.mxu0 %v4817_v41  ;;  %v3990_v41 = vld [vmem:[%s8355_s3 + $0x660] sm:$0xff] }
 0x20d   :  { %4857 = vmatpush1.bf16.msra.mxu1 %v4856_v15  ;;  %4819 = vmatprep.subr.bf16.mxu0 %v5226_v26  ;;  %v3991_v15 = vld [vmem:[%s8355_s3 + $0x668] sm:$0xff] }
 0x20e   :  { %4858 = vmatprep.subr.bf16.mxu1 %v5226_v26  ;;  %v4877_v13 = vpack.c.bf16 %v3991_v15, %v3990_v41  ;;  %v4006_v41 = vld [vmem:[%s8355_s3 + $0x6e0] sm:$0xff]  ;;  %v4007_v15 = vld [vmem:[%s8355_s3 + $0x6e8] sm:$0xff] }
 0x210   :  { %4821 = vmatpush1.bf16.msra.mxu0 %v4820_v19  ;;  %v4021_v19 = vld [vmem:[%s8355_s3 + $0x748] sm:$0xff] }
 0x211   :  { %4860 = vmatpush1.bf16.msra.mxu1 %v4859_v56  ;;  %4822 = vmatprep.subr.bf16.mxu0 %v5226_v26  ;;  %v4022_v56 = vld [vmem:[%s8355_s3 + $0x750] sm:$0xff] }
 0x212   :  { %4861 = vmatprep.subr.bf16.mxu1 %v5226_v26  ;;  %v4919_v0 = vpack.c.bf16 %v4022_v56, %v4021_v19  ;;  %v4904_v19 = vpack.c.bf16 %v4009_v60, %v4008_v24  ;;  %v4067_v56 = vld [vmem:[%s8355_s3 + $0x898] sm:$0xff]  ;;  %v4082_v24 = vld [vmem:[%s8355_s3 + $0x910] sm:$0xff] }
 0x214   :  { %4824 = vmatpush1.bf16.msra.mxu0 %v4823_v62  ;;  %v4023_v62 = vld [vmem:[%s8355_s3 + $0x758] sm:$0xff] }
 0x215   :  { %4863 = vmatpush1.bf16.msra.mxu1 %v4862_v43  ;;  %4825 = vmatprep.subr.bf16.mxu0 %v5226_v26  ;;  %v4024_v43 = vld [vmem:[%s8355_s3 + $0x760] sm:$0xff] }
 0x216   :  { %4864 = vmatprep.subr.bf16.mxu1 %v5226_v26  ;;  %v4922_v5 = vpack.c.bf16 %v4024_v43, %v4023_v62  ;;  %v4041_v62 = vld [vmem:[%s8355_s3 + $0x7d8] sm:$0xff]  ;;  %v4069_v43 = vld [vmem:[%s8355_s3 + $0x8a8] sm:$0xff] }
 0x217   :  { %v4943_v7 = vpack.c.bf16 %v4041_v62, %v4040_v3 }
 0x218   :  { %4827 = vmatpush1.bf16.msra.mxu0 %v4826_v32  ;;  %v4025_v32 = vld [vmem:[%s8355_s3 + $0x768] sm:$0xff] }
 0x219   :  { %4866 = vmatpush1.bf16.msra.mxu1 %v4865_v18  ;;  %4828 = vmatprep.subr.bf16.mxu0 %v5226_v26  ;;  %v4026_v18 = vld [vmem:[%s8355_s3 + $0x770] sm:$0xff] }
 0x21a   :  { %4867 = vmatprep.subr.bf16.mxu1 %v5226_v26  ;;  %v4925_v10 = vpack.c.bf16 %v4026_v18, %v4025_v32  ;;  %v4042_v32 = vld [vmem:[%s8355_s3 + $0x7e0] sm:$0xff]  ;;  %v4043_v18 = vld [vmem:[%s8355_s3 + $0x7e8] sm:$0xff] }
 0x21c   :  { %4830 = vmatpush1.bf16.msra.mxu0 %v4829_v20  ;;  %v4027_v20 = vld [vmem:[%s8355_s3 + $0x778] sm:$0xff] }
 0x21d   :  { %4869 = vmatpush1.bf16.msra.mxu1 %v4868_v61  ;;  %4831 = vmatprep.subr.bf16.mxu0 %v5226_v26  ;;  %v4028_v61 = vld [vmem:[%s8355_s3 + $0x780] sm:$0xff] }
 0x21e   :  { %2432 = vmatprep.subr.mxu1 %v8391_v34  ;;  %v4928_v38 = vpack.c.bf16 %v4028_v61, %v4027_v20  ;;  %v4949_v20 = vpack.c.bf16 %v4045_v50, %v4044_v63  ;;  %v4060_v50 = vld [vmem:[%s8355_s3 + $0x870] sm:$0xff] }
 0x220   :  { %4833 = vmatpush1.bf16.msra.mxu0 %v4832_v28  ;;  %v4000_v28 = vld [vmem:[%s8355_s3 + $0x6b0] sm:$0xff] }
 0x221   :  { %3984 = vmatpush1.msk.msra.mxu1 %vm84_vm1, %v3983_v17  ;;  %2329 = vmatprep.subr.mxu0 %v8391_v34  ;;  %v4030_v17 = vld [vmem:[%s8355_s3 + $0x790] sm:$0xff] }
 0x222   :  { %2449 = vmatmul.mubr.f32.vlgmr.msra.gmra.mrb[22].mxu1 %v6900_v45  ;;  %4906 = vmatprep.subr.bf16.mxu1 %v5226_v26  ;;  %v4017_v45 = vld [vmem:[%s8355_s3 + $0x728] sm:$0xff]  ;;  %v4931_v8 = vpack.c.bf16 %v4030_v17, %v4029_v29 }
 0x223   :  { %4908 = vmatpush1.bf16.msra.mxu1 %v4907_v23  ;;  %4039 = vmatprep.mubr.msk.f32.mxu1 %vm1684_vm3, %v6911_v30  ;;  %v4018_v30 = vld [vmem:[%s8355_s3 + $0x730] sm:$0xff]  ;;  %v4892_v23 = vpack.c.bf16 %v4001_v51, %v4000_v28  ;;  %v4075_v28 = vld [vmem:[%s8355_s3 + $0x8d8] sm:$0xff]  ;;  %v4076_v51 = vld [vmem:[%s8355_s3 + $0x8e0] sm:$0xff] }
 0x224   :  { %3957 = vmatpush1.msk.msra.mxu0 %vm84_vm1, %v3956_v11  ;;  %4909 = vmatprep.subr.bf16.mxu1 %v5226_v26  ;;  %v4913_v39 = vpack.c.bf16 %v4018_v30, %v4017_v45  ;;  %v4032_v11 = vld [vmem:[%s8355_s3 + $0x7a0] sm:$0xff]  ;;  %v4033_v45 = vld [vmem:[%s8355_s3 + $0x7a8] sm:$0xff]  ;;  %v4034_v30 = vld [vmem:[%s8355_s3 + $0x7b0] sm:$0xff] }
 0x225   :  { %2346 = vmatmul.mubr.f32.vlgmr.msra.gmra.mrb[22].mxu0 %v6917_v22  ;;  %4870 = vmatprep.subr.bf16.mxu0 %v5226_v26  ;;  %v4019_v22 = vld [vmem:[%s8355_s3 + $0x738] sm:$0xff] }
 0x226   :  { %4872 = vmatpush1.bf16.msra.mxu0 %v4871_v25  ;;  %4012 = vmatprep.mubr.msk.f32.mxu0 %vm1684_vm3, %v6925_v47  ;;  %v4020_v47 = vld [vmem:[%s8355_s3 + $0x740] sm:$0xff]  ;;  %v4895_v25 = vpack.c.bf16 %v4003_v36, %v4002_v6  ;;  %v4991_v6 = vpack.c.bf16 %v4076_v51, %v4075_v28  ;;  %v4048_v36 = vld [vmem:[%s8355_s3 + $0x810] sm:$0xff]  ;;  %v4063_v28 = vld [vmem:[%s8355_s3 + $0x888] sm:$0xff] }
 0x227   :  { %4911 = vmatpush1.bf16.msra.mxu1 %v4910_v49  ;;  %4873 = vmatprep.subr.bf16.mxu0 %v5226_v26  ;;  %v4916_v16 = vpack.c.bf16 %v4020_v47, %v4019_v22  ;;  %v4934_v49 = vpack.c.bf16 %v4032_v11, %v4031_v44  ;;  %v4035_v22 = vld [vmem:[%s8355_s3 + $0x7b8] sm:$0xff]  ;;  %v4036_v47 = vld [vmem:[%s8355_s3 + $0x7c0] sm:$0xff] }
 0x228   :  { %4912 = vmatprep.subr.bf16.mxu1 %v5226_v26  ;;  %v4049_v44 = vld [vmem:[%s8355_s3 + $0x818] sm:$0xff] }
 0x22a   :  { %4875 = vmatpush1.bf16.msra.mxu0 %v4874_v58  ;;  %v4898_v58 = vpack.c.bf16 %v4005_v57, %v4004_v33  ;;  %v4078_v33 = vld [vmem:[%s8355_s3 + $0x8f0] sm:$0xff]  ;;  %v4955_v57 = vpack.c.bf16 %v4049_v44, %v4048_v36  ;;  %v4095_v36 = vld [vmem:[%s8355_s3 + $0x968] sm:$0xff]  ;;  %v4123_v44 = vld [vmem:[%s8355_s3 + $0xa38] sm:$0xff] }
 0x22b   :  { %4914 = vmatpush1.bf16.msra.mxu1 %v4913_v39  ;;  %4876 = vmatprep.subr.bf16.mxu0 %v5226_v26  ;;  %v4937_v39 = vpack.c.bf16 %v4034_v30, %v4033_v45  ;;  %v4050_v30 = vld [vmem:[%s8355_s3 + $0x820] sm:$0xff] }
 0x22c   :  { %4915 = vmatprep.subr.bf16.mxu1 %v5226_v26 }
 0x22e   :  { %4878 = vmatpush1.bf16.msra.mxu0 %v4877_v13  ;;  %v4901_v13 = vpack.c.bf16 %v4007_v15, %v4006_v41  ;;  %v4080_v41 = vld [vmem:[%s8355_s3 + $0x900] sm:$0xff] }
 0x22f   :  { %4917 = vmatpush1.bf16.msra.mxu1 %v4916_v16  ;;  %4879 = vmatprep.subr.bf16.mxu0 %v5226_v26  ;;  %v4940_v16 = vpack.c.bf16 %v4036_v47, %v4035_v22  ;;  %v4052_v47 = vld [vmem:[%s8355_s3 + $0x830] sm:$0xff] }
 0x230   :  { %4918 = vmatprep.subr.bf16.mxu1 %v5226_v26 }
 0x232   :  { %4881 = vmatpush1.bf16.msra.mxu0 %v4880_v55  ;;  %v4068_v55 = vld [vmem:[%s8355_s3 + $0x8a0] sm:$0xff] }
 0x233   :  { %4920 = vmatpush1.bf16.msra.mxu1 %v4919_v0  ;;  %4882 = vmatprep.subr.bf16.mxu0 %v5226_v26  ;;  %v4037_v0 = vld [vmem:[%s8355_s3 + $0x7c8] sm:$0x3f]  ;;  %v4979_v1 = vpack.c.bf16 %v4068_v55, %v4067_v56  ;;  %v4054_v56 = vld [vmem:[%s8355_s3 + $0x840] sm:$0xff] }
 0x234   :  { %4921 = vmatprep.subr.bf16.mxu1 %v5226_v26  ;;  %v4055_v55 = vld [vmem:[%s8355_s3 + $0x848] sm:$0xff] }
 0x235   :  { %v4964_v3 = vpack.c.bf16 %v4055_v55, %v4054_v56 }
 0x236   :  { %4884 = vmatpush1.bf16.msra.mxu0 %v4883_v4  ;;  %v4070_v4 = vld [vmem:[%s8355_s3 + $0x8b0] sm:$0xff] }
 0x237   :  { %4923 = vmatpush1.bf16.msra.mxu1 %v4922_v5  ;;  %4885 = vmatprep.subr.bf16.mxu0 %v5226_v26  ;;  %v4010_v5 = vld [vmem:[%s8355_s3 + $0x700] sm:$0x3f]  ;;  %v4982_v42 = vpack.c.bf16 %v4070_v4, %v4069_v43  ;;  %v4056_v43 = vld [vmem:[%s8355_s3 + $0x850] sm:$0xff]  ;;  %v4057_v4 = vld [vmem:[%s8355_s3 + $0x858] sm:$0xff] }
 0x238   :  { %4924 = vmatprep.subr.bf16.mxu1 %v5226_v26 }
 0x23a   :  { %4887 = vmatpush1.bf16.msra.mxu0 %v4886_v9  ;;  %v4946_v9 = vpack.c.bf16 %v4043_v18, %v4042_v32  ;;  %v4058_v18 = vld [vmem:[%s8355_s3 + $0x860] sm:$0xff] }
 0x23b   :  { %4926 = vmatpush1.bf16.msra.mxu1 %v4925_v10  ;;  %4888 = vmatprep.subr.bf16.mxu0 %v5226_v26 }
 0x23c   :  { %4927 = vmatprep.subr.bf16.mxu1 %v5226_v26 }
 0x23e   :  { %4890 = vmatpush1.bf16.msra.mxu0 %v4889_v12  ;;  %v4046_v12 = vld [vmem:[%s8355_s3 + $0x800] sm:$0xff] }
 0x23f   :  { %4929 = vmatpush1.bf16.msra.mxu1 %v4928_v38  ;;  %4891 = vmatprep.subr.bf16.mxu0 %v5226_v26  ;;  %v4047_v38 = vld [vmem:[%s8355_s3 + $0x808] sm:$0xff] }
 0x240   :  { %4930 = vmatprep.subr.bf16.mxu1 %v5226_v26 }
 0x242   :  { %4893 = vmatpush1.bf16.msra.mxu0 %v4892_v23  ;;  %v4952_v23 = vpack.c.bf16 %v4047_v38, %v4046_v12  ;;  %v4062_v38 = vld [vmem:[%s8355_s3 + $0x880] sm:$0xff] }
 0x243   :  { %4932 = vmatpush1.bf16.msra.mxu1 %v4931_v8  ;;  %4894 = vmatprep.subr.bf16.mxu0 %v5226_v26  ;;  %v4976_v51 = vpack.c.bf16 %v4063_v28, %v4062_v38  ;;  %v4108_v38 = vld [vmem:[%s8355_s3 + $0x9d0] sm:$0xff]  ;;  %v4109_v28 = vld [vmem:[%s8355_s3 + $0x9d8] sm:$0xff] }
 0x244   :  { %4933 = vmatprep.subr.bf16.mxu1 %v5226_v26 }
 0x246   :  { %4896 = vmatpush1.bf16.msra.mxu0 %v4895_v25 }
 0x247   :  { %4935 = vmatpush1.bf16.msra.mxu1 %v4934_v49  ;;  %4897 = vmatprep.subr.bf16.mxu0 %v5226_v26  ;;  %v4077_v49 = vld [vmem:[%s8355_s3 + $0x8e8] sm:$0xff] }
 0x248   :  { %4936 = vmatprep.subr.bf16.mxu1 %v5226_v26  ;;  %v4994_v45 = vpack.c.bf16 %v4078_v33, %v4077_v49  ;;  %v4064_v49 = vld [vmem:[%s8355_s3 + $0x890] sm:$0x3f] }
 0x24a   :  { %4899 = vmatpush1.bf16.msra.mxu0 %v4898_v58  ;;  %v4051_v58 = vld [vmem:[%s8355_s3 + $0x828] sm:$0xff] }
 0x24b   :  { %4938 = vmatpush1.bf16.msra.mxu1 %v4937_v39  ;;  %4900 = vmatprep.subr.bf16.mxu0 %v5226_v26  ;;  %v4079_v39 = vld [vmem:[%s8355_s3 + $0x8f8] sm:$0xff]  ;;  %v4958_v15 = vpack.c.bf16 %v4051_v58, %v4050_v30 }
 0x24c   :  { %4939 = vmatprep.subr.bf16.mxu1 %v5226_v26  ;;  %v4997_v22 = vpack.c.bf16 %v4080_v41, %v4079_v39  ;;  %v4097_v30 = vld [vmem:[%s8355_s3 + $0x978] sm:$0xff]  ;;  %v4098_v41 = vld [vmem:[%s8355_s3 + $0x980] sm:$0xff] }
 0x24e   :  { %4902 = vmatpush1.bf16.msra.mxu0 %v4901_v13  ;;  %v4053_v13 = vld [vmem:[%s8355_s3 + $0x838] sm:$0xff] }
 0x24f   :  { %4941 = vmatpush1.bf16.msra.mxu1 %v4940_v16  ;;  %4903 = vmatprep.subr.bf16.mxu0 %v5226_v26  ;;  %v4081_v16 = vld [vmem:[%s8355_s3 + $0x908] sm:$0xff]  ;;  %v4961_v60 = vpack.c.bf16 %v4053_v13, %v4052_v47  ;;  %v4100_v13 = vld [vmem:[%s8355_s3 + $0x990] sm:$0xff] }
 0x250   :  { %2638 = vmatprep.subr.mxu1 %v8391_v34 }
 0x252   :  { %4905 = vmatpush1.bf16.msra.mxu0 %v4904_v19  ;;  %v5000_v19 = vpack.c.bf16 %v4082_v24, %v4081_v16  ;;  %v4101_v16 = vld [vmem:[%s8355_s3 + $0x998] sm:$0xff]  ;;  %v4129_v24 = vld [vmem:[%s8355_s3 + $0xa68] sm:$0xff] }
 0x253   :  { %4038 = vmatpush1.msk.msra.mxu1 %vm84_vm1, %v4037_v0  ;;  %2535 = vmatprep.subr.mxu0 %v8391_v34  ;;  %v4083_v0 = vld [vmem:[%s8355_s3 + $0x918] sm:$0xff]  ;;  %v5024_v55 = vpack.c.bf16 %v4101_v16, %v4100_v13 }
 0x254   :  { %2655 = vmatmul.mubr.f32.vlgmr.msra.gmra.mrb[24].mxu1 %v6931_v27  ;;  %4978 = vmatprep.subr.bf16.mxu1 %v5226_v26  ;;  %v4071_v27 = vld [vmem:[%s8355_s3 + $0x8b8] sm:$0xff] }
 0x255   :  { %4980 = vmatpush1.bf16.msra.mxu1 %v4979_v1  ;;  %4093 = vmatprep.mubr.msk.f32.mxu1 %vm1684_vm3, %v6965_v35  ;;  %v4072_v35 = vld [vmem:[%s8355_s3 + $0x8c0] sm:$0xff]  ;;  %v4175_v16 = vld [vmem:[%s8355_s3 + $0xbb8] sm:$0xff] }
 0x256   :  { %4011 = vmatpush1.msk.msra.mxu0 %vm84_vm1, %v4010_v5  ;;  %4981 = vmatprep.subr.bf16.mxu1 %v5226_v26  ;;  %v4985_v10 = vpack.c.bf16 %v4072_v35, %v4071_v27  ;;  %v4084_v1 = vld [vmem:[%s8355_s3 + $0x920] sm:$0xff]  ;;  %v4085_v5 = vld [vmem:[%s8355_s3 + $0x928] sm:$0xff]  ;;  %v4087_v35 = vld [vmem:[%s8355_s3 + $0x938] sm:$0xff] }
 0x257   :  { %2552 = vmatmul.mubr.f32.vlgmr.msra.gmra.mrb[24].mxu0 %v6942_v31  ;;  %4942 = vmatprep.subr.bf16.mxu0 %v5226_v26  ;;  %v4073_v31 = vld [vmem:[%s8355_s3 + $0x8c8] sm:$0xff]  ;;  %v5003_v62 = vpack.c.bf16 %v4084_v1, %v4083_v0 }
 0x258   :  { %4944 = vmatpush1.bf16.msra.mxu0 %v4943_v7  ;;  %4066 = vmatprep.mubr.msk.f32.mxu0 %vm1684_vm3, %v6977_v52  ;;  %v4074_v52 = vld [vmem:[%s8355_s3 + $0x8d0] sm:$0xff]  ;;  %v4059_v27 = vld [vmem:[%s8355_s3 + $0x868] sm:$0xff] }
 0x259   :  { %4983 = vmatpush1.bf16.msra.mxu1 %v4982_v42  ;;  %4945 = vmatprep.subr.bf16.mxu0 %v5226_v26  ;;  %v4988_v61 = vpack.c.bf16 %v4074_v52, %v4073_v31  ;;  %v1833_v29 = vpop.f32.mrb[16].mxu1  ;;  %v4086_v7 = vld [vmem:[%s8355_s3 + $0x930] sm:$0xff]  ;;  %v4967_v42 = vpack.c.bf16 %v4057_v4, %v4056_v43  ;;  %v4061_v31 = vld [vmem:[%s8355_s3 + $0x878] sm:$0xff]  ;;  %v4089_v52 = vld [vmem:[%s8355_s3 + $0x948] sm:$0xff] }
 0x25a   :  { %4984 = vmatprep.subr.bf16.mxu1 %v5226_v26  ;;  %v1835_v17 = vpop.f32.mrb[17].mxu1  ;;  %v5006_v32 = vpack.c.bf16 %v4086_v7, %v4085_v5  ;;  %v4131_v5 = vld [vmem:[%s8355_s3 + $0xa78] sm:$0xff]  ;;  %v4132_v7 = vld [vmem:[%s8355_s3 + $0xa80] sm:$0xff] }
 0x25b   :  { %v1757_v8 = vpop.f32.mrb[16].mxu0  ;;  %v4122_v17 = vld [vmem:[%s8355_s3 + $0xa30] sm:$0xff] }
 0x25c   :  { %4947 = vmatpush1.bf16.msra.mxu0 %v4946_v9  ;;  %v7748_v11 = vadd.f32 %v1833_v29, %v1757_v8  ;;  %v1759_v25 = vpop.f32.mrb[17].mxu0  ;;  %v4088_v9 = vld [vmem:[%s8355_s3 + $0x940] sm:$0xff]  ;;  %v4121_v29 = vld [vmem:[%s8355_s3 + $0xa28] sm:$0xff] }
 0x25d   :  { %4986 = vmatpush1.bf16.msra.mxu1 %v4985_v10  ;;  %4948 = vmatprep.subr.bf16.mxu0 %v5226_v26  ;;  %v4970_v10 = vpack.c.bf16 %v4059_v27, %v4058_v18  ;;  %v5009_v63 = vpack.c.bf16 %v4088_v9, %v4087_v35  ;;  %v5051_v8 = vpack.c.bf16 %v4122_v17, %v4121_v29  ;;  %v4124_v25 = vld [vmem:[%s8355_s3 + $0xa40] sm:$0xff]  ;;  %v4105_v27 = vld [vmem:[%s8355_s3 + $0x9b8] sm:$0xff]  ;;  %v4133_v35 = vld [vmem:[%s8355_s3 + $0xa88] sm:$0xff] }
 0x25e   :  { %4987 = vmatprep.subr.bf16.mxu1 %v5226_v26  ;;  %v5066_v18 = vpack.c.bf16 %v4132_v7, %v4131_v5  ;;  %v4134_v9 = vld [vmem:[%s8355_s3 + $0xa90] sm:$0xff]  ;;  %v5036_v17 = vpack.c.bf16 %v4109_v28, %v4108_v38  ;;  %v4151_v5 = vld [vmem:[%s8355_s3 + $0xb08] sm:$0xff]  ;;  %v4157_v38 = vld [vmem:[%s8355_s3 + $0xb38] sm:$0xff] }
 0x25f   :  { %v4138_v29 = vld [vmem:[%s8355_s3 + $0xab0] sm:$0xff] }
 0x260   :  { %4950 = vmatpush1.bf16.msra.mxu0 %v4949_v20  ;;  %v4090_v20 = vld [vmem:[%s8355_s3 + $0x950] sm:$0xff] }
 0x261   :  { %4989 = vmatpush1.bf16.msra.mxu1 %v4988_v61  ;;  %4951 = vmatprep.subr.bf16.mxu0 %v5226_v26  ;;  %v4973_v61 = vpack.c.bf16 %v4061_v31, %v4060_v50  ;;  %v5012_v12 = vpack.c.bf16 %v4090_v20, %v4089_v52  ;;  %v4106_v50 = vld [vmem:[%s8355_s3 + $0x9c0] sm:$0xff]  ;;  %v4107_v31 = vld [vmem:[%s8355_s3 + $0x9c8] sm:$0xff]  ;;  %v4135_v52 = vld [vmem:[%s8355_s3 + $0xa98] sm:$0xff] }
 0x262   :  { %4990 = vmatprep.subr.bf16.mxu1 %v5226_v26  ;;  %v4136_v20 = vld [vmem:[%s8355_s3 + $0xaa0] sm:$0xff] }
 0x264   :  { %4953 = vmatpush1.bf16.msra.mxu0 %v4952_v23  ;;  %v4091_v23 = vld [vmem:[%s8355_s3 + $0x958] sm:$0x3f] }
 0x265   :  { %4992 = vmatpush1.bf16.msra.mxu1 %v4991_v6  ;;  %4954 = vmatprep.subr.bf16.mxu0 %v5226_v26  ;;  %v4094_v6 = vld [vmem:[%s8355_s3 + $0x960] sm:$0xff] }
 0x266   :  { %4993 = vmatprep.subr.bf16.mxu1 %v5226_v26  ;;  %v5015_v33 = vpack.c.bf16 %v4095_v36, %v4094_v6  ;;  %v4111_v6 = vld [vmem:[%s8355_s3 + $0x9e8] sm:$0xff]  ;;  %v4139_v36 = vld [vmem:[%s8355_s3 + $0xab8] sm:$0xff] }
 0x268   :  { %4956 = vmatpush1.bf16.msra.mxu0 %v4955_v57  ;;  %v5054_v57 = vpack.c.bf16 %v4124_v25, %v4123_v44  ;;  %v4140_v44 = vld [vmem:[%s8355_s3 + $0xac0] sm:$0xff] }
 0x269   :  { %4995 = vmatpush1.bf16.msra.mxu1 %v4994_v45  ;;  %4957 = vmatprep.subr.bf16.mxu0 %v5226_v26  ;;  %v4096_v45 = vld [vmem:[%s8355_s3 + $0x970] sm:$0xff] }
 0x26a   :  { %4996 = vmatprep.subr.bf16.mxu1 %v5226_v26  ;;  %v5018_v58 = vpack.c.bf16 %v4097_v30, %v4096_v45  ;;  %v4141_v45 = vld [vmem:[%s8355_s3 + $0xac8] sm:$0xff]  ;;  %v4142_v30 = vld [vmem:[%s8355_s3 + $0xad0] sm:$0xff] }
 0x26c   :  { %4959 = vmatpush1.bf16.msra.mxu0 %v4958_v15  ;;  %v4099_v15 = vld [vmem:[%s8355_s3 + $0x988] sm:$0xff] }
 0x26d   :  { %4998 = vmatpush1.bf16.msra.mxu1 %v4997_v22  ;;  %4960 = vmatprep.subr.bf16.mxu0 %v5226_v26  ;;  %v5021_v22 = vpack.c.bf16 %v4099_v15, %v4098_v41  ;;  %v4143_v41 = vld [vmem:[%s8355_s3 + $0xad8] sm:$0xff]  ;;  %v4144_v15 = vld [vmem:[%s8355_s3 + $0xae0] sm:$0xff] }
 0x26e   :  { %4999 = vmatprep.subr.bf16.mxu1 %v5226_v26 }
 0x270   :  { %4962 = vmatpush1.bf16.msra.mxu0 %v4961_v60  ;;  %v4130_v60 = vld [vmem:[%s8355_s3 + $0xa70] sm:$0xff] }
 0x271   :  { %5001 = vmatpush1.bf16.msra.mxu1 %v5000_v19  ;;  %4963 = vmatprep.subr.bf16.mxu0 %v5226_v26  ;;  %v5063_v1 = vpack.c.bf16 %v4130_v60, %v4129_v24  ;;  %v4176_v24 = vld [vmem:[%s8355_s3 + $0xbc0] sm:$0xff]  ;;  %v4145_v60 = vld [vmem:[%s8355_s3 + $0xae8] sm:$0x3f] }
 0x272   :  { %5002 = vmatprep.subr.bf16.mxu1 %v5226_v26 }
 0x274   :  { %4965 = vmatpush1.bf16.msra.mxu0 %v4964_v3  ;;  %v4102_v3 = vld [vmem:[%s8355_s3 + $0x9a0] sm:$0xff] }
 0x275   :  { %5004 = vmatpush1.bf16.msra.mxu1 %v5003_v62  ;;  %4966 = vmatprep.subr.bf16.mxu0 %v5226_v26  ;;  %v4103_v62 = vld [vmem:[%s8355_s3 + $0x9a8] sm:$0xff] }
 0x276   :  { %5005 = vmatprep.subr.bf16.mxu1 %v5226_v26 }
 0x278   :  { %4968 = vmatpush1.bf16.msra.mxu0 %v4967_v42  ;;  %v5027_v42 = vpack.c.bf16 %v4103_v62, %v4102_v3  ;;  %v4118_v3 = vld [vmem:[%s8355_s3 + $0xa20] sm:$0x3f] }
 0x279   :  { %5007 = vmatpush1.bf16.msra.mxu1 %v5006_v32  ;;  %4969 = vmatprep.subr.bf16.mxu0 %v5226_v26 }
 0x27a   :  { %5008 = vmatprep.subr.bf16.mxu1 %v5226_v26 }
 0x27c   :  { %4971 = vmatpush1.bf16.msra.mxu0 %v4970_v10 }
 0x27d   :  { %5010 = vmatpush1.bf16.msra.mxu1 %v5009_v63  ;;  %4972 = vmatprep.subr.bf16.mxu0 %v5226_v26  ;;  %v5069_v63 = vpack.c.bf16 %v4134_v9, %v4133_v35  ;;  %v4154_v9 = vld [vmem:[%s8355_s3 + $0xb20] sm:$0xff] }
 0x27e   :  { %5011 = vmatprep.subr.bf16.mxu1 %v5226_v26 }
 0x280   :  { %4974 = vmatpush1.bf16.msra.mxu0 %v4973_v61  ;;  %v5033_v61 = vpack.c.bf16 %v4107_v31, %v4106_v50  ;;  %v4184_v50 = vld [vmem:[%s8355_s3 + $0xc00] sm:$0xff] }
 0x281   :  { %5013 = vmatpush1.bf16.msra.mxu1 %v5012_v12  ;;  %4975 = vmatprep.subr.bf16.mxu0 %v5226_v26  ;;  %v5072_v12 = vpack.c.bf16 %v4136_v20, %v4135_v52 }
 0x282   :  { %2844 = vmatprep.subr.mxu1 %v8391_v34 }
 0x284   :  { %4977 = vmatpush1.bf16.msra.mxu0 %v4976_v51  ;;  %v4137_v51 = vld [vmem:[%s8355_s3 + $0xaa8] sm:$0xff] }
 0x285   :  { %4092 = vmatpush1.msk.msra.mxu1 %vm84_vm1, %v4091_v23  ;;  %2741 = vmatprep.subr.mxu0 %v8391_v34  ;;  %v5075_v23 = vpack.c.bf16 %v4138_v29, %v4137_v51  ;;  %v4185_v51 = vld [vmem:[%s8355_s3 + $0xc08] sm:$0xff]  ;;  %v4186_v29 = vld [vmem:[%s8355_s3 + $0xc10] sm:$0xff] }
 0x286   :  { %2861 = vmatmul.mubr.f32.vlgmr.msra.gmra.mrb[26].mxu1 %v6971_v21  ;;  %5050 = vmatprep.subr.bf16.mxu1 %v5226_v26  ;;  %v4125_v21 = vld [vmem:[%s8355_s3 + $0xa48] sm:$0xff] }
 0x287   :  { %5052 = vmatpush1.bf16.msra.mxu1 %v5051_v8  ;;  %4147 = vmatprep.mubr.msk.f32.mxu1 %vm1684_vm3, %v6953_v48  ;;  %v4126_v48 = vld [vmem:[%s8355_s3 + $0xa50] sm:$0xff]  ;;  %v4110_v8 = vld [vmem:[%s8355_s3 + $0x9e0] sm:$0xff] }
 0x288   :  { %4065 = vmatpush1.msk.msra.mxu0 %vm84_vm1, %v4064_v49  ;;  %5053 = vmatprep.subr.bf16.mxu1 %v5226_v26  ;;  %v5057_v39 = vpack.c.bf16 %v4126_v48, %v4125_v21  ;;  %v5039_v25 = vpack.c.bf16 %v4111_v6, %v4110_v8  ;;  %v5078_v49 = vpack.c.bf16 %v4140_v44, %v4139_v36  ;;  %v4158_v36 = vld [vmem:[%s8355_s3 + $0xb40] sm:$0xff]  ;;  %v4159_v44 = vld [vmem:[%s8355_s3 + $0xb48] sm:$0xff] }
 0x289   :  { %2758 = vmatmul.mubr.f32.vlgmr.msra.gmra.mrb[26].mxu0 %v6980_v53  ;;  %5014 = vmatprep.subr.bf16.mxu0 %v5226_v26  ;;  %v4127_v53 = vld [vmem:[%s8355_s3 + $0xa58] sm:$0xff]  ;;  %v5081_v48 = vpack.c.bf16 %v4142_v30, %v4141_v45  ;;  %v5138_v6 = vpack.c.bf16 %v4186_v29, %v4185_v51  ;;  %v4160_v45 = vld [vmem:[%s8355_s3 + $0xb50] sm:$0xff] }
 0x28a   :  { %5016 = vmatpush1.bf16.msra.mxu0 %v5015_v33  ;;  %4120 = vmatprep.mubr.msk.f32.mxu0 %vm1684_vm3, %v6987_v14  ;;  %v4128_v14 = vld [vmem:[%s8355_s3 + $0xa60] sm:$0xff]  ;;  %v4112_v33 = vld [vmem:[%s8355_s3 + $0x9f0] sm:$0xff]  ;;  %v4161_v30 = vld [vmem:[%s8355_s3 + $0xb58] sm:$0xff] }
 0x28b   :  { %5055 = vmatpush1.bf16.msra.mxu1 %v5054_v57  ;;  %5017 = vmatprep.subr.bf16.mxu0 %v5226_v26  ;;  %v5060_v47 = vpack.c.bf16 %v4128_v14, %v4127_v53  ;;  %v4113_v57 = vld [vmem:[%s8355_s3 + $0x9f8] sm:$0xff]  ;;  %v5084_v14 = vpack.c.bf16 %v4144_v15, %v4143_v41  ;;  %v4162_v41 = vld [vmem:[%s8355_s3 + $0xb60] sm:$0xff]  ;;  %v4163_v15 = vld [vmem:[%s8355_s3 + $0xb68] sm:$0xff] }
 0x28c   :  { %5056 = vmatprep.subr.bf16.mxu1 %v5226_v26  ;;  %v5042_v21 = vpack.c.bf16 %v4113_v57, %v4112_v33  ;;  %v5102_v33 = vpack.c.bf16 %v4159_v44, %v4158_v36  ;;  %v3294_v29 = vld [vmem:[%s8357_s5 + $0x30] sm:$0xff] }
 0x28e   :  { %5019 = vmatpush1.bf16.msra.mxu0 %v5018_v58  ;;  %v4114_v58 = vld [vmem:[%s8355_s3 + $0xa00] sm:$0xff] }
 0x28f   :  { %5058 = vmatpush1.bf16.msra.mxu1 %v5057_v39  ;;  %5020 = vmatprep.subr.bf16.mxu0 %v5226_v26  ;;  %v4115_v39 = vld [vmem:[%s8355_s3 + $0xa08] sm:$0xff] }
 0x290   :  { %5059 = vmatprep.subr.bf16.mxu1 %v5226_v26  ;;  %v5045_v53 = vpack.c.bf16 %v4115_v39, %v4114_v58  ;;  %v5105_v58 = vpack.c.bf16 %v4161_v30, %v4160_v45  ;;  %v3298_v45 = vld [vmem:[%s8357_s5 + $0x50] sm:$0xff]  ;;  %v3299_v30 = vld [vmem:[%s8357_s5 + $0x58] sm:$0xff] }
 0x291   :  { %v2038_v19 = vpop.f32.mrb[18].mxu1 }
 0x292   :  { %5022 = vmatpush1.bf16.msra.mxu0 %v5021_v22  ;;  %v2040_v56 = vpop.f32.mrb[19].mxu1  ;;  %v4116_v22 = vld [vmem:[%s8355_s3 + $0xa10] sm:$0xff] }
 0x293   :  { %v1935_v0 = vpop.f32.mrb[18].mxu0  ;;  %5061 = vmatpush1.bf16.msra.mxu1 %v5060_v47  ;;  %5023 = vmatprep.subr.bf16.mxu0 %v5226_v26  ;;  %v4117_v47 = vld [vmem:[%s8355_s3 + $0xa18] sm:$0xff]  ;;  %v4148_v56 = vld [vmem:[%s8355_s3 + $0xaf0] sm:$0xff] }
 0x294   :  { %v1939_v43 = vadd.f32 %v1935_v0, %v7748_v11  ;;  %v1937_v4 = vpop.f32.mrb[19].mxu0  ;;  %5062 = vmatprep.subr.bf16.mxu1 %v5226_v26  ;;  %v4104_v11 = vld [vmem:[%s8355_s3 + $0x9b0] sm:$0xff]  ;;  %v5048_v13 = vpack.c.bf16 %v4117_v47, %v4116_v22  ;;  %v4177_v0 = vld [vmem:[%s8355_s3 + $0xbc8] sm:$0xff]  ;;  %v5108_v22 = vpack.c.bf16 %v4163_v15, %v4162_v41 }
 0x295   :  { %v5030_v10 = vpack.c.bf16 %v4105_v27, %v4104_v11  ;;  %v4150_v4 = vld [vmem:[%s8355_s3 + $0xb00] sm:$0xff]  ;;  %v4153_v11 = vld [vmem:[%s8355_s3 + $0xb18] sm:$0xff]  ;;  %v3386_v41 = vld [vmem:[%s8359_s7 + $0x8] sm:$0xff] }
 0x296   :  { %5025 = vmatpush1.bf16.msra.mxu0 %v5024_v55  ;;  %v7942_v32 = vadd.f32 %v2038_v19, %v1939_v43  ;;  %v5123_v19 = vpack.c.bf16 %v4176_v24, %v4175_v16  ;;  %v4149_v55 = vld [vmem:[%s8355_s3 + $0xaf8] sm:$0xff]  ;;  %v5090_v7 = vpack.c.bf16 %v4151_v5, %v4150_v4  ;;  %v4193_v24 = vld [vmem:[%s8355_s3 + $0xc48] sm:$0xff]  ;;  %v4168_v4 = vld [vmem:[%s8355_s3 + $0xb90] sm:$0xff] }
 0x297   :  { %5064 = vmatpush1.bf16.msra.mxu1 %v5063_v1  ;;  %5026 = vmatprep.subr.bf16.mxu0 %v5226_v26  ;;  %v4178_v1 = vld [vmem:[%s8355_s3 + $0xbd0] sm:$0xff]  ;;  %v5087_v62 = vpack.c.bf16 %v4149_v55, %v4148_v56  ;;  %v4165_v16 = vld [vmem:[%s8355_s3 + $0xb78] sm:$0xff]  ;;  %v4166_v55 = vld [vmem:[%s8355_s3 + $0xb80] sm:$0xff] }
 0x298   :  { %5065 = vmatprep.subr.bf16.mxu1 %v5226_v26  ;;  %v5126_v43 = vpack.c.bf16 %v4178_v1, %v4177_v0  ;;  %v4167_v0 = vld [vmem:[%s8355_s3 + $0xb88] sm:$0xff]  ;;  %v4195_v1 = vld [vmem:[%s8355_s3 + $0xc58] sm:$0xff]  ;;  %v3387_v15 = vld [vmem:[%s8359_s7 + $0x10] sm:$0xff] }
 0x299   :  { %v4169_v5 = vld [vmem:[%s8355_s3 + $0xb98] sm:$0xff] }
 0x29a   :  { %5028 = vmatpush1.bf16.msra.mxu0 %v5027_v42 }
 0x29b   :  { %5067 = vmatpush1.bf16.msra.mxu1 %v5066_v18  ;;  %5029 = vmatprep.subr.bf16.mxu0 %v5226_v26  ;;  %v4152_v18 = vld [vmem:[%s8355_s3 + $0xb10] sm:$0xff] }
 0x29c   :  { %5068 = vmatprep.subr.bf16.mxu1 %v5226_v26  ;;  %v5093_v27 = vpack.c.bf16 %v4153_v11, %v4152_v18  ;;  %v4170_v18 = vld [vmem:[%s8355_s3 + $0xba0] sm:$0xff]  ;;  %v4171_v11 = vld [vmem:[%s8355_s3 + $0xba8] sm:$0xff] }
 0x29e   :  { %5031 = vmatpush1.bf16.msra.mxu0 %v5030_v10  ;;  %v4155_v10 = vld [vmem:[%s8355_s3 + $0xb28] sm:$0xff] }
 0x29f   :  { %5070 = vmatpush1.bf16.msra.mxu1 %v5069_v63  ;;  %5032 = vmatprep.subr.bf16.mxu0 %v5226_v26  ;;  %v4183_v63 = vld [vmem:[%s8355_s3 + $0xbf8] sm:$0xff]  ;;  %v5096_v20 = vpack.c.bf16 %v4155_v10, %v4154_v9 }
 0x2a0   :  { %5071 = vmatprep.subr.bf16.mxu1 %v5226_v26 }
 0x2a2   :  { %5034 = vmatpush1.bf16.msra.mxu0 %v5033_v61  ;;  %v5135_v61 = vpack.c.bf16 %v4184_v50, %v4183_v63 }
 0x2a3   :  { %5073 = vmatpush1.bf16.msra.mxu1 %v5072_v12  ;;  %5035 = vmatprep.subr.bf16.mxu0 %v5226_v26  ;;  %v4156_v12 = vld [vmem:[%s8355_s3 + $0xb30] sm:$0xff] }
 0x2a4   :  { %5074 = vmatprep.subr.bf16.mxu1 %v5226_v26  ;;  %v5099_v8 = vpack.c.bf16 %v4157_v38, %v4156_v12  ;;  %v3292_v38 = vld [vmem:[%s8357_s5 + $0x20] sm:$0xff] }
 0x2a6   :  { %5037 = vmatpush1.bf16.msra.mxu0 %v5036_v17 }
 0x2a7   :  { %5076 = vmatpush1.bf16.msra.mxu1 %v5075_v23  ;;  %5038 = vmatprep.subr.bf16.mxu0 %v5226_v26 }
 0x2a8   :  { %5077 = vmatprep.subr.bf16.mxu1 %v5226_v26 }
 0x2aa   :  { %5040 = vmatpush1.bf16.msra.mxu0 %v5039_v25 }
 0x2ab   :  { %5079 = vmatpush1.bf16.msra.mxu1 %v5078_v49  ;;  %5041 = vmatprep.subr.bf16.mxu0 %v5226_v26  ;;  %v4188_v49 = vld [vmem:[%s8355_s3 + $0xc20] sm:$0xff] }
 0x2ac   :  { %5080 = vmatprep.subr.bf16.mxu1 %v5226_v26 }
 0x2ae   :  { %5043 = vmatpush1.bf16.msra.mxu0 %v5042_v21  ;;  %v4189_v21 = vld [vmem:[%s8355_s3 + $0xc28] sm:$0xff] }
 0x2af   :  { %5082 = vmatpush1.bf16.msra.mxu1 %v5081_v48  ;;  %5044 = vmatprep.subr.bf16.mxu0 %v5226_v26  ;;  %v4190_v48 = vld [vmem:[%s8355_s3 + $0xc30] sm:$0xff] }
 0x2b0   :  { %5083 = vmatprep.subr.bf16.mxu1 %v5226_v26  ;;  %v5144_v39 = vpack.c.bf16 %v4190_v48, %v4189_v21  ;;  %v3300_v21 = vld [vmem:[%s8357_s5 + $0x60] sm:$0xff]  ;;  %v5174_v48 = vpack.c.bf16 %v3299_v30, %v3298_v45 }
 0x2b2   :  { %5046 = vmatpush1.bf16.msra.mxu0 %v5045_v53  ;;  %v4191_v53 = vld [vmem:[%s8355_s3 + $0xc38] sm:$0xff] }
 0x2b3   :  { %5085 = vmatpush1.bf16.msra.mxu1 %v5084_v14  ;;  %5047 = vmatprep.subr.bf16.mxu0 %v5226_v26  ;;  %v4192_v14 = vld [vmem:[%s8355_s3 + $0xc40] sm:$0xff] }
 0x2b4   :  { %3050 = vmatprep.subr.mxu1 %v8391_v34  ;;  %v5147_v47 = vpack.c.bf16 %v4192_v14, %v4191_v53 }
 0x2b6   :  { %5049 = vmatpush1.bf16.msra.mxu0 %v5048_v13  ;;  %v4164_v13 = vld [vmem:[%s8355_s3 + $0xb70] sm:$0xff] }
 0x2b7   :  { %4146 = vmatpush1.msk.msra.mxu1 %vm84_vm1, %v4145_v60  ;;  %2947 = vmatprep.subr.mxu0 %v8391_v34  ;;  %v4194_v60 = vld [vmem:[%s8355_s3 + $0xc50] sm:$0xff] }
 0x2b8   :  { %3067 = vmatmul.mubr.f32.vlgmr.msra.gmra.mrb[28].mxu1 %v6990_v54  ;;  %5122 = vmatprep.subr.bf16.mxu1 %v5226_v26  ;;  %v4179_v54 = vld [vmem:[%s8355_s3 + $0xbd8] sm:$0xff]  ;;  %v5150_v56 = vpack.c.bf16 %v4194_v60, %v4193_v24  ;;  %v3302_v24 = vld [vmem:[%s8357_s5 + $0x70] sm:$0xff] }
 0x2b9   :  { %5124 = vmatpush1.bf16.msra.mxu1 %v5123_v19  ;;  %4201 = vmatprep.mubr.msk.f32.mxu1 %vm1684_vm3, %v7023_v59  ;;  %v4180_v59 = vld [vmem:[%s8355_s3 + $0xbe0] sm:$0xff]  ;;  %v5111_v19 = vpack.c.bf16 %v4165_v16, %v4164_v13  ;;  %v3390_v16 = vld [vmem:[%s8359_s7 + $0x28] sm:$0xff] }
 0x2ba   :  { %4119 = vmatpush1.msk.msra.mxu0 %vm84_vm1, %v4118_v3  ;;  %5125 = vmatprep.subr.bf16.mxu1 %v5226_v26  ;;  %v5129_v42 = vpack.c.bf16 %v4180_v59, %v4179_v54  ;;  %v4196_v3 = vld [vmem:[%s8355_s3 + $0xc60] sm:$0xff]  ;;  %v4197_v54 = vld [vmem:[%s8355_s3 + $0xc68] sm:$0xff]  ;;  %v4198_v59 = vld [vmem:[%s8355_s3 + $0xc70] sm:$0xff] }
 0x2bb   :  { %2964 = vmatmul.mubr.f32.vlgmr.msra.gmra.mrb[28].mxu0 %v7003_v40  ;;  %5086 = vmatprep.subr.bf16.mxu0 %v5226_v26  ;;  %v4181_v40 = vld [vmem:[%s8355_s3 + $0xbe8] sm:$0xff]  ;;  %v3389_v13 = vld [vmem:[%s8359_s7 + $0x20] sm:$0xff] }
 0x2bc   :  { %5088 = vmatpush1.bf16.msra.mxu0 %v5087_v62  ;;  %4174 = vmatprep.mubr.msk.f32.mxu0 %vm1684_vm3, %v7032_v46  ;;  %v4182_v46 = vld [vmem:[%s8355_s3 + $0xbf0] sm:$0xff]  ;;  %v5114_v62 = vpack.c.bf16 %v4167_v0, %v4166_v55  ;;  %v5186_v60 = vpack.c.bf16 %v3390_v16, %v3389_v13 }
 0x2bd   :  { %5127 = vmatpush1.bf16.msra.mxu1 %v5126_v43  ;;  %5089 = vmatprep.subr.bf16.mxu0 %v5226_v26  ;;  %v5132_v35 = vpack.c.bf16 %v4182_v46, %v4181_v40  ;;  %v5153_v43 = vpack.c.bf16 %v4196_v3, %v4195_v1  ;;  %v5120_v40 = vpack.c.bf16 %v4171_v11, %v4170_v18  ;;  %v4199_v46 = vld [vmem:[%s8355_s3 + $0xc78] sm:$0x3f] }
 0x2be   :  { %5128 = vmatprep.subr.bf16.mxu1 %v5226_v26 }
 0x2c0   :  { %5091 = vmatpush1.bf16.msra.mxu0 %v5090_v7  ;;  %v5117_v7 = vpack.c.bf16 %v4169_v5, %v4168_v4 }
 0x2c1   :  { %5130 = vmatpush1.bf16.msra.mxu1 %v5129_v42  ;;  %5092 = vmatprep.subr.bf16.mxu0 %v5226_v26  ;;  %v5156_v42 = vpack.c.bf16 %v4198_v59, %v4197_v54 }
 0x2c2   :  { %5131 = vmatprep.subr.bf16.mxu1 %v5226_v26 }
 0x2c3   :  { %v2244_v31 = vpop.f32.mrb[20].mxu1 }
 0x2c4   :  { %5094 = vmatpush1.bf16.msra.mxu0 %v5093_v27  ;;  %v2246_v52 = vpop.f32.mrb[21].mxu1  ;;  %v4172_v27 = vld [vmem:[%s8355_s3 + $0xbb0] sm:$0x3f] }
 0x2c5   :  { %5133 = vmatpush1.bf16.msra.mxu1 %v5132_v35  ;;  %5095 = vmatprep.subr.bf16.mxu0 %v5226_v26  ;;  %v3288_v52 = vld [vmem:[%s8357_s5] sm:$0xff] }
 0x2c6   :  { %v2141_v28 = vpop.f32.mrb[20].mxu0  ;;  %5134 = vmatprep.subr.bf16.mxu1 %v5226_v26 }
 0x2c7   :  { %v2145_v17 = vadd.f32 %v2141_v28, %v7942_v32  ;;  %v2143_v23 = vpop.f32.mrb[21].mxu0  ;;  %v4187_v32 = vld [vmem:[%s8355_s3 + $0xc18] sm:$0xff]  ;;  %v3293_v28 = vld [vmem:[%s8357_s5 + $0x28] sm:$0xff] }
 0x2c8   :  { %5097 = vmatpush1.bf16.msra.mxu0 %v5096_v20  ;;  %v5141_v57 = vpack.c.bf16 %v4188_v49, %v4187_v32  ;;  %v5165_v51 = vpack.c.bf16 %v3293_v28, %v3292_v38 }
 0x2c9   :  { %5136 = vmatpush1.bf16.msra.mxu1 %v5135_v61  ;;  %5098 = vmatprep.subr.bf16.mxu0 %v5226_v26  ;;  %v8136_v25 = vadd.f32 %v2244_v31, %v2145_v17  ;;  %v3291_v61 = vld [vmem:[%s8357_s5 + $0x18] sm:$0xff] }
 0x2ca   :  { %5137 = vmatprep.subr.bf16.mxu1 %v5226_v26  ;;  %v3295_v17 = vld [vmem:[%s8357_s5 + $0x38] sm:$0xff] }
 0x2cb   :  { %v5168_v23 = vpack.c.bf16 %v3295_v17, %v3294_v29 }
 0x2cc   :  { %5100 = vmatpush1.bf16.msra.mxu0 %v5099_v8  ;;  %v3296_v8 = vld [vmem:[%s8357_s5 + $0x40] sm:$0xff] }
 0x2cd   :  { %5139 = vmatpush1.bf16.msra.mxu1 %v5138_v6  ;;  %5101 = vmatprep.subr.bf16.mxu0 %v5226_v26  ;;  %v3297_v6 = vld [vmem:[%s8357_s5 + $0x48] sm:$0xff] }
 0x2ce   :  { %5140 = vmatprep.subr.bf16.mxu1 %v5226_v26  ;;  %v5171_v36 = vpack.c.bf16 %v3297_v6, %v3296_v8 }
 0x2d0   :  { %5103 = vmatpush1.bf16.msra.mxu0 %v5102_v33 }
 0x2d1   :  { %5142 = vmatpush1.bf16.msra.mxu1 %v5141_v57  ;;  %5104 = vmatprep.subr.bf16.mxu0 %v5226_v26 }
 0x2d2   :  { %5143 = vmatprep.subr.bf16.mxu1 %v5226_v26 }
 0x2d4   :  { %5106 = vmatpush1.bf16.msra.mxu0 %v5105_v58  ;;  %v3301_v58 = vld [vmem:[%s8357_s5 + $0x68] sm:$0xff] }
 0x2d5   :  { %5145 = vmatpush1.bf16.msra.mxu1 %v5144_v39  ;;  %5107 = vmatprep.subr.bf16.mxu0 %v5226_v26  ;;  %v3385_v39 = vld [vmem:[%s8359_s7] sm:$0xff]  ;;  %v5177_v53 = vpack.c.bf16 %v3301_v58, %v3300_v21 }
 0x2d6   :  { %5146 = vmatprep.subr.bf16.mxu1 %v5226_v26  ;;  %v5180_v14 = vpack.c.bf16 %v3386_v41, %v3385_v39 }
 0x2d8   :  { %5109 = vmatpush1.bf16.msra.mxu0 %v5108_v22  ;;  %v3388_v22 = vld [vmem:[%s8359_s7 + $0x18] sm:$0xff] }
 0x2d9   :  { %5148 = vmatpush1.bf16.msra.mxu1 %v5147_v47  ;;  %5110 = vmatprep.subr.bf16.mxu0 %v5226_v26  ;;  %v5183_v47 = vpack.c.bf16 %v3388_v22, %v3387_v15 }
 0x2da   :  { %5149 = vmatprep.subr.bf16.mxu1 %v5226_v26 }
 0x2dc   :  { %5112 = vmatpush1.bf16.msra.mxu0 %v5111_v19  ;;  %v3391_v19 = vld [vmem:[%s8359_s7 + $0x30] sm:$0xff] }
 0x2dd   :  { %5151 = vmatpush1.bf16.msra.mxu1 %v5150_v56  ;;  %5113 = vmatprep.subr.bf16.mxu0 %v5226_v26  ;;  %v3392_v56 = vld [vmem:[%s8359_s7 + $0x38] sm:$0xff] }
 0x2de   :  { %5152 = vmatprep.subr.bf16.mxu1 %v5226_v26  ;;  %v5189_v55 = vpack.c.bf16 %v3392_v56, %v3391_v19 }
 0x2e0   :  { %5115 = vmatpush1.bf16.msra.mxu0 %v5114_v62 }
 0x2e1   :  { %5154 = vmatpush1.bf16.msra.mxu1 %v5153_v43  ;;  %5116 = vmatprep.subr.bf16.mxu0 %v5226_v26 }
 0x2e2   :  { %5155 = vmatprep.subr.bf16.mxu1 %v5226_v26 }
 0x2e4   :  { %5118 = vmatpush1.bf16.msra.mxu0 %v5117_v7 }
 0x2e5   :  { %5157 = vmatpush1.bf16.msra.mxu1 %v5156_v42  ;;  %5119 = vmatprep.subr.bf16.mxu0 %v5226_v26 }
 0x2e6   :  { %3256 = vmatprep.subr.mxu1 %v8391_v34 }
 0x2e8   :  { %5121 = vmatpush1.bf16.msra.mxu0 %v5120_v40 }
 0x2e9   :  { %4200 = vmatpush1.msk.msra.mxu1 %vm84_vm1, %v4199_v46  ;;  %3153 = vmatprep.subr.mxu0 %v8391_v34 }
 0x2ea   :  { %3273 = vmatmul.mubr.f32.vlgmr.msra.gmra.mrb[30].mxu1 %v7026_v2  ;;  %5179 = vmatprep.subr.bf16.mxu1 %v5226_v26  ;;  %v3289_v2 = vld [vmem:[%s8357_s5 + $0x8] sm:$0xff] }
 0x2eb   :  { %v5159_v20 = vpack.c.bf16 %v3289_v2, %v3288_v52  ;;  %4291 = vmatprep.mubr.msk.f32.mxu1 %vm5229_vm4, %v8391_v34  ;;  %5181 = vmatpush3.bf16.msra.mxu1 %v5180_v14  ;;  %v3395_v2 = vld [vmem:[%s8359_s7 + $0x50] sm:$0xf] }
 0x2ec   :  { %4173 = vmatpush1.msk.msra.mxu0 %vm84_vm1, %v4172_v27  ;;  %5182 = vmatprep.subr.bf16.mxu1 %v5226_v26 }
 0x2ed   :  { %3170 = vmatmul.mubr.f32.vlgmr.msra.gmra.mrb[30].mxu0 %v7035_v37  ;;  %5158 = vmatprep.subr.bf16.mxu0 %v5226_v26  ;;  %v3290_v37 = vld [vmem:[%s8357_s5 + $0x10] sm:$0xff] }
 0x2ee   :  { %5160 = vmatpush3.bf16.msra.mxu0 %v5159_v20  ;;  %v5162_v12 = vpack.c.bf16 %v3291_v61, %v3290_v37  ;;  %4266 = vmatprep.mubr.msk.f32.mxu0 %vm5229_vm4, %v8391_v34  ;;  %v4203_v37 = vld [vmem:[%s8358_s6] ss:$0 sm:$0xff] }
 0x2ef   :  { %5161 = vmatprep.subr.bf16.mxu0 %v5226_v26  ;;  %5184 = vmatpush3.bf16.msra.mxu1 %v5183_v47 }
 0x2f0   :  { %5185 = vmatprep.subr.bf16.mxu1 %v5226_v26 }
 0x2f2   :  { %5163 = vmatpush3.bf16.msra.mxu0 %v5162_v12 }
 0x2f3   :  { %5164 = vmatprep.subr.bf16.mxu0 %v5226_v26  ;;  %5187 = vmatpush3.bf16.msra.mxu1 %v5186_v60 }
 0x2f4   :  { %5188 = vmatprep.subr.bf16.mxu1 %v5226_v26 }
 0x2f5   :  { %v2450_v35 = vpop.f32.mrb[22].mxu1 }
 0x2f6   :  { %v2452_v9 = vpop.f32.mrb[23].mxu1  ;;  %5166 = vmatpush3.bf16.msra.mxu0 %v5165_v51 }
 0x2f7   :  { %5167 = vmatprep.subr.bf16.mxu0 %v5226_v26  ;;  %5190 = vmatpush3.bf16.msra.mxu1 %v5189_v55 }
 0x2f8   :  { %v2347_v10 = vpop.f32.mrb[22].mxu0  ;;  %5191 = vmatprep.subr.bf16.mxu1 %v5226_v26 }
 0x2f9   :  { %v2351_v63 = vadd.f32 %v2347_v10, %v8136_v25  ;;  %v2349_v50 = vpop.f32.mrb[23].mxu0 }
 0x2fa   :  { %5169 = vmatpush3.bf16.msra.mxu0 %v5168_v23  ;;  %v3393_v50 = vld [vmem:[%s8359_s7 + $0x40] sm:$0xff] }
 0x2fb   :  { %v2454_v31 = vadd.f32 %v2450_v35, %v2351_v63  ;;  %5170 = vmatprep.subr.bf16.mxu0 %v5226_v26 }
 0x2fe   :  { %5172 = vmatpush3.bf16.msra.mxu0 %v5171_v36 }
 0x2ff   :  { %5173 = vmatprep.subr.bf16.mxu0 %v5226_v26 }
 0x302   :  { %5175 = vmatpush3.bf16.msra.mxu0 %v5174_v48 }
 0x303   :  { %5176 = vmatprep.subr.bf16.mxu0 %v5226_v26  ;;  %v4202_v26 = vld [vmem:[%s8356_s4] ss:$0 sm:$0xff] }
 0x306   :  { %5178 = vmatpush3.bf16.msra.mxu0 %v5177_v53 }
 0x307   :  { %4264 = vmatprep.subr.mxu0 %v8391_v34 }
 0x30a   :  { %4265 = vmatpush3.msra.mxu0 %v3302_v24 }
 0x327   :  { %v2656_v44 = vpop.f32.mrb[24].mxu1 }
 0x328   :  { %v2658_v25 = vpop.f32.mrb[25].mxu1 }
 0x32a   :  { %v2553_v32 = vpop.f32.mrb[24].mxu0 }
 0x32b   :  { %v2557_v49 = vadd.f32 %v2553_v32, %v2454_v31  ;;  %v2555_v33 = vpop.f32.mrb[25].mxu0  ;;  %v3394_v31 = vld [vmem:[%s8359_s7 + $0x48] sm:$0xff]  ;;  %s5201_s7 = scalar_lea.vmem %s3490_s28, 32 }
 0x32c   :  { %v5192_v52 = vpack.c.bf16 %v3394_v31, %v3393_v50  ;;  %p5202_p0 = scmp.ne.s32.totalorder %s3490_s28, %s5201_s7  ;;  %p5207_p2 = scmp.lt.s32.totalorder %s5201_s7, %s5201_s7 }
 0x32d   :  { %v2660_v57 = vadd.f32 %v2656_v44, %v2557_v49 }
 0x32e   :  { %5193 = vmatpush3.bf16.msra.mxu1 %v5192_v52  ;;  %p5208_p3 = por %p5207_p2, %p5206_p1 }
 0x32f   :  { %4289 = vmatprep.subr.mxu1 %v8391_v34  ;;  %v4205_v34 = vld [vmem:[%s8360_s8] ss:$0 sm:$0xff] }
 0x330   :  { %p5209_p4 = pnand %p5208_p3, %p5202_p0 }
 0x332   :  { %4290 = vmatpush3.msk.msra.mxu1 %vm3407_vm6, %v3395_v2 }
 0x359   :  { %v2862_v0 = vpop.f32.mrb[26].mxu1 }
 0x35a   :  { %v2864_v1 = vpop.f32.mrb[27].mxu1 }
 0x35c   :  { %v2759_v3 = vpop.f32.mrb[26].mxu0 }
 0x35d   :  { %v2763_v62 = vadd.f32 %v2759_v3, %v2660_v57  ;;  %v2761_v43 = vpop.f32.mrb[27].mxu0 }
 0x35f   :  { %v2866_v4 = vadd.f32 %v2862_v0, %v2763_v62 }
 0x38b   :  { %v3068_v5 = vpop.f32.mrb[28].mxu1 }
 0x38c   :  { %v3070_v54 = vpop.f32.mrb[29].mxu1 }
 0x38e   :  { %v2965_v59 = vpop.f32.mrb[28].mxu0 }
 0x38f   :  { %v2969_v7 = vadd.f32 %v2965_v59, %v2866_v4  ;;  %v2967_v42 = vpop.f32.mrb[29].mxu0 }
 0x391   :  { %v3072_v18 = vadd.f32 %v3068_v5, %v2969_v7 }
 0x3bd   :  { %v3274_v11 = vpop.f32.mrb[30].mxu1 }
 0x3be   :  { %v3276_v40 = vpop.f32.mrb[31].mxu1 }
 0x3c0   :  { %v3171_v46 = vpop.f32.mrb[30].mxu0 }
 0x3c1   :  { %v3175_v27 = vadd.f32 %v3171_v46, %v3072_v18  ;;  %v3173_v35 = vpop.f32.mrb[31].mxu0 }
 0x3c3   :  { %v3278_v9 = vadd.f32 %v3274_v11, %v3175_v27 }
 0x3c5   :  { %v3286_v10 = vadd.f32 %v4202_v26, %v3278_v9 }
 0x3c7   :  { %v3287_v63 = vmax.f32 %v3286_v10, 0.0 }
 0x3c9   :  { %4267 = vmatmul.mubr.msk.f32.vlgmr.msra.gmra.mrb[32].mxu0 %vm3310_vm5, %v3287_v63 }
 0x49c   :  { %v3380_v20 = vpop.f32.mrb[32].mxu0 }
 0x49d   :  { %v3381_v61 = vadd.f32 %v4203_v37, %v3380_v20  ;;  %v4268_v12 = vpop.f32.mrb[33].mxu0 }
 0x49f   :  { %v3384_v38 = vmax.f32 %v3381_v61, 0.0 }
 0x4a1   :  { %4292 = vmatmul.mubr.msk.f32.vlgmr.msra.gmra.mrb[32].mxu1 %vm3403_vm7, %v3384_v38 }
 0x574   :  { %v3477_v28 = vpop.f32.mrb[32].mxu1 }
 0x575   :  { %v3478_v51 = vadd.f32 %v4205_v34, %v3477_v28  ;;  %v4293_v29 = vpop.f32.mrb[33].mxu1 }
 0x577   :  { %3482 = vst.msk [vmem:[#allocation2] sm:$0x3] %vm3481_vm8, %v3478_v51 }
 0x578   :  { %5212 = shalt.err (!%p5209_p4)
}
 0x579   :  { %s5213_s30 = scalar_lea.hbm %s8361_s9, 32 }
 0x57a   :  { %p5214_p5 = scmp.ne.s32.totalorder %s8361_s9, %s5213_s30  ;;  %p5217_p6 = scmp.lt.u32.totalorder %s5213_s30, %s8361_s9 }
 0x57c   :  { %p5219_p7 = pnand %p5217_p6, %p5214_p5 }
 0x57e   :  { %5222 = shalt.err (!%p5219_p7)
}
 0x57f   :  { %3492 = dma.vmem_to_hbm [thread:$0]  %s3490_s28, 32, %s8361_s9, [#allocation3]  }
 0x580   :  { %5223 = dma.done.wait [#allocation3], 32  }
 0x581   :  { %5224 = vsyncadd [#allocation3], 4294967264 }
 0x582   :  { %3496 = vsyncpa [#allocation3], 1 }

</bundles_post_ra>
